<compile_context>
chip_gen: v7x
topology: tpu7x:2x2x1
jax: 0.10.0
libtpu: 0.0.40
codegen_flags: <defaults>
</compile_context>

<pallas_src>
import math

import jax
import jax.numpy as jnp
from jax import lax
from jax.experimental import pallas as pl
from jax.experimental.pallas import tpu as pltpu

D_IN, D_H1, D_H2, D_OUT = 4096, 512, 32, 1


def _pred_head_kernel(x_ref, w1_ref, b1_ref, w2t_ref, b2_ref, w3_ref, b3_ref, o_ref):
    # Layer 1 (MXU, bf16 operands, f32 accumulate): (tm, 4096) @ (4096, 512).
    # Cast the f32 x tile to bf16 here (VPU) instead of in a separate XLA pass.
    x_bf = x_ref[...].astype(jnp.bfloat16)
    h1 = jnp.dot(x_bf, w1_ref[...], preferred_element_type=jnp.float32)     # (tm, 512) f32
    h1 = jnp.maximum(h1 + b1_ref[...], 0.0)                                  # (1,512) bias broadcasts
    # Dropout(p=0.6) -> identity in eval mode.

    # Layer 2, transposed & in f32 (tiny FLOPs): (32, 512) x (tm, 512) contracting K=512
    # -> h2_t of shape (32, tm), fully lane-dense.
    h2t = lax.dot_general(
        w2t_ref[...], h1,
        dimension_numbers=(((1,), (1,)), ((), ())),
        preferred_element_type=jnp.float32,
    )                                                                        # (32, tm)
    h2t = jnp.maximum(h2t + b2_ref[...], 0.0)                                # b2: (32,1) broadcasts over lanes
    # Dropout(p=0.6) -> identity in eval mode.

    # Layer 3 (K=32, N=1): VPU multiply + sublane reduce, no MXU, no transpose.
    logits = jnp.sum(h2t * w3_ref[...], axis=0, keepdims=True)               # (1, tm) f32
    o_ref[0] = jax.nn.sigmoid(logits + b3_ref[...]).astype(o_ref.dtype)      # lane-dense store


def _pick_tm(batch):
    # Bigger tiles amortize per-step pipeline overhead; keep >= ~8 grid steps
    # (>= 4 per TC on v7x) for DMA/compute overlap; cap at 512 for v7x VMEM.
    tm = 512
    while tm > 128 and pl.cdiv(batch, tm) < 8:
        tm //= 2
    return tm


def pred_head(x, w1, b1, w2, b2, w3, b3, *, tm=None):
    B = x.shape[0]
    if tm is None:
        tm = _pick_tm(B)
    num_tiles = pl.cdiv(B, tm)
    b_pad = num_tiles * tm
    if b_pad != B:
        # Remainder tile only; common case (B % tm == 0) does no copy.
        x = jnp.pad(x, ((0, b_pad - B), (0, 0)))

    # x stays f32 (cast to bf16 inside the kernel); W1 in bf16 halves its
    # HBM/VMEM footprint. Layers 2-3 stay f32.
    w1_bf = w1.astype(jnp.bfloat16)
    w2_t = jnp.transpose(w2.astype(jnp.float32))          # (32, 512)
    w3_col = w3.reshape(D_H2, D_OUT).astype(jnp.float32)  # (32, 1)
    b1 = b1.reshape(1, D_H1).astype(jnp.float32)
    b2_col = b2.reshape(D_H2, 1).astype(jnp.float32)      # (32, 1)
    b3 = b3.reshape(1, D_OUT).astype(jnp.float32)         # (1, 1)

    full = lambda shape: pl.BlockSpec(shape, lambda i: (0, 0))

    out = pl.pallas_call(
        _pred_head_kernel,
        # Lane-dense output: one (1, tm) row per grid step.
        out_shape=jax.ShapeDtypeStruct((num_tiles, 1, tm), jnp.float32),
        grid_spec=pltpu.PrefetchScalarGridSpec(
            num_scalar_prefetch=0,
            grid=(num_tiles,),
            in_specs=[
                pl.BlockSpec((tm, D_IN), lambda i: (i, 0)),  # x batch tile (f32)
                full((D_IN, D_H1)),                          # W1 (bf16, VMEM-resident: 4 MiB)
                full((1, D_H1)),                             # b1
                full((D_H2, D_H1)),                          # W2^T  (32, 512)
                full((D_H2, 1)),                             # b2    (32, 1)
                full((D_H2, D_OUT)),                         # W3    (32, 1)
                full((1, D_OUT)),                            # b3    (1, 1)
            ],
            out_specs=pl.BlockSpec((1, 1, tm), lambda i: (i, 0, 0)),
        ),
        compiler_params=pltpu.CompilerParams(
            dimension_semantics=("parallel",),               # batch axis shards across TCs (v7x)
            vmem_limit_bytes=48 * 1024 * 1024,               # actual use ~26 MiB at tm=512
        ),
    )(x, w1_bf, b1, w2_t, b2_col, w3_col, b3)

    return out.reshape(b_pad, 1)[:B]


def _xavier_normal(key, fan_in, fan_out):
    std = math.sqrt(2.0 / (fan_in + fan_out))
    return jax.random.normal(key, (fan_in, fan_out), dtype=jnp.float32) * std


def _reference(x, w1, b1, w2, b2, w3, b3):
    h1 = jnp.maximum(x @ w1 + b1.reshape(1, -1), 0.0)
    h2 = jnp.maximum(h1 @ w2 + b2.reshape(1, -1), 0.0)
    return jax.nn.sigmoid(h2 @ w3 + b3.reshape(1, -1))


if __name__ == "__main__":
    key = jax.random.PRNGKey(0)
    kx, k1, k2, k3, kb1, kb2, kb3 = jax.random.split(key, 7)

    B = 256  # small batch; feature sizes are fixed by the module (4096 -> 512 -> 32 -> 1)
    x = jax.random.normal(kx, (B, D_IN), dtype=jnp.float32)

    w1 = _xavier_normal(k1, D_IN, D_H1)
    b1 = 0.1 * jax.random.normal(kb1, (1, D_H1), dtype=jnp.float32)
    w2 = _xavier_normal(k2, D_H1, D_H2)
    b2 = 0.1 * jax.random.normal(kb2, (1, D_H2), dtype=jnp.float32)
    w3 = _xavier_normal(k3, D_H2, D_OUT)
    b3 = 0.1 * jax.random.normal(kb3, (1, D_OUT), dtype=jnp.float32)

    out = pred_head(x, w1, b1, w2, b2, w3, b3)
    out = jax.block_until_ready(out)

    ref = _reference(x, w1, b1, w2, b2, w3, b3)
    assert out.shape == (B, 1), out.shape
    max_err = float(jnp.max(jnp.abs(out - ref)))
    assert jnp.allclose(out, ref, atol=2e-2, rtol=2e-2), f"mismatch vs reference (max abs err {max_err})"

    print("KERNEL_OK")
</pallas_src>

<mosaic_0001>
module attributes {stable_mosaic.version = 11 : i64} {
  func.func @_pred_head_kernel(%arg0: i32, %arg1: memref<128x4096xf32, #tpu.memory_space<vmem>>, %arg2: memref<4096x512xbf16, #tpu.memory_space<vmem>>, %arg3: memref<1x512xf32, #tpu.memory_space<vmem>>, %arg4: memref<32x512xf32, #tpu.memory_space<vmem>>, %arg5: memref<32x1xf32, #tpu.memory_space<vmem>>, %arg6: memref<32x1xf32, #tpu.memory_space<vmem>>, %arg7: memref<1x1xf32, #tpu.memory_space<vmem>>, %arg8: memref<1x1x128xf32, #tpu.memory_space<vmem>>) attributes {dimension_semantics = [#tpu.dimension_semantics<parallel>], iteration_bounds = array<i64: 2>, scalar_prefetch = 0 : i64, scratch_operands = 0 : i64, tpu.core_type = #tpu.core_type<tc>, window_params = [{transform_indices = @transform_0, window_bounds = array<i64: 128, 4096>}, {pipeline_mode = #tpu.pipeline_mode<synchronous>, transform_indices = @transform_1, window_bounds = array<i64: 4096, 512>}, {pipeline_mode = #tpu.pipeline_mode<synchronous>, transform_indices = @transform_2, window_bounds = array<i64: 1, 512>}, {pipeline_mode = #tpu.pipeline_mode<synchronous>, transform_indices = @transform_3, window_bounds = array<i64: 32, 512>}, {pipeline_mode = #tpu.pipeline_mode<synchronous>, transform_indices = @transform_4, window_bounds = array<i64: 32, 1>}, {pipeline_mode = #tpu.pipeline_mode<synchronous>, transform_indices = @transform_5, window_bounds = array<i64: 32, 1>}, {pipeline_mode = #tpu.pipeline_mode<synchronous>, transform_indices = @transform_6, window_bounds = array<i64: 1, 1>}, {transform_indices = @transform_7, window_bounds = array<i64: 1, 1, 128>}]} {
    %c0 = arith.constant 0 : index
    %c0_0 = arith.constant 0 : index
    %0 = vector.load %arg1[%c0, %c0_0] : memref<128x4096xf32, #tpu.memory_space<vmem>>, vector<128x4096xf32>
    %1 = arith.truncf %0 : vector<128x4096xf32> to vector<128x4096xbf16>
    %c0_1 = arith.constant 0 : index
    %c0_2 = arith.constant 0 : index
    %2 = vector.load %arg2[%c0_1, %c0_2] : memref<4096x512xbf16, #tpu.memory_space<vmem>>, vector<4096x512xbf16>
    %cst = arith.constant dense<0.000000e+00> : vector<128x512xf32>
    %3 = tpu.matmul %1, %2, %cst {dimension_numbers = #tpu.dot_dimension_numbers<[1], [0], [0], [1], [0, 0, 1, 1], [], []>} : vector<128x4096xbf16>, vector<4096x512xbf16>, vector<128x512xf32> -> vector<128x512xf32>
    %c0_3 = arith.constant 0 : index
    %c0_4 = arith.constant 0 : index
    %4 = vector.load %arg3[%c0_3, %c0_4] : memref<1x512xf32, #tpu.memory_space<vmem>>, vector<1x512xf32>
    %5 = vector.broadcast %4 : vector<1x512xf32> to vector<128x512xf32>
    %6 = arith.addf %3, %5 : vector<128x512xf32>
    %cst_5 = arith.constant 0.000000e+00 : f32
    %7 = vector.broadcast %cst_5 : f32 to vector<128x512xf32>
    %8 = arith.maximumf %6, %7 : vector<128x512xf32>
    %c0_6 = arith.constant 0 : index
    %c0_7 = arith.constant 0 : index
    %9 = vector.load %arg4[%c0_6, %c0_7] : memref<32x512xf32, #tpu.memory_space<vmem>>, vector<32x512xf32>
    %cst_8 = arith.constant dense<0.000000e+00> : vector<32x128xf32>
    %10 = tpu.matmul %9, %8, %cst_8 {dimension_numbers = #tpu.dot_dimension_numbers<[1], [1], [0], [0], [0, 0, 1, 0], [], []>} : vector<32x512xf32>, vector<128x512xf32>, vector<32x128xf32> -> vector<32x128xf32>
    %c0_9 = arith.constant 0 : index
    %c0_10 = arith.constant 0 : index
    %11 = vector.load %arg5[%c0_9, %c0_10] : memref<32x1xf32, #tpu.memory_space<vmem>>, vector<32x1xf32>
    %12 = vector.broadcast %11 : vector<32x1xf32> to vector<32x128xf32>
    %13 = arith.addf %10, %12 : vector<32x128xf32>
    %cst_11 = arith.constant 0.000000e+00 : f32
    %14 = vector.broadcast %cst_11 : f32 to vector<32x128xf32>
    %15 = arith.maximumf %13, %14 : vector<32x128xf32>
    %c0_12 = arith.constant 0 : index
    %c0_13 = arith.constant 0 : index
    %16 = vector.load %arg6[%c0_12, %c0_13] : memref<32x1xf32, #tpu.memory_space<vmem>>, vector<32x1xf32>
    %17 = vector.broadcast %16 : vector<32x1xf32> to vector<32x128xf32>
    %18 = arith.mulf %15, %17 : vector<32x128xf32>
    %cst_14 = arith.constant dense<0.000000e+00> : vector<128xf32>
    %19 = vector.multi_reduction <add>, %18, %cst_14 [0] : vector<32x128xf32> to vector<128xf32>
    %20 = vector.shape_cast %19 : vector<128xf32> to vector<1x128xf32>
    %c0_15 = arith.constant 0 : index
    %c0_16 = arith.constant 0 : index
    %21 = vector.load %arg7[%c0_15, %c0_16] : memref<1x1xf32, #tpu.memory_space<vmem>>, vector<1x1xf32>
    %22 = vector.broadcast %21 : vector<1x1xf32> to vector<1x128xf32>
    %23 = arith.addf %20, %22 : vector<1x128xf32>
    %24 = arith.negf %23 : vector<1x128xf32>
    %25 = math.exp %24 : vector<1x128xf32>
    %cst_17 = arith.constant 1.000000e+00 : f32
    %26 = vector.broadcast %cst_17 : f32 to vector<1x128xf32>
    %27 = arith.addf %26, %25 : vector<1x128xf32>
    %28 = arith.divf %26, %27 : vector<1x128xf32>
    %c0_18 = arith.constant 0 : index
    %c0_19 = arith.constant 0 : index
    %c0_20 = arith.constant 0 : index
    %29 = vector.load %arg8[%c0_18, %c0_19, %c0_20] : memref<1x1x128xf32, #tpu.memory_space<vmem>>, vector<1x1x128xf32>
    %30 = vector.shape_cast %29 : vector<1x1x128xf32> to vector<1x128xf32>
    %31 = vector.shape_cast %28 : vector<1x128xf32> to vector<1x1x128xf32>
    tpu.vector_store %arg8[%c0_18, %c0_19, %c0_20], %31 {strides = array<i32>} : memref<1x1x128xf32, #tpu.memory_space<vmem>>, vector<1x1x128xf32>,
    return
  }
  func.func @transform_0(%arg0: i32) -> (i32, i32) {
    %c0_i32 = arith.constant 0 : i32
    %c0_i32_0 = arith.constant 0 : i32
    return %arg0, %c0_i32 : i32, i32
  }
  func.func @transform_1(%arg0: i32) -> (i32, i32) {
    %c0_i32 = arith.constant 0 : i32
    %c0_i32_0 = arith.constant 0 : i32
    %c0_i32_1 = arith.constant 0 : i32
    return %c0_i32, %c0_i32_0 : i32, i32
  }
  func.func @transform_2(%arg0: i32) -> (i32, i32) {
    %c0_i32 = arith.constant 0 : i32
    %c0_i32_0 = arith.constant 0 : i32
    %c0_i32_1 = arith.constant 0 : i32
    return %c0_i32, %c0_i32_0 : i32, i32
  }
  func.func @transform_3(%arg0: i32) -> (i32, i32) {
    %c0_i32 = arith.constant 0 : i32
    %c0_i32_0 = arith.constant 0 : i32
    %c0_i32_1 = arith.constant 0 : i32
    return %c0_i32, %c0_i32_0 : i32, i32
  }
  func.func @transform_4(%arg0: i32) -> (i32, i32) {
    %c0_i32 = arith.constant 0 : i32
    %c0_i32_0 = arith.constant 0 : i32
    %c0_i32_1 = arith.constant 0 : i32
    return %c0_i32, %c0_i32_0 : i32, i32
  }
  func.func @transform_5(%arg0: i32) -> (i32, i32) {
    %c0_i32 = arith.constant 0 : i32
    %c0_i32_0 = arith.constant 0 : i32
    %c0_i32_1 = arith.constant 0 : i32
    return %c0_i32, %c0_i32_0 : i32, i32
  }
  func.func @transform_6(%arg0: i32) -> (i32, i32) {
    %c0_i32 = arith.constant 0 : i32
    %c0_i32_0 = arith.constant 0 : i32
    %c0_i32_1 = arith.constant 0 : i32
    return %c0_i32, %c0_i32_0 : i32, i32
  }
  func.func @transform_7(%arg0: i32) -> (i32, i32, i32) {
    %c0_i32 = arith.constant 0 : i32
    %c0_i32_0 = arith.constant 0 : i32
    %c0_i32_1 = arith.constant 0 : i32
    return %arg0, %c0_i32, %c0_i32_0 : i32, i32, i32
  }
}

</mosaic_0001>

<bundles_post_ra>
// kernel: tpu_custom_call.1
= control target key start
LH: loop header
LB: loop body
LE: loop exit
PB: predicated region body
PF: predicated region fallthrough
CT: control target
= control target key end

     0   :  { %s16224_s0 = inlined_call_operand.hbm [shape: f32[256,4096], index: 0, kind: input, shape index: {}]   ;;  %s16225_s1 = inlined_call_operand.hbm [shape: bf16[4096,512], index: 1, kind: input, shape index: {}]   ;;  %s16226_s2 = inlined_call_operand.hbm [shape: f32[1,512], index: 2, kind: input, shape index: {}]   ;;  %s16227_s3 = inlined_call_operand.hbm [shape: f32[32,512], index: 3, kind: input, shape index: {}]   ;;  %s16228_s4 = inlined_call_operand.vmem [shape: f32[32,1], index: 4, kind: input, shape index: {}]   ;;  %s16229_s5 = inlined_call_operand.vmem [shape: f32[32,1], index: 5, kind: input, shape index: {}]   ;;  %s16230_s6 = inlined_call_operand.<no memory space> [shape: f32[1,1], index: 6, kind: input, shape index: {}]   ;;  %s16231_s7 = inlined_call_operand.hbm [shape: f32[2,1,128], index: 7, kind: output, shape index: {}]  }
   0x1   :  { %v12_v0 = vstv %s16230_s6 }
   0x2   :  { %13 = vst [vmem:[#allocation2] sm:$0x1] %v12_v0 }
   0x3   :  { %14 = vsyncpa [#allocation4], 0 }
   0x4   :  { %16 = vsyncpa [#allocation4 + $0x1], 0 }
   0x5   :  { %17 = vsyncpa [#allocation7], 0 }
   0x6   :  { %18 = vsyncpa [#allocation10], 0 }
   0x7   :  { %19 = vsyncpa [#allocation5], 0 }
   0x8   :  { %21 = vsyncpa [#allocation5 + $0x1], 0  ;;  %s15343_s26 = smov 0   ;;  %s15345_s27 = smov 0  }
   0x9   :  { %s15347_s28 = smov 0   ;;  %s15349_s29 = smov 0  }
   0xa LB: > { %s15364_s6 = sadd.s32 4294967295, %s15287_s29   ;;  %s11333_s30 = sadd.s32 4294967294, %s15287_s29   ;;  %s15287_s29 = sphi %s15349_s29, %s16254_s29   ;;  %s15283_s28 = sphi %s15347_s28, %s16253_s28   ;;  %s15279_s27 = sphi %s15345_s27, %s16252_s27   ;;  %s15275_s26 = sphi %s15343_s26, %s16251_s26  }
   0xb   : > { %p47_p0 = scmp.ne.s32.totalorder %s15279_s27, %s15275_s26  ;;  %p16232_p1 = scmp.eq.s32.totalorder %s15364_s6, 0 }
   0xc   : > { %p203_p3 = scmp.eq.s32.totalorder %s11333_s30, 1  ;;  %p11334_p5 = scmp.ge.s32.totalorder %s15287_s29, 1 }
   0xd   : > { %p15373_p4 = por %p16232_p1, %p47_p0  ;;  %p210_p7 = scmp.lt.s32.totalorder %s15287_s29, 3 }
   0xe   : > { %p15378_p6 = por %p203_p3, %p47_p0  ;;  %s15289_s11 = smov [#allocation6]  }
   0xf   : > { %s16235_s8 = scalar_select %p15373_p4, 1, 0 }
  0x10   : > { %s16236_s9 = scalar_select %p15378_p6, 1, 0 }
  0x11   : > { %p15383_p8 = pnand %p11334_p5, %p210_p7  ;;  %s222_s12 = sshll.u32 %s15289_s11, 4  ;;  %s15387_s12 = int_to_ptr.vmem [resolvable:$true] %s222_s12 }
  0x12   : > { %s15290_s14 = smov [#allocation8]   ;;  %s15291_s16 = smov [#allocation9]  }
  0x13   : > { %s16237_s10 = scalar_select %p15383_p8, 1, 0 }
  0x14   : > { %p13490_p9 = pneg %p15383_p8  ;;  %s236_s15 = sshll.u32 %s15290_s14, 4  ;;  %s15398_s15 = int_to_ptr.vmem [resolvable:$true] %s236_s15 }
  0x15   : > { %s15400_s17 = sshll.u32 %s15291_s16, 4  ;;  %s15099_s20 = scalar_lea.hbm %s16225_s1, 131072  ;;  %s247_s17 = int_to_ptr.vmem [resolvable:$true] %s15400_s17 }
  0x16   : > { %p15394_p11 = pnand %p13490_p9, %p16232_p1  ;;  %p15100_p12 = scmp.ne.s32.totalorder %s16225_s1, %s15099_s20 }
  0x17   : > { %p15106_p5 = scmp.lt.u32.totalorder %s15099_s20, %s16225_s1 }
  0x18   : > { %p15410_p13 = pneg %p15394_p11 }
  0x1a   : > { %p15102_p0 = pnand %p15410_p13, %p15100_p12 }
  0x1c   : > { %p15103_p3 = pneg %p15102_p0 }
  0x1e   : > { %p15108_p7 = pnand %p15106_p5, %p15103_p3 }
  0x20   : > { %15111 = shalt.err (!%p15108_p7)
}
  0x21   : > { %s15112_s30 = scalar_lea.vmem %s15387_s12, 131072  ;;  %p15120_p2 = scmp.lt.s32.totalorder %s15387_s12, %s15387_s12 }
  0x22   : > { %p15113_p9 = scmp.ne.s32.totalorder %s15387_s12, %s15112_s30  ;;  %p15121_p6 = scmp.lt.s32.totalorder %s15112_s30, %s15112_s30 }
  0x24   : > { %p15115_p10 = pnand %p15113_p9, %p15410_p13  ;;  %p15122_p12 = por %p15121_p6, %p15120_p2 }
  0x26   : > { %p15116_p1 = pneg %p15115_p10 }
  0x28   : > { %p15123_p0 = pnand %p15122_p12, %p15116_p1 }
  0x2a   : > { %15126 = shalt.err (!%p15123_p0)
}
  0x2b   : > { %s15292_s11 = smov 256   ;;  %s15293_s14 = smov 16  }
  0x2c   : > { %13493 = dma.hbm_to_vmem [thread:$0]  (!%p15394_p11), %s16225_s1, 131072, %s15387_s12, [#allocation7], %s15292_s11, %s15292_s11, %s15293_s14  }
  0x2d   : > { %s15127_s21 = scalar_lea.hbm %s16226_s2, 64 }
  0x2e   : > { %p15128_p1 = scmp.ne.s32.totalorder %s16226_s2, %s15127_s21  ;;  %p15134_p10 = scmp.lt.u32.totalorder %s15127_s21, %s16226_s2 }
  0x30   : > { %p15130_p2 = pnand %p15128_p1, %p15410_p13 }
  0x32   : > { %p15131_p6 = pneg %p15130_p2 }
  0x34   : > { %p15136_p3 = pnand %p15134_p10, %p15131_p6 }
  0x36   : > { %15139 = shalt.err (!%p15136_p3)
}
  0x37   : > { %s15140_s12 = scalar_lea.vmem %s15398_s15, 64  ;;  %p15148_p12 = scmp.lt.s32.totalorder %s15398_s15, %s15398_s15 }
  0x38   : > { %p15141_p5 = scmp.ne.s32.totalorder %s15398_s15, %s15140_s12  ;;  %p15149_p0 = scmp.lt.s32.totalorder %s15140_s12, %s15140_s12 }
  0x3a   : > { %p15143_p7 = pnand %p15141_p5, %p15410_p13  ;;  %p15150_p1 = por %p15149_p0, %p15148_p12 }
  0x3c   : > { %p15144_p9 = pneg %p15143_p7 }
  0x3e   : > { %p15151_p2 = pnand %p15150_p1, %p15144_p9 }
  0x40   : > { %15154 = shalt.err (!%p15151_p2)
}
  0x41   : > { %13496 = dma.hbm_to_vmem [thread:$0]  (!%p15394_p11), %s16226_s2, 64, %s15398_s15, [#allocation7]  }
  0x42   : > { %s15155_s20 = scalar_lea.hbm %s16227_s3, 2048 }
  0x43   : > { %p15156_p6 = scmp.ne.s32.totalorder %s16227_s3, %s15155_s20  ;;  %p15162_p5 = scmp.lt.u32.totalorder %s15155_s20, %s16227_s3 }
  0x45   : > { %p15158_p10 = pnand %p15156_p6, %p15410_p13 }
  0x47   : > { %p15159_p3 = pneg %p15158_p10 }
  0x49   : > { %p15164_p7 = pnand %p15162_p5, %p15159_p3 }
  0x4b   : > { %15167 = shalt.err (!%p15164_p7)
}
  0x4c   : > { %s15168_s30 = scalar_lea.vmem %s247_s17, 2048  ;;  %p15176_p1 = scmp.lt.s32.totalorder %s247_s17, %s247_s17 }
  0x4d   : > { %p15169_p9 = scmp.ne.s32.totalorder %s247_s17, %s15168_s30  ;;  %p15177_p2 = scmp.lt.s32.totalorder %s15168_s30, %s15168_s30 }
  0x4f   : > { %p15171_p12 = pnand %p15169_p9, %p15410_p13  ;;  %p15178_p4 = por %p15177_p2, %p15176_p1 }
  0x51   : > { %p15172_p0 = pneg %p15171_p12 }
  0x53   : > { %p15179_p8 = pnand %p15178_p4, %p15172_p0 }
  0x55   : > { %15182 = shalt.err (!%p15179_p8)
}
  0x56   : > { %s15294_s15 = smov 512   ;;  %s15295_s23 = smov 32  }
  0x57   : > { %13499 = dma.hbm_to_vmem [thread:$0]  (!%p15394_p11), %s16227_s3, 2048, %s247_s17, [#allocation10], %s15294_s15, %s15294_s15, %s15295_s23  }
  0x58   : > { %s15476_s16 = sadd.s32 1, %s15287_s29   ;;  %s34_s19 = sadd.s32 1, %s15283_s28 }
  0x59   : > { %s31_s18 = ssub.s32 %s15287_s29, %s15476_s16  ;;  %p41_p8 = scmp.ne.s32.totalorder %s15283_s28, %s15279_s27 }
  0x5a   : > { %p32_p4 = scmp.eq.s32.totalorder %s31_s18, 0  ;;  %p42_p13 = scmp.eq.s32.totalorder %s15287_s29, 0 }
  0x5b   : > { %p13511_p6 = scmp.lt.s32.totalorder %s15287_s29, 2  ;;  %p16240_p3 = scmp.eq.s32.totalorder %s15364_s6, 1 }
  0x5c   : > { %s15486_s20 = scalar_select %p32_p4, %s15283_s28, %s34_s19  }
  0x5d   : > { %p43_p10 = por %p42_p13, %p41_p8  ;;  %p15490_p5 = por %p16240_p3, %p41_p8 }
  0x5e   : > { %s269_s13 = sand.u32 1, %s15283_s28   ;;  %s12377_s22 = sshll.u32 %s15287_s29, 16 }
  0x5f   : > { %s11339_s17 = sshll.u32 %s269_s13, 12  ;;  %s15499_s30 = scalar_lea.hbm %s16224_s0, %s12377_s22 }
  0x60   : > { %s273_s15 = scalar_lea.vmem [#allocation3], %s11339_s17  ;;  %p15501_p11 = pnand %p13511_p6, %p43_p10 }
  0x61   : > { %s281_s23 = sshll.u32 %s273_s15, 4  ;;  %s15507_s14 = scalar_lea.sflag [#allocation4], %s269_s13  ;;  %s15505_s23 = int_to_ptr.vmem [resolvable:$true] %s281_s23 }
  0x62   : > { %s15183_s18 = scalar_lea.hbm %s15499_s30, 65536  ;;  %p15185_p9 = pneg %p15501_p11 }
  0x63   : > { %p15184_p7 = scmp.ne.s32.totalorder %s15499_s30, %s15183_s18  ;;  %s15188_s17 = scalar_lea.hbm %s16224_s0, 131072 }
  0x64   : > { %p15189_p1 = scmp.lt.u32.totalorder %s15499_s30, %s16224_s0  ;;  %p15190_p2 = scmp.lt.u32.totalorder %s15188_s17, %s15183_s18 }
  0x65   : > { %p15186_p12 = pnand %p15185_p9, %p15184_p7  ;;  %p15192_p8 = scmp.lt.u32.totalorder %s15183_s18, %s15499_s30 }
  0x66   : > { %p15191_p4 = por %p15190_p2, %p15189_p1 }
  0x67   : > { %p15187_p0 = pneg %p15186_p12 }
  0x68   : > { %p15193_p13 = por %p15192_p8, %p15191_p4 }
  0x6a   : > { %p15194_p6 = pnand %p15193_p13, %p15187_p0 }
  0x6c   : > { %15197 = shalt.err (!%p15194_p6)
}
  0x6d   : > { %s15198_s13 = scalar_lea.vmem %s15505_s23, 65536  ;;  %s15296_s15 = smov [#allocation3]  }
  0x6e   : > { %p15199_p10 = scmp.ne.s32.totalorder %s15505_s23, %s15198_s13  ;;  %s15203_s19 = sshll.u32 %s15296_s15, 4  ;;  %s15204_s19 = int_to_ptr.vmem [resolvable:$false] %s15203_s19 }
  0x6f   : > { %s15205_s22 = scalar_lea.vmem %s15204_s19, 131072  ;;  %p15206_p12 = scmp.lt.s32.totalorder %s15505_s23, %s15204_s19 }
  0x70   : > { %p15201_p3 = pnand %p15199_p10, %p15185_p9  ;;  %p15207_p1 = scmp.lt.s32.totalorder %s15205_s22, %s15198_s13 }
  0x72   : > { %p15202_p7 = pneg %p15201_p3  ;;  %p15208_p2 = por %p15207_p1, %p15206_p12 }
  0x74   : > { %p15209_p4 = pnand %p15208_p2, %p15202_p7 }
  0x76   : > { %15212 = shalt.err (!%p15209_p4)
}
  0x77   : > { %s15297_s18 = smov 4096   ;;  %p16243_p9 = scmp.ne.s32.totalorder %s16237_s10, 0 }
  0x78   : > { %13503 = dma.hbm_to_vmem [thread:$0]  (!%p15501_p11), %s15499_s30, 65536, %s15505_s23, %s15507_s14, %s15297_s18, %s15297_s18, %s15292_s11  }
  0x79   : > { %293 = sbr.rel (%p16243_p9) target bundleno = 1734 (0x6c6), region = 48  ;;  %s15539_s17 = sand.u32 (!%p16243_p9), 1, %s15279_s27  }
  0x7a   : > { %s11344_s24 = sshll.u32 (!%p16243_p9), %s15539_s17, 12  ;;  %s296_s25 = scalar_lea.sflag (!%p16243_p9), [#allocation4], %s15539_s17 }
  0x7b   : > { %s15543_s13 = scalar_lea.vmem (!%p16243_p9), [#allocation3], %s11344_s24  ;;  %p16244_p0 = scmp.ne.s32.totalorder (!%p16243_p9), %s16235_s8, 0 }
  0x80   : > { %15258 = dma.done.wait (%p16244_p0), %s296_s25, 65536  }
  0x81   : > { %15260 = vsyncadd (%p16244_p0), %s296_s25, 4294901760  ;;  %p16245_p11 = scmp.eq.s32.totalorder %s15364_s6, 0 }
  0x83   : > { %15262 = dma.done.wait (%p16245_p11), [#allocation7], 131136   ;;  %p16246_p8 = pmov %p16245_p11 }
  0x85   : > { %15264 = vsyncadd (%p16246_p8), [#allocation7], 4294836160  ;;  %p16247_p13 = pmov %p16246_p8 }
  0x86   : > { %p16248_p6 = pmov %p16246_p8 }
  0x87   : > { %15266 = dma.done.wait (%p16247_p13), [#allocation10], 2048  }
  0x88   : > { %15268 = vsyncadd (%p16248_p6), [#allocation10], 4294965248  ;;  %v13559_v1 = vld [vmem:[#allocation6 + $0x4] ss:$16 sps:$4 sm:$0xff]   ;;  %v13561_v2 = vld [vmem:[#allocation6 + $0xc] ss:$16 sps:$4 sm:$0xff]  }
  0x89   : > { %7276 = vmatprep.subr.bf16.mxu0 %v13559_v1  ;;  %v13563_v3 = vld [vmem:[#allocation6] ss:$16 sps:$4 sm:$0xff]   ;;  %v13564_v4 = vld [vmem:[#allocation6 + $0x8] ss:$16 sps:$4 sm:$0xff]   ;;  %9084 = vmatprep.subr.bf16.mxu1 %v13561_v2  ;;  %v13565_v5 = vld [vmem:[#allocation6 + $0x24] ss:$16 sps:$4 sm:$0xff]  }
  0x8a   : > { %7277 = vmatpush1.bf16.msra.mxu0 %v13563_v3  ;;  %9085 = vmatpush1.bf16.msra.mxu1 %v13564_v4  ;;  %v13567_v6 = vld [vmem:[#allocation6 + $0x2c] ss:$16 sps:$4 sm:$0xff]   ;;  %v13569_v7 = vld [vmem:[#allocation6 + $0x20] ss:$16 sps:$4 sm:$0xff]   ;;  %v13570_v8 = vld [vmem:[#allocation6 + $0x28] ss:$16 sps:$4 sm:$0xff]  }
  0x8b   : > { %7278 = vmatprep.subr.bf16.mxu0 %v13565_v5  ;;  %9086 = vmatprep.subr.bf16.mxu1 %v13567_v6  ;;  %v13571_v9 = vld [vmem:[#allocation6 + $0x44] ss:$16 sps:$4 sm:$0xff]   ;;  %v13573_v10 = vld [vmem:[#allocation6 + $0x4c] ss:$16 sps:$4 sm:$0xff]   ;;  %v13575_v11 = vld [vmem:[#allocation6 + $0x40] ss:$16 sps:$4 sm:$0xff]  }
  0x8c   : > { %v13576_v12 = vld [vmem:[#allocation6 + $0x48] ss:$16 sps:$4 sm:$0xff]   ;;  %v13577_v13 = vld [vmem:[#allocation6 + $0x64] ss:$16 sps:$4 sm:$0xff]   ;;  %v13579_v14 = vld [vmem:[#allocation6 + $0x6c] ss:$16 sps:$4 sm:$0xff]  }
  0x8d   : > { %v13581_v15 = vld [vmem:[#allocation6 + $0x60] ss:$16 sps:$4 sm:$0xff]   ;;  %v13582_v16 = vld [vmem:[#allocation6 + $0x68] ss:$16 sps:$4 sm:$0xff]   ;;  %v13583_v17 = vld [vmem:[#allocation6 + $0x84] ss:$16 sps:$4 sm:$0xff]  }
  0x8e   : > { %7279 = vmatpush1.bf16.msra.mxu0 %v13569_v7  ;;  %9087 = vmatpush1.bf16.msra.mxu1 %v13570_v8  ;;  %v13585_v18 = vld [vmem:[#allocation6 + $0x8c] ss:$16 sps:$4 sm:$0xff]   ;;  %v13587_v19 = vld [vmem:[#allocation6 + $0x80] ss:$16 sps:$4 sm:$0xff]   ;;  %v13588_v20 = vld [vmem:[#allocation6 + $0x88] ss:$16 sps:$4 sm:$0xff]  }
  0x8f   : > { %7280 = vmatprep.subr.bf16.mxu0 %v13571_v9  ;;  %9088 = vmatprep.subr.bf16.mxu1 %v13573_v10  ;;  %v13589_v21 = vld [vmem:[#allocation6 + $0xa4] ss:$16 sps:$4 sm:$0xff]   ;;  %v13591_v22 = vld [vmem:[#allocation6 + $0xac] ss:$16 sps:$4 sm:$0xff]   ;;  %v13593_v23 = vld [vmem:[#allocation6 + $0xa0] ss:$16 sps:$4 sm:$0xff]  }
  0x90   : > { %v13594_v24 = vld [vmem:[#allocation6 + $0xa8] ss:$16 sps:$4 sm:$0xff]   ;;  %v13595_v25 = vld [vmem:[#allocation6 + $0xc4] ss:$16 sps:$4 sm:$0xff]   ;;  %v13597_v26 = vld [vmem:[#allocation6 + $0xcc] ss:$16 sps:$4 sm:$0xff]  }
  0x91   : > { %v13599_v27 = vld [vmem:[#allocation6 + $0xc0] ss:$16 sps:$4 sm:$0xff]   ;;  %v13600_v28 = vld [vmem:[#allocation6 + $0xc8] ss:$16 sps:$4 sm:$0xff]   ;;  %v13601_v29 = vld [vmem:[#allocation6 + $0xe4] ss:$16 sps:$4 sm:$0xff]  }
  0x92   : > { %7281 = vmatpush1.bf16.msra.mxu0 %v13575_v11  ;;  %9089 = vmatpush1.bf16.msra.mxu1 %v13576_v12  ;;  %v13603_v30 = vld [vmem:[#allocation6 + $0xec] ss:$16 sps:$4 sm:$0xff]   ;;  %v13605_v31 = vld [vmem:[#allocation6 + $0xe0] ss:$16 sps:$4 sm:$0xff]   ;;  %v13606_v32 = vld [vmem:[#allocation6 + $0xe8] ss:$16 sps:$4 sm:$0xff]  }
  0x93   : > { %7282 = vmatprep.subr.bf16.mxu0 %v13577_v13  ;;  %9090 = vmatprep.subr.bf16.mxu1 %v13579_v14  ;;  %v13607_v33 = vld [vmem:[#allocation6 + $0x104] ss:$16 sps:$4 sm:$0xff]   ;;  %v13609_v34 = vld [vmem:[#allocation6 + $0x10c] ss:$16 sps:$4 sm:$0xff]   ;;  %v13611_v35 = vld [vmem:[#allocation6 + $0x100] ss:$16 sps:$4 sm:$0xff]  }
  0x94   : > { %v13612_v36 = vld [vmem:[#allocation6 + $0x108] ss:$16 sps:$4 sm:$0xff]   ;;  %v13613_v37 = vld [vmem:[#allocation6 + $0x124] ss:$16 sps:$4 sm:$0xff]   ;;  %v13615_v38 = vld [vmem:[#allocation6 + $0x12c] ss:$16 sps:$4 sm:$0xff]  }
  0x95   : > { %v13617_v39 = vld [vmem:[#allocation6 + $0x120] ss:$16 sps:$4 sm:$0xff]   ;;  %v13618_v40 = vld [vmem:[#allocation6 + $0x128] ss:$16 sps:$4 sm:$0xff]   ;;  %v13619_v41 = vld [vmem:[#allocation6 + $0x144] ss:$16 sps:$4 sm:$0xff]  }
  0x96   : > { %7283 = vmatpush1.bf16.msra.mxu0 %v13581_v15  ;;  %9091 = vmatpush1.bf16.msra.mxu1 %v13582_v16  ;;  %v13621_v42 = vld [vmem:[#allocation6 + $0x14c] ss:$16 sps:$4 sm:$0xff]   ;;  %v13623_v43 = vld [vmem:[#allocation6 + $0x140] ss:$16 sps:$4 sm:$0xff]   ;;  %v13624_v44 = vld [vmem:[#allocation6 + $0x148] ss:$16 sps:$4 sm:$0xff]  }
  0x97   : > { %7284 = vmatprep.subr.bf16.mxu0 %v13583_v17  ;;  %9092 = vmatprep.subr.bf16.mxu1 %v13585_v18  ;;  %v13625_v45 = vld [vmem:[#allocation6 + $0x164] ss:$16 sps:$4 sm:$0xff]   ;;  %v13627_v46 = vld [vmem:[#allocation6 + $0x16c] ss:$16 sps:$4 sm:$0xff]   ;;  %v13629_v48 = vld [vmem:[#allocation6 + $0x160] ss:$16 sps:$4 sm:$0xff]  }
  0x98   : > { %v343_v47 = vld [vmem:[%s15543_s13 + $0x8] sm:$0xff]  ;;  %v13631_v51 = vld [vmem:[#allocation6 + $0x184] ss:$16 sps:$4 sm:$0xff]   ;;  %v13635_v54 = vld [vmem:[#allocation6 + $0x180] ss:$16 sps:$4 sm:$0xff]   ;;  %s12373_s11 = sshll.u32 %s15364_s6, 4 }
  0x99   : > { %v13630_v49 = vld [vmem:[#allocation6 + $0x168] ss:$16 sps:$4 sm:$0xff]   ;;  %v13633_v53 = vld [vmem:[#allocation6 + $0x18c] ss:$16 sps:$4 sm:$0xff]   ;;  %v13637_v56 = vld [vmem:[#allocation6 + $0x1a4] ss:$16 sps:$4 sm:$0xff]   ;;  %s16180_s15 = scalar_lea.hbm %s16231_s7, %s12373_s11 }
  0x9a   : > { %7285 = vmatpush1.bf16.msra.mxu0 %v13587_v19  ;;  %9093 = vmatpush1.bf16.msra.mxu1 %v13588_v20  ;;  %v375_v50 = vld [vmem:[%s15543_s13 + $0x108] sm:$0xff]  ;;  %v13641_v58 = vld [vmem:[#allocation6 + $0x1a0] ss:$16 sps:$4 sm:$0xff]   ;;  %v13643_v60 = vld [vmem:[#allocation6 + $0x1c4] ss:$16 sps:$4 sm:$0xff]   ;;  %s340_s30 = scalar_lea.vmem [#allocation11], %s15539_s17 }
  0x9b   : > { %7286 = vmatprep.subr.bf16.mxu0 %v13589_v21  ;;  %9094 = vmatprep.subr.bf16.mxu1 %v13591_v22  ;;  %v855_v52 = vpack.c.bf16 %v375_v50, %v343_v47  ;;  %v13636_v55 = vld [vmem:[#allocation6 + $0x188] ss:$16 sps:$4 sm:$0xff]   ;;  %v13639_v57 = vld [vmem:[#allocation6 + $0x1ac] ss:$16 sps:$4 sm:$0xff]   ;;  %v13647_v62 = vld [vmem:[#allocation6 + $0x1c0] ss:$16 sps:$4 sm:$0xff]  }
  0x9c   : > { %v13642_v59 = vld [vmem:[#allocation6 + $0x1a8] ss:$16 sps:$4 sm:$0xff]   ;;  %v13645_v61 = vld [vmem:[#allocation6 + $0x1cc] ss:$16 sps:$4 sm:$0xff]   ;;  %v13649_v0 = vld [vmem:[#allocation6 + $0x1e4] ss:$16 sps:$4 sm:$0xff]  }
  0x9d   : > { %7308 = vmatprep.mubr.bf16.mxu0 %v855_v52  ;;  %9116 = vmatprep.mubr.bf16.mxu1 %v855_v52  ;;  %v13648_v63 = vld [vmem:[#allocation6 + $0x1c8] ss:$16 sps:$4 sm:$0xff]   ;;  %v13651_v1 = vld [vmem:[#allocation6 + $0x1ec] ss:$16 sps:$4 sm:$0xff]   ;;  %v13653_v2 = vld [vmem:[#allocation6 + $0x1e0] ss:$16 sps:$4 sm:$0xff]  }
  0x9e   : > { %7287 = vmatpush1.bf16.msra.mxu0 %v13593_v23  ;;  %9095 = vmatpush1.bf16.msra.mxu1 %v13594_v24  ;;  %v13654_v3 = vld [vmem:[#allocation6 + $0x1e8] ss:$16 sps:$4 sm:$0xff]   ;;  %v342_v4 = vld [vmem:[%s15543_s13] sm:$0xff]  ;;  %v13660_v7 = vld [vmem:[#allocation6 + $0x20c] ss:$16 sps:$4 sm:$0xff]   ;;  %s11238_s23 = sshll.u32 %s340_s30, 4  ;;  %s16182_s23 = int_to_ptr.vmem [resolvable:$true] %s11238_s23 }
  0x9f   : > { %7288 = vmatprep.subr.bf16.mxu0 %v13595_v25  ;;  %9096 = vmatprep.subr.bf16.mxu1 %v13597_v26  ;;  %v374_v5 = vld [vmem:[%s15543_s13 + $0x100] sm:$0xff]  ;;  %v13658_v10 = vld [vmem:[#allocation6 + $0x208] ss:$16 sps:$4 sm:$0xff]   ;;  %v13666_v14 = vld [vmem:[#allocation6 + $0x22c] ss:$16 sps:$4 sm:$0xff]   ;;  %s11226_s19 = scalar_lea.sflag [#allocation5], %s15539_s17 }
  0xa0   : > { %v13657_v6 = vld [vmem:[#allocation6 + $0x204] ss:$16 sps:$4 sm:$0xff]   ;;  %v13655_v8 = vld [vmem:[#allocation6 + $0x200] ss:$16 sps:$4 sm:$0xff]   ;;  %v854_v9 = vpack.c.bf16 %v374_v5, %v342_v4  ;;  %v407_v11 = vld [vmem:[%s15543_s13 + $0x208] sm:$0xff]  ;;  %s15213_s22 = scalar_lea.vmem %s16182_s23, 16 }
  0xa1   : > { %v439_v12 = vld [vmem:[%s15543_s13 + $0x308] sm:$0xff]  ;;  %v13663_v13 = vld [vmem:[#allocation6 + $0x224] ss:$16 sps:$4 sm:$0xff]   ;;  %v13661_v15 = vld [vmem:[#allocation6 + $0x220] ss:$16 sps:$4 sm:$0xff]   ;;  %p15214_p10 = scmp.ne.s32.totalorder %s16182_s23, %s15213_s22  ;;  %s15299_s6 = smov [#allocation11]  }
  0xa2   : > { %7289 = vmatpush1.bf16.msra.mxu0 %v13599_v27  ;;  %9097 = vmatpush1.bf16.msra.mxu1 %v13600_v28  ;;  %v887_v16 = vpack.c.bf16 %v439_v12, %v407_v11  ;;  %v13664_v17 = vld [vmem:[#allocation6 + $0x228] ss:$16 sps:$4 sm:$0xff]   ;;  %v406_v18 = vld [vmem:[%s15543_s13 + $0x200] sm:$0xff]  ;;  %v13672_v21 = vld [vmem:[#allocation6 + $0x24c] ss:$16 sps:$4 sm:$0xff]   ;;  %s15217_s18 = sshll.u32 %s15299_s6, 4  ;;  %s15218_s18 = int_to_ptr.vmem [resolvable:$false] %s15217_s18 }
  0xa3   : > { %7290 = vmatprep.subr.bf16.mxu0 %v13601_v29  ;;  %9098 = vmatprep.subr.bf16.mxu1 %v13603_v30  ;;  %v438_v19 = vld [vmem:[%s15543_s13 + $0x300] sm:$0xff]  ;;  %v13670_v23 = vld [vmem:[#allocation6 + $0x248] ss:$16 sps:$4 sm:$0xff]   ;;  %v13678_v28 = vld [vmem:[#allocation6 + $0x26c] ss:$16 sps:$4 sm:$0xff]   ;;  %p15215_p3 = pnand %p15214_p10, %p15490_p5  ;;  %s15219_s24 = scalar_lea.vmem %s15218_s18, 32 }
  0xa4   : > { %v13669_v20 = vld [vmem:[#allocation6 + $0x244] ss:$16 sps:$4 sm:$0xff]   ;;  %v13667_v22 = vld [vmem:[#allocation6 + $0x240] ss:$16 sps:$4 sm:$0xff]   ;;  %v886_v24 = vpack.c.bf16 %v438_v19, %v406_v18  ;;  %v471_v25 = vld [vmem:[%s15543_s13 + $0x408] sm:$0xff]  ;;  %p15220_p12 = scmp.lt.s32.totalorder %s16182_s23, %s15218_s18  ;;  %p15221_p1 = scmp.lt.s32.totalorder %s15219_s24, %s15213_s22 }
  0xa5   : > { %v503_v26 = vld [vmem:[%s15543_s13 + $0x508] sm:$0xff]  ;;  %v13675_v27 = vld [vmem:[#allocation6 + $0x264] ss:$16 sps:$4 sm:$0xff]   ;;  %v13673_v30 = vld [vmem:[#allocation6 + $0x260] ss:$16 sps:$4 sm:$0xff]   ;;  %p15216_p7 = pneg %p15215_p3 }
  0xa6   : > { %7291 = vmatpush1.bf16.msra.mxu0 %v13605_v31  ;;  %9099 = vmatpush1.bf16.msra.mxu1 %v13606_v32  ;;  %v919_v29 = vpack.c.bf16 %v503_v26, %v471_v25  ;;  %v13676_v31 = vld [vmem:[#allocation6 + $0x268] ss:$16 sps:$4 sm:$0xff]   ;;  %v470_v32 = vld [vmem:[%s15543_s13 + $0x400] sm:$0xff]  ;;  %p15222_p2 = por %p15221_p1, %p15220_p12 }
  0xa7   : > { %7292 = vmatprep.subr.bf16.mxu0 %v13607_v33  ;;  %9100 = vmatprep.subr.bf16.mxu1 %v13609_v34  ;;  %v502_v33 = vld [vmem:[%s15543_s13 + $0x500] sm:$0xff]  ;;  %v599_v52 = vld [vmem:[%s15543_s13 + $0x808] sm:$0xff] }
  0xa8   : > { %v13681_v34 = vld [vmem:[#allocation6 + $0x284] ss:$16 sps:$4 sm:$0xff]   ;;  %v13691_v50 = vld [vmem:[#allocation6 + $0x2c0] ss:$16 sps:$4 sm:$0xff]   ;;  %v13706_v4 = vld [vmem:[#allocation6 + $0x308] ss:$16 sps:$4 sm:$0xff]   ;;  %p15223_p4 = pnand %p15222_p2, %p15216_p7 }
  0xa9   : > { %v566_v47 = vld [vmem:[%s15543_s13 + $0x700] sm:$0xff]  ;;  %v759_v18 = vld [vmem:[%s15543_s13 + $0xd08] sm:$0xff] }
  0xaa   : > { %7293 = vmatpush1.bf16.msra.mxu0 %v13611_v35  ;;  %9101 = vmatpush1.bf16.msra.mxu1 %v13612_v36  ;;  %v13684_v35 = vld [vmem:[#allocation6 + $0x28c] ss:$16 sps:$4 sm:$0xff]   ;;  %v13679_v36 = vld [vmem:[#allocation6 + $0x280] ss:$16 sps:$4 sm:$0xff]   ;;  %v13711_v5 = vld [vmem:[#allocation6 + $0x324] ss:$16 sps:$4 sm:$0xff]  }
  0xab   : > { %7294 = vmatprep.subr.bf16.mxu0 %v13613_v37  ;;  %9102 = vmatprep.subr.bf16.mxu1 %v13615_v38  ;;  %v13682_v37 = vld [vmem:[#allocation6 + $0x288] ss:$16 sps:$4 sm:$0xff]   ;;  %v918_v38 = vpack.c.bf16 %v502_v33, %v470_v32  ;;  %v694_v11 = vld [vmem:[%s15543_s13 + $0xb00] sm:$0xff] }
  0xac   : > { %v13717_v12 = vld [vmem:[#allocation6 + $0x344] ss:$16 sps:$4 sm:$0xff]   ;;  %v823_v32 = vld [vmem:[%s15543_s13 + $0xf08] sm:$0xff] }
  0xad   : > { %v13723_v19 = vld [vmem:[#allocation6 + $0x364] ss:$16 sps:$4 sm:$0xff]  }
  0xae   : > { %7295 = vmatpush1.bf16.msra.mxu0 %v13617_v39  ;;  %9103 = vmatpush1.bf16.msra.mxu1 %v13618_v40  ;;  %v535_v39 = vld [vmem:[%s15543_s13 + $0x608] sm:$0xff]  ;;  %v758_v25 = vld [vmem:[%s15543_s13 + $0xd00] sm:$0xff] }
  0xaf   : > { %7296 = vmatprep.subr.bf16.mxu0 %v13619_v41  ;;  %9104 = vmatprep.subr.bf16.mxu1 %v13621_v42  ;;  %v567_v40 = vld [vmem:[%s15543_s13 + $0x708] sm:$0xff]  ;;  %v13687_v41 = vld [vmem:[#allocation6 + $0x2a4] ss:$16 sps:$4 sm:$0xff]  }
  0xb0   : > { %v13690_v42 = vld [vmem:[#allocation6 + $0x2ac] ss:$16 sps:$4 sm:$0xff]   ;;  %v13729_v26 = vld [vmem:[#allocation6 + $0x384] ss:$16 sps:$4 sm:$0xff]  }
  0xb1   : > { %v13735_v33 = vld [vmem:[#allocation6 + $0x3a4] ss:$16 sps:$4 sm:$0xff]  }
  0xb2   : > { %7297 = vmatpush1.bf16.msra.mxu0 %v13623_v43  ;;  %9105 = vmatpush1.bf16.msra.mxu1 %v13624_v44  ;;  %v13685_v43 = vld [vmem:[#allocation6 + $0x2a0] ss:$16 sps:$4 sm:$0xff]   ;;  %v951_v44 = vpack.c.bf16 %v567_v40, %v535_v39  ;;  %v13741_v40 = vld [vmem:[#allocation6 + $0x3c4] ss:$16 sps:$4 sm:$0xff]  }
  0xb3   : > { %7298 = vmatprep.subr.bf16.mxu0 %v13625_v45  ;;  %9106 = vmatprep.subr.bf16.mxu1 %v13627_v46  ;;  %v13688_v45 = vld [vmem:[#allocation6 + $0x2a8] ss:$16 sps:$4 sm:$0xff]   ;;  %v534_v46 = vld [vmem:[%s15543_s13 + $0x600] sm:$0xff] }
  0xb4   : > { %v822_v39 = vld [vmem:[%s15543_s13 + $0xf00] sm:$0xff] }
  0xb6   : > { %7299 = vmatpush1.bf16.msra.mxu0 %v13629_v48  ;;  %9107 = vmatpush1.bf16.msra.mxu1 %v13630_v49  ;;  %v13693_v48 = vld [vmem:[#allocation6 + $0x2c4] ss:$16 sps:$4 sm:$0xff]   ;;  %v13696_v49 = vld [vmem:[#allocation6 + $0x2cc] ss:$16 sps:$4 sm:$0xff]  }
  0xb7   : > { %7300 = vmatprep.subr.bf16.mxu0 %v13631_v51  ;;  %9108 = vmatprep.subr.bf16.mxu1 %v13633_v53  ;;  %v950_v51 = vpack.c.bf16 %v566_v47, %v534_v46  ;;  %v631_v53 = vld [vmem:[%s15543_s13 + $0x908] sm:$0xff]  ;;  %v377_v46 = vld [vmem:[%s15543_s13 + $0x118] sm:$0xff]  ;;  %v13747_v47 = vld [vmem:[#allocation6 + $0x3e4] ss:$16 sps:$4 sm:$0xff]  }
  0xba   : > { %7301 = vmatpush1.bf16.msra.mxu0 %v13635_v54  ;;  %9109 = vmatpush1.bf16.msra.mxu1 %v13636_v55  ;;  %v13694_v54 = vld [vmem:[#allocation6 + $0x2c8] ss:$16 sps:$4 sm:$0xff]   ;;  %v13699_v55 = vld [vmem:[#allocation6 + $0x2e4] ss:$16 sps:$4 sm:$0xff]  }
  0xbb   : > { %7302 = vmatprep.subr.bf16.mxu0 %v13637_v56  ;;  %9110 = vmatprep.subr.bf16.mxu1 %v13639_v57  ;;  %v13702_v56 = vld [vmem:[#allocation6 + $0x2ec] ss:$16 sps:$4 sm:$0xff]   ;;  %v13697_v57 = vld [vmem:[#allocation6 + $0x2e0] ss:$16 sps:$4 sm:$0xff]  }
  0xbe   : > { %7303 = vmatpush1.bf16.msra.mxu0 %v13641_v58  ;;  %9111 = vmatpush1.bf16.msra.mxu1 %v13642_v59  ;;  %v13700_v58 = vld [vmem:[#allocation6 + $0x2e8] ss:$16 sps:$4 sm:$0xff]   ;;  %v983_v59 = vpack.c.bf16 %v631_v53, %v599_v52  ;;  %v344_v52 = vld [vmem:[%s15543_s13 + $0x10] sm:$0xff] }
  0xbf   : > { %7304 = vmatprep.subr.bf16.mxu0 %v13643_v60  ;;  %9112 = vmatprep.subr.bf16.mxu1 %v13645_v61  ;;  %v598_v60 = vld [vmem:[%s15543_s13 + $0x800] sm:$0xff]  ;;  %v376_v53 = vld [vmem:[%s15543_s13 + $0x110] sm:$0xff] }
  0xc0   : > { %v630_v61 = vld [vmem:[%s15543_s13 + $0x900] sm:$0xff] }
  0xc2   : > { %7305 = vmatpush1.bf16.msra.mxu0 %v13647_v62  ;;  %9113 = vmatpush1.bf16.msra.mxu1 %v13648_v63  ;;  %v13705_v62 = vld [vmem:[#allocation6 + $0x304] ss:$16 sps:$4 sm:$0xff]   ;;  %v13708_v63 = vld [vmem:[#allocation6 + $0x30c] ss:$16 sps:$4 sm:$0xff]  }
  0xc3   : > { %7306 = vmatprep.subr.bf16.mxu0 %v13649_v0  ;;  %9114 = vmatprep.subr.bf16.mxu1 %v13651_v1  ;;  %v982_v0 = vpack.c.bf16 %v630_v61, %v598_v60  ;;  %v663_v1 = vld [vmem:[%s15543_s13 + $0xa08] sm:$0xff]  ;;  %v13759_v61 = vld [vmem:[#allocation6 + $0x424] ss:$16 sps:$4 sm:$0xff]  }
  0xc4   : > { %v13754_v60 = vld [vmem:[#allocation6 + $0x408] ss:$16 sps:$4 sm:$0xff]  }
  0xc6   : > { %7307 = vmatpush1.bf16.msra.mxu0 %v13653_v2  ;;  %9115 = vmatpush1.bf16.msra.mxu1 %v13654_v3  ;;  %v695_v2 = vld [vmem:[%s15543_s13 + $0xb08] sm:$0xff]  ;;  %v13703_v3 = vld [vmem:[#allocation6 + $0x300] ss:$16 sps:$4 sm:$0xff]  }
  0xc7   : > { %7389 = vmatprep.subr.bf16.mxu0 %v13657_v6  ;;  %9197 = vmatprep.subr.bf16.mxu1 %v13660_v7  ;;  %v13714_v6 = vld [vmem:[#allocation6 + $0x32c] ss:$16 sps:$4 sm:$0xff]   ;;  %v13709_v7 = vld [vmem:[#allocation6 + $0x320] ss:$16 sps:$4 sm:$0xff]  }
  0xc9   : > { %7309 = vmatmul.mubr.bf16.vlgmr.msra.gmra.mrb[0].mxu0 %v854_v9  ;;  %9117 = vmatmul.mubr.bf16.vlgmr.msra.gmra.mrb[0].mxu1 %v854_v9  ;;  %v1015_v9 = vpack.c.bf16 %v695_v2, %v663_v1  ;;  %v408_v2 = vld [vmem:[%s15543_s13 + $0x210] sm:$0xff] }
  0xca   : > { %7390 = vmatpush1.bf16.msra.mxu0 %v13655_v8  ;;  %9198 = vmatpush1.bf16.msra.mxu1 %v13658_v10  ;;  %v13712_v8 = vld [vmem:[#allocation6 + $0x328] ss:$16 sps:$4 sm:$0xff]   ;;  %v662_v10 = vld [vmem:[%s15543_s13 + $0xa00] sm:$0xff] }
  0xcb   : > { %7391 = vmatprep.subr.bf16.mxu0 %v13663_v13  ;;  %9199 = vmatprep.subr.bf16.mxu1 %v13666_v14  ;;  %v13720_v13 = vld [vmem:[#allocation6 + $0x34c] ss:$16 sps:$4 sm:$0xff]   ;;  %v13715_v14 = vld [vmem:[#allocation6 + $0x340] ss:$16 sps:$4 sm:$0xff]  }
  0xcc   : > { %7318 = vmatprep.mubr.bf16.mxu0 %v887_v16  ;;  %9126 = vmatprep.mubr.bf16.mxu1 %v887_v16  ;;  %v13718_v16 = vld [vmem:[#allocation6 + $0x348] ss:$16 sps:$4 sm:$0xff]  }
  0xce   : > { %7392 = vmatpush1.bf16.msra.mxu0 %v13661_v15  ;;  %9200 = vmatpush1.bf16.msra.mxu1 %v13664_v17  ;;  %v1014_v15 = vpack.c.bf16 %v694_v11, %v662_v10  ;;  %v727_v17 = vld [vmem:[%s15543_s13 + $0xc08] sm:$0xff]  ;;  %v13771_v11 = vld [vmem:[#allocation6 + $0x464] ss:$16 sps:$4 sm:$0xff]  }
  0xcf   : > { %7393 = vmatprep.subr.bf16.mxu0 %v13669_v20  ;;  %9201 = vmatprep.subr.bf16.mxu1 %v13672_v21  ;;  %v13726_v20 = vld [vmem:[#allocation6 + $0x36c] ss:$16 sps:$4 sm:$0xff]   ;;  %v13721_v21 = vld [vmem:[#allocation6 + $0x360] ss:$16 sps:$4 sm:$0xff]   ;;  %v13766_v10 = vld [vmem:[#allocation6 + $0x448] ss:$16 sps:$4 sm:$0xff]  }
  0xd1   : > { %7319 = vmatmul.mubr.bf16.gmra.mrb[4].mxu0 %v886_v24  ;;  %9127 = vmatmul.mubr.bf16.gmra.mrb[4].mxu1 %v886_v24  ;;  %v726_v24 = vld [vmem:[%s15543_s13 + $0xc00] sm:$0xff] }
  0xd2   : > { %7394 = vmatpush1.bf16.msra.mxu0 %v13667_v22  ;;  %9202 = vmatpush1.bf16.msra.mxu1 %v13670_v23  ;;  %v1047_v22 = vpack.c.bf16 %v759_v18, %v727_v17  ;;  %v13724_v23 = vld [vmem:[#allocation6 + $0x368] ss:$16 sps:$4 sm:$0xff]   ;;  %v504_v17 = vld [vmem:[%s15543_s13 + $0x510] sm:$0xff] }
  0xd3   : > { %7395 = vmatprep.subr.bf16.mxu0 %v13675_v27  ;;  %9203 = vmatprep.subr.bf16.mxu1 %v13678_v28  ;;  %v13732_v27 = vld [vmem:[#allocation6 + $0x38c] ss:$16 sps:$4 sm:$0xff]   ;;  %v13727_v28 = vld [vmem:[#allocation6 + $0x380] ss:$16 sps:$4 sm:$0xff]   ;;  %v13777_v18 = vld [vmem:[#allocation6 + $0x484] ss:$16 sps:$4 sm:$0xff]  }
  0xd4   : > { %7328 = vmatprep.mubr.bf16.mxu0 %v919_v29  ;;  %9136 = vmatprep.mubr.bf16.mxu1 %v919_v29  ;;  %v13730_v29 = vld [vmem:[#allocation6 + $0x388] ss:$16 sps:$4 sm:$0xff]  }
  0xd6   : > { %7396 = vmatpush1.bf16.msra.mxu0 %v13673_v30  ;;  %9204 = vmatpush1.bf16.msra.mxu1 %v13676_v31  ;;  %v1046_v30 = vpack.c.bf16 %v758_v25, %v726_v24  ;;  %v791_v31 = vld [vmem:[%s15543_s13 + $0xe08] sm:$0xff]  ;;  %v569_v24 = vld [vmem:[%s15543_s13 + $0x718] sm:$0xff]  ;;  %v13783_v25 = vld [vmem:[#allocation6 + $0x4a4] ss:$16 sps:$4 sm:$0xff]  }
  0xd7   : > { %7397 = vmatprep.subr.bf16.mxu0 %v13681_v34  ;;  %9205 = vmatprep.subr.bf16.mxu1 %v13684_v35  ;;  %v13738_v34 = vld [vmem:[#allocation6 + $0x3ac] ss:$16 sps:$4 sm:$0xff]   ;;  %v1079_v35 = vpack.c.bf16 %v823_v32, %v791_v31  ;;  %v568_v31 = vld [vmem:[%s15543_s13 + $0x710] sm:$0xff] }
  0xd8   : > { %v13789_v32 = vld [vmem:[#allocation6 + $0x4c4] ss:$16 sps:$4 sm:$0xff]  }
  0xd9   : > { %7329 = vmatmul.mubr.bf16.gmra.mrb[8].mxu0 %v918_v38  ;;  %9137 = vmatmul.mubr.bf16.gmra.mrb[8].mxu1 %v918_v38  ;;  %v790_v38 = vld [vmem:[%s15543_s13 + $0xe00] sm:$0xff] }
  0xda   : > { %7398 = vmatpush1.bf16.msra.mxu0 %v13679_v36  ;;  %9206 = vmatpush1.bf16.msra.mxu1 %v13682_v37  ;;  %v13733_v36 = vld [vmem:[#allocation6 + $0x3a0] ss:$16 sps:$4 sm:$0xff]   ;;  %v13736_v37 = vld [vmem:[#allocation6 + $0x3a8] ss:$16 sps:$4 sm:$0xff]  }
  0xdb   : > { %7399 = vmatprep.subr.bf16.mxu0 %v13687_v41  ;;  %9207 = vmatprep.subr.bf16.mxu1 %v13690_v42  ;;  %v13744_v41 = vld [vmem:[#allocation6 + $0x3cc] ss:$16 sps:$4 sm:$0xff]   ;;  %v13739_v42 = vld [vmem:[#allocation6 + $0x3c0] ss:$16 sps:$4 sm:$0xff]  }
  0xdc   : > { %7338 = vmatprep.mubr.bf16.mxu0 %v951_v44  ;;  %9146 = vmatprep.mubr.bf16.mxu1 %v951_v44  ;;  %v1078_v44 = vpack.c.bf16 %v822_v39, %v790_v38  ;;  %v633_v38 = vld [vmem:[%s15543_s13 + $0x918] sm:$0xff]  ;;  %v13795_v39 = vld [vmem:[#allocation6 + $0x4e4] ss:$16 sps:$4 sm:$0xff]  }
  0xde   : > { %7400 = vmatpush1.bf16.msra.mxu0 %v13685_v43  ;;  %9208 = vmatpush1.bf16.msra.mxu1 %v13688_v45  ;;  %v13742_v43 = vld [vmem:[#allocation6 + $0x3c8] ss:$16 sps:$4 sm:$0xff]  }
  0xdf   : > { %7401 = vmatprep.subr.bf16.mxu0 %v13693_v48  ;;  %9209 = vmatprep.subr.bf16.mxu1 %v13696_v49  ;;  %v345_v45 = vld [vmem:[%s15543_s13 + $0x18] sm:$0xff]  ;;  %v13745_v49 = vld [vmem:[#allocation6 + $0x3e0] ss:$16 sps:$4 sm:$0xff]  }
  0xe0   : > { %v13750_v48 = vld [vmem:[#allocation6 + $0x3ec] ss:$16 sps:$4 sm:$0xff]  }
  0xe1   : > { %7339 = vmatmul.mubr.bf16.gmra.mrb[12].mxu0 %v950_v51  ;;  %9147 = vmatmul.mubr.bf16.gmra.mrb[12].mxu1 %v950_v51  ;;  %v13748_v51 = vld [vmem:[#allocation6 + $0x3e8] ss:$16 sps:$4 sm:$0xff]  }
  0xe2   : > { %7402 = vmatpush1.bf16.msra.mxu0 %v13691_v50  ;;  %9210 = vmatpush1.bf16.msra.mxu1 %v13694_v54  ;;  %v857_v50 = vpack.c.bf16 %v377_v46, %v345_v45  ;;  %v13753_v54 = vld [vmem:[#allocation6 + $0x404] ss:$16 sps:$4 sm:$0xff]  }
  0xe3   : > { %7403 = vmatprep.subr.bf16.mxu0 %v13699_v55  ;;  %9211 = vmatprep.subr.bf16.mxu1 %v13702_v56  ;;  %v13756_v55 = vld [vmem:[#allocation6 + $0x40c] ss:$16 sps:$4 sm:$0xff]   ;;  %v13751_v56 = vld [vmem:[#allocation6 + $0x400] ss:$16 sps:$4 sm:$0xff]   ;;  %v13801_v46 = vld [vmem:[#allocation6 + $0x504] ss:$16 sps:$4 sm:$0xff]  }
  0xe4   : > { %7348 = vmatprep.mubr.bf16.mxu0 %v983_v59  ;;  %9156 = vmatprep.mubr.bf16.mxu1 %v983_v59  ;;  %v441_v59 = vld [vmem:[%s15543_s13 + $0x318] sm:$0xff]  ;;  %v632_v45 = vld [vmem:[%s15543_s13 + $0x910] sm:$0xff] }
  0xe6   : > { %7404 = vmatpush1.bf16.msra.mxu0 %v13697_v57  ;;  %9212 = vmatpush1.bf16.msra.mxu1 %v13700_v58  ;;  %v856_v57 = vpack.c.bf16 %v376_v53, %v344_v52  ;;  %v409_v58 = vld [vmem:[%s15543_s13 + $0x218] sm:$0xff]  ;;  %v13807_v53 = vld [vmem:[#allocation6 + $0x524] ss:$16 sps:$4 sm:$0xff]  }
  0xe7   : > { %7405 = vmatprep.subr.bf16.mxu0 %v13705_v62  ;;  %9213 = vmatprep.subr.bf16.mxu1 %v13708_v63  ;;  %v13762_v62 = vld [vmem:[#allocation6 + $0x42c] ss:$16 sps:$4 sm:$0xff]   ;;  %v13757_v63 = vld [vmem:[#allocation6 + $0x420] ss:$16 sps:$4 sm:$0xff]   ;;  %v889_v1 = vpack.c.bf16 %v441_v59, %v409_v58 }
  0xe8   : > { %v697_v52 = vld [vmem:[%s15543_s13 + $0xb18] sm:$0xff]  ;;  %v664_v58 = vld [vmem:[%s15543_s13 + $0xa10] sm:$0xff] }
  0xe9   : > { %7349 = vmatmul.mubr.bf16.gmra.mrb[16].mxu0 %v982_v0  ;;  %9157 = vmatmul.mubr.bf16.gmra.mrb[16].mxu1 %v982_v0  ;;  %v13760_v0 = vld [vmem:[#allocation6 + $0x428] ss:$16 sps:$4 sm:$0xff]   ;;  %v696_v59 = vld [vmem:[%s15543_s13 + $0xb10] sm:$0xff] }
  0xea   : > { %7406 = vmatpush1.bf16.msra.mxu0 %v13703_v3  ;;  %9214 = vmatpush1.bf16.msra.mxu1 %v13706_v4  ;;  %v440_v3 = vld [vmem:[%s15543_s13 + $0x310] sm:$0xff] }
  0xeb   : > { %7407 = vmatprep.subr.bf16.mxu0 %v13711_v5  ;;  %9215 = vmatprep.subr.bf16.mxu1 %v13714_v6  ;;  %v13765_v4 = vld [vmem:[#allocation6 + $0x444] ss:$16 sps:$4 sm:$0xff]   ;;  %v13768_v5 = vld [vmem:[#allocation6 + $0x44c] ss:$16 sps:$4 sm:$0xff]   ;;  %v888_v6 = vpack.c.bf16 %v440_v3, %v408_v2  ;;  %v13814_v2 = vld [vmem:[#allocation6 + $0x548] ss:$16 sps:$4 sm:$0xff]  }
  0xec   : > { %7358 = vmatprep.mubr.bf16.mxu0 %v1015_v9  ;;  %9166 = vmatprep.mubr.bf16.mxu1 %v1015_v9  ;;  %v13763_v9 = vld [vmem:[#allocation6 + $0x440] ss:$16 sps:$4 sm:$0xff]   ;;  %v13819_v3 = vld [vmem:[#allocation6 + $0x564] ss:$16 sps:$4 sm:$0xff]  }
  0xee   : > { %7408 = vmatpush1.bf16.msra.mxu0 %v13709_v7  ;;  %9216 = vmatpush1.bf16.msra.mxu1 %v13712_v8  ;;  %v473_v7 = vld [vmem:[%s15543_s13 + $0x418] sm:$0xff] }
  0xef   : > { %7409 = vmatprep.subr.bf16.mxu0 %v13717_v12  ;;  %9217 = vmatprep.subr.bf16.mxu1 %v13720_v13  ;;  %v505_v8 = vld [vmem:[%s15543_s13 + $0x518] sm:$0xff]  ;;  %v13769_v13 = vld [vmem:[#allocation6 + $0x460] ss:$16 sps:$4 sm:$0xff]  }
  0xf0   : > { %v13774_v12 = vld [vmem:[#allocation6 + $0x46c] ss:$16 sps:$4 sm:$0xff]  }
  0xf1   : > { %7359 = vmatmul.mubr.bf16.gmra.mrb[20].mxu0 %v1014_v15  ;;  %9167 = vmatmul.mubr.bf16.gmra.mrb[20].mxu1 %v1014_v15  ;;  %v921_v15 = vpack.c.bf16 %v505_v8, %v473_v7  ;;  %v728_v8 = vld [vmem:[%s15543_s13 + $0xc10] sm:$0xff] }
  0xf2   : > { %7410 = vmatpush1.bf16.msra.mxu0 %v13715_v14  ;;  %9218 = vmatpush1.bf16.msra.mxu1 %v13718_v16  ;;  %v13772_v14 = vld [vmem:[#allocation6 + $0x468] ss:$16 sps:$4 sm:$0xff]   ;;  %v472_v16 = vld [vmem:[%s15543_s13 + $0x410] sm:$0xff] }
  0xf3   : > { %7411 = vmatprep.subr.bf16.mxu0 %v13723_v19  ;;  %9219 = vmatprep.subr.bf16.mxu1 %v13726_v20  ;;  %v13780_v19 = vld [vmem:[#allocation6 + $0x48c] ss:$16 sps:$4 sm:$0xff]   ;;  %v13775_v20 = vld [vmem:[#allocation6 + $0x480] ss:$16 sps:$4 sm:$0xff]  }
  0xf4   : > { %7368 = vmatprep.mubr.bf16.mxu0 %v1047_v22  ;;  %9176 = vmatprep.mubr.bf16.mxu1 %v1047_v22  ;;  %v13778_v22 = vld [vmem:[#allocation6 + $0x488] ss:$16 sps:$4 sm:$0xff]  }
  0xf6   : > { %7412 = vmatpush1.bf16.msra.mxu0 %v13721_v21  ;;  %9220 = vmatpush1.bf16.msra.mxu1 %v13724_v23  ;;  %v920_v21 = vpack.c.bf16 %v504_v17, %v472_v16  ;;  %v537_v23 = vld [vmem:[%s15543_s13 + $0x618] sm:$0xff]  ;;  %v13831_v17 = vld [vmem:[#allocation6 + $0x5a4] ss:$16 sps:$4 sm:$0xff]  }
  0xf7   : > { %7413 = vmatprep.subr.bf16.mxu0 %v13729_v26  ;;  %9221 = vmatprep.subr.bf16.mxu1 %v13732_v27  ;;  %v13786_v26 = vld [vmem:[#allocation6 + $0x4ac] ss:$16 sps:$4 sm:$0xff]   ;;  %v13781_v27 = vld [vmem:[#allocation6 + $0x4a0] ss:$16 sps:$4 sm:$0xff]   ;;  %v13826_v16 = vld [vmem:[#allocation6 + $0x588] ss:$16 sps:$4 sm:$0xff]  }
  0xf9   : > { %7369 = vmatmul.mubr.bf16.gmra.mrb[24].mxu0 %v1046_v30  ;;  %9177 = vmatmul.mubr.bf16.gmra.mrb[24].mxu1 %v1046_v30  ;;  %v536_v30 = vld [vmem:[%s15543_s13 + $0x610] sm:$0xff] }
  0xfa   : > { %7414 = vmatpush1.bf16.msra.mxu0 %v13727_v28  ;;  %9222 = vmatpush1.bf16.msra.mxu1 %v13730_v29  ;;  %v953_v28 = vpack.c.bf16 %v569_v24, %v537_v23  ;;  %v13784_v29 = vld [vmem:[#allocation6 + $0x4a8] ss:$16 sps:$4 sm:$0xff]   ;;  %v824_v23 = vld [vmem:[%s15543_s13 + $0xf10] sm:$0xff] }
  0xfb   : > { %7415 = vmatprep.subr.bf16.mxu0 %v13735_v33  ;;  %9223 = vmatprep.subr.bf16.mxu1 %v13738_v34  ;;  %v13792_v33 = vld [vmem:[#allocation6 + $0x4cc] ss:$16 sps:$4 sm:$0xff]   ;;  %v13787_v34 = vld [vmem:[#allocation6 + $0x4c0] ss:$16 sps:$4 sm:$0xff]   ;;  %v13837_v24 = vld [vmem:[#allocation6 + $0x5c4] ss:$16 sps:$4 sm:$0xff]  }
  0xfc   : > { %7378 = vmatprep.mubr.bf16.mxu0 %v1079_v35  ;;  %9186 = vmatprep.mubr.bf16.mxu1 %v1079_v35  ;;  %v13790_v35 = vld [vmem:[#allocation6 + $0x4c8] ss:$16 sps:$4 sm:$0xff]  }
  0xfe   : > { %7416 = vmatpush1.bf16.msra.mxu0 %v13733_v36  ;;  %9224 = vmatpush1.bf16.msra.mxu1 %v13736_v37  ;;  %v952_v36 = vpack.c.bf16 %v568_v31, %v536_v30  ;;  %v601_v37 = vld [vmem:[%s15543_s13 + $0x818] sm:$0xff]  ;;  %v379_v30 = vld [vmem:[%s15543_s13 + $0x128] sm:$0xff]  ;;  %v13843_v31 = vld [vmem:[#allocation6 + $0x5e4] ss:$16 sps:$4 sm:$0xff]  }
  0xff   : > { %7417 = vmatprep.subr.bf16.mxu0 %v13741_v40  ;;  %9225 = vmatprep.subr.bf16.mxu1 %v13744_v41  ;;  %v13798_v40 = vld [vmem:[#allocation6 + $0x4ec] ss:$16 sps:$4 sm:$0xff]   ;;  %v985_v41 = vpack.c.bf16 %v633_v38, %v601_v37  ;;  %v378_v37 = vld [vmem:[%s15543_s13 + $0x120] sm:$0xff] }
 0x100   : > { %v13849_v38 = vld [vmem:[#allocation6 + $0x604] ss:$16 sps:$4 sm:$0xff]  }
 0x101   : > { %7379 = vmatmul.mubr.bf16.gmra.mrb[28].mxu0 %v1078_v44  ;;  %9187 = vmatmul.mubr.bf16.gmra.mrb[28].mxu1 %v1078_v44  ;;  %v600_v44 = vld [vmem:[%s15543_s13 + $0x810] sm:$0xff] }
 0x102   : > { %7418 = vmatpush1.bf16.msra.mxu0 %v13739_v42  ;;  %9226 = vmatpush1.bf16.msra.mxu1 %v13742_v43  ;;  %v13793_v42 = vld [vmem:[#allocation6 + $0x4e0] ss:$16 sps:$4 sm:$0xff]   ;;  %v13796_v43 = vld [vmem:[#allocation6 + $0x4e8] ss:$16 sps:$4 sm:$0xff]  }
 0x103   : > { %7419 = vmatprep.subr.bf16.mxu0 %v13747_v47  ;;  %9227 = vmatprep.subr.bf16.mxu1 %v13750_v48  ;;  %v13804_v47 = vld [vmem:[#allocation6 + $0x50c] ss:$16 sps:$4 sm:$0xff]   ;;  %v13799_v48 = vld [vmem:[#allocation6 + $0x500] ss:$16 sps:$4 sm:$0xff]  }
 0x104   : > { %7421 = vmatprep.mubr.bf16.mxu0 %v857_v50  ;;  %9229 = vmatprep.mubr.bf16.mxu1 %v857_v50  ;;  %v984_v50 = vpack.c.bf16 %v632_v45, %v600_v44  ;;  %v443_v44 = vld [vmem:[%s15543_s13 + $0x328] sm:$0xff]  ;;  %v13855_v45 = vld [vmem:[#allocation6 + $0x624] ss:$16 sps:$4 sm:$0xff]  }
 0x106   : > { %7420 = vmatpush1.bf16.msra.mxu0 %v13745_v49  ;;  %9228 = vmatpush1.bf16.msra.mxu1 %v13748_v51  ;;  %v13802_v49 = vld [vmem:[#allocation6 + $0x508] ss:$16 sps:$4 sm:$0xff]  }
 0x107   : > { %7502 = vmatprep.subr.bf16.mxu0 %v13753_v54  ;;  %9310 = vmatprep.subr.bf16.mxu1 %v13756_v55  ;;  %v665_v51 = vld [vmem:[%s15543_s13 + $0xa18] sm:$0xff]  ;;  %v13805_v55 = vld [vmem:[#allocation6 + $0x520] ss:$16 sps:$4 sm:$0xff]  }
 0x108   : > { %v13810_v54 = vld [vmem:[#allocation6 + $0x52c] ss:$16 sps:$4 sm:$0xff]  }
 0x109   : > { %7422 = vmatmul.mubr.bf16.vlgmr.msra.gmra.mrb[0].mxu0 %v856_v57  ;;  %9230 = vmatmul.mubr.bf16.vlgmr.msra.gmra.mrb[0].mxu1 %v856_v57  ;;  %v13808_v57 = vld [vmem:[#allocation6 + $0x528] ss:$16 sps:$4 sm:$0xff]  }
 0x10a   : > { %7503 = vmatpush1.bf16.msra.mxu0 %v13751_v56  ;;  %9311 = vmatpush1.bf16.msra.mxu1 %v13754_v60  ;;  %v1017_v56 = vpack.c.bf16 %v697_v52, %v665_v51  ;;  %v13813_v60 = vld [vmem:[#allocation6 + $0x544] ss:$16 sps:$4 sm:$0xff]  }
 0x10b   : > { %7504 = vmatprep.subr.bf16.mxu0 %v13759_v61  ;;  %9312 = vmatprep.subr.bf16.mxu1 %v13762_v62  ;;  %v13816_v61 = vld [vmem:[#allocation6 + $0x54c] ss:$16 sps:$4 sm:$0xff]   ;;  %v13811_v62 = vld [vmem:[#allocation6 + $0x540] ss:$16 sps:$4 sm:$0xff]   ;;  %v13861_v52 = vld [vmem:[#allocation6 + $0x644] ss:$16 sps:$4 sm:$0xff]  }
 0x10c   : > { %7431 = vmatprep.mubr.bf16.mxu0 %v889_v1  ;;  %9239 = vmatprep.mubr.bf16.mxu1 %v889_v1  ;;  %v761_v1 = vld [vmem:[%s15543_s13 + $0xd18] sm:$0xff]  ;;  %v442_v51 = vld [vmem:[%s15543_s13 + $0x320] sm:$0xff] }
 0x10e   : > { %7505 = vmatpush1.bf16.msra.mxu0 %v13757_v63  ;;  %9313 = vmatpush1.bf16.msra.mxu1 %v13760_v0  ;;  %v1016_v63 = vpack.c.bf16 %v696_v59, %v664_v58  ;;  %v729_v0 = vld [vmem:[%s15543_s13 + $0xc18] sm:$0xff]  ;;  %v507_v58 = vld [vmem:[%s15543_s13 + $0x528] sm:$0xff]  ;;  %v13867_v59 = vld [vmem:[#allocation6 + $0x664] ss:$16 sps:$4 sm:$0xff]  }
 0x10f   : > { %7506 = vmatprep.subr.bf16.mxu0 %v13765_v4  ;;  %9314 = vmatprep.subr.bf16.mxu1 %v13768_v5  ;;  %v13822_v4 = vld [vmem:[#allocation6 + $0x56c] ss:$16 sps:$4 sm:$0xff]   ;;  %v13817_v5 = vld [vmem:[#allocation6 + $0x560] ss:$16 sps:$4 sm:$0xff]   ;;  %v1049_v7 = vpack.c.bf16 %v761_v1, %v729_v0 }
 0x110   : > { %v474_v0 = vld [vmem:[%s15543_s13 + $0x420] sm:$0xff] }
 0x111   : > { %7432 = vmatmul.mubr.bf16.gmra.mrb[4].mxu0 %v888_v6  ;;  %9240 = vmatmul.mubr.bf16.gmra.mrb[4].mxu1 %v888_v6  ;;  %v13820_v6 = vld [vmem:[#allocation6 + $0x568] ss:$16 sps:$4 sm:$0xff]   ;;  %v506_v1 = vld [vmem:[%s15543_s13 + $0x520] sm:$0xff] }
 0x112   : > { %7507 = vmatpush1.bf16.msra.mxu0 %v13763_v9  ;;  %9315 = vmatpush1.bf16.msra.mxu1 %v13766_v10  ;;  %v760_v9 = vld [vmem:[%s15543_s13 + $0xd10] sm:$0xff] }
 0x113   : > { %7508 = vmatprep.subr.bf16.mxu0 %v13771_v11  ;;  %9316 = vmatprep.subr.bf16.mxu1 %v13774_v12  ;;  %v13825_v10 = vld [vmem:[#allocation6 + $0x584] ss:$16 sps:$4 sm:$0xff]   ;;  %v13828_v11 = vld [vmem:[#allocation6 + $0x58c] ss:$16 sps:$4 sm:$0xff]   ;;  %v1048_v12 = vpack.c.bf16 %v760_v9, %v728_v8  ;;  %v13874_v8 = vld [vmem:[#allocation6 + $0x688] ss:$16 sps:$4 sm:$0xff]  }
 0x114   : > { %7441 = vmatprep.mubr.bf16.mxu0 %v921_v15  ;;  %9249 = vmatprep.mubr.bf16.mxu1 %v921_v15  ;;  %v13823_v15 = vld [vmem:[#allocation6 + $0x580] ss:$16 sps:$4 sm:$0xff]   ;;  %v13879_v9 = vld [vmem:[#allocation6 + $0x6a4] ss:$16 sps:$4 sm:$0xff]  }
 0x116   : > { %7509 = vmatpush1.bf16.msra.mxu0 %v13769_v13  ;;  %9317 = vmatpush1.bf16.msra.mxu1 %v13772_v14  ;;  %v793_v13 = vld [vmem:[%s15543_s13 + $0xe18] sm:$0xff] }
 0x117   : > { %7510 = vmatprep.subr.bf16.mxu0 %v13777_v18  ;;  %9318 = vmatprep.subr.bf16.mxu1 %v13780_v19  ;;  %v825_v14 = vld [vmem:[%s15543_s13 + $0xf18] sm:$0xff]  ;;  %v13829_v19 = vld [vmem:[#allocation6 + $0x5a0] ss:$16 sps:$4 sm:$0xff]  }
 0x118   : > { %v13834_v18 = vld [vmem:[#allocation6 + $0x5ac] ss:$16 sps:$4 sm:$0xff]  }
 0x119   : > { %7442 = vmatmul.mubr.bf16.gmra.mrb[8].mxu0 %v920_v21  ;;  %9250 = vmatmul.mubr.bf16.gmra.mrb[8].mxu1 %v920_v21  ;;  %v1081_v21 = vpack.c.bf16 %v825_v14, %v793_v13  ;;  %v538_v14 = vld [vmem:[%s15543_s13 + $0x620] sm:$0xff] }
 0x11a   : > { %7511 = vmatpush1.bf16.msra.mxu0 %v13775_v20  ;;  %9319 = vmatpush1.bf16.msra.mxu1 %v13778_v22  ;;  %v13832_v20 = vld [vmem:[#allocation6 + $0x5a8] ss:$16 sps:$4 sm:$0xff]   ;;  %v792_v22 = vld [vmem:[%s15543_s13 + $0xe10] sm:$0xff] }
 0x11b   : > { %7512 = vmatprep.subr.bf16.mxu0 %v13783_v25  ;;  %9320 = vmatprep.subr.bf16.mxu1 %v13786_v26  ;;  %v13840_v25 = vld [vmem:[#allocation6 + $0x5cc] ss:$16 sps:$4 sm:$0xff]   ;;  %v13835_v26 = vld [vmem:[#allocation6 + $0x5c0] ss:$16 sps:$4 sm:$0xff]  }
 0x11c   : > { %7451 = vmatprep.mubr.bf16.mxu0 %v953_v28  ;;  %9259 = vmatprep.mubr.bf16.mxu1 %v953_v28  ;;  %v13838_v28 = vld [vmem:[#allocation6 + $0x5c8] ss:$16 sps:$4 sm:$0xff]  }
 0x11e   : > { %7513 = vmatpush1.bf16.msra.mxu0 %v13781_v27  ;;  %9321 = vmatpush1.bf16.msra.mxu1 %v13784_v29  ;;  %v1080_v27 = vpack.c.bf16 %v824_v23, %v792_v22  ;;  %v347_v29 = vld [vmem:[%s15543_s13 + $0x28] sm:$0xff]  ;;  %v13891_v23 = vld [vmem:[#allocation6 + $0x6e4] ss:$16 sps:$4 sm:$0xff]  }
 0x11f   : > { %7514 = vmatprep.subr.bf16.mxu0 %v13789_v32  ;;  %9322 = vmatprep.subr.bf16.mxu1 %v13792_v33  ;;  %v13846_v32 = vld [vmem:[#allocation6 + $0x5ec] ss:$16 sps:$4 sm:$0xff]   ;;  %v13841_v33 = vld [vmem:[#allocation6 + $0x5e0] ss:$16 sps:$4 sm:$0xff]   ;;  %v13886_v22 = vld [vmem:[#allocation6 + $0x6c8] ss:$16 sps:$4 sm:$0xff]  }
 0x121   : > { %7452 = vmatmul.mubr.bf16.gmra.mrb[12].mxu0 %v952_v36  ;;  %9260 = vmatmul.mubr.bf16.gmra.mrb[12].mxu1 %v952_v36  ;;  %v346_v36 = vld [vmem:[%s15543_s13 + $0x20] sm:$0xff] }
 0x122   : > { %7515 = vmatpush1.bf16.msra.mxu0 %v13787_v34  ;;  %9323 = vmatpush1.bf16.msra.mxu1 %v13790_v35  ;;  %v859_v34 = vpack.c.bf16 %v379_v30, %v347_v29  ;;  %v13844_v35 = vld [vmem:[#allocation6 + $0x5e8] ss:$16 sps:$4 sm:$0xff]   ;;  %v634_v29 = vld [vmem:[%s15543_s13 + $0x920] sm:$0xff] }
 0x123   : > { %7516 = vmatprep.subr.bf16.mxu0 %v13795_v39  ;;  %9324 = vmatprep.subr.bf16.mxu1 %v13798_v40  ;;  %v13852_v39 = vld [vmem:[#allocation6 + $0x60c] ss:$16 sps:$4 sm:$0xff]   ;;  %v13847_v40 = vld [vmem:[#allocation6 + $0x600] ss:$16 sps:$4 sm:$0xff]   ;;  %v13897_v30 = vld [vmem:[#allocation6 + $0x704] ss:$16 sps:$4 sm:$0xff]  }
 0x124   : > { %7461 = vmatprep.mubr.bf16.mxu0 %v985_v41  ;;  %9269 = vmatprep.mubr.bf16.mxu1 %v985_v41  ;;  %v13850_v41 = vld [vmem:[#allocation6 + $0x608] ss:$16 sps:$4 sm:$0xff]  }
 0x126   : > { %7517 = vmatpush1.bf16.msra.mxu0 %v13793_v42  ;;  %9325 = vmatpush1.bf16.msra.mxu1 %v13796_v43  ;;  %v858_v42 = vpack.c.bf16 %v378_v37, %v346_v36  ;;  %v411_v43 = vld [vmem:[%s15543_s13 + $0x228] sm:$0xff]  ;;  %v13903_v37 = vld [vmem:[#allocation6 + $0x724] ss:$16 sps:$4 sm:$0xff]  }
 0x127   : > { %7518 = vmatprep.subr.bf16.mxu0 %v13801_v46  ;;  %9326 = vmatprep.subr.bf16.mxu1 %v13804_v47  ;;  %v13858_v46 = vld [vmem:[#allocation6 + $0x62c] ss:$16 sps:$4 sm:$0xff]   ;;  %v891_v47 = vpack.c.bf16 %v443_v44, %v411_v43  ;;  %v698_v43 = vld [vmem:[%s15543_s13 + $0xb20] sm:$0xff] }
 0x128   : > { %v699_v36 = vld [vmem:[%s15543_s13 + $0xb28] sm:$0xff]  ;;  %v13909_v44 = vld [vmem:[#allocation6 + $0x744] ss:$16 sps:$4 sm:$0xff]  }
 0x129   : > { %7462 = vmatmul.mubr.bf16.gmra.mrb[16].mxu0 %v984_v50  ;;  %9270 = vmatmul.mubr.bf16.gmra.mrb[16].mxu1 %v984_v50  ;;  %v410_v50 = vld [vmem:[%s15543_s13 + $0x220] sm:$0xff] }
 0x12a   : > { %7519 = vmatpush1.bf16.msra.mxu0 %v13799_v48  ;;  %9327 = vmatpush1.bf16.msra.mxu1 %v13802_v49  ;;  %v13853_v48 = vld [vmem:[#allocation6 + $0x620] ss:$16 sps:$4 sm:$0xff]   ;;  %v13856_v49 = vld [vmem:[#allocation6 + $0x628] ss:$16 sps:$4 sm:$0xff]  }
 0x12b   : > { %7520 = vmatprep.subr.bf16.mxu0 %v13807_v53  ;;  %9328 = vmatprep.subr.bf16.mxu1 %v13810_v54  ;;  %v13864_v53 = vld [vmem:[#allocation6 + $0x64c] ss:$16 sps:$4 sm:$0xff]   ;;  %v13859_v54 = vld [vmem:[#allocation6 + $0x640] ss:$16 sps:$4 sm:$0xff]  }
 0x12c   : > { %7471 = vmatprep.mubr.bf16.mxu0 %v1017_v56  ;;  %9279 = vmatprep.mubr.bf16.mxu1 %v1017_v56  ;;  %v890_v56 = vpack.c.bf16 %v442_v51, %v410_v50  ;;  %v763_v50 = vld [vmem:[%s15543_s13 + $0xd28] sm:$0xff]  ;;  %v13915_v51 = vld [vmem:[#allocation6 + $0x764] ss:$16 sps:$4 sm:$0xff]  }
 0x12e   : > { %7521 = vmatpush1.bf16.msra.mxu0 %v13805_v55  ;;  %9329 = vmatpush1.bf16.msra.mxu1 %v13808_v57  ;;  %v13862_v55 = vld [vmem:[#allocation6 + $0x648] ss:$16 sps:$4 sm:$0xff]  }
 0x12f   : > { %7522 = vmatprep.subr.bf16.mxu0 %v13813_v60  ;;  %9330 = vmatprep.subr.bf16.mxu1 %v13816_v61  ;;  %v475_v57 = vld [vmem:[%s15543_s13 + $0x428] sm:$0xff]  ;;  %v13865_v61 = vld [vmem:[#allocation6 + $0x660] ss:$16 sps:$4 sm:$0xff]  }
 0x130   : > { %v13870_v60 = vld [vmem:[#allocation6 + $0x66c] ss:$16 sps:$4 sm:$0xff]  }
 0x131   : > { %7472 = vmatmul.mubr.bf16.gmra.mrb[20].mxu0 %v1016_v63  ;;  %9280 = vmatmul.mubr.bf16.gmra.mrb[20].mxu1 %v1016_v63  ;;  %v13868_v63 = vld [vmem:[#allocation6 + $0x668] ss:$16 sps:$4 sm:$0xff]  }
 0x132   : > { %7523 = vmatpush1.bf16.msra.mxu0 %v13811_v62  ;;  %9331 = vmatpush1.bf16.msra.mxu1 %v13814_v2  ;;  %v923_v62 = vpack.c.bf16 %v507_v58, %v475_v57  ;;  %v13873_v2 = vld [vmem:[#allocation6 + $0x684] ss:$16 sps:$4 sm:$0xff]  }
 0x133   : > { %7524 = vmatprep.subr.bf16.mxu0 %v13819_v3  ;;  %9332 = vmatprep.subr.bf16.mxu1 %v13822_v4  ;;  %v13876_v3 = vld [vmem:[#allocation6 + $0x68c] ss:$16 sps:$4 sm:$0xff]   ;;  %v13871_v4 = vld [vmem:[#allocation6 + $0x680] ss:$16 sps:$4 sm:$0xff]   ;;  %v13921_v58 = vld [vmem:[#allocation6 + $0x784] ss:$16 sps:$4 sm:$0xff]  }
 0x134   : > { %7481 = vmatprep.mubr.bf16.mxu0 %v1049_v7  ;;  %9289 = vmatprep.mubr.bf16.mxu1 %v1049_v7  ;;  %v571_v7 = vld [vmem:[%s15543_s13 + $0x728] sm:$0xff]  ;;  %v762_v57 = vld [vmem:[%s15543_s13 + $0xd20] sm:$0xff] }
 0x136   : > { %7525 = vmatpush1.bf16.msra.mxu0 %v13817_v5  ;;  %9333 = vmatpush1.bf16.msra.mxu1 %v13820_v6  ;;  %v922_v5 = vpack.c.bf16 %v506_v1, %v474_v0  ;;  %v539_v6 = vld [vmem:[%s15543_s13 + $0x628] sm:$0xff]  ;;  %v13927_v1 = vld [vmem:[#allocation6 + $0x7a4] ss:$16 sps:$4 sm:$0xff]  }
 0x137   : > { %7526 = vmatprep.subr.bf16.mxu0 %v13825_v10  ;;  %9334 = vmatprep.subr.bf16.mxu1 %v13828_v11  ;;  %v13882_v10 = vld [vmem:[#allocation6 + $0x6ac] ss:$16 sps:$4 sm:$0xff]   ;;  %v13877_v11 = vld [vmem:[#allocation6 + $0x6a0] ss:$16 sps:$4 sm:$0xff]   ;;  %v955_v13 = vpack.c.bf16 %v571_v7, %v539_v6 }
 0x138   : > { %v827_v0 = vld [vmem:[%s15543_s13 + $0xf28] sm:$0xff]  ;;  %v794_v6 = vld [vmem:[%s15543_s13 + $0xe20] sm:$0xff] }
 0x139   : > { %7482 = vmatmul.mubr.bf16.gmra.mrb[24].mxu0 %v1048_v12  ;;  %9290 = vmatmul.mubr.bf16.gmra.mrb[24].mxu1 %v1048_v12  ;;  %v13880_v12 = vld [vmem:[#allocation6 + $0x6a8] ss:$16 sps:$4 sm:$0xff]   ;;  %v826_v7 = vld [vmem:[%s15543_s13 + $0xf20] sm:$0xff] }
 0x13a   : > { %7527 = vmatpush1.bf16.msra.mxu0 %v13823_v15  ;;  %9335 = vmatpush1.bf16.msra.mxu1 %v13826_v16  ;;  %v570_v15 = vld [vmem:[%s15543_s13 + $0x720] sm:$0xff] }
 0x13b   : > { %7528 = vmatprep.subr.bf16.mxu0 %v13831_v17  ;;  %9336 = vmatprep.subr.bf16.mxu1 %v13834_v18  ;;  %v13885_v16 = vld [vmem:[#allocation6 + $0x6c4] ss:$16 sps:$4 sm:$0xff]   ;;  %v13888_v17 = vld [vmem:[#allocation6 + $0x6cc] ss:$16 sps:$4 sm:$0xff]   ;;  %v954_v18 = vpack.c.bf16 %v570_v15, %v538_v14  ;;  %v13934_v14 = vld [vmem:[#allocation6 + $0x7c8] ss:$16 sps:$4 sm:$0xff]  }
 0x13c   : > { %7491 = vmatprep.mubr.bf16.mxu0 %v1081_v21  ;;  %9299 = vmatprep.mubr.bf16.mxu1 %v1081_v21  ;;  %v13883_v21 = vld [vmem:[#allocation6 + $0x6c0] ss:$16 sps:$4 sm:$0xff]   ;;  %v13939_v15 = vld [vmem:[#allocation6 + $0x7e4] ss:$16 sps:$4 sm:$0xff]  }
 0x13e   : > { %7529 = vmatpush1.bf16.msra.mxu0 %v13829_v19  ;;  %9337 = vmatpush1.bf16.msra.mxu1 %v13832_v20  ;;  %v603_v19 = vld [vmem:[%s15543_s13 + $0x828] sm:$0xff] }
 0x13f   : > { %7530 = vmatprep.subr.bf16.mxu0 %v13837_v24  ;;  %9338 = vmatprep.subr.bf16.mxu1 %v13840_v25  ;;  %v635_v20 = vld [vmem:[%s15543_s13 + $0x928] sm:$0xff]  ;;  %v13889_v25 = vld [vmem:[#allocation6 + $0x6e0] ss:$16 sps:$4 sm:$0xff]  }
 0x140   : > { %v13894_v24 = vld [vmem:[#allocation6 + $0x6ec] ss:$16 sps:$4 sm:$0xff]  }
 0x141   : > { %7492 = vmatmul.mubr.bf16.gmra.mrb[28].mxu0 %v1080_v27  ;;  %9300 = vmatmul.mubr.bf16.gmra.mrb[28].mxu1 %v1080_v27  ;;  %v987_v27 = vpack.c.bf16 %v635_v20, %v603_v19  ;;  %v348_v20 = vld [vmem:[%s15543_s13 + $0x30] sm:$0xff] }
 0x142   : > { %7531 = vmatpush1.bf16.msra.mxu0 %v13835_v26  ;;  %9339 = vmatpush1.bf16.msra.mxu1 %v13838_v28  ;;  %v13892_v26 = vld [vmem:[#allocation6 + $0x6e8] ss:$16 sps:$4 sm:$0xff]   ;;  %v602_v28 = vld [vmem:[%s15543_s13 + $0x820] sm:$0xff] }
 0x143   : > { %7532 = vmatprep.subr.bf16.mxu0 %v13843_v31  ;;  %9340 = vmatprep.subr.bf16.mxu1 %v13846_v32  ;;  %v13900_v31 = vld [vmem:[#allocation6 + $0x70c] ss:$16 sps:$4 sm:$0xff]   ;;  %v13895_v32 = vld [vmem:[#allocation6 + $0x700] ss:$16 sps:$4 sm:$0xff]  }
 0x144   : > { %7534 = vmatprep.mubr.bf16.mxu0 %v859_v34  ;;  %9342 = vmatprep.mubr.bf16.mxu1 %v859_v34  ;;  %v13898_v34 = vld [vmem:[#allocation6 + $0x708] ss:$16 sps:$4 sm:$0xff]  }
 0x146   : > { %7533 = vmatpush1.bf16.msra.mxu0 %v13841_v33  ;;  %9341 = vmatpush1.bf16.msra.mxu1 %v13844_v35  ;;  %v986_v33 = vpack.c.bf16 %v634_v29, %v602_v28  ;;  %v667_v35 = vld [vmem:[%s15543_s13 + $0xa28] sm:$0xff]  ;;  %v13951_v29 = vld [vmem:[#allocation6 + $0x824] ss:$16 sps:$4 sm:$0xff]  }
 0x147   : > { %7615 = vmatprep.subr.bf16.mxu0 %v13849_v38  ;;  %9423 = vmatprep.subr.bf16.mxu1 %v13852_v39  ;;  %v13906_v38 = vld [vmem:[#allocation6 + $0x72c] ss:$16 sps:$4 sm:$0xff]   ;;  %v13901_v39 = vld [vmem:[#allocation6 + $0x720] ss:$16 sps:$4 sm:$0xff]   ;;  %v13946_v28 = vld [vmem:[#allocation6 + $0x808] ss:$16 sps:$4 sm:$0xff]  }
 0x149   : > { %7535 = vmatmul.mubr.bf16.vlgmr.msra.gmra.mrb[0].mxu0 %v858_v42  ;;  %9343 = vmatmul.mubr.bf16.vlgmr.msra.gmra.mrb[0].mxu1 %v858_v42  ;;  %v666_v42 = vld [vmem:[%s15543_s13 + $0xa20] sm:$0xff] }
 0x14a   : > { %7616 = vmatpush1.bf16.msra.mxu0 %v13847_v40  ;;  %9424 = vmatpush1.bf16.msra.mxu1 %v13850_v41  ;;  %v1019_v40 = vpack.c.bf16 %v699_v36, %v667_v35  ;;  %v13904_v41 = vld [vmem:[#allocation6 + $0x728] ss:$16 sps:$4 sm:$0xff]   ;;  %v444_v35 = vld [vmem:[%s15543_s13 + $0x330] sm:$0xff] }
 0x14b   : > { %7617 = vmatprep.subr.bf16.mxu0 %v13855_v45  ;;  %9425 = vmatprep.subr.bf16.mxu1 %v13858_v46  ;;  %v13912_v45 = vld [vmem:[#allocation6 + $0x74c] ss:$16 sps:$4 sm:$0xff]   ;;  %v13907_v46 = vld [vmem:[#allocation6 + $0x740] ss:$16 sps:$4 sm:$0xff]   ;;  %v13957_v36 = vld [vmem:[#allocation6 + $0x844] ss:$16 sps:$4 sm:$0xff]  }
 0x14c   : > { %7544 = vmatprep.mubr.bf16.mxu0 %v891_v47  ;;  %9352 = vmatprep.mubr.bf16.mxu1 %v891_v47  ;;  %v13910_v47 = vld [vmem:[#allocation6 + $0x748] ss:$16 sps:$4 sm:$0xff]  }
 0x14e   : > { %7618 = vmatpush1.bf16.msra.mxu0 %v13853_v48  ;;  %9426 = vmatpush1.bf16.msra.mxu1 %v13856_v49  ;;  %v1018_v48 = vpack.c.bf16 %v698_v43, %v666_v42  ;;  %v731_v49 = vld [vmem:[%s15543_s13 + $0xc28] sm:$0xff]  ;;  %v509_v42 = vld [vmem:[%s15543_s13 + $0x538] sm:$0xff]  ;;  %v13963_v43 = vld [vmem:[#allocation6 + $0x864] ss:$16 sps:$4 sm:$0xff]  }
 0x14f   : > { %7619 = vmatprep.subr.bf16.mxu0 %v13861_v52  ;;  %9427 = vmatprep.subr.bf16.mxu1 %v13864_v53  ;;  %v13918_v52 = vld [vmem:[#allocation6 + $0x76c] ss:$16 sps:$4 sm:$0xff]   ;;  %v1051_v53 = vpack.c.bf16 %v763_v50, %v731_v49  ;;  %v508_v49 = vld [vmem:[%s15543_s13 + $0x530] sm:$0xff] }
 0x150   : > { %v13969_v50 = vld [vmem:[#allocation6 + $0x884] ss:$16 sps:$4 sm:$0xff]  }
 0x151   : > { %7545 = vmatmul.mubr.bf16.gmra.mrb[4].mxu0 %v890_v56  ;;  %9353 = vmatmul.mubr.bf16.gmra.mrb[4].mxu1 %v890_v56  ;;  %v730_v56 = vld [vmem:[%s15543_s13 + $0xc20] sm:$0xff] }
 0x152   : > { %7620 = vmatpush1.bf16.msra.mxu0 %v13859_v54  ;;  %9428 = vmatpush1.bf16.msra.mxu1 %v13862_v55  ;;  %v13913_v54 = vld [vmem:[#allocation6 + $0x760] ss:$16 sps:$4 sm:$0xff]   ;;  %v13916_v55 = vld [vmem:[#allocation6 + $0x768] ss:$16 sps:$4 sm:$0xff]  }
 0x153   : > { %7621 = vmatprep.subr.bf16.mxu0 %v13867_v59  ;;  %9429 = vmatprep.subr.bf16.mxu1 %v13870_v60  ;;  %v13924_v59 = vld [vmem:[#allocation6 + $0x78c] ss:$16 sps:$4 sm:$0xff]   ;;  %v13919_v60 = vld [vmem:[#allocation6 + $0x780] ss:$16 sps:$4 sm:$0xff]  }
 0x154   : > { %7554 = vmatprep.mubr.bf16.mxu0 %v923_v62  ;;  %9362 = vmatprep.mubr.bf16.mxu1 %v923_v62  ;;  %v1050_v62 = vpack.c.bf16 %v762_v57, %v730_v56  ;;  %v573_v56 = vld [vmem:[%s15543_s13 + $0x738] sm:$0xff]  ;;  %v13975_v57 = vld [vmem:[#allocation6 + $0x8a4] ss:$16 sps:$4 sm:$0xff]  }
 0x156   : > { %7622 = vmatpush1.bf16.msra.mxu0 %v13865_v61  ;;  %9430 = vmatpush1.bf16.msra.mxu1 %v13868_v63  ;;  %v13922_v61 = vld [vmem:[#allocation6 + $0x788] ss:$16 sps:$4 sm:$0xff]  }
 0x157   : > { %7623 = vmatprep.subr.bf16.mxu0 %v13873_v2  ;;  %9431 = vmatprep.subr.bf16.mxu1 %v13876_v3  ;;  %v795_v63 = vld [vmem:[%s15543_s13 + $0xe28] sm:$0xff]  ;;  %v13925_v3 = vld [vmem:[#allocation6 + $0x7a0] ss:$16 sps:$4 sm:$0xff]  }
 0x158   : > { %v13930_v2 = vld [vmem:[#allocation6 + $0x7ac] ss:$16 sps:$4 sm:$0xff]  }
 0x159   : > { %7555 = vmatmul.mubr.bf16.gmra.mrb[8].mxu0 %v922_v5  ;;  %9363 = vmatmul.mubr.bf16.gmra.mrb[8].mxu1 %v922_v5  ;;  %v13928_v5 = vld [vmem:[#allocation6 + $0x7a8] ss:$16 sps:$4 sm:$0xff]  }
 0x15a   : > { %7624 = vmatpush1.bf16.msra.mxu0 %v13871_v4  ;;  %9432 = vmatpush1.bf16.msra.mxu1 %v13874_v8  ;;  %v1083_v4 = vpack.c.bf16 %v827_v0, %v795_v63  ;;  %v13933_v8 = vld [vmem:[#allocation6 + $0x7c4] ss:$16 sps:$4 sm:$0xff]  }
 0x15b   : > { %7625 = vmatprep.subr.bf16.mxu0 %v13879_v9  ;;  %9433 = vmatprep.subr.bf16.mxu1 %v13882_v10  ;;  %v13936_v9 = vld [vmem:[#allocation6 + $0x7cc] ss:$16 sps:$4 sm:$0xff]   ;;  %v13931_v10 = vld [vmem:[#allocation6 + $0x7c0] ss:$16 sps:$4 sm:$0xff]   ;;  %v13981_v0 = vld [vmem:[#allocation6 + $0x8c4] ss:$16 sps:$4 sm:$0xff]  }
 0x15c   : > { %7564 = vmatprep.mubr.bf16.mxu0 %v955_v13  ;;  %9372 = vmatprep.mubr.bf16.mxu1 %v955_v13  ;;  %v381_v13 = vld [vmem:[%s15543_s13 + $0x138] sm:$0xff]  ;;  %v572_v63 = vld [vmem:[%s15543_s13 + $0x730] sm:$0xff] }
 0x15e   : > { %7626 = vmatpush1.bf16.msra.mxu0 %v13877_v11  ;;  %9434 = vmatpush1.bf16.msra.mxu1 %v13880_v12  ;;  %v1082_v11 = vpack.c.bf16 %v826_v7, %v794_v6  ;;  %v349_v12 = vld [vmem:[%s15543_s13 + $0x38] sm:$0xff]  ;;  %v13987_v7 = vld [vmem:[#allocation6 + $0x8e4] ss:$16 sps:$4 sm:$0xff]  }
 0x15f   : > { %7627 = vmatprep.subr.bf16.mxu0 %v13885_v16  ;;  %9435 = vmatprep.subr.bf16.mxu1 %v13888_v17  ;;  %v13942_v16 = vld [vmem:[#allocation6 + $0x7ec] ss:$16 sps:$4 sm:$0xff]   ;;  %v13937_v17 = vld [vmem:[#allocation6 + $0x7e0] ss:$16 sps:$4 sm:$0xff]   ;;  %v861_v19 = vpack.c.bf16 %v381_v13, %v349_v12 }
 0x160   : > { %v637_v6 = vld [vmem:[%s15543_s13 + $0x938] sm:$0xff]  ;;  %v604_v12 = vld [vmem:[%s15543_s13 + $0x830] sm:$0xff] }
 0x161   : > { %7565 = vmatmul.mubr.bf16.gmra.mrb[12].mxu0 %v954_v18  ;;  %9373 = vmatmul.mubr.bf16.gmra.mrb[12].mxu1 %v954_v18  ;;  %v13940_v18 = vld [vmem:[#allocation6 + $0x7e8] ss:$16 sps:$4 sm:$0xff]   ;;  %v636_v13 = vld [vmem:[%s15543_s13 + $0x930] sm:$0xff] }
 0x162   : > { %7628 = vmatpush1.bf16.msra.mxu0 %v13883_v21  ;;  %9436 = vmatpush1.bf16.msra.mxu1 %v13886_v22  ;;  %v380_v21 = vld [vmem:[%s15543_s13 + $0x130] sm:$0xff] }
 0x163   : > { %7629 = vmatprep.subr.bf16.mxu0 %v13891_v23  ;;  %9437 = vmatprep.subr.bf16.mxu1 %v13894_v24  ;;  %v13945_v22 = vld [vmem:[#allocation6 + $0x804] ss:$16 sps:$4 sm:$0xff]   ;;  %v13948_v23 = vld [vmem:[#allocation6 + $0x80c] ss:$16 sps:$4 sm:$0xff]   ;;  %v860_v24 = vpack.c.bf16 %v380_v21, %v348_v20  ;;  %v13994_v20 = vld [vmem:[#allocation6 + $0x908] ss:$16 sps:$4 sm:$0xff]  }
 0x164   : > { %7574 = vmatprep.mubr.bf16.mxu0 %v987_v27  ;;  %9382 = vmatprep.mubr.bf16.mxu1 %v987_v27  ;;  %v13943_v27 = vld [vmem:[#allocation6 + $0x800] ss:$16 sps:$4 sm:$0xff]   ;;  %v13999_v21 = vld [vmem:[#allocation6 + $0x924] ss:$16 sps:$4 sm:$0xff]  }
 0x166   : > { %7630 = vmatpush1.bf16.msra.mxu0 %v13889_v25  ;;  %9438 = vmatpush1.bf16.msra.mxu1 %v13892_v26  ;;  %v413_v25 = vld [vmem:[%s15543_s13 + $0x238] sm:$0xff] }
 0x167   : > { %7631 = vmatprep.subr.bf16.mxu0 %v13897_v30  ;;  %9439 = vmatprep.subr.bf16.mxu1 %v13900_v31  ;;  %v445_v26 = vld [vmem:[%s15543_s13 + $0x338] sm:$0xff]  ;;  %v13949_v31 = vld [vmem:[#allocation6 + $0x820] ss:$16 sps:$4 sm:$0xff]  }
 0x168   : > { %v13954_v30 = vld [vmem:[#allocation6 + $0x82c] ss:$16 sps:$4 sm:$0xff]  }
 0x169   : > { %7575 = vmatmul.mubr.bf16.gmra.mrb[16].mxu0 %v986_v33  ;;  %9383 = vmatmul.mubr.bf16.gmra.mrb[16].mxu1 %v986_v33  ;;  %v893_v33 = vpack.c.bf16 %v445_v26, %v413_v25  ;;  %v668_v26 = vld [vmem:[%s15543_s13 + $0xa30] sm:$0xff] }
 0x16a   : > { %7632 = vmatpush1.bf16.msra.mxu0 %v13895_v32  ;;  %9440 = vmatpush1.bf16.msra.mxu1 %v13898_v34  ;;  %v13952_v32 = vld [vmem:[#allocation6 + $0x828] ss:$16 sps:$4 sm:$0xff]   ;;  %v412_v34 = vld [vmem:[%s15543_s13 + $0x230] sm:$0xff] }
 0x16b   : > { %7633 = vmatprep.subr.bf16.mxu0 %v13903_v37  ;;  %9441 = vmatprep.subr.bf16.mxu1 %v13906_v38  ;;  %v13960_v37 = vld [vmem:[#allocation6 + $0x84c] ss:$16 sps:$4 sm:$0xff]   ;;  %v13955_v38 = vld [vmem:[#allocation6 + $0x840] ss:$16 sps:$4 sm:$0xff]  }
 0x16c   : > { %7584 = vmatprep.mubr.bf16.mxu0 %v1019_v40  ;;  %9392 = vmatprep.mubr.bf16.mxu1 %v1019_v40  ;;  %v13958_v40 = vld [vmem:[#allocation6 + $0x848] ss:$16 sps:$4 sm:$0xff]  }
 0x16e   : > { %7634 = vmatpush1.bf16.msra.mxu0 %v13901_v39  ;;  %9442 = vmatpush1.bf16.msra.mxu1 %v13904_v41  ;;  %v892_v39 = vpack.c.bf16 %v444_v35, %v412_v34  ;;  %v477_v41 = vld [vmem:[%s15543_s13 + $0x438] sm:$0xff]  ;;  %v14011_v35 = vld [vmem:[#allocation6 + $0x964] ss:$16 sps:$4 sm:$0xff]  }
 0x16f   : > { %7635 = vmatprep.subr.bf16.mxu0 %v13909_v44  ;;  %9443 = vmatprep.subr.bf16.mxu1 %v13912_v45  ;;  %v13966_v44 = vld [vmem:[#allocation6 + $0x86c] ss:$16 sps:$4 sm:$0xff]   ;;  %v13961_v45 = vld [vmem:[#allocation6 + $0x860] ss:$16 sps:$4 sm:$0xff]   ;;  %v14006_v34 = vld [vmem:[#allocation6 + $0x948] ss:$16 sps:$4 sm:$0xff]  }
 0x171   : > { %7585 = vmatmul.mubr.bf16.gmra.mrb[20].mxu0 %v1018_v48  ;;  %9393 = vmatmul.mubr.bf16.gmra.mrb[20].mxu1 %v1018_v48  ;;  %v476_v48 = vld [vmem:[%s15543_s13 + $0x430] sm:$0xff] }
 0x172   : > { %7636 = vmatpush1.bf16.msra.mxu0 %v13907_v46  ;;  %9444 = vmatpush1.bf16.msra.mxu1 %v13910_v47  ;;  %v925_v46 = vpack.c.bf16 %v509_v42, %v477_v41  ;;  %v13964_v47 = vld [vmem:[#allocation6 + $0x868] ss:$16 sps:$4 sm:$0xff]   ;;  %v764_v41 = vld [vmem:[%s15543_s13 + $0xd30] sm:$0xff] }
 0x173   : > { %7637 = vmatprep.subr.bf16.mxu0 %v13915_v51  ;;  %9445 = vmatprep.subr.bf16.mxu1 %v13918_v52  ;;  %v13972_v51 = vld [vmem:[#allocation6 + $0x88c] ss:$16 sps:$4 sm:$0xff]   ;;  %v13967_v52 = vld [vmem:[#allocation6 + $0x880] ss:$16 sps:$4 sm:$0xff]   ;;  %v14017_v42 = vld [vmem:[#allocation6 + $0x984] ss:$16 sps:$4 sm:$0xff]  }
 0x174   : > { %7594 = vmatprep.mubr.bf16.mxu0 %v1051_v53  ;;  %9402 = vmatprep.mubr.bf16.mxu1 %v1051_v53  ;;  %v13970_v53 = vld [vmem:[#allocation6 + $0x888] ss:$16 sps:$4 sm:$0xff]  }
 0x176   : > { %7638 = vmatpush1.bf16.msra.mxu0 %v13913_v54  ;;  %9446 = vmatpush1.bf16.msra.mxu1 %v13916_v55  ;;  %v924_v54 = vpack.c.bf16 %v508_v49, %v476_v48  ;;  %v541_v55 = vld [vmem:[%s15543_s13 + $0x638] sm:$0xff]  ;;  %v14023_v49 = vld [vmem:[#allocation6 + $0x9a4] ss:$16 sps:$4 sm:$0xff]  }
 0x177   : > { %7639 = vmatprep.subr.bf16.mxu0 %v13921_v58  ;;  %9447 = vmatprep.subr.bf16.mxu1 %v13924_v59  ;;  %v13978_v58 = vld [vmem:[#allocation6 + $0x8ac] ss:$16 sps:$4 sm:$0xff]   ;;  %v957_v59 = vpack.c.bf16 %v573_v56, %v541_v55  ;;  %v828_v55 = vld [vmem:[%s15543_s13 + $0xf30] sm:$0xff] }
 0x178   : > { %v829_v48 = vld [vmem:[%s15543_s13 + $0xf38] sm:$0xff]  ;;  %v14029_v56 = vld [vmem:[#allocation6 + $0x9c4] ss:$16 sps:$4 sm:$0xff]  }
 0x179   : > { %7595 = vmatmul.mubr.bf16.gmra.mrb[24].mxu0 %v1050_v62  ;;  %9403 = vmatmul.mubr.bf16.gmra.mrb[24].mxu1 %v1050_v62  ;;  %v540_v62 = vld [vmem:[%s15543_s13 + $0x630] sm:$0xff] }
 0x17a   : > { %7640 = vmatpush1.bf16.msra.mxu0 %v13919_v60  ;;  %9448 = vmatpush1.bf16.msra.mxu1 %v13922_v61  ;;  %v13973_v60 = vld [vmem:[#allocation6 + $0x8a0] ss:$16 sps:$4 sm:$0xff]   ;;  %v13976_v61 = vld [vmem:[#allocation6 + $0x8a8] ss:$16 sps:$4 sm:$0xff]  }
 0x17b   : > { %7641 = vmatprep.subr.bf16.mxu0 %v13927_v1  ;;  %9449 = vmatprep.subr.bf16.mxu1 %v13930_v2  ;;  %v13984_v1 = vld [vmem:[#allocation6 + $0x8cc] ss:$16 sps:$4 sm:$0xff]   ;;  %v13979_v2 = vld [vmem:[#allocation6 + $0x8c0] ss:$16 sps:$4 sm:$0xff]  }
 0x17c   : > { %7604 = vmatprep.mubr.bf16.mxu0 %v1083_v4  ;;  %9412 = vmatprep.mubr.bf16.mxu1 %v1083_v4  ;;  %v956_v4 = vpack.c.bf16 %v572_v63, %v540_v62  ;;  %v383_v62 = vld [vmem:[%s15543_s13 + $0x148] sm:$0xff]  ;;  %v14035_v63 = vld [vmem:[#allocation6 + $0x9e4] ss:$16 sps:$4 sm:$0xff]  }
 0x17e   : > { %7642 = vmatpush1.bf16.msra.mxu0 %v13925_v3  ;;  %9450 = vmatpush1.bf16.msra.mxu1 %v13928_v5  ;;  %v13982_v3 = vld [vmem:[#allocation6 + $0x8c8] ss:$16 sps:$4 sm:$0xff]  }
 0x17f   : > { %7643 = vmatprep.subr.bf16.mxu0 %v13933_v8  ;;  %9451 = vmatprep.subr.bf16.mxu1 %v13936_v9  ;;  %v605_v5 = vld [vmem:[%s15543_s13 + $0x838] sm:$0xff]  ;;  %v13985_v9 = vld [vmem:[#allocation6 + $0x8e0] ss:$16 sps:$4 sm:$0xff]  }
 0x180   : > { %v13990_v8 = vld [vmem:[#allocation6 + $0x8ec] ss:$16 sps:$4 sm:$0xff]  }
 0x181   : > { %7605 = vmatmul.mubr.bf16.gmra.mrb[28].mxu0 %v1082_v11  ;;  %9413 = vmatmul.mubr.bf16.gmra.mrb[28].mxu1 %v1082_v11  ;;  %v13988_v11 = vld [vmem:[#allocation6 + $0x8e8] ss:$16 sps:$4 sm:$0xff]  }
 0x182   : > { %7644 = vmatpush1.bf16.msra.mxu0 %v13931_v10  ;;  %9452 = vmatpush1.bf16.msra.mxu1 %v13934_v14  ;;  %v989_v10 = vpack.c.bf16 %v637_v6, %v605_v5  ;;  %v13993_v14 = vld [vmem:[#allocation6 + $0x904] ss:$16 sps:$4 sm:$0xff]  }
 0x183   : > { %7645 = vmatprep.subr.bf16.mxu0 %v13939_v15  ;;  %9453 = vmatprep.subr.bf16.mxu1 %v13942_v16  ;;  %v13996_v15 = vld [vmem:[#allocation6 + $0x90c] ss:$16 sps:$4 sm:$0xff]   ;;  %v13991_v16 = vld [vmem:[#allocation6 + $0x900] ss:$16 sps:$4 sm:$0xff]   ;;  %v14041_v6 = vld [vmem:[#allocation6 + $0xa04] ss:$16 sps:$4 sm:$0xff]  }
 0x184   : > { %7647 = vmatprep.mubr.bf16.mxu0 %v861_v19  ;;  %9455 = vmatprep.mubr.bf16.mxu1 %v861_v19  ;;  %v701_v19 = vld [vmem:[%s15543_s13 + $0xb38] sm:$0xff]  ;;  %v382_v5 = vld [vmem:[%s15543_s13 + $0x140] sm:$0xff] }
 0x186   : > { %7646 = vmatpush1.bf16.msra.mxu0 %v13937_v17  ;;  %9454 = vmatpush1.bf16.msra.mxu1 %v13940_v18  ;;  %v988_v17 = vpack.c.bf16 %v636_v13, %v604_v12  ;;  %v669_v18 = vld [vmem:[%s15543_s13 + $0xa38] sm:$0xff]  ;;  %v447_v12 = vld [vmem:[%s15543_s13 + $0x348] sm:$0xff]  ;;  %v14047_v13 = vld [vmem:[#allocation6 + $0xa24] ss:$16 sps:$4 sm:$0xff]  }
 0x187   : > { %7728 = vmatprep.subr.bf16.mxu0 %v13945_v22  ;;  %9536 = vmatprep.subr.bf16.mxu1 %v13948_v23  ;;  %v14002_v22 = vld [vmem:[#allocation6 + $0x92c] ss:$16 sps:$4 sm:$0xff]   ;;  %v13997_v23 = vld [vmem:[#allocation6 + $0x920] ss:$16 sps:$4 sm:$0xff]   ;;  %v1021_v25 = vpack.c.bf16 %v701_v19, %v669_v18 }
 0x188   : > { %v414_v18 = vld [vmem:[%s15543_s13 + $0x240] sm:$0xff] }
 0x189   : > { %7648 = vmatmul.mubr.bf16.vlgmr.msra.gmra.mrb[0].mxu0 %v860_v24  ;;  %9456 = vmatmul.mubr.bf16.vlgmr.msra.gmra.mrb[0].mxu1 %v860_v24  ;;  %v14000_v24 = vld [vmem:[#allocation6 + $0x928] ss:$16 sps:$4 sm:$0xff]   ;;  %v446_v19 = vld [vmem:[%s15543_s13 + $0x340] sm:$0xff] }
 0x18a   : > { %7729 = vmatpush1.bf16.msra.mxu0 %v13943_v27  ;;  %9537 = vmatpush1.bf16.msra.mxu1 %v13946_v28  ;;  %v700_v27 = vld [vmem:[%s15543_s13 + $0xb30] sm:$0xff] }
 0x18b   : > { %7730 = vmatprep.subr.bf16.mxu0 %v13951_v29  ;;  %9538 = vmatprep.subr.bf16.mxu1 %v13954_v30  ;;  %v14005_v28 = vld [vmem:[#allocation6 + $0x944] ss:$16 sps:$4 sm:$0xff]   ;;  %v14008_v29 = vld [vmem:[#allocation6 + $0x94c] ss:$16 sps:$4 sm:$0xff]   ;;  %v1020_v30 = vpack.c.bf16 %v700_v27, %v668_v26  ;;  %v14054_v26 = vld [vmem:[#allocation6 + $0xa48] ss:$16 sps:$4 sm:$0xff]  }
 0x18c   : > { %7657 = vmatprep.mubr.bf16.mxu0 %v893_v33  ;;  %9465 = vmatprep.mubr.bf16.mxu1 %v893_v33  ;;  %v14003_v33 = vld [vmem:[#allocation6 + $0x940] ss:$16 sps:$4 sm:$0xff]   ;;  %v14059_v27 = vld [vmem:[#allocation6 + $0xa64] ss:$16 sps:$4 sm:$0xff]  }
 0x18e   : > { %7731 = vmatpush1.bf16.msra.mxu0 %v13949_v31  ;;  %9539 = vmatpush1.bf16.msra.mxu1 %v13952_v32  ;;  %v733_v31 = vld [vmem:[%s15543_s13 + $0xc38] sm:$0xff] }
 0x18f   : > { %7732 = vmatprep.subr.bf16.mxu0 %v13957_v36  ;;  %9540 = vmatprep.subr.bf16.mxu1 %v13960_v37  ;;  %v765_v32 = vld [vmem:[%s15543_s13 + $0xd38] sm:$0xff]  ;;  %v14009_v37 = vld [vmem:[#allocation6 + $0x960] ss:$16 sps:$4 sm:$0xff]  }
 0x190   : > { %v14014_v36 = vld [vmem:[#allocation6 + $0x96c] ss:$16 sps:$4 sm:$0xff]  }
 0x191   : > { %7658 = vmatmul.mubr.bf16.gmra.mrb[4].mxu0 %v892_v39  ;;  %9466 = vmatmul.mubr.bf16.gmra.mrb[4].mxu1 %v892_v39  ;;  %v1053_v39 = vpack.c.bf16 %v765_v32, %v733_v31  ;;  %v478_v32 = vld [vmem:[%s15543_s13 + $0x440] sm:$0xff] }
 0x192   : > { %7733 = vmatpush1.bf16.msra.mxu0 %v13955_v38  ;;  %9541 = vmatpush1.bf16.msra.mxu1 %v13958_v40  ;;  %v14012_v38 = vld [vmem:[#allocation6 + $0x968] ss:$16 sps:$4 sm:$0xff]   ;;  %v732_v40 = vld [vmem:[%s15543_s13 + $0xc30] sm:$0xff] }
 0x193   : > { %7734 = vmatprep.subr.bf16.mxu0 %v13963_v43  ;;  %9542 = vmatprep.subr.bf16.mxu1 %v13966_v44  ;;  %v14020_v43 = vld [vmem:[#allocation6 + $0x98c] ss:$16 sps:$4 sm:$0xff]   ;;  %v14015_v44 = vld [vmem:[#allocation6 + $0x980] ss:$16 sps:$4 sm:$0xff]  }
 0x194   : > { %7667 = vmatprep.mubr.bf16.mxu0 %v925_v46  ;;  %9475 = vmatprep.mubr.bf16.mxu1 %v925_v46  ;;  %v14018_v46 = vld [vmem:[#allocation6 + $0x988] ss:$16 sps:$4 sm:$0xff]  }
 0x196   : > { %7735 = vmatpush1.bf16.msra.mxu0 %v13961_v45  ;;  %9543 = vmatpush1.bf16.msra.mxu1 %v13964_v47  ;;  %v1052_v45 = vpack.c.bf16 %v764_v41, %v732_v40  ;;  %v797_v47 = vld [vmem:[%s15543_s13 + $0xe38] sm:$0xff]  ;;  %v14071_v41 = vld [vmem:[#allocation6 + $0xaa4] ss:$16 sps:$4 sm:$0xff]  }
 0x197   : > { %7736 = vmatprep.subr.bf16.mxu0 %v13969_v50  ;;  %9544 = vmatprep.subr.bf16.mxu1 %v13972_v51  ;;  %v14026_v50 = vld [vmem:[#allocation6 + $0x9ac] ss:$16 sps:$4 sm:$0xff]   ;;  %v14021_v51 = vld [vmem:[#allocation6 + $0x9a0] ss:$16 sps:$4 sm:$0xff]   ;;  %v14066_v40 = vld [vmem:[#allocation6 + $0xa88] ss:$16 sps:$4 sm:$0xff]  }
 0x199   : > { %7668 = vmatmul.mubr.bf16.gmra.mrb[8].mxu0 %v924_v54  ;;  %9476 = vmatmul.mubr.bf16.gmra.mrb[8].mxu1 %v924_v54  ;;  %v796_v54 = vld [vmem:[%s15543_s13 + $0xe30] sm:$0xff] }
 0x19a   : > { %7737 = vmatpush1.bf16.msra.mxu0 %v13967_v52  ;;  %9545 = vmatpush1.bf16.msra.mxu1 %v13970_v53  ;;  %v1085_v52 = vpack.c.bf16 %v829_v48, %v797_v47  ;;  %v14024_v53 = vld [vmem:[#allocation6 + $0x9a8] ss:$16 sps:$4 sm:$0xff]   ;;  %v574_v47 = vld [vmem:[%s15543_s13 + $0x740] sm:$0xff] }
 0x19b   : > { %7738 = vmatprep.subr.bf16.mxu0 %v13975_v57  ;;  %9546 = vmatprep.subr.bf16.mxu1 %v13978_v58  ;;  %v14032_v57 = vld [vmem:[#allocation6 + $0x9cc] ss:$16 sps:$4 sm:$0xff]   ;;  %v14027_v58 = vld [vmem:[#allocation6 + $0x9c0] ss:$16 sps:$4 sm:$0xff]   ;;  %v14077_v48 = vld [vmem:[#allocation6 + $0xac4] ss:$16 sps:$4 sm:$0xff]  }
 0x19c   : > { %7677 = vmatprep.mubr.bf16.mxu0 %v957_v59  ;;  %9485 = vmatprep.mubr.bf16.mxu1 %v957_v59  ;;  %v14030_v59 = vld [vmem:[#allocation6 + $0x9c8] ss:$16 sps:$4 sm:$0xff]  }
 0x19e   : > { %7739 = vmatpush1.bf16.msra.mxu0 %v13973_v60  ;;  %9547 = vmatpush1.bf16.msra.mxu1 %v13976_v61  ;;  %v1084_v60 = vpack.c.bf16 %v828_v55, %v796_v54  ;;  %v351_v61 = vld [vmem:[%s15543_s13 + $0x48] sm:$0xff]  ;;  %v14083_v55 = vld [vmem:[#allocation6 + $0xae4] ss:$16 sps:$4 sm:$0xff]  }
 0x19f   : > { %7740 = vmatprep.subr.bf16.mxu0 %v13981_v0  ;;  %9548 = vmatprep.subr.bf16.mxu1 %v13984_v1  ;;  %v14038_v0 = vld [vmem:[#allocation6 + $0x9ec] ss:$16 sps:$4 sm:$0xff]   ;;  %v863_v1 = vpack.c.bf16 %v383_v62, %v351_v61  ;;  %v638_v61 = vld [vmem:[%s15543_s13 + $0x940] sm:$0xff] }
 0x1a0   : > { %v639_v54 = vld [vmem:[%s15543_s13 + $0x948] sm:$0xff]  ;;  %v14089_v62 = vld [vmem:[#allocation6 + $0xb04] ss:$16 sps:$4 sm:$0xff]  }
 0x1a1   : > { %7678 = vmatmul.mubr.bf16.gmra.mrb[12].mxu0 %v956_v4  ;;  %9486 = vmatmul.mubr.bf16.gmra.mrb[12].mxu1 %v956_v4  ;;  %v350_v4 = vld [vmem:[%s15543_s13 + $0x40] sm:$0xff] }
 0x1a2   : > { %7741 = vmatpush1.bf16.msra.mxu0 %v13979_v2  ;;  %9549 = vmatpush1.bf16.msra.mxu1 %v13982_v3  ;;  %v14033_v2 = vld [vmem:[#allocation6 + $0x9e0] ss:$16 sps:$4 sm:$0xff]   ;;  %v14036_v3 = vld [vmem:[#allocation6 + $0x9e8] ss:$16 sps:$4 sm:$0xff]  }
 0x1a3   : > { %7742 = vmatprep.subr.bf16.mxu0 %v13987_v7  ;;  %9550 = vmatprep.subr.bf16.mxu1 %v13990_v8  ;;  %v14044_v7 = vld [vmem:[#allocation6 + $0xa0c] ss:$16 sps:$4 sm:$0xff]   ;;  %v14039_v8 = vld [vmem:[#allocation6 + $0xa00] ss:$16 sps:$4 sm:$0xff]  }
 0x1a4   : > { %7687 = vmatprep.mubr.bf16.mxu0 %v989_v10  ;;  %9495 = vmatprep.mubr.bf16.mxu1 %v989_v10  ;;  %v862_v10 = vpack.c.bf16 %v382_v5, %v350_v4  ;;  %v703_v4 = vld [vmem:[%s15543_s13 + $0xb48] sm:$0xff]  ;;  %v14095_v5 = vld [vmem:[#allocation6 + $0xb24] ss:$16 sps:$4 sm:$0xff]  }
 0x1a6   : > { %7743 = vmatpush1.bf16.msra.mxu0 %v13985_v9  ;;  %9551 = vmatpush1.bf16.msra.mxu1 %v13988_v11  ;;  %v14042_v9 = vld [vmem:[#allocation6 + $0xa08] ss:$16 sps:$4 sm:$0xff]  }
 0x1a7   : > { %7744 = vmatprep.subr.bf16.mxu0 %v13993_v14  ;;  %9552 = vmatprep.subr.bf16.mxu1 %v13996_v15  ;;  %v415_v11 = vld [vmem:[%s15543_s13 + $0x248] sm:$0xff]  ;;  %v14045_v15 = vld [vmem:[#allocation6 + $0xa20] ss:$16 sps:$4 sm:$0xff]  }
 0x1a8   : > { %v14050_v14 = vld [vmem:[#allocation6 + $0xa2c] ss:$16 sps:$4 sm:$0xff]  }
 0x1a9   : > { %7688 = vmatmul.mubr.bf16.gmra.mrb[16].mxu0 %v988_v17  ;;  %9496 = vmatmul.mubr.bf16.gmra.mrb[16].mxu1 %v988_v17  ;;  %v14048_v17 = vld [vmem:[#allocation6 + $0xa28] ss:$16 sps:$4 sm:$0xff]  }
 0x1aa   : > { %7745 = vmatpush1.bf16.msra.mxu0 %v13991_v16  ;;  %9553 = vmatpush1.bf16.msra.mxu1 %v13994_v20  ;;  %v895_v16 = vpack.c.bf16 %v447_v12, %v415_v11  ;;  %v14053_v20 = vld [vmem:[#allocation6 + $0xa44] ss:$16 sps:$4 sm:$0xff]  }
 0x1ab   : > { %7746 = vmatprep.subr.bf16.mxu0 %v13999_v21  ;;  %9554 = vmatprep.subr.bf16.mxu1 %v14002_v22  ;;  %v14056_v21 = vld [vmem:[#allocation6 + $0xa4c] ss:$16 sps:$4 sm:$0xff]   ;;  %v14051_v22 = vld [vmem:[#allocation6 + $0xa40] ss:$16 sps:$4 sm:$0xff]   ;;  %v14101_v12 = vld [vmem:[#allocation6 + $0xb44] ss:$16 sps:$4 sm:$0xff]  }
 0x1ac   : > { %7697 = vmatprep.mubr.bf16.mxu0 %v1021_v25  ;;  %9505 = vmatprep.mubr.bf16.mxu1 %v1021_v25  ;;  %v511_v25 = vld [vmem:[%s15543_s13 + $0x548] sm:$0xff]  ;;  %v702_v11 = vld [vmem:[%s15543_s13 + $0xb40] sm:$0xff] }
 0x1ae   : > { %7747 = vmatpush1.bf16.msra.mxu0 %v13997_v23  ;;  %9555 = vmatpush1.bf16.msra.mxu1 %v14000_v24  ;;  %v894_v23 = vpack.c.bf16 %v446_v19, %v414_v18  ;;  %v479_v24 = vld [vmem:[%s15543_s13 + $0x448] sm:$0xff]  ;;  %v14107_v19 = vld [vmem:[#allocation6 + $0xb64] ss:$16 sps:$4 sm:$0xff]  }
 0x1af   : > { %7748 = vmatprep.subr.bf16.mxu0 %v14005_v28  ;;  %9556 = vmatprep.subr.bf16.mxu1 %v14008_v29  ;;  %v14062_v28 = vld [vmem:[#allocation6 + $0xa6c] ss:$16 sps:$4 sm:$0xff]   ;;  %v14057_v29 = vld [vmem:[#allocation6 + $0xa60] ss:$16 sps:$4 sm:$0xff]   ;;  %v927_v31 = vpack.c.bf16 %v511_v25, %v479_v24 }
 0x1b0   : > { %v767_v18 = vld [vmem:[%s15543_s13 + $0xd48] sm:$0xff]  ;;  %v734_v24 = vld [vmem:[%s15543_s13 + $0xc40] sm:$0xff] }
 0x1b1   : > { %7698 = vmatmul.mubr.bf16.gmra.mrb[20].mxu0 %v1020_v30  ;;  %9506 = vmatmul.mubr.bf16.gmra.mrb[20].mxu1 %v1020_v30  ;;  %v14060_v30 = vld [vmem:[#allocation6 + $0xa68] ss:$16 sps:$4 sm:$0xff]   ;;  %v766_v25 = vld [vmem:[%s15543_s13 + $0xd40] sm:$0xff] }
 0x1b2   : > { %7749 = vmatpush1.bf16.msra.mxu0 %v14003_v33  ;;  %9557 = vmatpush1.bf16.msra.mxu1 %v14006_v34  ;;  %v510_v33 = vld [vmem:[%s15543_s13 + $0x540] sm:$0xff] }
 0x1b3   : > { %7750 = vmatprep.subr.bf16.mxu0 %v14011_v35  ;;  %9558 = vmatprep.subr.bf16.mxu1 %v14014_v36  ;;  %v14065_v34 = vld [vmem:[#allocation6 + $0xa84] ss:$16 sps:$4 sm:$0xff]   ;;  %v14068_v35 = vld [vmem:[#allocation6 + $0xa8c] ss:$16 sps:$4 sm:$0xff]   ;;  %v926_v36 = vpack.c.bf16 %v510_v33, %v478_v32  ;;  %v14114_v32 = vld [vmem:[#allocation6 + $0xb88] ss:$16 sps:$4 sm:$0xff]  }
 0x1b4   : > { %7707 = vmatprep.mubr.bf16.mxu0 %v1053_v39  ;;  %9515 = vmatprep.mubr.bf16.mxu1 %v1053_v39  ;;  %v14063_v39 = vld [vmem:[#allocation6 + $0xa80] ss:$16 sps:$4 sm:$0xff]   ;;  %v14119_v33 = vld [vmem:[#allocation6 + $0xba4] ss:$16 sps:$4 sm:$0xff]  }
 0x1b6   : > { %7751 = vmatpush1.bf16.msra.mxu0 %v14009_v37  ;;  %9559 = vmatpush1.bf16.msra.mxu1 %v14012_v38  ;;  %v543_v37 = vld [vmem:[%s15543_s13 + $0x648] sm:$0xff] }
 0x1b7   : > { %7752 = vmatprep.subr.bf16.mxu0 %v14017_v42  ;;  %9560 = vmatprep.subr.bf16.mxu1 %v14020_v43  ;;  %v575_v38 = vld [vmem:[%s15543_s13 + $0x748] sm:$0xff]  ;;  %v14069_v43 = vld [vmem:[#allocation6 + $0xaa0] ss:$16 sps:$4 sm:$0xff]  }
 0x1b8   : > { %v14074_v42 = vld [vmem:[#allocation6 + $0xaac] ss:$16 sps:$4 sm:$0xff]  }
 0x1b9   : > { %7708 = vmatmul.mubr.bf16.gmra.mrb[24].mxu0 %v1052_v45  ;;  %9516 = vmatmul.mubr.bf16.gmra.mrb[24].mxu1 %v1052_v45  ;;  %v959_v45 = vpack.c.bf16 %v575_v38, %v543_v37  ;;  %v798_v38 = vld [vmem:[%s15543_s13 + $0xe40] sm:$0xff] }
 0x1ba   : > { %7753 = vmatpush1.bf16.msra.mxu0 %v14015_v44  ;;  %9561 = vmatpush1.bf16.msra.mxu1 %v14018_v46  ;;  %v14072_v44 = vld [vmem:[#allocation6 + $0xaa8] ss:$16 sps:$4 sm:$0xff]   ;;  %v542_v46 = vld [vmem:[%s15543_s13 + $0x640] sm:$0xff] }
 0x1bb   : > { %7754 = vmatprep.subr.bf16.mxu0 %v14023_v49  ;;  %9562 = vmatprep.subr.bf16.mxu1 %v14026_v50  ;;  %v14080_v49 = vld [vmem:[#allocation6 + $0xacc] ss:$16 sps:$4 sm:$0xff]   ;;  %v14075_v50 = vld [vmem:[#allocation6 + $0xac0] ss:$16 sps:$4 sm:$0xff]  }
 0x1bc   : > { %7717 = vmatprep.mubr.bf16.mxu0 %v1085_v52  ;;  %9525 = vmatprep.mubr.bf16.mxu1 %v1085_v52  ;;  %v14078_v52 = vld [vmem:[#allocation6 + $0xac8] ss:$16 sps:$4 sm:$0xff]  }
 0x1be   : > { %7755 = vmatpush1.bf16.msra.mxu0 %v14021_v51  ;;  %9563 = vmatpush1.bf16.msra.mxu1 %v14024_v53  ;;  %v958_v51 = vpack.c.bf16 %v574_v47, %v542_v46  ;;  %v607_v53 = vld [vmem:[%s15543_s13 + $0x848] sm:$0xff]  ;;  %v14131_v47 = vld [vmem:[#allocation6 + $0xbe4] ss:$16 sps:$4 sm:$0xff]  }
 0x1bf   : > { %7756 = vmatprep.subr.bf16.mxu0 %v14029_v56  ;;  %9564 = vmatprep.subr.bf16.mxu1 %v14032_v57  ;;  %v14086_v56 = vld [vmem:[#allocation6 + $0xaec] ss:$16 sps:$4 sm:$0xff]   ;;  %v14081_v57 = vld [vmem:[#allocation6 + $0xae0] ss:$16 sps:$4 sm:$0xff]   ;;  %v14126_v46 = vld [vmem:[#allocation6 + $0xbc8] ss:$16 sps:$4 sm:$0xff]  }
 0x1c1   : > { %7718 = vmatmul.mubr.bf16.gmra.mrb[28].mxu0 %v1084_v60  ;;  %9526 = vmatmul.mubr.bf16.gmra.mrb[28].mxu1 %v1084_v60  ;;  %v606_v60 = vld [vmem:[%s15543_s13 + $0x840] sm:$0xff] }
 0x1c2   : > { %7757 = vmatpush1.bf16.msra.mxu0 %v14027_v58  ;;  %9565 = vmatpush1.bf16.msra.mxu1 %v14030_v59  ;;  %v991_v58 = vpack.c.bf16 %v639_v54, %v607_v53  ;;  %v14084_v59 = vld [vmem:[#allocation6 + $0xae8] ss:$16 sps:$4 sm:$0xff]   ;;  %v384_v53 = vld [vmem:[%s15543_s13 + $0x150] sm:$0xff] }
 0x1c3   : > { %7758 = vmatprep.subr.bf16.mxu0 %v14035_v63  ;;  %9566 = vmatprep.subr.bf16.mxu1 %v14038_v0  ;;  %v14092_v63 = vld [vmem:[#allocation6 + $0xb0c] ss:$16 sps:$4 sm:$0xff]   ;;  %v14087_v0 = vld [vmem:[#allocation6 + $0xb00] ss:$16 sps:$4 sm:$0xff]   ;;  %v14137_v54 = vld [vmem:[#allocation6 + $0xc04] ss:$16 sps:$4 sm:$0xff]  }
 0x1c4   : > { %7760 = vmatprep.mubr.bf16.mxu0 %v863_v1  ;;  %9568 = vmatprep.mubr.bf16.mxu1 %v863_v1  ;;  %v14090_v1 = vld [vmem:[#allocation6 + $0xb08] ss:$16 sps:$4 sm:$0xff]  }
 0x1c6   : > { %7759 = vmatpush1.bf16.msra.mxu0 %v14033_v2  ;;  %9567 = vmatpush1.bf16.msra.mxu1 %v14036_v3  ;;  %v990_v2 = vpack.c.bf16 %v638_v61, %v606_v60  ;;  %v671_v3 = vld [vmem:[%s15543_s13 + $0xa48] sm:$0xff]  ;;  %v449_v60 = vld [vmem:[%s15543_s13 + $0x358] sm:$0xff]  ;;  %v14143_v61 = vld [vmem:[#allocation6 + $0xc24] ss:$16 sps:$4 sm:$0xff]  }
 0x1c7   : > { %7841 = vmatprep.subr.bf16.mxu0 %v14041_v6  ;;  %9649 = vmatprep.subr.bf16.mxu1 %v14044_v7  ;;  %v14098_v6 = vld [vmem:[#allocation6 + $0xb2c] ss:$16 sps:$4 sm:$0xff]   ;;  %v1023_v7 = vpack.c.bf16 %v703_v4, %v671_v3  ;;  %v448_v3 = vld [vmem:[%s15543_s13 + $0x350] sm:$0xff] }
 0x1c8   : > { %v14149_v4 = vld [vmem:[#allocation6 + $0xc44] ss:$16 sps:$4 sm:$0xff]  }
 0x1c9   : > { %7761 = vmatmul.mubr.bf16.vlgmr.msra.gmra.mrb[0].mxu0 %v862_v10  ;;  %9569 = vmatmul.mubr.bf16.vlgmr.msra.gmra.mrb[0].mxu1 %v862_v10  ;;  %v670_v10 = vld [vmem:[%s15543_s13 + $0xa40] sm:$0xff] }
 0x1ca   : > { %7842 = vmatpush1.bf16.msra.mxu0 %v14039_v8  ;;  %9650 = vmatpush1.bf16.msra.mxu1 %v14042_v9  ;;  %v14093_v8 = vld [vmem:[#allocation6 + $0xb20] ss:$16 sps:$4 sm:$0xff]   ;;  %v14096_v9 = vld [vmem:[#allocation6 + $0xb28] ss:$16 sps:$4 sm:$0xff]  }
 0x1cb   : > { %7843 = vmatprep.subr.bf16.mxu0 %v14047_v13  ;;  %9651 = vmatprep.subr.bf16.mxu1 %v14050_v14  ;;  %v14104_v13 = vld [vmem:[#allocation6 + $0xb4c] ss:$16 sps:$4 sm:$0xff]   ;;  %v14099_v14 = vld [vmem:[#allocation6 + $0xb40] ss:$16 sps:$4 sm:$0xff]  }
 0x1cc   : > { %7770 = vmatprep.mubr.bf16.mxu0 %v895_v16  ;;  %9578 = vmatprep.mubr.bf16.mxu1 %v895_v16  ;;  %v1022_v16 = vpack.c.bf16 %v702_v11, %v670_v10  ;;  %v513_v10 = vld [vmem:[%s15543_s13 + $0x558] sm:$0xff]  ;;  %v14155_v11 = vld [vmem:[#allocation6 + $0xc64] ss:$16 sps:$4 sm:$0xff]  }
 0x1ce   : > { %7844 = vmatpush1.bf16.msra.mxu0 %v14045_v15  ;;  %9652 = vmatpush1.bf16.msra.mxu1 %v14048_v17  ;;  %v14102_v15 = vld [vmem:[#allocation6 + $0xb48] ss:$16 sps:$4 sm:$0xff]  }
 0x1cf   : > { %7845 = vmatprep.subr.bf16.mxu0 %v14053_v20  ;;  %9653 = vmatprep.subr.bf16.mxu1 %v14056_v21  ;;  %v735_v17 = vld [vmem:[%s15543_s13 + $0xc48] sm:$0xff]  ;;  %v14105_v21 = vld [vmem:[#allocation6 + $0xb60] ss:$16 sps:$4 sm:$0xff]  }
 0x1d0   : > { %v14110_v20 = vld [vmem:[#allocation6 + $0xb6c] ss:$16 sps:$4 sm:$0xff]  }
 0x1d1   : > { %7771 = vmatmul.mubr.bf16.gmra.mrb[4].mxu0 %v894_v23  ;;  %9579 = vmatmul.mubr.bf16.gmra.mrb[4].mxu1 %v894_v23  ;;  %v14108_v23 = vld [vmem:[#allocation6 + $0xb68] ss:$16 sps:$4 sm:$0xff]  }
 0x1d2   : > { %7846 = vmatpush1.bf16.msra.mxu0 %v14051_v22  ;;  %9654 = vmatpush1.bf16.msra.mxu1 %v14054_v26  ;;  %v1055_v22 = vpack.c.bf16 %v767_v18, %v735_v17  ;;  %v14113_v26 = vld [vmem:[#allocation6 + $0xb84] ss:$16 sps:$4 sm:$0xff]  }
 0x1d3   : > { %7847 = vmatprep.subr.bf16.mxu0 %v14059_v27  ;;  %9655 = vmatprep.subr.bf16.mxu1 %v14062_v28  ;;  %v14116_v27 = vld [vmem:[#allocation6 + $0xb8c] ss:$16 sps:$4 sm:$0xff]   ;;  %v14111_v28 = vld [vmem:[#allocation6 + $0xb80] ss:$16 sps:$4 sm:$0xff]   ;;  %v14161_v18 = vld [vmem:[#allocation6 + $0xc84] ss:$16 sps:$4 sm:$0xff]  }
 0x1d4   : > { %7780 = vmatprep.mubr.bf16.mxu0 %v927_v31  ;;  %9588 = vmatprep.mubr.bf16.mxu1 %v927_v31  ;;  %v831_v31 = vld [vmem:[%s15543_s13 + $0xf48] sm:$0xff]  ;;  %v512_v17 = vld [vmem:[%s15543_s13 + $0x550] sm:$0xff] }
 0x1d6   : > { %7848 = vmatpush1.bf16.msra.mxu0 %v14057_v29  ;;  %9656 = vmatpush1.bf16.msra.mxu1 %v14060_v30  ;;  %v1054_v29 = vpack.c.bf16 %v766_v25, %v734_v24  ;;  %v799_v30 = vld [vmem:[%s15543_s13 + $0xe48] sm:$0xff]  ;;  %v577_v24 = vld [vmem:[%s15543_s13 + $0x758] sm:$0xff]  ;;  %v14167_v25 = vld [vmem:[#allocation6 + $0xca4] ss:$16 sps:$4 sm:$0xff]  }
 0x1d7   : > { %7849 = vmatprep.subr.bf16.mxu0 %v14065_v34  ;;  %9657 = vmatprep.subr.bf16.mxu1 %v14068_v35  ;;  %v14122_v34 = vld [vmem:[#allocation6 + $0xbac] ss:$16 sps:$4 sm:$0xff]   ;;  %v14117_v35 = vld [vmem:[#allocation6 + $0xba0] ss:$16 sps:$4 sm:$0xff]   ;;  %v1087_v37 = vpack.c.bf16 %v831_v31, %v799_v30 }
 0x1d8   : > { %v544_v30 = vld [vmem:[%s15543_s13 + $0x650] sm:$0xff] }
 0x1d9   : > { %7781 = vmatmul.mubr.bf16.gmra.mrb[8].mxu0 %v926_v36  ;;  %9589 = vmatmul.mubr.bf16.gmra.mrb[8].mxu1 %v926_v36  ;;  %v14120_v36 = vld [vmem:[#allocation6 + $0xba8] ss:$16 sps:$4 sm:$0xff]   ;;  %v576_v31 = vld [vmem:[%s15543_s13 + $0x750] sm:$0xff] }
 0x1da   : > { %7850 = vmatpush1.bf16.msra.mxu0 %v14063_v39  ;;  %9658 = vmatpush1.bf16.msra.mxu1 %v14066_v40  ;;  %v830_v39 = vld [vmem:[%s15543_s13 + $0xf40] sm:$0xff] }
 0x1db   : > { %7851 = vmatprep.subr.bf16.mxu0 %v14071_v41  ;;  %9659 = vmatprep.subr.bf16.mxu1 %v14074_v42  ;;  %v14125_v40 = vld [vmem:[#allocation6 + $0xbc4] ss:$16 sps:$4 sm:$0xff]   ;;  %v14128_v41 = vld [vmem:[#allocation6 + $0xbcc] ss:$16 sps:$4 sm:$0xff]   ;;  %v1086_v42 = vpack.c.bf16 %v830_v39, %v798_v38  ;;  %v14174_v38 = vld [vmem:[#allocation6 + $0xcc8] ss:$16 sps:$4 sm:$0xff]  }
 0x1dc   : > { %7790 = vmatprep.mubr.bf16.mxu0 %v959_v45  ;;  %9598 = vmatprep.mubr.bf16.mxu1 %v959_v45  ;;  %v14123_v45 = vld [vmem:[#allocation6 + $0xbc0] ss:$16 sps:$4 sm:$0xff]   ;;  %v14179_v39 = vld [vmem:[#allocation6 + $0xce4] ss:$16 sps:$4 sm:$0xff]  }
 0x1de   : > { %7852 = vmatpush1.bf16.msra.mxu0 %v14069_v43  ;;  %9660 = vmatpush1.bf16.msra.mxu1 %v14072_v44  ;;  %v353_v43 = vld [vmem:[%s15543_s13 + $0x58] sm:$0xff] }
 0x1df   : > { %7853 = vmatprep.subr.bf16.mxu0 %v14077_v48  ;;  %9661 = vmatprep.subr.bf16.mxu1 %v14080_v49  ;;  %v385_v44 = vld [vmem:[%s15543_s13 + $0x158] sm:$0xff]  ;;  %v14129_v49 = vld [vmem:[#allocation6 + $0xbe0] ss:$16 sps:$4 sm:$0xff]  }
 0x1e0   : > { %v14134_v48 = vld [vmem:[#allocation6 + $0xbec] ss:$16 sps:$4 sm:$0xff]  }
 0x1e1   : > { %7791 = vmatmul.mubr.bf16.gmra.mrb[12].mxu0 %v958_v51  ;;  %9599 = vmatmul.mubr.bf16.gmra.mrb[12].mxu1 %v958_v51  ;;  %v865_v51 = vpack.c.bf16 %v385_v44, %v353_v43  ;;  %v608_v44 = vld [vmem:[%s15543_s13 + $0x850] sm:$0xff] }
 0x1e2   : > { %7854 = vmatpush1.bf16.msra.mxu0 %v14075_v50  ;;  %9662 = vmatpush1.bf16.msra.mxu1 %v14078_v52  ;;  %v14132_v50 = vld [vmem:[#allocation6 + $0xbe8] ss:$16 sps:$4 sm:$0xff]   ;;  %v352_v52 = vld [vmem:[%s15543_s13 + $0x50] sm:$0xff] }
 0x1e3   : > { %7855 = vmatprep.subr.bf16.mxu0 %v14083_v55  ;;  %9663 = vmatprep.subr.bf16.mxu1 %v14086_v56  ;;  %v14140_v55 = vld [vmem:[#allocation6 + $0xc0c] ss:$16 sps:$4 sm:$0xff]   ;;  %v14135_v56 = vld [vmem:[#allocation6 + $0xc00] ss:$16 sps:$4 sm:$0xff]  }
 0x1e4   : > { %7800 = vmatprep.mubr.bf16.mxu0 %v991_v58  ;;  %9608 = vmatprep.mubr.bf16.mxu1 %v991_v58  ;;  %v14138_v58 = vld [vmem:[#allocation6 + $0xc08] ss:$16 sps:$4 sm:$0xff]  }
 0x1e6   : > { %7856 = vmatpush1.bf16.msra.mxu0 %v14081_v57  ;;  %9664 = vmatpush1.bf16.msra.mxu1 %v14084_v59  ;;  %v864_v57 = vpack.c.bf16 %v384_v53, %v352_v52  ;;  %v417_v59 = vld [vmem:[%s15543_s13 + $0x258] sm:$0xff]  ;;  %v14191_v53 = vld [vmem:[#allocation6 + $0xd24] ss:$16 sps:$4 sm:$0xff]  }
 0x1e7   : > { %7857 = vmatprep.subr.bf16.mxu0 %v14089_v62  ;;  %9665 = vmatprep.subr.bf16.mxu1 %v14092_v63  ;;  %v14146_v62 = vld [vmem:[#allocation6 + $0xc2c] ss:$16 sps:$4 sm:$0xff]   ;;  %v14141_v63 = vld [vmem:[#allocation6 + $0xc20] ss:$16 sps:$4 sm:$0xff]   ;;  %v14186_v52 = vld [vmem:[#allocation6 + $0xd08] ss:$16 sps:$4 sm:$0xff]  }
 0x1e9   : > { %7801 = vmatmul.mubr.bf16.gmra.mrb[16].mxu0 %v990_v2  ;;  %9609 = vmatmul.mubr.bf16.gmra.mrb[16].mxu1 %v990_v2  ;;  %v416_v2 = vld [vmem:[%s15543_s13 + $0x250] sm:$0xff] }
 0x1ea   : > { %7858 = vmatpush1.bf16.msra.mxu0 %v14087_v0  ;;  %9666 = vmatpush1.bf16.msra.mxu1 %v14090_v1  ;;  %v897_v0 = vpack.c.bf16 %v449_v60, %v417_v59  ;;  %v14144_v1 = vld [vmem:[#allocation6 + $0xc28] ss:$16 sps:$4 sm:$0xff]   ;;  %v704_v59 = vld [vmem:[%s15543_s13 + $0xb50] sm:$0xff] }
 0x1eb   : > { %7859 = vmatprep.subr.bf16.mxu0 %v14095_v5  ;;  %9667 = vmatprep.subr.bf16.mxu1 %v14098_v6  ;;  %v14152_v5 = vld [vmem:[#allocation6 + $0xc4c] ss:$16 sps:$4 sm:$0xff]   ;;  %v14147_v6 = vld [vmem:[#allocation6 + $0xc40] ss:$16 sps:$4 sm:$0xff]   ;;  %v14197_v60 = vld [vmem:[#allocation6 + $0xd44] ss:$16 sps:$4 sm:$0xff]  }
 0x1ec   : > { %7810 = vmatprep.mubr.bf16.mxu0 %v1023_v7  ;;  %9618 = vmatprep.mubr.bf16.mxu1 %v1023_v7  ;;  %v14150_v7 = vld [vmem:[#allocation6 + $0xc48] ss:$16 sps:$4 sm:$0xff]  }
 0x1ee   : > { %7860 = vmatpush1.bf16.msra.mxu0 %v14093_v8  ;;  %9668 = vmatpush1.bf16.msra.mxu1 %v14096_v9  ;;  %v896_v8 = vpack.c.bf16 %v448_v3, %v416_v2  ;;  %v481_v9 = vld [vmem:[%s15543_s13 + $0x458] sm:$0xff]  ;;  %v14203_v3 = vld [vmem:[#allocation6 + $0xd64] ss:$16 sps:$4 sm:$0xff]  }
 0x1ef   : > { %7861 = vmatprep.subr.bf16.mxu0 %v14101_v12  ;;  %9669 = vmatprep.subr.bf16.mxu1 %v14104_v13  ;;  %v14158_v12 = vld [vmem:[#allocation6 + $0xc6c] ss:$16 sps:$4 sm:$0xff]   ;;  %v929_v13 = vpack.c.bf16 %v513_v10, %v481_v9  ;;  %v768_v9 = vld [vmem:[%s15543_s13 + $0xd50] sm:$0xff] }
 0x1f0   : > { %v769_v2 = vld [vmem:[%s15543_s13 + $0xd58] sm:$0xff]  ;;  %v14209_v10 = vld [vmem:[#allocation6 + $0xd84] ss:$16 sps:$4 sm:$0xff]  }
 0x1f1   : > { %7811 = vmatmul.mubr.bf16.gmra.mrb[20].mxu0 %v1022_v16  ;;  %9619 = vmatmul.mubr.bf16.gmra.mrb[20].mxu1 %v1022_v16  ;;  %v480_v16 = vld [vmem:[%s15543_s13 + $0x450] sm:$0xff] }
 0x1f2   : > { %7862 = vmatpush1.bf16.msra.mxu0 %v14099_v14  ;;  %9670 = vmatpush1.bf16.msra.mxu1 %v14102_v15  ;;  %v14153_v14 = vld [vmem:[#allocation6 + $0xc60] ss:$16 sps:$4 sm:$0xff]   ;;  %v14156_v15 = vld [vmem:[#allocation6 + $0xc68] ss:$16 sps:$4 sm:$0xff]  }
 0x1f3   : > { %7863 = vmatprep.subr.bf16.mxu0 %v14107_v19  ;;  %9671 = vmatprep.subr.bf16.mxu1 %v14110_v20  ;;  %v14164_v19 = vld [vmem:[#allocation6 + $0xc8c] ss:$16 sps:$4 sm:$0xff]   ;;  %v14159_v20 = vld [vmem:[#allocation6 + $0xc80] ss:$16 sps:$4 sm:$0xff]  }
 0x1f4   : > { %7820 = vmatprep.mubr.bf16.mxu0 %v1055_v22  ;;  %9628 = vmatprep.mubr.bf16.mxu1 %v1055_v22  ;;  %v928_v22 = vpack.c.bf16 %v512_v17, %v480_v16  ;;  %v833_v16 = vld [vmem:[%s15543_s13 + $0xf58] sm:$0xff]  ;;  %v14215_v17 = vld [vmem:[#allocation6 + $0xda4] ss:$16 sps:$4 sm:$0xff]  }
 0x1f6   : > { %7864 = vmatpush1.bf16.msra.mxu0 %v14105_v21  ;;  %9672 = vmatpush1.bf16.msra.mxu1 %v14108_v23  ;;  %v14162_v21 = vld [vmem:[#allocation6 + $0xc88] ss:$16 sps:$4 sm:$0xff]  }
 0x1f7   : > { %7865 = vmatprep.subr.bf16.mxu0 %v14113_v26  ;;  %9673 = vmatprep.subr.bf16.mxu1 %v14116_v27  ;;  %v545_v23 = vld [vmem:[%s15543_s13 + $0x658] sm:$0xff]  ;;  %v14165_v27 = vld [vmem:[#allocation6 + $0xca0] ss:$16 sps:$4 sm:$0xff]  }
 0x1f8   : > { %v14170_v26 = vld [vmem:[#allocation6 + $0xcac] ss:$16 sps:$4 sm:$0xff]  }
 0x1f9   : > { %7821 = vmatmul.mubr.bf16.gmra.mrb[24].mxu0 %v1054_v29  ;;  %9629 = vmatmul.mubr.bf16.gmra.mrb[24].mxu1 %v1054_v29  ;;  %v14168_v29 = vld [vmem:[#allocation6 + $0xca8] ss:$16 sps:$4 sm:$0xff]  }
 0x1fa   : > { %7866 = vmatpush1.bf16.msra.mxu0 %v14111_v28  ;;  %9674 = vmatpush1.bf16.msra.mxu1 %v14114_v32  ;;  %v961_v28 = vpack.c.bf16 %v577_v24, %v545_v23  ;;  %v14173_v32 = vld [vmem:[#allocation6 + $0xcc4] ss:$16 sps:$4 sm:$0xff]  }
 0x1fb   : > { %7867 = vmatprep.subr.bf16.mxu0 %v14119_v33  ;;  %9675 = vmatprep.subr.bf16.mxu1 %v14122_v34  ;;  %v14176_v33 = vld [vmem:[#allocation6 + $0xccc] ss:$16 sps:$4 sm:$0xff]   ;;  %v14171_v34 = vld [vmem:[#allocation6 + $0xcc0] ss:$16 sps:$4 sm:$0xff]   ;;  %v14221_v24 = vld [vmem:[#allocation6 + $0xdc4] ss:$16 sps:$4 sm:$0xff]  }
 0x1fc   : > { %7830 = vmatprep.mubr.bf16.mxu0 %v1087_v37  ;;  %9638 = vmatprep.mubr.bf16.mxu1 %v1087_v37  ;;  %v641_v37 = vld [vmem:[%s15543_s13 + $0x958] sm:$0xff]  ;;  %v832_v23 = vld [vmem:[%s15543_s13 + $0xf50] sm:$0xff] }
 0x1fe   : > { %7868 = vmatpush1.bf16.msra.mxu0 %v14117_v35  ;;  %9676 = vmatpush1.bf16.msra.mxu1 %v14120_v36  ;;  %v960_v35 = vpack.c.bf16 %v576_v31, %v544_v30  ;;  %v609_v36 = vld [vmem:[%s15543_s13 + $0x858] sm:$0xff]  ;;  %v387_v30 = vld [vmem:[%s15543_s13 + $0x168] sm:$0xff]  ;;  %v14227_v31 = vld [vmem:[#allocation6 + $0xde4] ss:$16 sps:$4 sm:$0xff]  }
 0x1ff   : > { %7869 = vmatprep.subr.bf16.mxu0 %v14125_v40  ;;  %9677 = vmatprep.subr.bf16.mxu1 %v14128_v41  ;;  %v14182_v40 = vld [vmem:[#allocation6 + $0xcec] ss:$16 sps:$4 sm:$0xff]   ;;  %v14177_v41 = vld [vmem:[#allocation6 + $0xce0] ss:$16 sps:$4 sm:$0xff]   ;;  %v993_v43 = vpack.c.bf16 %v641_v37, %v609_v36 }
 0x200   : > { %v354_v36 = vld [vmem:[%s15543_s13 + $0x60] sm:$0xff] }
 0x201   : > { %7831 = vmatmul.mubr.bf16.gmra.mrb[28].mxu0 %v1086_v42  ;;  %9639 = vmatmul.mubr.bf16.gmra.mrb[28].mxu1 %v1086_v42  ;;  %v14180_v42 = vld [vmem:[#allocation6 + $0xce8] ss:$16 sps:$4 sm:$0xff]   ;;  %v386_v37 = vld [vmem:[%s15543_s13 + $0x160] sm:$0xff] }
 0x202   : > { %7870 = vmatpush1.bf16.msra.mxu0 %v14123_v45  ;;  %9678 = vmatpush1.bf16.msra.mxu1 %v14126_v46  ;;  %v640_v45 = vld [vmem:[%s15543_s13 + $0x950] sm:$0xff] }
 0x203   : > { %7871 = vmatprep.subr.bf16.mxu0 %v14131_v47  ;;  %9679 = vmatprep.subr.bf16.mxu1 %v14134_v48  ;;  %v14185_v46 = vld [vmem:[#allocation6 + $0xd04] ss:$16 sps:$4 sm:$0xff]   ;;  %v14188_v47 = vld [vmem:[#allocation6 + $0xd0c] ss:$16 sps:$4 sm:$0xff]   ;;  %v992_v48 = vpack.c.bf16 %v640_v45, %v608_v44  ;;  %v14234_v44 = vld [vmem:[#allocation6 + $0xe08] ss:$16 sps:$4 sm:$0xff]  }
 0x204   : > { %7873 = vmatprep.mubr.bf16.mxu0 %v865_v51  ;;  %9681 = vmatprep.mubr.bf16.mxu1 %v865_v51  ;;  %v14183_v51 = vld [vmem:[#allocation6 + $0xd00] ss:$16 sps:$4 sm:$0xff]   ;;  %v14239_v45 = vld [vmem:[#allocation6 + $0xe24] ss:$16 sps:$4 sm:$0xff]  }
 0x206   : > { %7872 = vmatpush1.bf16.msra.mxu0 %v14129_v49  ;;  %9680 = vmatpush1.bf16.msra.mxu1 %v14132_v50  ;;  %v673_v49 = vld [vmem:[%s15543_s13 + $0xa58] sm:$0xff] }
 0x207   : > { %7954 = vmatprep.subr.bf16.mxu0 %v14137_v54  ;;  %9762 = vmatprep.subr.bf16.mxu1 %v14140_v55  ;;  %v705_v50 = vld [vmem:[%s15543_s13 + $0xb58] sm:$0xff]  ;;  %v14189_v55 = vld [vmem:[#allocation6 + $0xd20] ss:$16 sps:$4 sm:$0xff]  }
 0x208   : > { %v14194_v54 = vld [vmem:[#allocation6 + $0xd2c] ss:$16 sps:$4 sm:$0xff]  }
 0x209   : > { %7874 = vmatmul.mubr.bf16.vlgmr.msra.gmra.mrb[0].mxu0 %v864_v57  ;;  %9682 = vmatmul.mubr.bf16.vlgmr.msra.gmra.mrb[0].mxu1 %v864_v57  ;;  %v1025_v57 = vpack.c.bf16 %v705_v50, %v673_v49  ;;  %v418_v50 = vld [vmem:[%s15543_s13 + $0x260] sm:$0xff] }
 0x20a   : > { %7955 = vmatpush1.bf16.msra.mxu0 %v14135_v56  ;;  %9763 = vmatpush1.bf16.msra.mxu1 %v14138_v58  ;;  %v14192_v56 = vld [vmem:[#allocation6 + $0xd28] ss:$16 sps:$4 sm:$0xff]   ;;  %v672_v58 = vld [vmem:[%s15543_s13 + $0xa50] sm:$0xff] }
 0x20b   : > { %7956 = vmatprep.subr.bf16.mxu0 %v14143_v61  ;;  %9764 = vmatprep.subr.bf16.mxu1 %v14146_v62  ;;  %v14200_v61 = vld [vmem:[#allocation6 + $0xd4c] ss:$16 sps:$4 sm:$0xff]   ;;  %v14195_v62 = vld [vmem:[#allocation6 + $0xd40] ss:$16 sps:$4 sm:$0xff]  }
 0x20c   : > { %7883 = vmatprep.mubr.bf16.mxu0 %v897_v0  ;;  %9691 = vmatprep.mubr.bf16.mxu1 %v897_v0  ;;  %v14198_v0 = vld [vmem:[#allocation6 + $0xd48] ss:$16 sps:$4 sm:$0xff]  }
 0x20e   : > { %7957 = vmatpush1.bf16.msra.mxu0 %v14141_v63  ;;  %9765 = vmatpush1.bf16.msra.mxu1 %v14144_v1  ;;  %v1024_v63 = vpack.c.bf16 %v704_v59, %v672_v58  ;;  %v737_v1 = vld [vmem:[%s15543_s13 + $0xc58] sm:$0xff]  ;;  %v14251_v59 = vld [vmem:[#allocation6 + $0xe64] ss:$16 sps:$4 sm:$0xff]  }
 0x20f   : > { %7958 = vmatprep.subr.bf16.mxu0 %v14149_v4  ;;  %9766 = vmatprep.subr.bf16.mxu1 %v14152_v5  ;;  %v14206_v4 = vld [vmem:[#allocation6 + $0xd6c] ss:$16 sps:$4 sm:$0xff]   ;;  %v14201_v5 = vld [vmem:[#allocation6 + $0xd60] ss:$16 sps:$4 sm:$0xff]   ;;  %v14246_v58 = vld [vmem:[#allocation6 + $0xe48] ss:$16 sps:$4 sm:$0xff]  }
 0x211   : > { %7884 = vmatmul.mubr.bf16.gmra.mrb[4].mxu0 %v896_v8  ;;  %9692 = vmatmul.mubr.bf16.gmra.mrb[4].mxu1 %v896_v8  ;;  %v736_v8 = vld [vmem:[%s15543_s13 + $0xc50] sm:$0xff] }
 0x212   : > { %7959 = vmatpush1.bf16.msra.mxu0 %v14147_v6  ;;  %9767 = vmatpush1.bf16.msra.mxu1 %v14150_v7  ;;  %v1057_v6 = vpack.c.bf16 %v769_v2, %v737_v1  ;;  %v14204_v7 = vld [vmem:[#allocation6 + $0xd68] ss:$16 sps:$4 sm:$0xff]   ;;  %v514_v1 = vld [vmem:[%s15543_s13 + $0x560] sm:$0xff] }
 0x213   : > { %7960 = vmatprep.subr.bf16.mxu0 %v14155_v11  ;;  %9768 = vmatprep.subr.bf16.mxu1 %v14158_v12  ;;  %v14212_v11 = vld [vmem:[#allocation6 + $0xd8c] ss:$16 sps:$4 sm:$0xff]   ;;  %v14207_v12 = vld [vmem:[#allocation6 + $0xd80] ss:$16 sps:$4 sm:$0xff]   ;;  %v14257_v2 = vld [vmem:[#allocation6 + $0xe84] ss:$16 sps:$4 sm:$0xff]  }
 0x214   : > { %7893 = vmatprep.mubr.bf16.mxu0 %v929_v13  ;;  %9701 = vmatprep.mubr.bf16.mxu1 %v929_v13  ;;  %v14210_v13 = vld [vmem:[#allocation6 + $0xd88] ss:$16 sps:$4 sm:$0xff]  }
 0x216   : > { %7961 = vmatpush1.bf16.msra.mxu0 %v14153_v14  ;;  %9769 = vmatpush1.bf16.msra.mxu1 %v14156_v15  ;;  %v1056_v14 = vpack.c.bf16 %v768_v9, %v736_v8  ;;  %v801_v15 = vld [vmem:[%s15543_s13 + $0xe58] sm:$0xff]  ;;  %v579_v8 = vld [vmem:[%s15543_s13 + $0x768] sm:$0xff]  ;;  %v14263_v9 = vld [vmem:[#allocation6 + $0xea4] ss:$16 sps:$4 sm:$0xff]  }
 0x217   : > { %7962 = vmatprep.subr.bf16.mxu0 %v14161_v18  ;;  %9770 = vmatprep.subr.bf16.mxu1 %v14164_v19  ;;  %v14218_v18 = vld [vmem:[#allocation6 + $0xdac] ss:$16 sps:$4 sm:$0xff]   ;;  %v1089_v19 = vpack.c.bf16 %v833_v16, %v801_v15  ;;  %v578_v15 = vld [vmem:[%s15543_s13 + $0x760] sm:$0xff] }
 0x218   : > { %v14269_v16 = vld [vmem:[#allocation6 + $0xec4] ss:$16 sps:$4 sm:$0xff]  }
 0x219   : > { %7894 = vmatmul.mubr.bf16.gmra.mrb[8].mxu0 %v928_v22  ;;  %9702 = vmatmul.mubr.bf16.gmra.mrb[8].mxu1 %v928_v22  ;;  %v800_v22 = vld [vmem:[%s15543_s13 + $0xe50] sm:$0xff] }
 0x21a   : > { %7963 = vmatpush1.bf16.msra.mxu0 %v14159_v20  ;;  %9771 = vmatpush1.bf16.msra.mxu1 %v14162_v21  ;;  %v14213_v20 = vld [vmem:[#allocation6 + $0xda0] ss:$16 sps:$4 sm:$0xff]   ;;  %v14216_v21 = vld [vmem:[#allocation6 + $0xda8] ss:$16 sps:$4 sm:$0xff]  }
 0x21b   : > { %7964 = vmatprep.subr.bf16.mxu0 %v14167_v25  ;;  %9772 = vmatprep.subr.bf16.mxu1 %v14170_v26  ;;  %v14224_v25 = vld [vmem:[#allocation6 + $0xdcc] ss:$16 sps:$4 sm:$0xff]   ;;  %v14219_v26 = vld [vmem:[#allocation6 + $0xdc0] ss:$16 sps:$4 sm:$0xff]  }
 0x21c   : > { %7903 = vmatprep.mubr.bf16.mxu0 %v961_v28  ;;  %9711 = vmatprep.mubr.bf16.mxu1 %v961_v28  ;;  %v1088_v28 = vpack.c.bf16 %v832_v23, %v800_v22  ;;  %v643_v22 = vld [vmem:[%s15543_s13 + $0x968] sm:$0xff]  ;;  %v14275_v23 = vld [vmem:[#allocation6 + $0xee4] ss:$16 sps:$4 sm:$0xff]  }
 0x21e   : > { %7965 = vmatpush1.bf16.msra.mxu0 %v14165_v27  ;;  %9773 = vmatpush1.bf16.msra.mxu1 %v14168_v29  ;;  %v14222_v27 = vld [vmem:[#allocation6 + $0xdc8] ss:$16 sps:$4 sm:$0xff]  }
 0x21f   : > { %7966 = vmatprep.subr.bf16.mxu0 %v14173_v32  ;;  %9774 = vmatprep.subr.bf16.mxu1 %v14176_v33  ;;  %v355_v29 = vld [vmem:[%s15543_s13 + $0x68] sm:$0xff]  ;;  %v14225_v33 = vld [vmem:[#allocation6 + $0xde0] ss:$16 sps:$4 sm:$0xff]  }
 0x220   : > { %v14230_v32 = vld [vmem:[#allocation6 + $0xdec] ss:$16 sps:$4 sm:$0xff]  }
 0x221   : > { %7904 = vmatmul.mubr.bf16.gmra.mrb[12].mxu0 %v960_v35  ;;  %9712 = vmatmul.mubr.bf16.gmra.mrb[12].mxu1 %v960_v35  ;;  %v14228_v35 = vld [vmem:[#allocation6 + $0xde8] ss:$16 sps:$4 sm:$0xff]  }
 0x222   : > { %7967 = vmatpush1.bf16.msra.mxu0 %v14171_v34  ;;  %9775 = vmatpush1.bf16.msra.mxu1 %v14174_v38  ;;  %v867_v34 = vpack.c.bf16 %v387_v30, %v355_v29  ;;  %v14233_v38 = vld [vmem:[#allocation6 + $0xe04] ss:$16 sps:$4 sm:$0xff]  }
 0x223   : > { %7968 = vmatprep.subr.bf16.mxu0 %v14179_v39  ;;  %9776 = vmatprep.subr.bf16.mxu1 %v14182_v40  ;;  %v14236_v39 = vld [vmem:[#allocation6 + $0xe0c] ss:$16 sps:$4 sm:$0xff]   ;;  %v14231_v40 = vld [vmem:[#allocation6 + $0xe00] ss:$16 sps:$4 sm:$0xff]   ;;  %v14281_v30 = vld [vmem:[#allocation6 + $0xf04] ss:$16 sps:$4 sm:$0xff]  }
 0x224   : > { %7913 = vmatprep.mubr.bf16.mxu0 %v993_v43  ;;  %9721 = vmatprep.mubr.bf16.mxu1 %v993_v43  ;;  %v451_v43 = vld [vmem:[%s15543_s13 + $0x368] sm:$0xff]  ;;  %v642_v29 = vld [vmem:[%s15543_s13 + $0x960] sm:$0xff] }
 0x226   : > { %7969 = vmatpush1.bf16.msra.mxu0 %v14177_v41  ;;  %9777 = vmatpush1.bf16.msra.mxu1 %v14180_v42  ;;  %v866_v41 = vpack.c.bf16 %v386_v37, %v354_v36  ;;  %v419_v42 = vld [vmem:[%s15543_s13 + $0x268] sm:$0xff]  ;;  %v14287_v37 = vld [vmem:[#allocation6 + $0xf24] ss:$16 sps:$4 sm:$0xff]  }
 0x227   : > { %7970 = vmatprep.subr.bf16.mxu0 %v14185_v46  ;;  %9778 = vmatprep.subr.bf16.mxu1 %v14188_v47  ;;  %v14242_v46 = vld [vmem:[#allocation6 + $0xe2c] ss:$16 sps:$4 sm:$0xff]   ;;  %v14237_v47 = vld [vmem:[#allocation6 + $0xe20] ss:$16 sps:$4 sm:$0xff]   ;;  %v899_v49 = vpack.c.bf16 %v451_v43, %v419_v42 }
 0x228   : > { %v707_v36 = vld [vmem:[%s15543_s13 + $0xb68] sm:$0xff]  ;;  %v674_v42 = vld [vmem:[%s15543_s13 + $0xa60] sm:$0xff] }
 0x229   : > { %7914 = vmatmul.mubr.bf16.gmra.mrb[16].mxu0 %v992_v48  ;;  %9722 = vmatmul.mubr.bf16.gmra.mrb[16].mxu1 %v992_v48  ;;  %v14240_v48 = vld [vmem:[#allocation6 + $0xe28] ss:$16 sps:$4 sm:$0xff]   ;;  %v706_v43 = vld [vmem:[%s15543_s13 + $0xb60] sm:$0xff] }
 0x22a   : > { %7971 = vmatpush1.bf16.msra.mxu0 %v14183_v51  ;;  %9779 = vmatpush1.bf16.msra.mxu1 %v14186_v52  ;;  %v450_v51 = vld [vmem:[%s15543_s13 + $0x360] sm:$0xff] }
 0x22b   : > { %7972 = vmatprep.subr.bf16.mxu0 %v14191_v53  ;;  %9780 = vmatprep.subr.bf16.mxu1 %v14194_v54  ;;  %v14245_v52 = vld [vmem:[#allocation6 + $0xe44] ss:$16 sps:$4 sm:$0xff]   ;;  %v14248_v53 = vld [vmem:[#allocation6 + $0xe4c] ss:$16 sps:$4 sm:$0xff]   ;;  %v898_v54 = vpack.c.bf16 %v450_v51, %v418_v50  ;;  %v14294_v50 = vld [vmem:[#allocation6 + $0xf48] ss:$16 sps:$4 sm:$0xff]  }
 0x22c   : > { %7923 = vmatprep.mubr.bf16.mxu0 %v1025_v57  ;;  %9731 = vmatprep.mubr.bf16.mxu1 %v1025_v57  ;;  %v14243_v57 = vld [vmem:[#allocation6 + $0xe40] ss:$16 sps:$4 sm:$0xff]   ;;  %v14299_v51 = vld [vmem:[#allocation6 + $0xf64] ss:$16 sps:$4 sm:$0xff]  }
 0x22e   : > { %7973 = vmatpush1.bf16.msra.mxu0 %v14189_v55  ;;  %9781 = vmatpush1.bf16.msra.mxu1 %v14192_v56  ;;  %v483_v55 = vld [vmem:[%s15543_s13 + $0x468] sm:$0xff] }
 0x22f   : > { %7974 = vmatprep.subr.bf16.mxu0 %v14197_v60  ;;  %9782 = vmatprep.subr.bf16.mxu1 %v14200_v61  ;;  %v515_v56 = vld [vmem:[%s15543_s13 + $0x568] sm:$0xff]  ;;  %v14249_v61 = vld [vmem:[#allocation6 + $0xe60] ss:$16 sps:$4 sm:$0xff]  }
 0x230   : > { %v14254_v60 = vld [vmem:[#allocation6 + $0xe6c] ss:$16 sps:$4 sm:$0xff]  }
 0x231   : > { %7924 = vmatmul.mubr.bf16.gmra.mrb[20].mxu0 %v1024_v63  ;;  %9732 = vmatmul.mubr.bf16.gmra.mrb[20].mxu1 %v1024_v63  ;;  %v931_v63 = vpack.c.bf16 %v515_v56, %v483_v55  ;;  %v738_v56 = vld [vmem:[%s15543_s13 + $0xc60] sm:$0xff] }
 0x232   : > { %7975 = vmatpush1.bf16.msra.mxu0 %v14195_v62  ;;  %9783 = vmatpush1.bf16.msra.mxu1 %v14198_v0  ;;  %v14252_v62 = vld [vmem:[#allocation6 + $0xe68] ss:$16 sps:$4 sm:$0xff]   ;;  %v482_v0 = vld [vmem:[%s15543_s13 + $0x460] sm:$0xff] }
 0x233   : > { %7976 = vmatprep.subr.bf16.mxu0 %v14203_v3  ;;  %9784 = vmatprep.subr.bf16.mxu1 %v14206_v4  ;;  %v14260_v3 = vld [vmem:[#allocation6 + $0xe8c] ss:$16 sps:$4 sm:$0xff]   ;;  %v14255_v4 = vld [vmem:[#allocation6 + $0xe80] ss:$16 sps:$4 sm:$0xff]  }
 0x234   : > { %7933 = vmatprep.mubr.bf16.mxu0 %v1057_v6  ;;  %9741 = vmatprep.mubr.bf16.mxu1 %v1057_v6  ;;  %v14258_v6 = vld [vmem:[#allocation6 + $0xe88] ss:$16 sps:$4 sm:$0xff]  }
 0x236   : > { %7977 = vmatpush1.bf16.msra.mxu0 %v14201_v5  ;;  %9785 = vmatpush1.bf16.msra.mxu1 %v14204_v7  ;;  %v930_v5 = vpack.c.bf16 %v514_v1, %v482_v0  ;;  %v547_v7 = vld [vmem:[%s15543_s13 + $0x668] sm:$0xff]  ;;  %v14311_v1 = vld [vmem:[#allocation6 + $0xfa4] ss:$16 sps:$4 sm:$0xff]  }
 0x237   : > { %7978 = vmatprep.subr.bf16.mxu0 %v14209_v10  ;;  %9786 = vmatprep.subr.bf16.mxu1 %v14212_v11  ;;  %v14266_v10 = vld [vmem:[#allocation6 + $0xeac] ss:$16 sps:$4 sm:$0xff]   ;;  %v14261_v11 = vld [vmem:[#allocation6 + $0xea0] ss:$16 sps:$4 sm:$0xff]   ;;  %v14306_v0 = vld [vmem:[#allocation6 + $0xf88] ss:$16 sps:$4 sm:$0xff]  }
 0x239   : > { %7934 = vmatmul.mubr.bf16.gmra.mrb[24].mxu0 %v1056_v14  ;;  %9742 = vmatmul.mubr.bf16.gmra.mrb[24].mxu1 %v1056_v14  ;;  %v546_v14 = vld [vmem:[%s15543_s13 + $0x660] sm:$0xff] }
 0x23a   : > { %7979 = vmatpush1.bf16.msra.mxu0 %v14207_v12  ;;  %9787 = vmatpush1.bf16.msra.mxu1 %v14210_v13  ;;  %v963_v12 = vpack.c.bf16 %v579_v8, %v547_v7  ;;  %v14264_v13 = vld [vmem:[#allocation6 + $0xea8] ss:$16 sps:$4 sm:$0xff]   ;;  %v834_v7 = vld [vmem:[%s15543_s13 + $0xf60] sm:$0xff] }
 0x23b   : > { %7980 = vmatprep.subr.bf16.mxu0 %v14215_v17  ;;  %9788 = vmatprep.subr.bf16.mxu1 %v14218_v18  ;;  %v14272_v17 = vld [vmem:[#allocation6 + $0xecc] ss:$16 sps:$4 sm:$0xff]   ;;  %v14267_v18 = vld [vmem:[#allocation6 + $0xec0] ss:$16 sps:$4 sm:$0xff]   ;;  %v14317_v8 = vld [vmem:[#allocation6 + $0xfc4] ss:$16 sps:$4 sm:$0xff]  }
 0x23c   : > { %7943 = vmatprep.mubr.bf16.mxu0 %v1089_v19  ;;  %9751 = vmatprep.mubr.bf16.mxu1 %v1089_v19  ;;  %v14270_v19 = vld [vmem:[#allocation6 + $0xec8] ss:$16 sps:$4 sm:$0xff]  }
 0x23e   : > { %7981 = vmatpush1.bf16.msra.mxu0 %v14213_v20  ;;  %9789 = vmatpush1.bf16.msra.mxu1 %v14216_v21  ;;  %v962_v20 = vpack.c.bf16 %v578_v15, %v546_v14  ;;  %v611_v21 = vld [vmem:[%s15543_s13 + $0x868] sm:$0xff]  ;;  %v389_v14 = vld [vmem:[%s15543_s13 + $0x178] sm:$0xff]  ;;  %v14323_v15 = vld [vmem:[#allocation6 + $0xfe4] ss:$16 sps:$4 sm:$0xff]  }
 0x23f   : > { %7982 = vmatprep.subr.bf16.mxu0 %v14221_v24  ;;  %9790 = vmatprep.subr.bf16.mxu1 %v14224_v25  ;;  %v14278_v24 = vld [vmem:[#allocation6 + $0xeec] ss:$16 sps:$4 sm:$0xff]   ;;  %v995_v25 = vpack.c.bf16 %v643_v22, %v611_v21  ;;  %v388_v21 = vld [vmem:[%s15543_s13 + $0x170] sm:$0xff] }
 0x240   : > { %v14329_v22 = vld [vmem:[#allocation6 + $0x1004] ss:$16 sps:$4 sm:$0xff]  }
 0x241   : > { %7944 = vmatmul.mubr.bf16.gmra.mrb[28].mxu0 %v1088_v28  ;;  %9752 = vmatmul.mubr.bf16.gmra.mrb[28].mxu1 %v1088_v28  ;;  %v610_v28 = vld [vmem:[%s15543_s13 + $0x860] sm:$0xff] }
 0x242   : > { %7983 = vmatpush1.bf16.msra.mxu0 %v14219_v26  ;;  %9791 = vmatpush1.bf16.msra.mxu1 %v14222_v27  ;;  %v14273_v26 = vld [vmem:[#allocation6 + $0xee0] ss:$16 sps:$4 sm:$0xff]   ;;  %v14276_v27 = vld [vmem:[#allocation6 + $0xee8] ss:$16 sps:$4 sm:$0xff]  }
 0x243   : > { %7984 = vmatprep.subr.bf16.mxu0 %v14227_v31  ;;  %9792 = vmatprep.subr.bf16.mxu1 %v14230_v32  ;;  %v14284_v31 = vld [vmem:[#allocation6 + $0xf0c] ss:$16 sps:$4 sm:$0xff]   ;;  %v14279_v32 = vld [vmem:[#allocation6 + $0xf00] ss:$16 sps:$4 sm:$0xff]  }
 0x244   : > { %7986 = vmatprep.mubr.bf16.mxu0 %v867_v34  ;;  %9794 = vmatprep.mubr.bf16.mxu1 %v867_v34  ;;  %v994_v34 = vpack.c.bf16 %v642_v29, %v610_v28  ;;  %v453_v28 = vld [vmem:[%s15543_s13 + $0x378] sm:$0xff]  ;;  %v14335_v29 = vld [vmem:[#allocation6 + $0x1024] ss:$16 sps:$4 sm:$0xff]  }
 0x246   : > { %7985 = vmatpush1.bf16.msra.mxu0 %v14225_v33  ;;  %9793 = vmatpush1.bf16.msra.mxu1 %v14228_v35  ;;  %v14282_v33 = vld [vmem:[#allocation6 + $0xf08] ss:$16 sps:$4 sm:$0xff]  }
 0x247   : > { %8067 = vmatprep.subr.bf16.mxu0 %v14233_v38  ;;  %9875 = vmatprep.subr.bf16.mxu1 %v14236_v39  ;;  %v675_v35 = vld [vmem:[%s15543_s13 + $0xa68] sm:$0xff]  ;;  %v14285_v39 = vld [vmem:[#allocation6 + $0xf20] ss:$16 sps:$4 sm:$0xff]  }
 0x248   : > { %v14290_v38 = vld [vmem:[#allocation6 + $0xf2c] ss:$16 sps:$4 sm:$0xff]  }
 0x249   : > { %7987 = vmatmul.mubr.bf16.vlgmr.msra.gmra.mrb[0].mxu0 %v866_v41  ;;  %9795 = vmatmul.mubr.bf16.vlgmr.msra.gmra.mrb[0].mxu1 %v866_v41  ;;  %v14288_v41 = vld [vmem:[#allocation6 + $0xf28] ss:$16 sps:$4 sm:$0xff]  }
 0x24a   : > { %8068 = vmatpush1.bf16.msra.mxu0 %v14231_v40  ;;  %9876 = vmatpush1.bf16.msra.mxu1 %v14234_v44  ;;  %v1027_v40 = vpack.c.bf16 %v707_v36, %v675_v35  ;;  %v14293_v44 = vld [vmem:[#allocation6 + $0xf44] ss:$16 sps:$4 sm:$0xff]  }
 0x24b   : > { %8069 = vmatprep.subr.bf16.mxu0 %v14239_v45  ;;  %9877 = vmatprep.subr.bf16.mxu1 %v14242_v46  ;;  %v14296_v45 = vld [vmem:[#allocation6 + $0xf4c] ss:$16 sps:$4 sm:$0xff]   ;;  %v14291_v46 = vld [vmem:[#allocation6 + $0xf40] ss:$16 sps:$4 sm:$0xff]   ;;  %v14341_v36 = vld [vmem:[#allocation6 + $0x1044] ss:$16 sps:$4 sm:$0xff]  }
 0x24c   : > { %7996 = vmatprep.mubr.bf16.mxu0 %v899_v49  ;;  %9804 = vmatprep.mubr.bf16.mxu1 %v899_v49  ;;  %v771_v49 = vld [vmem:[%s15543_s13 + $0xd68] sm:$0xff]  ;;  %v452_v35 = vld [vmem:[%s15543_s13 + $0x370] sm:$0xff] }
 0x24e   : > { %8070 = vmatpush1.bf16.msra.mxu0 %v14237_v47  ;;  %9878 = vmatpush1.bf16.msra.mxu1 %v14240_v48  ;;  %v1026_v47 = vpack.c.bf16 %v706_v43, %v674_v42  ;;  %v739_v48 = vld [vmem:[%s15543_s13 + $0xc68] sm:$0xff]  ;;  %v517_v42 = vld [vmem:[%s15543_s13 + $0x578] sm:$0xff]  ;;  %v14347_v43 = vld [vmem:[#allocation6 + $0x1064] ss:$16 sps:$4 sm:$0xff]  }
 0x24f   : > { %8071 = vmatprep.subr.bf16.mxu0 %v14245_v52  ;;  %9879 = vmatprep.subr.bf16.mxu1 %v14248_v53  ;;  %v14302_v52 = vld [vmem:[#allocation6 + $0xf6c] ss:$16 sps:$4 sm:$0xff]   ;;  %v14297_v53 = vld [vmem:[#allocation6 + $0xf60] ss:$16 sps:$4 sm:$0xff]   ;;  %v1059_v55 = vpack.c.bf16 %v771_v49, %v739_v48 }
 0x250   : > { %v484_v48 = vld [vmem:[%s15543_s13 + $0x470] sm:$0xff] }
 0x251   : > { %7997 = vmatmul.mubr.bf16.gmra.mrb[4].mxu0 %v898_v54  ;;  %9805 = vmatmul.mubr.bf16.gmra.mrb[4].mxu1 %v898_v54  ;;  %v14300_v54 = vld [vmem:[#allocation6 + $0xf68] ss:$16 sps:$4 sm:$0xff]   ;;  %v516_v49 = vld [vmem:[%s15543_s13 + $0x570] sm:$0xff] }
 0x252   : > { %8072 = vmatpush1.bf16.msra.mxu0 %v14243_v57  ;;  %9880 = vmatpush1.bf16.msra.mxu1 %v14246_v58  ;;  %v770_v57 = vld [vmem:[%s15543_s13 + $0xd60] sm:$0xff] }
 0x253   : > { %8073 = vmatprep.subr.bf16.mxu0 %v14251_v59  ;;  %9881 = vmatprep.subr.bf16.mxu1 %v14254_v60  ;;  %v14305_v58 = vld [vmem:[#allocation6 + $0xf84] ss:$16 sps:$4 sm:$0xff]   ;;  %v14308_v59 = vld [vmem:[#allocation6 + $0xf8c] ss:$16 sps:$4 sm:$0xff]   ;;  %v1058_v60 = vpack.c.bf16 %v770_v57, %v738_v56  ;;  %v14354_v56 = vld [vmem:[#allocation6 + $0x1088] ss:$16 sps:$4 sm:$0xff]  }
 0x254   : > { %8006 = vmatprep.mubr.bf16.mxu0 %v931_v63  ;;  %9814 = vmatprep.mubr.bf16.mxu1 %v931_v63  ;;  %v14303_v63 = vld [vmem:[#allocation6 + $0xf80] ss:$16 sps:$4 sm:$0xff]   ;;  %v14359_v57 = vld [vmem:[#allocation6 + $0x10a4] ss:$16 sps:$4 sm:$0xff]  }
 0x256   : > { %8074 = vmatpush1.bf16.msra.mxu0 %v14249_v61  ;;  %9882 = vmatpush1.bf16.msra.mxu1 %v14252_v62  ;;  %v803_v61 = vld [vmem:[%s15543_s13 + $0xe68] sm:$0xff] }
 0x257   : > { %8075 = vmatprep.subr.bf16.mxu0 %v14257_v2  ;;  %9883 = vmatprep.subr.bf16.mxu1 %v14260_v3  ;;  %v835_v62 = vld [vmem:[%s15543_s13 + $0xf68] sm:$0xff]  ;;  %v14309_v3 = vld [vmem:[#allocation6 + $0xfa0] ss:$16 sps:$4 sm:$0xff]  }
 0x258   : > { %v14314_v2 = vld [vmem:[#allocation6 + $0xfac] ss:$16 sps:$4 sm:$0xff]  }
 0x259   : > { %8007 = vmatmul.mubr.bf16.gmra.mrb[8].mxu0 %v930_v5  ;;  %9815 = vmatmul.mubr.bf16.gmra.mrb[8].mxu1 %v930_v5  ;;  %v1091_v5 = vpack.c.bf16 %v835_v62, %v803_v61  ;;  %v548_v62 = vld [vmem:[%s15543_s13 + $0x670] sm:$0xff] }
 0x25a   : > { %8076 = vmatpush1.bf16.msra.mxu0 %v14255_v4  ;;  %9884 = vmatpush1.bf16.msra.mxu1 %v14258_v6  ;;  %v14312_v4 = vld [vmem:[#allocation6 + $0xfa8] ss:$16 sps:$4 sm:$0xff]   ;;  %v802_v6 = vld [vmem:[%s15543_s13 + $0xe60] sm:$0xff] }
 0x25b   : > { %8077 = vmatprep.subr.bf16.mxu0 %v14263_v9  ;;  %9885 = vmatprep.subr.bf16.mxu1 %v14266_v10  ;;  %v14320_v9 = vld [vmem:[#allocation6 + $0xfcc] ss:$16 sps:$4 sm:$0xff]   ;;  %v14315_v10 = vld [vmem:[#allocation6 + $0xfc0] ss:$16 sps:$4 sm:$0xff]  }
 0x25c   : > { %8016 = vmatprep.mubr.bf16.mxu0 %v963_v12  ;;  %9824 = vmatprep.mubr.bf16.mxu1 %v963_v12  ;;  %v14318_v12 = vld [vmem:[#allocation6 + $0xfc8] ss:$16 sps:$4 sm:$0xff]  }
 0x25e   : > { %8078 = vmatpush1.bf16.msra.mxu0 %v14261_v11  ;;  %9886 = vmatpush1.bf16.msra.mxu1 %v14264_v13  ;;  %v1090_v11 = vpack.c.bf16 %v834_v7, %v802_v6  ;;  %v357_v13 = vld [vmem:[%s15543_s13 + $0x78] sm:$0xff]  ;;  %v14371_v7 = vld [vmem:[#allocation6 + $0x10e4] ss:$16 sps:$4 sm:$0xff]  }
 0x25f   : > { %8079 = vmatprep.subr.bf16.mxu0 %v14269_v16  ;;  %9887 = vmatprep.subr.bf16.mxu1 %v14272_v17  ;;  %v14326_v16 = vld [vmem:[#allocation6 + $0xfec] ss:$16 sps:$4 sm:$0xff]   ;;  %v14321_v17 = vld [vmem:[#allocation6 + $0xfe0] ss:$16 sps:$4 sm:$0xff]   ;;  %v14366_v6 = vld [vmem:[#allocation6 + $0x10c8] ss:$16 sps:$4 sm:$0xff]  }
 0x261   : > { %8017 = vmatmul.mubr.bf16.gmra.mrb[12].mxu0 %v962_v20  ;;  %9825 = vmatmul.mubr.bf16.gmra.mrb[12].mxu1 %v962_v20  ;;  %v356_v20 = vld [vmem:[%s15543_s13 + $0x70] sm:$0xff] }
 0x262   : > { %8080 = vmatpush1.bf16.msra.mxu0 %v14267_v18  ;;  %9888 = vmatpush1.bf16.msra.mxu1 %v14270_v19  ;;  %v869_v18 = vpack.c.bf16 %v389_v14, %v357_v13  ;;  %v14324_v19 = vld [vmem:[#allocation6 + $0xfe8] ss:$16 sps:$4 sm:$0xff]   ;;  %v644_v13 = vld [vmem:[%s15543_s13 + $0x970] sm:$0xff] }
 0x263   : > { %8081 = vmatprep.subr.bf16.mxu0 %v14275_v23  ;;  %9889 = vmatprep.subr.bf16.mxu1 %v14278_v24  ;;  %v14332_v23 = vld [vmem:[#allocation6 + $0x100c] ss:$16 sps:$4 sm:$0xff]   ;;  %v14327_v24 = vld [vmem:[#allocation6 + $0x1000] ss:$16 sps:$4 sm:$0xff]   ;;  %v14377_v14 = vld [vmem:[#allocation6 + $0x1104] ss:$16 sps:$4 sm:$0xff]  }
 0x264   : > { %8026 = vmatprep.mubr.bf16.mxu0 %v995_v25  ;;  %9834 = vmatprep.mubr.bf16.mxu1 %v995_v25  ;;  %v14330_v25 = vld [vmem:[#allocation6 + $0x1008] ss:$16 sps:$4 sm:$0xff]  }
 0x266   : > { %8082 = vmatpush1.bf16.msra.mxu0 %v14273_v26  ;;  %9890 = vmatpush1.bf16.msra.mxu1 %v14276_v27  ;;  %v868_v26 = vpack.c.bf16 %v388_v21, %v356_v20  ;;  %v421_v27 = vld [vmem:[%s15543_s13 + $0x278] sm:$0xff]  ;;  %v14383_v21 = vld [vmem:[#allocation6 + $0x1124] ss:$16 sps:$4 sm:$0xff]  }
 0x267   : > { %8083 = vmatprep.subr.bf16.mxu0 %v14281_v30  ;;  %9891 = vmatprep.subr.bf16.mxu1 %v14284_v31  ;;  %v14338_v30 = vld [vmem:[#allocation6 + $0x102c] ss:$16 sps:$4 sm:$0xff]   ;;  %v901_v31 = vpack.c.bf16 %v453_v28, %v421_v27  ;;  %v708_v27 = vld [vmem:[%s15543_s13 + $0xb70] sm:$0xff] }
 0x268   : > { %v709_v20 = vld [vmem:[%s15543_s13 + $0xb78] sm:$0xff]  ;;  %v14389_v28 = vld [vmem:[#allocation6 + $0x1144] ss:$16 sps:$4 sm:$0xff]  }
 0x269   : > { %8027 = vmatmul.mubr.bf16.gmra.mrb[16].mxu0 %v994_v34  ;;  %9835 = vmatmul.mubr.bf16.gmra.mrb[16].mxu1 %v994_v34  ;;  %v420_v34 = vld [vmem:[%s15543_s13 + $0x270] sm:$0xff] }
 0x26a   : > { %8084 = vmatpush1.bf16.msra.mxu0 %v14279_v32  ;;  %9892 = vmatpush1.bf16.msra.mxu1 %v14282_v33  ;;  %v14333_v32 = vld [vmem:[#allocation6 + $0x1020] ss:$16 sps:$4 sm:$0xff]   ;;  %v14336_v33 = vld [vmem:[#allocation6 + $0x1028] ss:$16 sps:$4 sm:$0xff]  }
 0x26b   : > { %8085 = vmatprep.subr.bf16.mxu0 %v14287_v37  ;;  %9893 = vmatprep.subr.bf16.mxu1 %v14290_v38  ;;  %v14344_v37 = vld [vmem:[#allocation6 + $0x104c] ss:$16 sps:$4 sm:$0xff]   ;;  %v14339_v38 = vld [vmem:[#allocation6 + $0x1040] ss:$16 sps:$4 sm:$0xff]  }
 0x26c   : > { %8036 = vmatprep.mubr.bf16.mxu0 %v1027_v40  ;;  %9844 = vmatprep.mubr.bf16.mxu1 %v1027_v40  ;;  %v900_v40 = vpack.c.bf16 %v452_v35, %v420_v34  ;;  %v773_v34 = vld [vmem:[%s15543_s13 + $0xd78] sm:$0xff]  ;;  %v14395_v35 = vld [vmem:[#allocation6 + $0x1164] ss:$16 sps:$4 sm:$0xff]  }
 0x26e   : > { %8086 = vmatpush1.bf16.msra.mxu0 %v14285_v39  ;;  %9894 = vmatpush1.bf16.msra.mxu1 %v14288_v41  ;;  %v14342_v39 = vld [vmem:[#allocation6 + $0x1048] ss:$16 sps:$4 sm:$0xff]  }
 0x26f   : > { %8087 = vmatprep.subr.bf16.mxu0 %v14293_v44  ;;  %9895 = vmatprep.subr.bf16.mxu1 %v14296_v45  ;;  %v485_v41 = vld [vmem:[%s15543_s13 + $0x478] sm:$0xff]  ;;  %v14345_v45 = vld [vmem:[#allocation6 + $0x1060] ss:$16 sps:$4 sm:$0xff]  }
 0x270   : > { %v14350_v44 = vld [vmem:[#allocation6 + $0x106c] ss:$16 sps:$4 sm:$0xff]  }
 0x271   : > { %8037 = vmatmul.mubr.bf16.gmra.mrb[20].mxu0 %v1026_v47  ;;  %9845 = vmatmul.mubr.bf16.gmra.mrb[20].mxu1 %v1026_v47  ;;  %v14348_v47 = vld [vmem:[#allocation6 + $0x1068] ss:$16 sps:$4 sm:$0xff]  }
 0x272   : > { %8088 = vmatpush1.bf16.msra.mxu0 %v14291_v46  ;;  %9896 = vmatpush1.bf16.msra.mxu1 %v14294_v50  ;;  %v933_v46 = vpack.c.bf16 %v517_v42, %v485_v41  ;;  %v14353_v50 = vld [vmem:[#allocation6 + $0x1084] ss:$16 sps:$4 sm:$0xff]  }
 0x273   : > { %8089 = vmatprep.subr.bf16.mxu0 %v14299_v51  ;;  %9897 = vmatprep.subr.bf16.mxu1 %v14302_v52  ;;  %v14356_v51 = vld [vmem:[#allocation6 + $0x108c] ss:$16 sps:$4 sm:$0xff]   ;;  %v14351_v52 = vld [vmem:[#allocation6 + $0x1080] ss:$16 sps:$4 sm:$0xff]   ;;  %v14401_v42 = vld [vmem:[#allocation6 + $0x1184] ss:$16 sps:$4 sm:$0xff]  }
 0x274   : > { %8046 = vmatprep.mubr.bf16.mxu0 %v1059_v55  ;;  %9854 = vmatprep.mubr.bf16.mxu1 %v1059_v55  ;;  %v581_v55 = vld [vmem:[%s15543_s13 + $0x778] sm:$0xff]  ;;  %v772_v41 = vld [vmem:[%s15543_s13 + $0xd70] sm:$0xff] }
 0x276   : > { %8090 = vmatpush1.bf16.msra.mxu0 %v14297_v53  ;;  %9898 = vmatpush1.bf16.msra.mxu1 %v14300_v54  ;;  %v932_v53 = vpack.c.bf16 %v516_v49, %v484_v48  ;;  %v549_v54 = vld [vmem:[%s15543_s13 + $0x678] sm:$0xff]  ;;  %v14407_v49 = vld [vmem:[#allocation6 + $0x11a4] ss:$16 sps:$4 sm:$0xff]  }
 0x277   : > { %8091 = vmatprep.subr.bf16.mxu0 %v14305_v58  ;;  %9899 = vmatprep.subr.bf16.mxu1 %v14308_v59  ;;  %v14362_v58 = vld [vmem:[#allocation6 + $0x10ac] ss:$16 sps:$4 sm:$0xff]   ;;  %v14357_v59 = vld [vmem:[#allocation6 + $0x10a0] ss:$16 sps:$4 sm:$0xff]   ;;  %v965_v61 = vpack.c.bf16 %v581_v55, %v549_v54 }
 0x278   : > { %v837_v48 = vld [vmem:[%s15543_s13 + $0xf78] sm:$0xff]  ;;  %v804_v54 = vld [vmem:[%s15543_s13 + $0xe70] sm:$0xff] }
 0x279   : > { %8047 = vmatmul.mubr.bf16.gmra.mrb[24].mxu0 %v1058_v60  ;;  %9855 = vmatmul.mubr.bf16.gmra.mrb[24].mxu1 %v1058_v60  ;;  %v14360_v60 = vld [vmem:[#allocation6 + $0x10a8] ss:$16 sps:$4 sm:$0xff]   ;;  %v836_v55 = vld [vmem:[%s15543_s13 + $0xf70] sm:$0xff] }
 0x27a   : > { %8092 = vmatpush1.bf16.msra.mxu0 %v14303_v63  ;;  %9900 = vmatpush1.bf16.msra.mxu1 %v14306_v0  ;;  %v580_v63 = vld [vmem:[%s15543_s13 + $0x770] sm:$0xff] }
 0x27b   : > { %8093 = vmatprep.subr.bf16.mxu0 %v14311_v1  ;;  %9901 = vmatprep.subr.bf16.mxu1 %v14314_v2  ;;  %v14365_v0 = vld [vmem:[#allocation6 + $0x10c4] ss:$16 sps:$4 sm:$0xff]   ;;  %v14368_v1 = vld [vmem:[#allocation6 + $0x10cc] ss:$16 sps:$4 sm:$0xff]   ;;  %v964_v2 = vpack.c.bf16 %v580_v63, %v548_v62  ;;  %v14414_v62 = vld [vmem:[#allocation6 + $0x11c8] ss:$16 sps:$4 sm:$0xff]  }
 0x27c   : > { %8056 = vmatprep.mubr.bf16.mxu0 %v1091_v5  ;;  %9864 = vmatprep.mubr.bf16.mxu1 %v1091_v5  ;;  %v14363_v5 = vld [vmem:[#allocation6 + $0x10c0] ss:$16 sps:$4 sm:$0xff]   ;;  %v14419_v63 = vld [vmem:[#allocation6 + $0x11e4] ss:$16 sps:$4 sm:$0xff]  }
 0x27e   : > { %8094 = vmatpush1.bf16.msra.mxu0 %v14309_v3  ;;  %9902 = vmatpush1.bf16.msra.mxu1 %v14312_v4  ;;  %v613_v3 = vld [vmem:[%s15543_s13 + $0x878] sm:$0xff] }
 0x27f   : > { %8095 = vmatprep.subr.bf16.mxu0 %v14317_v8  ;;  %9903 = vmatprep.subr.bf16.mxu1 %v14320_v9  ;;  %v645_v4 = vld [vmem:[%s15543_s13 + $0x978] sm:$0xff]  ;;  %v14369_v9 = vld [vmem:[#allocation6 + $0x10e0] ss:$16 sps:$4 sm:$0xff]  }
 0x280   : > { %v14374_v8 = vld [vmem:[#allocation6 + $0x10ec] ss:$16 sps:$4 sm:$0xff]  }
 0x281   : > { %8057 = vmatmul.mubr.bf16.gmra.mrb[28].mxu0 %v1090_v11  ;;  %9865 = vmatmul.mubr.bf16.gmra.mrb[28].mxu1 %v1090_v11  ;;  %v997_v11 = vpack.c.bf16 %v645_v4, %v613_v3  ;;  %v358_v4 = vld [vmem:[%s15543_s13 + $0x80] sm:$0xff] }
 0x282   : > { %8096 = vmatpush1.bf16.msra.mxu0 %v14315_v10  ;;  %9904 = vmatpush1.bf16.msra.mxu1 %v14318_v12  ;;  %v14372_v10 = vld [vmem:[#allocation6 + $0x10e8] ss:$16 sps:$4 sm:$0xff]   ;;  %v612_v12 = vld [vmem:[%s15543_s13 + $0x870] sm:$0xff] }
 0x283   : > { %8097 = vmatprep.subr.bf16.mxu0 %v14323_v15  ;;  %9905 = vmatprep.subr.bf16.mxu1 %v14326_v16  ;;  %v14380_v15 = vld [vmem:[#allocation6 + $0x110c] ss:$16 sps:$4 sm:$0xff]   ;;  %v14375_v16 = vld [vmem:[#allocation6 + $0x1100] ss:$16 sps:$4 sm:$0xff]  }
 0x284   : > { %8099 = vmatprep.mubr.bf16.mxu0 %v869_v18  ;;  %9907 = vmatprep.mubr.bf16.mxu1 %v869_v18  ;;  %v14378_v18 = vld [vmem:[#allocation6 + $0x1108] ss:$16 sps:$4 sm:$0xff]  }
 0x286   : > { %8098 = vmatpush1.bf16.msra.mxu0 %v14321_v17  ;;  %9906 = vmatpush1.bf16.msra.mxu1 %v14324_v19  ;;  %v996_v17 = vpack.c.bf16 %v644_v13, %v612_v12  ;;  %v677_v19 = vld [vmem:[%s15543_s13 + $0xa78] sm:$0xff]  ;;  %v14431_v13 = vld [vmem:[#allocation6 + $0x1224] ss:$16 sps:$4 sm:$0xff]  }
 0x287   : > { %8180 = vmatprep.subr.bf16.mxu0 %v14329_v22  ;;  %9988 = vmatprep.subr.bf16.mxu1 %v14332_v23  ;;  %v14386_v22 = vld [vmem:[#allocation6 + $0x112c] ss:$16 sps:$4 sm:$0xff]   ;;  %v14381_v23 = vld [vmem:[#allocation6 + $0x1120] ss:$16 sps:$4 sm:$0xff]   ;;  %v14426_v12 = vld [vmem:[#allocation6 + $0x1208] ss:$16 sps:$4 sm:$0xff]  }
 0x289   : > { %8100 = vmatmul.mubr.bf16.vlgmr.msra.gmra.mrb[0].mxu0 %v868_v26  ;;  %9908 = vmatmul.mubr.bf16.vlgmr.msra.gmra.mrb[0].mxu1 %v868_v26  ;;  %v676_v26 = vld [vmem:[%s15543_s13 + $0xa70] sm:$0xff] }
 0x28a   : > { %8181 = vmatpush1.bf16.msra.mxu0 %v14327_v24  ;;  %9989 = vmatpush1.bf16.msra.mxu1 %v14330_v25  ;;  %v1029_v24 = vpack.c.bf16 %v709_v20, %v677_v19  ;;  %v14384_v25 = vld [vmem:[#allocation6 + $0x1128] ss:$16 sps:$4 sm:$0xff]   ;;  %v454_v19 = vld [vmem:[%s15543_s13 + $0x380] sm:$0xff] }
 0x28b   : > { %8182 = vmatprep.subr.bf16.mxu0 %v14335_v29  ;;  %9990 = vmatprep.subr.bf16.mxu1 %v14338_v30  ;;  %v14392_v29 = vld [vmem:[#allocation6 + $0x114c] ss:$16 sps:$4 sm:$0xff]   ;;  %v14387_v30 = vld [vmem:[#allocation6 + $0x1140] ss:$16 sps:$4 sm:$0xff]   ;;  %v14437_v20 = vld [vmem:[#allocation6 + $0x1244] ss:$16 sps:$4 sm:$0xff]  }
 0x28c   : > { %8109 = vmatprep.mubr.bf16.mxu0 %v901_v31  ;;  %9917 = vmatprep.mubr.bf16.mxu1 %v901_v31  ;;  %v14390_v31 = vld [vmem:[#allocation6 + $0x1148] ss:$16 sps:$4 sm:$0xff]  }
 0x28e   : > { %8183 = vmatpush1.bf16.msra.mxu0 %v14333_v32  ;;  %9991 = vmatpush1.bf16.msra.mxu1 %v14336_v33  ;;  %v1028_v32 = vpack.c.bf16 %v708_v27, %v676_v26  ;;  %v741_v33 = vld [vmem:[%s15543_s13 + $0xc78] sm:$0xff]  ;;  %v14443_v27 = vld [vmem:[#allocation6 + $0x1264] ss:$16 sps:$4 sm:$0xff]  }
 0x28f   : > { %8184 = vmatprep.subr.bf16.mxu0 %v14341_v36  ;;  %9992 = vmatprep.subr.bf16.mxu1 %v14344_v37  ;;  %v14398_v36 = vld [vmem:[#allocation6 + $0x116c] ss:$16 sps:$4 sm:$0xff]   ;;  %v1061_v37 = vpack.c.bf16 %v773_v34, %v741_v33  ;;  %v14438_v26 = vld [vmem:[#allocation6 + $0x1248] ss:$16 sps:$4 sm:$0xff]   ;;  %v518_v33 = vld [vmem:[%s15543_s13 + $0x580] sm:$0xff] }
 0x290   : > { %v14449_v34 = vld [vmem:[#allocation6 + $0x1284] ss:$16 sps:$4 sm:$0xff]  }
 0x291   : > { %8110 = vmatmul.mubr.bf16.gmra.mrb[4].mxu0 %v900_v40  ;;  %9918 = vmatmul.mubr.bf16.gmra.mrb[4].mxu1 %v900_v40  ;;  %v740_v40 = vld [vmem:[%s15543_s13 + $0xc70] sm:$0xff] }
 0x292   : > { %8185 = vmatpush1.bf16.msra.mxu0 %v14339_v38  ;;  %9993 = vmatpush1.bf16.msra.mxu1 %v14342_v39  ;;  %v14393_v38 = vld [vmem:[#allocation6 + $0x1160] ss:$16 sps:$4 sm:$0xff]   ;;  %v14396_v39 = vld [vmem:[#allocation6 + $0x1168] ss:$16 sps:$4 sm:$0xff]  }
 0x293   : > { %8186 = vmatprep.subr.bf16.mxu0 %v14347_v43  ;;  %9994 = vmatprep.subr.bf16.mxu1 %v14350_v44  ;;  %v14404_v43 = vld [vmem:[#allocation6 + $0x118c] ss:$16 sps:$4 sm:$0xff]   ;;  %v14399_v44 = vld [vmem:[#allocation6 + $0x1180] ss:$16 sps:$4 sm:$0xff]  }
 0x294   : > { %8119 = vmatprep.mubr.bf16.mxu0 %v933_v46  ;;  %9927 = vmatprep.mubr.bf16.mxu1 %v933_v46  ;;  %v1060_v46 = vpack.c.bf16 %v772_v41, %v740_v40  ;;  %v14450_v40 = vld [vmem:[#allocation6 + $0x1288] ss:$16 sps:$4 sm:$0xff]   ;;  %v14455_v41 = vld [vmem:[#allocation6 + $0x12a4] ss:$16 sps:$4 sm:$0xff]  }
 0x296   : > { %8187 = vmatpush1.bf16.msra.mxu0 %v14345_v45  ;;  %9995 = vmatpush1.bf16.msra.mxu1 %v14348_v47  ;;  %v14402_v45 = vld [vmem:[#allocation6 + $0x1188] ss:$16 sps:$4 sm:$0xff]  }
 0x297   : > { %8188 = vmatprep.subr.bf16.mxu0 %v14353_v50  ;;  %9996 = vmatprep.subr.bf16.mxu1 %v14356_v51  ;;  %v805_v47 = vld [vmem:[%s15543_s13 + $0xe78] sm:$0xff]  ;;  %v14405_v51 = vld [vmem:[#allocation6 + $0x11a0] ss:$16 sps:$4 sm:$0xff]  }
 0x298   : > { %v14410_v50 = vld [vmem:[#allocation6 + $0x11ac] ss:$16 sps:$4 sm:$0xff]  }
 0x299   : > { %8120 = vmatmul.mubr.bf16.gmra.mrb[8].mxu0 %v932_v53  ;;  %9928 = vmatmul.mubr.bf16.gmra.mrb[8].mxu1 %v932_v53  ;;  %v14408_v53 = vld [vmem:[#allocation6 + $0x11a8] ss:$16 sps:$4 sm:$0xff]  }
 0x29a   : > { %8189 = vmatpush1.bf16.msra.mxu0 %v14351_v52  ;;  %9997 = vmatpush1.bf16.msra.mxu1 %v14354_v56  ;;  %v1093_v52 = vpack.c.bf16 %v837_v48, %v805_v47  ;;  %v14413_v56 = vld [vmem:[#allocation6 + $0x11c4] ss:$16 sps:$4 sm:$0xff]  }
 0x29b   : > { %8190 = vmatprep.subr.bf16.mxu0 %v14359_v57  ;;  %9998 = vmatprep.subr.bf16.mxu1 %v14362_v58  ;;  %v14416_v57 = vld [vmem:[#allocation6 + $0x11cc] ss:$16 sps:$4 sm:$0xff]   ;;  %v14411_v58 = vld [vmem:[#allocation6 + $0x11c0] ss:$16 sps:$4 sm:$0xff]   ;;  %v14461_v48 = vld [vmem:[#allocation6 + $0x12c4] ss:$16 sps:$4 sm:$0xff]  }
 0x29c   : > { %8129 = vmatprep.mubr.bf16.mxu0 %v965_v61  ;;  %9937 = vmatprep.mubr.bf16.mxu1 %v965_v61  ;;  %v391_v61 = vld [vmem:[%s15543_s13 + $0x188] sm:$0xff]  ;;  %v582_v47 = vld [vmem:[%s15543_s13 + $0x780] sm:$0xff] }
 0x29e   : > { %8191 = vmatpush1.bf16.msra.mxu0 %v14357_v59  ;;  %9999 = vmatpush1.bf16.msra.mxu1 %v14360_v60  ;;  %v1092_v59 = vpack.c.bf16 %v836_v55, %v804_v54  ;;  %v359_v60 = vld [vmem:[%s15543_s13 + $0x88] sm:$0xff]  ;;  %v14467_v55 = vld [vmem:[#allocation6 + $0x12e4] ss:$16 sps:$4 sm:$0xff]  }
 0x29f   : > { %8192 = vmatprep.subr.bf16.mxu0 %v14365_v0  ;;  %10000 = vmatprep.subr.bf16.mxu1 %v14368_v1  ;;  %v14422_v0 = vld [vmem:[#allocation6 + $0x11ec] ss:$16 sps:$4 sm:$0xff]   ;;  %v14417_v1 = vld [vmem:[#allocation6 + $0x11e0] ss:$16 sps:$4 sm:$0xff]   ;;  %v871_v3 = vpack.c.bf16 %v391_v61, %v359_v60  ;;  %v14462_v54 = vld [vmem:[#allocation6 + $0x12c8] ss:$16 sps:$4 sm:$0xff]  }
 0x2a0   : > { %v614_v60 = vld [vmem:[%s15543_s13 + $0x880] sm:$0xff] }
 0x2a1   : > { %8130 = vmatmul.mubr.bf16.gmra.mrb[12].mxu0 %v964_v2  ;;  %9938 = vmatmul.mubr.bf16.gmra.mrb[12].mxu1 %v964_v2  ;;  %v14420_v2 = vld [vmem:[#allocation6 + $0x11e8] ss:$16 sps:$4 sm:$0xff]   ;;  %v646_v61 = vld [vmem:[%s15543_s13 + $0x980] sm:$0xff] }
 0x2a2   : > { %8193 = vmatpush1.bf16.msra.mxu0 %v14363_v5  ;;  %10001 = vmatpush1.bf16.msra.mxu1 %v14366_v6  ;;  %v390_v5 = vld [vmem:[%s15543_s13 + $0x180] sm:$0xff] }
 0x2a3   : > { %8194 = vmatprep.subr.bf16.mxu0 %v14371_v7  ;;  %10002 = vmatprep.subr.bf16.mxu1 %v14374_v8  ;;  %v14425_v6 = vld [vmem:[#allocation6 + $0x1204] ss:$16 sps:$4 sm:$0xff]   ;;  %v14428_v7 = vld [vmem:[#allocation6 + $0x120c] ss:$16 sps:$4 sm:$0xff]   ;;  %v870_v8 = vpack.c.bf16 %v390_v5, %v358_v4  ;;  %v14474_v4 = vld [vmem:[#allocation6 + $0x1308] ss:$16 sps:$4 sm:$0xff]  }
 0x2a4   : > { %8139 = vmatprep.mubr.bf16.mxu0 %v997_v11  ;;  %9947 = vmatprep.mubr.bf16.mxu1 %v997_v11  ;;  %v14423_v11 = vld [vmem:[#allocation6 + $0x1200] ss:$16 sps:$4 sm:$0xff]   ;;  %v14479_v5 = vld [vmem:[#allocation6 + $0x1324] ss:$16 sps:$4 sm:$0xff]  }
 0x2a6   : > { %8195 = vmatpush1.bf16.msra.mxu0 %v14369_v9  ;;  %10003 = vmatpush1.bf16.msra.mxu1 %v14372_v10  ;;  %v423_v9 = vld [vmem:[%s15543_s13 + $0x288] sm:$0xff] }
 0x2a7   : > { %8196 = vmatprep.subr.bf16.mxu0 %v14377_v14  ;;  %10004 = vmatprep.subr.bf16.mxu1 %v14380_v15  ;;  %v455_v10 = vld [vmem:[%s15543_s13 + $0x388] sm:$0xff]  ;;  %v14429_v15 = vld [vmem:[#allocation6 + $0x1220] ss:$16 sps:$4 sm:$0xff]  }
 0x2a8   : > { %v14434_v14 = vld [vmem:[#allocation6 + $0x122c] ss:$16 sps:$4 sm:$0xff]  }
 0x2a9   : > { %8140 = vmatmul.mubr.bf16.gmra.mrb[16].mxu0 %v996_v17  ;;  %9948 = vmatmul.mubr.bf16.gmra.mrb[16].mxu1 %v996_v17  ;;  %v903_v17 = vpack.c.bf16 %v455_v10, %v423_v9  ;;  %v678_v10 = vld [vmem:[%s15543_s13 + $0xa80] sm:$0xff] }
 0x2aa   : > { %8197 = vmatpush1.bf16.msra.mxu0 %v14375_v16  ;;  %10005 = vmatpush1.bf16.msra.mxu1 %v14378_v18  ;;  %v14432_v16 = vld [vmem:[#allocation6 + $0x1228] ss:$16 sps:$4 sm:$0xff]   ;;  %v422_v18 = vld [vmem:[%s15543_s13 + $0x280] sm:$0xff] }
 0x2ab   : > { %8198 = vmatprep.subr.bf16.mxu0 %v14383_v21  ;;  %10006 = vmatprep.subr.bf16.mxu1 %v14386_v22  ;;  %v14440_v21 = vld [vmem:[#allocation6 + $0x124c] ss:$16 sps:$4 sm:$0xff]   ;;  %v902_v22 = vpack.c.bf16 %v454_v19, %v422_v18  ;;  %v14486_v18 = vld [vmem:[#allocation6 + $0x1348] ss:$16 sps:$4 sm:$0xff]   ;;  %v14491_v19 = vld [vmem:[#allocation6 + $0x1364] ss:$16 sps:$4 sm:$0xff]  }
 0x2ac   : > { %8149 = vmatprep.mubr.bf16.mxu0 %v1029_v24  ;;  %9957 = vmatprep.mubr.bf16.mxu1 %v1029_v24  ;;  %v519_v24 = vld [vmem:[%s15543_s13 + $0x588] sm:$0xff] }
 0x2ae   : > { %8199 = vmatpush1.bf16.msra.mxu0 %v14381_v23  ;;  %10007 = vmatpush1.bf16.msra.mxu1 %v14384_v25  ;;  %v487_v23 = vld [vmem:[%s15543_s13 + $0x488] sm:$0xff]  ;;  %v14435_v25 = vld [vmem:[#allocation6 + $0x1240] ss:$16 sps:$4 sm:$0xff]  }
 0x2af   : > { %8200 = vmatprep.subr.bf16.mxu0 %v14389_v28  ;;  %10008 = vmatprep.subr.bf16.mxu1 %v14392_v29  ;;  %v14446_v28 = vld [vmem:[#allocation6 + $0x126c] ss:$16 sps:$4 sm:$0xff]   ;;  %v14441_v29 = vld [vmem:[#allocation6 + $0x1260] ss:$16 sps:$4 sm:$0xff]  }
 0x2b1   : > { %8150 = vmatmul.mubr.bf16.gmra.mrb[20].mxu0 %v1028_v32  ;;  %9958 = vmatmul.mubr.bf16.gmra.mrb[20].mxu1 %v1028_v32  ;;  %v486_v32 = vld [vmem:[%s15543_s13 + $0x480] sm:$0xff] }
 0x2b2   : > { %8201 = vmatpush1.bf16.msra.mxu0 %v14387_v30  ;;  %10009 = vmatpush1.bf16.msra.mxu1 %v14390_v31  ;;  %v14444_v30 = vld [vmem:[#allocation6 + $0x1268] ss:$16 sps:$4 sm:$0xff]   ;;  %v935_v31 = vpack.c.bf16 %v519_v24, %v487_v23  ;;  %v742_v24 = vld [vmem:[%s15543_s13 + $0xc80] sm:$0xff] }
 0x2b3   : > { %8202 = vmatprep.subr.bf16.mxu0 %v14395_v35  ;;  %10010 = vmatprep.subr.bf16.mxu1 %v14398_v36  ;;  %v14452_v35 = vld [vmem:[#allocation6 + $0x128c] ss:$16 sps:$4 sm:$0xff]   ;;  %v934_v36 = vpack.c.bf16 %v518_v33, %v486_v32  ;;  %v14498_v32 = vld [vmem:[#allocation6 + $0x1388] ss:$16 sps:$4 sm:$0xff]   ;;  %v14503_v33 = vld [vmem:[#allocation6 + $0x13a4] ss:$16 sps:$4 sm:$0xff]  }
 0x2b4   : > { %8159 = vmatprep.mubr.bf16.mxu0 %v1061_v37  ;;  %9967 = vmatprep.mubr.bf16.mxu1 %v1061_v37  ;;  %v551_v37 = vld [vmem:[%s15543_s13 + $0x688] sm:$0xff] }
 0x2b6   : > { %8203 = vmatpush1.bf16.msra.mxu0 %v14393_v38  ;;  %10011 = vmatpush1.bf16.msra.mxu1 %v14396_v39  ;;  %v583_v38 = vld [vmem:[%s15543_s13 + $0x788] sm:$0xff]  ;;  %v14447_v39 = vld [vmem:[#allocation6 + $0x1280] ss:$16 sps:$4 sm:$0xff]  }
 0x2b7   : > { %8204 = vmatprep.subr.bf16.mxu0 %v14401_v42  ;;  %10012 = vmatprep.subr.bf16.mxu1 %v14404_v43  ;;  %v14458_v42 = vld [vmem:[#allocation6 + $0x12ac] ss:$16 sps:$4 sm:$0xff]   ;;  %v14453_v43 = vld [vmem:[#allocation6 + $0x12a0] ss:$16 sps:$4 sm:$0xff]  }
 0x2b9   : > { %8160 = vmatmul.mubr.bf16.gmra.mrb[24].mxu0 %v1060_v46  ;;  %9968 = vmatmul.mubr.bf16.gmra.mrb[24].mxu1 %v1060_v46  ;;  %v550_v46 = vld [vmem:[%s15543_s13 + $0x680] sm:$0xff] }
 0x2ba   : > { %8205 = vmatpush1.bf16.msra.mxu0 %v14399_v44  ;;  %10013 = vmatpush1.bf16.msra.mxu1 %v14402_v45  ;;  %v14456_v44 = vld [vmem:[#allocation6 + $0x12a8] ss:$16 sps:$4 sm:$0xff]   ;;  %v967_v45 = vpack.c.bf16 %v583_v38, %v551_v37  ;;  %v806_v38 = vld [vmem:[%s15543_s13 + $0xe80] sm:$0xff] }
 0x2bb   : > { %8206 = vmatprep.subr.bf16.mxu0 %v14407_v49  ;;  %10014 = vmatprep.subr.bf16.mxu1 %v14410_v50  ;;  %v14464_v49 = vld [vmem:[#allocation6 + $0x12cc] ss:$16 sps:$4 sm:$0xff]   ;;  %v966_v50 = vpack.c.bf16 %v582_v47, %v550_v46  ;;  %v14510_v46 = vld [vmem:[#allocation6 + $0x13c8] ss:$16 sps:$4 sm:$0xff]   ;;  %v14515_v47 = vld [vmem:[#allocation6 + $0x13e4] ss:$16 sps:$4 sm:$0xff]  }
 0x2bc   : > { %8169 = vmatprep.mubr.bf16.mxu0 %v1093_v52  ;;  %9977 = vmatprep.mubr.bf16.mxu1 %v1093_v52  ;;  %v647_v52 = vld [vmem:[%s15543_s13 + $0x988] sm:$0xff] }
 0x2be   : > { %8207 = vmatpush1.bf16.msra.mxu0 %v14405_v51  ;;  %10015 = vmatpush1.bf16.msra.mxu1 %v14408_v53  ;;  %v615_v51 = vld [vmem:[%s15543_s13 + $0x888] sm:$0xff]  ;;  %v14459_v53 = vld [vmem:[#allocation6 + $0x12c0] ss:$16 sps:$4 sm:$0xff]  }
 0x2bf   : > { %8208 = vmatprep.subr.bf16.mxu0 %v14413_v56  ;;  %10016 = vmatprep.subr.bf16.mxu1 %v14416_v57  ;;  %v14470_v56 = vld [vmem:[#allocation6 + $0x12ec] ss:$16 sps:$4 sm:$0xff]   ;;  %v14465_v57 = vld [vmem:[#allocation6 + $0x12e0] ss:$16 sps:$4 sm:$0xff]  }
 0x2c1   : > { %8170 = vmatmul.mubr.bf16.gmra.mrb[28].mxu0 %v1092_v59  ;;  %9978 = vmatmul.mubr.bf16.gmra.mrb[28].mxu1 %v1092_v59  ;;  %v999_v59 = vpack.c.bf16 %v647_v52, %v615_v51  ;;  %v360_v52 = vld [vmem:[%s15543_s13 + $0x90] sm:$0xff] }
 0x2c2   : > { %8209 = vmatpush1.bf16.msra.mxu0 %v14411_v58  ;;  %10017 = vmatpush1.bf16.msra.mxu1 %v14414_v62  ;;  %v14468_v58 = vld [vmem:[#allocation6 + $0x12e8] ss:$16 sps:$4 sm:$0xff]   ;;  %v14473_v62 = vld [vmem:[#allocation6 + $0x1304] ss:$16 sps:$4 sm:$0xff]  }
 0x2c3   : > { %8210 = vmatprep.subr.bf16.mxu0 %v14419_v63  ;;  %10018 = vmatprep.subr.bf16.mxu1 %v14422_v0  ;;  %v14476_v63 = vld [vmem:[#allocation6 + $0x130c] ss:$16 sps:$4 sm:$0xff]   ;;  %v998_v0 = vpack.c.bf16 %v646_v61, %v614_v60  ;;  %v14522_v60 = vld [vmem:[#allocation6 + $0x1408] ss:$16 sps:$4 sm:$0xff]   ;;  %v14527_v61 = vld [vmem:[#allocation6 + $0x1424] ss:$16 sps:$4 sm:$0xff]  }
 0x2c4   : > { %8212 = vmatprep.mubr.bf16.mxu0 %v871_v3  ;;  %10020 = vmatprep.mubr.bf16.mxu1 %v871_v3  ;;  %v14471_v3 = vld [vmem:[#allocation6 + $0x1300] ss:$16 sps:$4 sm:$0xff]  }
 0x2c6   : > { %8211 = vmatpush1.bf16.msra.mxu0 %v14417_v1  ;;  %10019 = vmatpush1.bf16.msra.mxu1 %v14420_v2  ;;  %v679_v1 = vld [vmem:[%s15543_s13 + $0xa88] sm:$0xff] }
 0x2c7   : > { %8293 = vmatprep.subr.bf16.mxu0 %v14425_v6  ;;  %10101 = vmatprep.subr.bf16.mxu1 %v14428_v7  ;;  %v711_v2 = vld [vmem:[%s15543_s13 + $0xb88] sm:$0xff]  ;;  %v14477_v7 = vld [vmem:[#allocation6 + $0x1320] ss:$16 sps:$4 sm:$0xff]  }
 0x2c8   : > { %v14482_v6 = vld [vmem:[#allocation6 + $0x132c] ss:$16 sps:$4 sm:$0xff]   ;;  %v1031_v9 = vpack.c.bf16 %v711_v2, %v679_v1  ;;  %v424_v2 = vld [vmem:[%s15543_s13 + $0x290] sm:$0xff] }
 0x2c9   : > { %8213 = vmatmul.mubr.bf16.vlgmr.msra.gmra.mrb[0].mxu0 %v870_v8  ;;  %10021 = vmatmul.mubr.bf16.vlgmr.msra.gmra.mrb[0].mxu1 %v870_v8  ;;  %v14480_v8 = vld [vmem:[#allocation6 + $0x1328] ss:$16 sps:$4 sm:$0xff]  }
 0x2ca   : > { %8294 = vmatpush1.bf16.msra.mxu0 %v14423_v11  ;;  %10102 = vmatpush1.bf16.msra.mxu1 %v14426_v12  ;;  %v710_v11 = vld [vmem:[%s15543_s13 + $0xb80] sm:$0xff] }
 0x2cb   : > { %8295 = vmatprep.subr.bf16.mxu0 %v14431_v13  ;;  %10103 = vmatprep.subr.bf16.mxu1 %v14434_v14  ;;  %v14485_v12 = vld [vmem:[#allocation6 + $0x1344] ss:$16 sps:$4 sm:$0xff]   ;;  %v14488_v13 = vld [vmem:[#allocation6 + $0x134c] ss:$16 sps:$4 sm:$0xff]   ;;  %v1030_v14 = vpack.c.bf16 %v710_v11, %v678_v10  ;;  %v14534_v10 = vld [vmem:[#allocation6 + $0x1448] ss:$16 sps:$4 sm:$0xff]  }
 0x2cc   : > { %8222 = vmatprep.mubr.bf16.mxu0 %v903_v17  ;;  %10030 = vmatprep.mubr.bf16.mxu1 %v903_v17  ;;  %v14483_v17 = vld [vmem:[#allocation6 + $0x1340] ss:$16 sps:$4 sm:$0xff]   ;;  %v14539_v11 = vld [vmem:[#allocation6 + $0x1464] ss:$16 sps:$4 sm:$0xff]  }
 0x2ce   : > { %8296 = vmatpush1.bf16.msra.mxu0 %v14429_v15  ;;  %10104 = vmatpush1.bf16.msra.mxu1 %v14432_v16  ;;  %v743_v15 = vld [vmem:[%s15543_s13 + $0xc88] sm:$0xff] }
 0x2cf   : > { %8297 = vmatprep.subr.bf16.mxu0 %v14437_v20  ;;  %10105 = vmatprep.subr.bf16.mxu1 %v14440_v21  ;;  %v775_v16 = vld [vmem:[%s15543_s13 + $0xd88] sm:$0xff]  ;;  %v14489_v21 = vld [vmem:[#allocation6 + $0x1360] ss:$16 sps:$4 sm:$0xff]  }
 0x2d0   : > { %v14494_v20 = vld [vmem:[#allocation6 + $0x136c] ss:$16 sps:$4 sm:$0xff]   ;;  %v1063_v23 = vpack.c.bf16 %v775_v16, %v743_v15  ;;  %v488_v16 = vld [vmem:[%s15543_s13 + $0x490] sm:$0xff] }
 0x2d1   : > { %8223 = vmatmul.mubr.bf16.gmra.mrb[4].mxu0 %v902_v22  ;;  %10031 = vmatmul.mubr.bf16.gmra.mrb[4].mxu1 %v902_v22  ;;  %v14492_v22 = vld [vmem:[#allocation6 + $0x1368] ss:$16 sps:$4 sm:$0xff]  }
 0x2d2   : > { %8298 = vmatpush1.bf16.msra.mxu0 %v14435_v25  ;;  %10106 = vmatpush1.bf16.msra.mxu1 %v14438_v26  ;;  %v774_v25 = vld [vmem:[%s15543_s13 + $0xd80] sm:$0xff] }
 0x2d3   : > { %8299 = vmatprep.subr.bf16.mxu0 %v14443_v27  ;;  %10107 = vmatprep.subr.bf16.mxu1 %v14446_v28  ;;  %v14497_v26 = vld [vmem:[#allocation6 + $0x1384] ss:$16 sps:$4 sm:$0xff]   ;;  %v14500_v27 = vld [vmem:[#allocation6 + $0x138c] ss:$16 sps:$4 sm:$0xff]   ;;  %v1062_v28 = vpack.c.bf16 %v774_v25, %v742_v24  ;;  %v14546_v24 = vld [vmem:[#allocation6 + $0x1488] ss:$16 sps:$4 sm:$0xff]  }
 0x2d4   : > { %8232 = vmatprep.mubr.bf16.mxu0 %v935_v31  ;;  %10040 = vmatprep.mubr.bf16.mxu1 %v935_v31  ;;  %v14495_v31 = vld [vmem:[#allocation6 + $0x1380] ss:$16 sps:$4 sm:$0xff]   ;;  %v14551_v25 = vld [vmem:[#allocation6 + $0x14a4] ss:$16 sps:$4 sm:$0xff]  }
 0x2d6   : > { %8300 = vmatpush1.bf16.msra.mxu0 %v14441_v29  ;;  %10108 = vmatpush1.bf16.msra.mxu1 %v14444_v30  ;;  %v807_v29 = vld [vmem:[%s15543_s13 + $0xe88] sm:$0xff] }
 0x2d7   : > { %8301 = vmatprep.subr.bf16.mxu0 %v14449_v34  ;;  %10109 = vmatprep.subr.bf16.mxu1 %v14452_v35  ;;  %v839_v30 = vld [vmem:[%s15543_s13 + $0xf88] sm:$0xff]  ;;  %v14501_v35 = vld [vmem:[#allocation6 + $0x13a0] ss:$16 sps:$4 sm:$0xff]  }
 0x2d8   : > { %v14506_v34 = vld [vmem:[#allocation6 + $0x13ac] ss:$16 sps:$4 sm:$0xff]   ;;  %v1095_v37 = vpack.c.bf16 %v839_v30, %v807_v29  ;;  %v552_v30 = vld [vmem:[%s15543_s13 + $0x690] sm:$0xff] }
 0x2d9   : > { %8233 = vmatmul.mubr.bf16.gmra.mrb[8].mxu0 %v934_v36  ;;  %10041 = vmatmul.mubr.bf16.gmra.mrb[8].mxu1 %v934_v36  ;;  %v14504_v36 = vld [vmem:[#allocation6 + $0x13a8] ss:$16 sps:$4 sm:$0xff]  }
 0x2da   : > { %8302 = vmatpush1.bf16.msra.mxu0 %v14447_v39  ;;  %10110 = vmatpush1.bf16.msra.mxu1 %v14450_v40  ;;  %v838_v39 = vld [vmem:[%s15543_s13 + $0xf80] sm:$0xff] }
 0x2db   : > { %8303 = vmatprep.subr.bf16.mxu0 %v14455_v41  ;;  %10111 = vmatprep.subr.bf16.mxu1 %v14458_v42  ;;  %v14509_v40 = vld [vmem:[#allocation6 + $0x13c4] ss:$16 sps:$4 sm:$0xff]   ;;  %v14512_v41 = vld [vmem:[#allocation6 + $0x13cc] ss:$16 sps:$4 sm:$0xff]   ;;  %v1094_v42 = vpack.c.bf16 %v838_v39, %v806_v38  ;;  %v14558_v38 = vld [vmem:[#allocation6 + $0x14c8] ss:$16 sps:$4 sm:$0xff]  }
 0x2dc   : > { %8242 = vmatprep.mubr.bf16.mxu0 %v967_v45  ;;  %10050 = vmatprep.mubr.bf16.mxu1 %v967_v45  ;;  %v14507_v45 = vld [vmem:[#allocation6 + $0x13c0] ss:$16 sps:$4 sm:$0xff]   ;;  %v14563_v39 = vld [vmem:[#allocation6 + $0x14e4] ss:$16 sps:$4 sm:$0xff]  }
 0x2de   : > { %8304 = vmatpush1.bf16.msra.mxu0 %v14453_v43  ;;  %10112 = vmatpush1.bf16.msra.mxu1 %v14456_v44  ;;  %v361_v43 = vld [vmem:[%s15543_s13 + $0x98] sm:$0xff] }
 0x2df   : > { %8305 = vmatprep.subr.bf16.mxu0 %v14461_v48  ;;  %10113 = vmatprep.subr.bf16.mxu1 %v14464_v49  ;;  %v393_v44 = vld [vmem:[%s15543_s13 + $0x198] sm:$0xff]  ;;  %v14513_v49 = vld [vmem:[#allocation6 + $0x13e0] ss:$16 sps:$4 sm:$0xff]  }
 0x2e0   : > { %v14518_v48 = vld [vmem:[#allocation6 + $0x13ec] ss:$16 sps:$4 sm:$0xff]   ;;  %v873_v51 = vpack.c.bf16 %v393_v44, %v361_v43  ;;  %v616_v44 = vld [vmem:[%s15543_s13 + $0x890] sm:$0xff] }
 0x2e1   : > { %8243 = vmatmul.mubr.bf16.gmra.mrb[12].mxu0 %v966_v50  ;;  %10051 = vmatmul.mubr.bf16.gmra.mrb[12].mxu1 %v966_v50  ;;  %v14516_v50 = vld [vmem:[#allocation6 + $0x13e8] ss:$16 sps:$4 sm:$0xff]  }
 0x2e2   : > { %8306 = vmatpush1.bf16.msra.mxu0 %v14459_v53  ;;  %10114 = vmatpush1.bf16.msra.mxu1 %v14462_v54  ;;  %v392_v53 = vld [vmem:[%s15543_s13 + $0x190] sm:$0xff] }
 0x2e3   : > { %8307 = vmatprep.subr.bf16.mxu0 %v14467_v55  ;;  %10115 = vmatprep.subr.bf16.mxu1 %v14470_v56  ;;  %v14521_v54 = vld [vmem:[#allocation6 + $0x1404] ss:$16 sps:$4 sm:$0xff]   ;;  %v14524_v55 = vld [vmem:[#allocation6 + $0x140c] ss:$16 sps:$4 sm:$0xff]   ;;  %v872_v56 = vpack.c.bf16 %v392_v53, %v360_v52  ;;  %v14570_v52 = vld [vmem:[#allocation6 + $0x1508] ss:$16 sps:$4 sm:$0xff]  }
 0x2e4   : > { %8252 = vmatprep.mubr.bf16.mxu0 %v999_v59  ;;  %10060 = vmatprep.mubr.bf16.mxu1 %v999_v59  ;;  %v14519_v59 = vld [vmem:[#allocation6 + $0x1400] ss:$16 sps:$4 sm:$0xff]   ;;  %v14575_v53 = vld [vmem:[#allocation6 + $0x1524] ss:$16 sps:$4 sm:$0xff]  }
 0x2e6   : > { %8308 = vmatpush1.bf16.msra.mxu0 %v14465_v57  ;;  %10116 = vmatpush1.bf16.msra.mxu1 %v14468_v58  ;;  %v425_v57 = vld [vmem:[%s15543_s13 + $0x298] sm:$0xff] }
 0x2e7   : > { %8309 = vmatprep.subr.bf16.mxu0 %v14473_v62  ;;  %10117 = vmatprep.subr.bf16.mxu1 %v14476_v63  ;;  %v457_v58 = vld [vmem:[%s15543_s13 + $0x398] sm:$0xff]  ;;  %v14525_v63 = vld [vmem:[#allocation6 + $0x1420] ss:$16 sps:$4 sm:$0xff]  }
 0x2e8   : > { %v14530_v62 = vld [vmem:[#allocation6 + $0x142c] ss:$16 sps:$4 sm:$0xff]   ;;  %v905_v1 = vpack.c.bf16 %v457_v58, %v425_v57  ;;  %v680_v58 = vld [vmem:[%s15543_s13 + $0xa90] sm:$0xff] }
 0x2e9   : > { %8253 = vmatmul.mubr.bf16.gmra.mrb[16].mxu0 %v998_v0  ;;  %10061 = vmatmul.mubr.bf16.gmra.mrb[16].mxu1 %v998_v0  ;;  %v14528_v0 = vld [vmem:[#allocation6 + $0x1428] ss:$16 sps:$4 sm:$0xff]  }
 0x2ea   : > { %8310 = vmatpush1.bf16.msra.mxu0 %v14471_v3  ;;  %10118 = vmatpush1.bf16.msra.mxu1 %v14474_v4  ;;  %v456_v3 = vld [vmem:[%s15543_s13 + $0x390] sm:$0xff] }
 0x2eb   : > { %8311 = vmatprep.subr.bf16.mxu0 %v14479_v5  ;;  %10119 = vmatprep.subr.bf16.mxu1 %v14482_v6  ;;  %v14533_v4 = vld [vmem:[#allocation6 + $0x1444] ss:$16 sps:$4 sm:$0xff]   ;;  %v14536_v5 = vld [vmem:[#allocation6 + $0x144c] ss:$16 sps:$4 sm:$0xff]   ;;  %v904_v6 = vpack.c.bf16 %v456_v3, %v424_v2  ;;  %v14582_v2 = vld [vmem:[#allocation6 + $0x1548] ss:$16 sps:$4 sm:$0xff]  }
 0x2ec   : > { %8262 = vmatprep.mubr.bf16.mxu0 %v1031_v9  ;;  %10070 = vmatprep.mubr.bf16.mxu1 %v1031_v9  ;;  %v14531_v9 = vld [vmem:[#allocation6 + $0x1440] ss:$16 sps:$4 sm:$0xff]   ;;  %v14587_v3 = vld [vmem:[#allocation6 + $0x1564] ss:$16 sps:$4 sm:$0xff]  }
 0x2ee   : > { %8312 = vmatpush1.bf16.msra.mxu0 %v14477_v7  ;;  %10120 = vmatpush1.bf16.msra.mxu1 %v14480_v8  ;;  %v489_v7 = vld [vmem:[%s15543_s13 + $0x498] sm:$0xff] }
 0x2ef   : > { %8313 = vmatprep.subr.bf16.mxu0 %v14485_v12  ;;  %10121 = vmatprep.subr.bf16.mxu1 %v14488_v13  ;;  %v521_v8 = vld [vmem:[%s15543_s13 + $0x598] sm:$0xff]  ;;  %v14537_v13 = vld [vmem:[#allocation6 + $0x1460] ss:$16 sps:$4 sm:$0xff]  }
 0x2f0   : > { %v14542_v12 = vld [vmem:[#allocation6 + $0x146c] ss:$16 sps:$4 sm:$0xff]   ;;  %v937_v15 = vpack.c.bf16 %v521_v8, %v489_v7  ;;  %v744_v8 = vld [vmem:[%s15543_s13 + $0xc90] sm:$0xff] }
 0x2f1   : > { %8263 = vmatmul.mubr.bf16.gmra.mrb[20].mxu0 %v1030_v14  ;;  %10071 = vmatmul.mubr.bf16.gmra.mrb[20].mxu1 %v1030_v14  ;;  %v14540_v14 = vld [vmem:[#allocation6 + $0x1468] ss:$16 sps:$4 sm:$0xff]  }
 0x2f2   : > { %8314 = vmatpush1.bf16.msra.mxu0 %v14483_v17  ;;  %10122 = vmatpush1.bf16.msra.mxu1 %v14486_v18  ;;  %v520_v17 = vld [vmem:[%s15543_s13 + $0x590] sm:$0xff] }
 0x2f3   : > { %8315 = vmatprep.subr.bf16.mxu0 %v14491_v19  ;;  %10123 = vmatprep.subr.bf16.mxu1 %v14494_v20  ;;  %v14545_v18 = vld [vmem:[#allocation6 + $0x1484] ss:$16 sps:$4 sm:$0xff]   ;;  %v14548_v19 = vld [vmem:[#allocation6 + $0x148c] ss:$16 sps:$4 sm:$0xff]   ;;  %v936_v20 = vpack.c.bf16 %v520_v17, %v488_v16  ;;  %v14594_v16 = vld [vmem:[#allocation6 + $0x1588] ss:$16 sps:$4 sm:$0xff]  }
 0x2f4   : > { %8272 = vmatprep.mubr.bf16.mxu0 %v1063_v23  ;;  %10080 = vmatprep.mubr.bf16.mxu1 %v1063_v23  ;;  %v14543_v23 = vld [vmem:[#allocation6 + $0x1480] ss:$16 sps:$4 sm:$0xff]   ;;  %v14599_v17 = vld [vmem:[#allocation6 + $0x15a4] ss:$16 sps:$4 sm:$0xff]  }
 0x2f6   : > { %8316 = vmatpush1.bf16.msra.mxu0 %v14489_v21  ;;  %10124 = vmatpush1.bf16.msra.mxu1 %v14492_v22  ;;  %v553_v21 = vld [vmem:[%s15543_s13 + $0x698] sm:$0xff] }
 0x2f7   : > { %8317 = vmatprep.subr.bf16.mxu0 %v14497_v26  ;;  %10125 = vmatprep.subr.bf16.mxu1 %v14500_v27  ;;  %v585_v22 = vld [vmem:[%s15543_s13 + $0x798] sm:$0xff]  ;;  %v14549_v27 = vld [vmem:[#allocation6 + $0x14a0] ss:$16 sps:$4 sm:$0xff]  }
 0x2f8   : > { %v14554_v26 = vld [vmem:[#allocation6 + $0x14ac] ss:$16 sps:$4 sm:$0xff]   ;;  %v969_v29 = vpack.c.bf16 %v585_v22, %v553_v21  ;;  %v808_v22 = vld [vmem:[%s15543_s13 + $0xe90] sm:$0xff] }
 0x2f9   : > { %8273 = vmatmul.mubr.bf16.gmra.mrb[24].mxu0 %v1062_v28  ;;  %10081 = vmatmul.mubr.bf16.gmra.mrb[24].mxu1 %v1062_v28  ;;  %v14552_v28 = vld [vmem:[#allocation6 + $0x14a8] ss:$16 sps:$4 sm:$0xff]  }
 0x2fa   : > { %8318 = vmatpush1.bf16.msra.mxu0 %v14495_v31  ;;  %10126 = vmatpush1.bf16.msra.mxu1 %v14498_v32  ;;  %v584_v31 = vld [vmem:[%s15543_s13 + $0x790] sm:$0xff] }
 0x2fb   : > { %8319 = vmatprep.subr.bf16.mxu0 %v14503_v33  ;;  %10127 = vmatprep.subr.bf16.mxu1 %v14506_v34  ;;  %v14557_v32 = vld [vmem:[#allocation6 + $0x14c4] ss:$16 sps:$4 sm:$0xff]   ;;  %v14560_v33 = vld [vmem:[#allocation6 + $0x14cc] ss:$16 sps:$4 sm:$0xff]   ;;  %v968_v34 = vpack.c.bf16 %v584_v31, %v552_v30  ;;  %v14606_v30 = vld [vmem:[#allocation6 + $0x15c8] ss:$16 sps:$4 sm:$0xff]  }
 0x2fc   : > { %8282 = vmatprep.mubr.bf16.mxu0 %v1095_v37  ;;  %10090 = vmatprep.mubr.bf16.mxu1 %v1095_v37  ;;  %v14555_v37 = vld [vmem:[#allocation6 + $0x14c0] ss:$16 sps:$4 sm:$0xff]   ;;  %v14611_v31 = vld [vmem:[#allocation6 + $0x15e4] ss:$16 sps:$4 sm:$0xff]  }
 0x2fe   : > { %8320 = vmatpush1.bf16.msra.mxu0 %v14501_v35  ;;  %10128 = vmatpush1.bf16.msra.mxu1 %v14504_v36  ;;  %v617_v35 = vld [vmem:[%s15543_s13 + $0x898] sm:$0xff] }
 0x2ff   : > { %8321 = vmatprep.subr.bf16.mxu0 %v14509_v40  ;;  %10129 = vmatprep.subr.bf16.mxu1 %v14512_v41  ;;  %v649_v36 = vld [vmem:[%s15543_s13 + $0x998] sm:$0xff]  ;;  %v14561_v41 = vld [vmem:[#allocation6 + $0x14e0] ss:$16 sps:$4 sm:$0xff]  }
 0x300   : > { %v14566_v40 = vld [vmem:[#allocation6 + $0x14ec] ss:$16 sps:$4 sm:$0xff]   ;;  %v1001_v43 = vpack.c.bf16 %v649_v36, %v617_v35  ;;  %v362_v36 = vld [vmem:[%s15543_s13 + $0xa0] sm:$0xff] }
 0x301   : > { %8283 = vmatmul.mubr.bf16.gmra.mrb[28].mxu0 %v1094_v42  ;;  %10091 = vmatmul.mubr.bf16.gmra.mrb[28].mxu1 %v1094_v42  ;;  %v14564_v42 = vld [vmem:[#allocation6 + $0x14e8] ss:$16 sps:$4 sm:$0xff]  }
 0x302   : > { %8322 = vmatpush1.bf16.msra.mxu0 %v14507_v45  ;;  %10130 = vmatpush1.bf16.msra.mxu1 %v14510_v46  ;;  %v648_v45 = vld [vmem:[%s15543_s13 + $0x990] sm:$0xff] }
 0x303   : > { %8323 = vmatprep.subr.bf16.mxu0 %v14515_v47  ;;  %10131 = vmatprep.subr.bf16.mxu1 %v14518_v48  ;;  %v14569_v46 = vld [vmem:[#allocation6 + $0x1504] ss:$16 sps:$4 sm:$0xff]   ;;  %v14572_v47 = vld [vmem:[#allocation6 + $0x150c] ss:$16 sps:$4 sm:$0xff]   ;;  %v1000_v48 = vpack.c.bf16 %v648_v45, %v616_v44  ;;  %v14618_v44 = vld [vmem:[#allocation6 + $0x1608] ss:$16 sps:$4 sm:$0xff]  }
 0x304   : > { %8325 = vmatprep.mubr.bf16.mxu0 %v873_v51  ;;  %10133 = vmatprep.mubr.bf16.mxu1 %v873_v51  ;;  %v14567_v51 = vld [vmem:[#allocation6 + $0x1500] ss:$16 sps:$4 sm:$0xff]   ;;  %v14623_v45 = vld [vmem:[#allocation6 + $0x1624] ss:$16 sps:$4 sm:$0xff]  }
 0x306   : > { %8324 = vmatpush1.bf16.msra.mxu0 %v14513_v49  ;;  %10132 = vmatpush1.bf16.msra.mxu1 %v14516_v50  ;;  %v681_v49 = vld [vmem:[%s15543_s13 + $0xa98] sm:$0xff] }
 0x307   : > { %8406 = vmatprep.subr.bf16.mxu0 %v14521_v54  ;;  %10214 = vmatprep.subr.bf16.mxu1 %v14524_v55  ;;  %v713_v50 = vld [vmem:[%s15543_s13 + $0xb98] sm:$0xff]  ;;  %v14573_v55 = vld [vmem:[#allocation6 + $0x1520] ss:$16 sps:$4 sm:$0xff]  }
 0x308   : > { %v14578_v54 = vld [vmem:[#allocation6 + $0x152c] ss:$16 sps:$4 sm:$0xff]   ;;  %v1033_v57 = vpack.c.bf16 %v713_v50, %v681_v49  ;;  %v426_v50 = vld [vmem:[%s15543_s13 + $0x2a0] sm:$0xff] }
 0x309   : > { %8326 = vmatmul.mubr.bf16.vlgmr.msra.gmra.mrb[0].mxu0 %v872_v56  ;;  %10134 = vmatmul.mubr.bf16.vlgmr.msra.gmra.mrb[0].mxu1 %v872_v56  ;;  %v14576_v56 = vld [vmem:[#allocation6 + $0x1528] ss:$16 sps:$4 sm:$0xff]  }
 0x30a   : > { %8407 = vmatpush1.bf16.msra.mxu0 %v14519_v59  ;;  %10215 = vmatpush1.bf16.msra.mxu1 %v14522_v60  ;;  %v712_v59 = vld [vmem:[%s15543_s13 + $0xb90] sm:$0xff] }
 0x30b   : > { %8408 = vmatprep.subr.bf16.mxu0 %v14527_v61  ;;  %10216 = vmatprep.subr.bf16.mxu1 %v14530_v62  ;;  %v14581_v60 = vld [vmem:[#allocation6 + $0x1544] ss:$16 sps:$4 sm:$0xff]   ;;  %v14584_v61 = vld [vmem:[#allocation6 + $0x154c] ss:$16 sps:$4 sm:$0xff]   ;;  %v1032_v62 = vpack.c.bf16 %v712_v59, %v680_v58  ;;  %v14630_v58 = vld [vmem:[#allocation6 + $0x1648] ss:$16 sps:$4 sm:$0xff]  }
 0x30c   : > { %8335 = vmatprep.mubr.bf16.mxu0 %v905_v1  ;;  %10143 = vmatprep.mubr.bf16.mxu1 %v905_v1  ;;  %v14579_v1 = vld [vmem:[#allocation6 + $0x1540] ss:$16 sps:$4 sm:$0xff]   ;;  %v14635_v59 = vld [vmem:[#allocation6 + $0x1664] ss:$16 sps:$4 sm:$0xff]  }
 0x30e   : > { %8409 = vmatpush1.bf16.msra.mxu0 %v14525_v63  ;;  %10217 = vmatpush1.bf16.msra.mxu1 %v14528_v0  ;;  %v745_v63 = vld [vmem:[%s15543_s13 + $0xc98] sm:$0xff] }
 0x30f   : > { %8410 = vmatprep.subr.bf16.mxu0 %v14533_v4  ;;  %10218 = vmatprep.subr.bf16.mxu1 %v14536_v5  ;;  %v777_v0 = vld [vmem:[%s15543_s13 + $0xd98] sm:$0xff]  ;;  %v14585_v5 = vld [vmem:[#allocation6 + $0x1560] ss:$16 sps:$4 sm:$0xff]  }
 0x310   : > { %v14590_v4 = vld [vmem:[#allocation6 + $0x156c] ss:$16 sps:$4 sm:$0xff]   ;;  %v1065_v7 = vpack.c.bf16 %v777_v0, %v745_v63  ;;  %v490_v0 = vld [vmem:[%s15543_s13 + $0x4a0] sm:$0xff] }
 0x311   : > { %8336 = vmatmul.mubr.bf16.gmra.mrb[4].mxu0 %v904_v6  ;;  %10144 = vmatmul.mubr.bf16.gmra.mrb[4].mxu1 %v904_v6  ;;  %v14588_v6 = vld [vmem:[#allocation6 + $0x1568] ss:$16 sps:$4 sm:$0xff]  }
 0x312   : > { %8411 = vmatpush1.bf16.msra.mxu0 %v14531_v9  ;;  %10219 = vmatpush1.bf16.msra.mxu1 %v14534_v10  ;;  %v776_v9 = vld [vmem:[%s15543_s13 + $0xd90] sm:$0xff] }
 0x313   : > { %8412 = vmatprep.subr.bf16.mxu0 %v14539_v11  ;;  %10220 = vmatprep.subr.bf16.mxu1 %v14542_v12  ;;  %v14593_v10 = vld [vmem:[#allocation6 + $0x1584] ss:$16 sps:$4 sm:$0xff]   ;;  %v14596_v11 = vld [vmem:[#allocation6 + $0x158c] ss:$16 sps:$4 sm:$0xff]   ;;  %v1064_v12 = vpack.c.bf16 %v776_v9, %v744_v8  ;;  %v14642_v8 = vld [vmem:[#allocation6 + $0x1688] ss:$16 sps:$4 sm:$0xff]  }
 0x314   : > { %8345 = vmatprep.mubr.bf16.mxu0 %v937_v15  ;;  %10153 = vmatprep.mubr.bf16.mxu1 %v937_v15  ;;  %v14591_v15 = vld [vmem:[#allocation6 + $0x1580] ss:$16 sps:$4 sm:$0xff]   ;;  %v14647_v9 = vld [vmem:[#allocation6 + $0x16a4] ss:$16 sps:$4 sm:$0xff]  }
 0x316   : > { %8413 = vmatpush1.bf16.msra.mxu0 %v14537_v13  ;;  %10221 = vmatpush1.bf16.msra.mxu1 %v14540_v14  ;;  %v809_v13 = vld [vmem:[%s15543_s13 + $0xe98] sm:$0xff] }
 0x317   : > { %8414 = vmatprep.subr.bf16.mxu0 %v14545_v18  ;;  %10222 = vmatprep.subr.bf16.mxu1 %v14548_v19  ;;  %v841_v14 = vld [vmem:[%s15543_s13 + $0xf98] sm:$0xff]  ;;  %v14597_v19 = vld [vmem:[#allocation6 + $0x15a0] ss:$16 sps:$4 sm:$0xff]  }
 0x318   : > { %v14602_v18 = vld [vmem:[#allocation6 + $0x15ac] ss:$16 sps:$4 sm:$0xff]   ;;  %v1097_v21 = vpack.c.bf16 %v841_v14, %v809_v13  ;;  %v554_v14 = vld [vmem:[%s15543_s13 + $0x6a0] sm:$0xff] }
 0x319   : > { %8346 = vmatmul.mubr.bf16.gmra.mrb[8].mxu0 %v936_v20  ;;  %10154 = vmatmul.mubr.bf16.gmra.mrb[8].mxu1 %v936_v20  ;;  %v14600_v20 = vld [vmem:[#allocation6 + $0x15a8] ss:$16 sps:$4 sm:$0xff]  }
 0x31a   : > { %8415 = vmatpush1.bf16.msra.mxu0 %v14543_v23  ;;  %10223 = vmatpush1.bf16.msra.mxu1 %v14546_v24  ;;  %v840_v23 = vld [vmem:[%s15543_s13 + $0xf90] sm:$0xff] }
 0x31b   : > { %8416 = vmatprep.subr.bf16.mxu0 %v14551_v25  ;;  %10224 = vmatprep.subr.bf16.mxu1 %v14554_v26  ;;  %v14605_v24 = vld [vmem:[#allocation6 + $0x15c4] ss:$16 sps:$4 sm:$0xff]   ;;  %v14608_v25 = vld [vmem:[#allocation6 + $0x15cc] ss:$16 sps:$4 sm:$0xff]   ;;  %v1096_v26 = vpack.c.bf16 %v840_v23, %v808_v22  ;;  %v14654_v22 = vld [vmem:[#allocation6 + $0x16c8] ss:$16 sps:$4 sm:$0xff]  }
 0x31c   : > { %8355 = vmatprep.mubr.bf16.mxu0 %v969_v29  ;;  %10163 = vmatprep.mubr.bf16.mxu1 %v969_v29  ;;  %v14603_v29 = vld [vmem:[#allocation6 + $0x15c0] ss:$16 sps:$4 sm:$0xff]   ;;  %v14659_v23 = vld [vmem:[#allocation6 + $0x16e4] ss:$16 sps:$4 sm:$0xff]  }
 0x31e   : > { %8417 = vmatpush1.bf16.msra.mxu0 %v14549_v27  ;;  %10225 = vmatpush1.bf16.msra.mxu1 %v14552_v28  ;;  %v363_v27 = vld [vmem:[%s15543_s13 + $0xa8] sm:$0xff] }
 0x31f   : > { %8418 = vmatprep.subr.bf16.mxu0 %v14557_v32  ;;  %10226 = vmatprep.subr.bf16.mxu1 %v14560_v33  ;;  %v395_v28 = vld [vmem:[%s15543_s13 + $0x1a8] sm:$0xff]  ;;  %v14609_v33 = vld [vmem:[#allocation6 + $0x15e0] ss:$16 sps:$4 sm:$0xff]  }
 0x320   : > { %v14614_v32 = vld [vmem:[#allocation6 + $0x15ec] ss:$16 sps:$4 sm:$0xff]   ;;  %v875_v35 = vpack.c.bf16 %v395_v28, %v363_v27  ;;  %v618_v28 = vld [vmem:[%s15543_s13 + $0x8a0] sm:$0xff] }
 0x321   : > { %8356 = vmatmul.mubr.bf16.gmra.mrb[12].mxu0 %v968_v34  ;;  %10164 = vmatmul.mubr.bf16.gmra.mrb[12].mxu1 %v968_v34  ;;  %v14612_v34 = vld [vmem:[#allocation6 + $0x15e8] ss:$16 sps:$4 sm:$0xff]  }
 0x322   : > { %8419 = vmatpush1.bf16.msra.mxu0 %v14555_v37  ;;  %10227 = vmatpush1.bf16.msra.mxu1 %v14558_v38  ;;  %v394_v37 = vld [vmem:[%s15543_s13 + $0x1a0] sm:$0xff] }
 0x323   : > { %8420 = vmatprep.subr.bf16.mxu0 %v14563_v39  ;;  %10228 = vmatprep.subr.bf16.mxu1 %v14566_v40  ;;  %v14617_v38 = vld [vmem:[#allocation6 + $0x1604] ss:$16 sps:$4 sm:$0xff]   ;;  %v14620_v39 = vld [vmem:[#allocation6 + $0x160c] ss:$16 sps:$4 sm:$0xff]   ;;  %v874_v40 = vpack.c.bf16 %v394_v37, %v362_v36  ;;  %v14666_v36 = vld [vmem:[#allocation6 + $0x1708] ss:$16 sps:$4 sm:$0xff]  }
 0x324   : > { %8365 = vmatprep.mubr.bf16.mxu0 %v1001_v43  ;;  %10173 = vmatprep.mubr.bf16.mxu1 %v1001_v43  ;;  %v14615_v43 = vld [vmem:[#allocation6 + $0x1600] ss:$16 sps:$4 sm:$0xff]   ;;  %v14671_v37 = vld [vmem:[#allocation6 + $0x1724] ss:$16 sps:$4 sm:$0xff]  }
 0x326   : > { %8421 = vmatpush1.bf16.msra.mxu0 %v14561_v41  ;;  %10229 = vmatpush1.bf16.msra.mxu1 %v14564_v42  ;;  %v427_v41 = vld [vmem:[%s15543_s13 + $0x2a8] sm:$0xff] }
 0x327   : > { %8422 = vmatprep.subr.bf16.mxu0 %v14569_v46  ;;  %10230 = vmatprep.subr.bf16.mxu1 %v14572_v47  ;;  %v459_v42 = vld [vmem:[%s15543_s13 + $0x3a8] sm:$0xff]  ;;  %v14621_v47 = vld [vmem:[#allocation6 + $0x1620] ss:$16 sps:$4 sm:$0xff]  }
 0x328   : > { %v14626_v46 = vld [vmem:[#allocation6 + $0x162c] ss:$16 sps:$4 sm:$0xff]   ;;  %v907_v49 = vpack.c.bf16 %v459_v42, %v427_v41  ;;  %v682_v42 = vld [vmem:[%s15543_s13 + $0xaa0] sm:$0xff] }
 0x329   : > { %8366 = vmatmul.mubr.bf16.gmra.mrb[16].mxu0 %v1000_v48  ;;  %10174 = vmatmul.mubr.bf16.gmra.mrb[16].mxu1 %v1000_v48  ;;  %v14624_v48 = vld [vmem:[#allocation6 + $0x1628] ss:$16 sps:$4 sm:$0xff]  }
 0x32a   : > { %8423 = vmatpush1.bf16.msra.mxu0 %v14567_v51  ;;  %10231 = vmatpush1.bf16.msra.mxu1 %v14570_v52  ;;  %v458_v51 = vld [vmem:[%s15543_s13 + $0x3a0] sm:$0xff] }
 0x32b   : > { %8424 = vmatprep.subr.bf16.mxu0 %v14575_v53  ;;  %10232 = vmatprep.subr.bf16.mxu1 %v14578_v54  ;;  %v14629_v52 = vld [vmem:[#allocation6 + $0x1644] ss:$16 sps:$4 sm:$0xff]   ;;  %v14632_v53 = vld [vmem:[#allocation6 + $0x164c] ss:$16 sps:$4 sm:$0xff]   ;;  %v906_v54 = vpack.c.bf16 %v458_v51, %v426_v50  ;;  %v14678_v50 = vld [vmem:[#allocation6 + $0x1748] ss:$16 sps:$4 sm:$0xff]  }
 0x32c   : > { %8375 = vmatprep.mubr.bf16.mxu0 %v1033_v57  ;;  %10183 = vmatprep.mubr.bf16.mxu1 %v1033_v57  ;;  %v14627_v57 = vld [vmem:[#allocation6 + $0x1640] ss:$16 sps:$4 sm:$0xff]   ;;  %v14683_v51 = vld [vmem:[#allocation6 + $0x1764] ss:$16 sps:$4 sm:$0xff]  }
 0x32e   : > { %8425 = vmatpush1.bf16.msra.mxu0 %v14573_v55  ;;  %10233 = vmatpush1.bf16.msra.mxu1 %v14576_v56  ;;  %v491_v55 = vld [vmem:[%s15543_s13 + $0x4a8] sm:$0xff] }
 0x32f   : > { %8426 = vmatprep.subr.bf16.mxu0 %v14581_v60  ;;  %10234 = vmatprep.subr.bf16.mxu1 %v14584_v61  ;;  %v523_v56 = vld [vmem:[%s15543_s13 + $0x5a8] sm:$0xff]  ;;  %v14633_v61 = vld [vmem:[#allocation6 + $0x1660] ss:$16 sps:$4 sm:$0xff]  }
 0x330   : > { %v14638_v60 = vld [vmem:[#allocation6 + $0x166c] ss:$16 sps:$4 sm:$0xff]   ;;  %v939_v63 = vpack.c.bf16 %v523_v56, %v491_v55  ;;  %v746_v56 = vld [vmem:[%s15543_s13 + $0xca0] sm:$0xff] }
 0x331   : > { %8376 = vmatmul.mubr.bf16.gmra.mrb[20].mxu0 %v1032_v62  ;;  %10184 = vmatmul.mubr.bf16.gmra.mrb[20].mxu1 %v1032_v62  ;;  %v14636_v62 = vld [vmem:[#allocation6 + $0x1668] ss:$16 sps:$4 sm:$0xff]  }
 0x332   : > { %8427 = vmatpush1.bf16.msra.mxu0 %v14579_v1  ;;  %10235 = vmatpush1.bf16.msra.mxu1 %v14582_v2  ;;  %v522_v1 = vld [vmem:[%s15543_s13 + $0x5a0] sm:$0xff] }
 0x333   : > { %8428 = vmatprep.subr.bf16.mxu0 %v14587_v3  ;;  %10236 = vmatprep.subr.bf16.mxu1 %v14590_v4  ;;  %v14641_v2 = vld [vmem:[#allocation6 + $0x1684] ss:$16 sps:$4 sm:$0xff]   ;;  %v14644_v3 = vld [vmem:[#allocation6 + $0x168c] ss:$16 sps:$4 sm:$0xff]   ;;  %v938_v4 = vpack.c.bf16 %v522_v1, %v490_v0  ;;  %v14690_v0 = vld [vmem:[#allocation6 + $0x1788] ss:$16 sps:$4 sm:$0xff]  }
 0x334   : > { %8385 = vmatprep.mubr.bf16.mxu0 %v1065_v7  ;;  %10193 = vmatprep.mubr.bf16.mxu1 %v1065_v7  ;;  %v14639_v7 = vld [vmem:[#allocation6 + $0x1680] ss:$16 sps:$4 sm:$0xff]   ;;  %v14695_v1 = vld [vmem:[#allocation6 + $0x17a4] ss:$16 sps:$4 sm:$0xff]  }
 0x336   : > { %8429 = vmatpush1.bf16.msra.mxu0 %v14585_v5  ;;  %10237 = vmatpush1.bf16.msra.mxu1 %v14588_v6  ;;  %v555_v5 = vld [vmem:[%s15543_s13 + $0x6a8] sm:$0xff] }
 0x337   : > { %8430 = vmatprep.subr.bf16.mxu0 %v14593_v10  ;;  %10238 = vmatprep.subr.bf16.mxu1 %v14596_v11  ;;  %v587_v6 = vld [vmem:[%s15543_s13 + $0x7a8] sm:$0xff]  ;;  %v14645_v11 = vld [vmem:[#allocation6 + $0x16a0] ss:$16 sps:$4 sm:$0xff]  }
 0x338   : > { %v14650_v10 = vld [vmem:[#allocation6 + $0x16ac] ss:$16 sps:$4 sm:$0xff]   ;;  %v971_v13 = vpack.c.bf16 %v587_v6, %v555_v5  ;;  %v810_v6 = vld [vmem:[%s15543_s13 + $0xea0] sm:$0xff] }
 0x339   : > { %8386 = vmatmul.mubr.bf16.gmra.mrb[24].mxu0 %v1064_v12  ;;  %10194 = vmatmul.mubr.bf16.gmra.mrb[24].mxu1 %v1064_v12  ;;  %v14648_v12 = vld [vmem:[#allocation6 + $0x16a8] ss:$16 sps:$4 sm:$0xff]  }
 0x33a   : > { %8431 = vmatpush1.bf16.msra.mxu0 %v14591_v15  ;;  %10239 = vmatpush1.bf16.msra.mxu1 %v14594_v16  ;;  %v586_v15 = vld [vmem:[%s15543_s13 + $0x7a0] sm:$0xff] }
 0x33b   : > { %8432 = vmatprep.subr.bf16.mxu0 %v14599_v17  ;;  %10240 = vmatprep.subr.bf16.mxu1 %v14602_v18  ;;  %v14653_v16 = vld [vmem:[#allocation6 + $0x16c4] ss:$16 sps:$4 sm:$0xff]   ;;  %v14656_v17 = vld [vmem:[#allocation6 + $0x16cc] ss:$16 sps:$4 sm:$0xff]   ;;  %v970_v18 = vpack.c.bf16 %v586_v15, %v554_v14  ;;  %v14702_v14 = vld [vmem:[#allocation6 + $0x17c8] ss:$16 sps:$4 sm:$0xff]  }
 0x33c   : > { %8395 = vmatprep.mubr.bf16.mxu0 %v1097_v21  ;;  %10203 = vmatprep.mubr.bf16.mxu1 %v1097_v21  ;;  %v14651_v21 = vld [vmem:[#allocation6 + $0x16c0] ss:$16 sps:$4 sm:$0xff]   ;;  %v14707_v15 = vld [vmem:[#allocation6 + $0x17e4] ss:$16 sps:$4 sm:$0xff]  }
 0x33e   : > { %8433 = vmatpush1.bf16.msra.mxu0 %v14597_v19  ;;  %10241 = vmatpush1.bf16.msra.mxu1 %v14600_v20  ;;  %v619_v19 = vld [vmem:[%s15543_s13 + $0x8a8] sm:$0xff] }
 0x33f   : > { %8434 = vmatprep.subr.bf16.mxu0 %v14605_v24  ;;  %10242 = vmatprep.subr.bf16.mxu1 %v14608_v25  ;;  %v651_v20 = vld [vmem:[%s15543_s13 + $0x9a8] sm:$0xff]  ;;  %v14657_v25 = vld [vmem:[#allocation6 + $0x16e0] ss:$16 sps:$4 sm:$0xff]  }
 0x340   : > { %v14662_v24 = vld [vmem:[#allocation6 + $0x16ec] ss:$16 sps:$4 sm:$0xff]   ;;  %v1003_v27 = vpack.c.bf16 %v651_v20, %v619_v19  ;;  %v364_v20 = vld [vmem:[%s15543_s13 + $0xb0] sm:$0xff] }
 0x341   : > { %8396 = vmatmul.mubr.bf16.gmra.mrb[28].mxu0 %v1096_v26  ;;  %10204 = vmatmul.mubr.bf16.gmra.mrb[28].mxu1 %v1096_v26  ;;  %v14660_v26 = vld [vmem:[#allocation6 + $0x16e8] ss:$16 sps:$4 sm:$0xff]  }
 0x342   : > { %8435 = vmatpush1.bf16.msra.mxu0 %v14603_v29  ;;  %10243 = vmatpush1.bf16.msra.mxu1 %v14606_v30  ;;  %v650_v29 = vld [vmem:[%s15543_s13 + $0x9a0] sm:$0xff] }
 0x343   : > { %8436 = vmatprep.subr.bf16.mxu0 %v14611_v31  ;;  %10244 = vmatprep.subr.bf16.mxu1 %v14614_v32  ;;  %v14665_v30 = vld [vmem:[#allocation6 + $0x1704] ss:$16 sps:$4 sm:$0xff]   ;;  %v14668_v31 = vld [vmem:[#allocation6 + $0x170c] ss:$16 sps:$4 sm:$0xff]   ;;  %v1002_v32 = vpack.c.bf16 %v650_v29, %v618_v28  ;;  %v14714_v28 = vld [vmem:[#allocation6 + $0x1808] ss:$16 sps:$4 sm:$0xff]  }
 0x344   : > { %8438 = vmatprep.mubr.bf16.mxu0 %v875_v35  ;;  %10246 = vmatprep.mubr.bf16.mxu1 %v875_v35  ;;  %v14663_v35 = vld [vmem:[#allocation6 + $0x1700] ss:$16 sps:$4 sm:$0xff]   ;;  %v14719_v29 = vld [vmem:[#allocation6 + $0x1824] ss:$16 sps:$4 sm:$0xff]  }
 0x346   : > { %8437 = vmatpush1.bf16.msra.mxu0 %v14609_v33  ;;  %10245 = vmatpush1.bf16.msra.mxu1 %v14612_v34  ;;  %v683_v33 = vld [vmem:[%s15543_s13 + $0xaa8] sm:$0xff] }
 0x347   : > { %8519 = vmatprep.subr.bf16.mxu0 %v14617_v38  ;;  %10327 = vmatprep.subr.bf16.mxu1 %v14620_v39  ;;  %v715_v34 = vld [vmem:[%s15543_s13 + $0xba8] sm:$0xff]  ;;  %v14669_v39 = vld [vmem:[#allocation6 + $0x1720] ss:$16 sps:$4 sm:$0xff]  }
 0x348   : > { %v14674_v38 = vld [vmem:[#allocation6 + $0x172c] ss:$16 sps:$4 sm:$0xff]   ;;  %v1035_v41 = vpack.c.bf16 %v715_v34, %v683_v33  ;;  %v428_v34 = vld [vmem:[%s15543_s13 + $0x2b0] sm:$0xff] }
 0x349   : > { %8439 = vmatmul.mubr.bf16.vlgmr.msra.gmra.mrb[0].mxu0 %v874_v40  ;;  %10247 = vmatmul.mubr.bf16.vlgmr.msra.gmra.mrb[0].mxu1 %v874_v40  ;;  %v14672_v40 = vld [vmem:[#allocation6 + $0x1728] ss:$16 sps:$4 sm:$0xff]  }
 0x34a   : > { %8520 = vmatpush1.bf16.msra.mxu0 %v14615_v43  ;;  %10328 = vmatpush1.bf16.msra.mxu1 %v14618_v44  ;;  %v714_v43 = vld [vmem:[%s15543_s13 + $0xba0] sm:$0xff] }
 0x34b   : > { %8521 = vmatprep.subr.bf16.mxu0 %v14623_v45  ;;  %10329 = vmatprep.subr.bf16.mxu1 %v14626_v46  ;;  %v14677_v44 = vld [vmem:[#allocation6 + $0x1744] ss:$16 sps:$4 sm:$0xff]   ;;  %v14680_v45 = vld [vmem:[#allocation6 + $0x174c] ss:$16 sps:$4 sm:$0xff]   ;;  %v1034_v46 = vpack.c.bf16 %v714_v43, %v682_v42  ;;  %v14726_v42 = vld [vmem:[#allocation6 + $0x1848] ss:$16 sps:$4 sm:$0xff]  }
 0x34c   : > { %8448 = vmatprep.mubr.bf16.mxu0 %v907_v49  ;;  %10256 = vmatprep.mubr.bf16.mxu1 %v907_v49  ;;  %v14675_v49 = vld [vmem:[#allocation6 + $0x1740] ss:$16 sps:$4 sm:$0xff]   ;;  %v14731_v43 = vld [vmem:[#allocation6 + $0x1864] ss:$16 sps:$4 sm:$0xff]  }
 0x34e   : > { %8522 = vmatpush1.bf16.msra.mxu0 %v14621_v47  ;;  %10330 = vmatpush1.bf16.msra.mxu1 %v14624_v48  ;;  %v747_v47 = vld [vmem:[%s15543_s13 + $0xca8] sm:$0xff] }
 0x34f   : > { %8523 = vmatprep.subr.bf16.mxu0 %v14629_v52  ;;  %10331 = vmatprep.subr.bf16.mxu1 %v14632_v53  ;;  %v779_v48 = vld [vmem:[%s15543_s13 + $0xda8] sm:$0xff]  ;;  %v14681_v53 = vld [vmem:[#allocation6 + $0x1760] ss:$16 sps:$4 sm:$0xff]  }
 0x350   : > { %v14686_v52 = vld [vmem:[#allocation6 + $0x176c] ss:$16 sps:$4 sm:$0xff]   ;;  %v1067_v55 = vpack.c.bf16 %v779_v48, %v747_v47  ;;  %v492_v48 = vld [vmem:[%s15543_s13 + $0x4b0] sm:$0xff] }
 0x351   : > { %8449 = vmatmul.mubr.bf16.gmra.mrb[4].mxu0 %v906_v54  ;;  %10257 = vmatmul.mubr.bf16.gmra.mrb[4].mxu1 %v906_v54  ;;  %v14684_v54 = vld [vmem:[#allocation6 + $0x1768] ss:$16 sps:$4 sm:$0xff]  }
 0x352   : > { %8524 = vmatpush1.bf16.msra.mxu0 %v14627_v57  ;;  %10332 = vmatpush1.bf16.msra.mxu1 %v14630_v58  ;;  %v778_v57 = vld [vmem:[%s15543_s13 + $0xda0] sm:$0xff] }
 0x353   : > { %8525 = vmatprep.subr.bf16.mxu0 %v14635_v59  ;;  %10333 = vmatprep.subr.bf16.mxu1 %v14638_v60  ;;  %v14689_v58 = vld [vmem:[#allocation6 + $0x1784] ss:$16 sps:$4 sm:$0xff]   ;;  %v14692_v59 = vld [vmem:[#allocation6 + $0x178c] ss:$16 sps:$4 sm:$0xff]   ;;  %v1066_v60 = vpack.c.bf16 %v778_v57, %v746_v56  ;;  %v14738_v56 = vld [vmem:[#allocation6 + $0x1888] ss:$16 sps:$4 sm:$0xff]  }
 0x354   : > { %8458 = vmatprep.mubr.bf16.mxu0 %v939_v63  ;;  %10266 = vmatprep.mubr.bf16.mxu1 %v939_v63  ;;  %v14687_v63 = vld [vmem:[#allocation6 + $0x1780] ss:$16 sps:$4 sm:$0xff]   ;;  %v14743_v57 = vld [vmem:[#allocation6 + $0x18a4] ss:$16 sps:$4 sm:$0xff]  }
 0x356   : > { %8526 = vmatpush1.bf16.msra.mxu0 %v14633_v61  ;;  %10334 = vmatpush1.bf16.msra.mxu1 %v14636_v62  ;;  %v811_v61 = vld [vmem:[%s15543_s13 + $0xea8] sm:$0xff] }
 0x357   : > { %8527 = vmatprep.subr.bf16.mxu0 %v14641_v2  ;;  %10335 = vmatprep.subr.bf16.mxu1 %v14644_v3  ;;  %v843_v62 = vld [vmem:[%s15543_s13 + $0xfa8] sm:$0xff]  ;;  %v14693_v3 = vld [vmem:[#allocation6 + $0x17a0] ss:$16 sps:$4 sm:$0xff]  }
 0x358   : > { %v14698_v2 = vld [vmem:[#allocation6 + $0x17ac] ss:$16 sps:$4 sm:$0xff]   ;;  %v1099_v5 = vpack.c.bf16 %v843_v62, %v811_v61  ;;  %v556_v62 = vld [vmem:[%s15543_s13 + $0x6b0] sm:$0xff] }
 0x359   : > { %8459 = vmatmul.mubr.bf16.gmra.mrb[8].mxu0 %v938_v4  ;;  %10267 = vmatmul.mubr.bf16.gmra.mrb[8].mxu1 %v938_v4  ;;  %v14696_v4 = vld [vmem:[#allocation6 + $0x17a8] ss:$16 sps:$4 sm:$0xff]  }
 0x35a   : > { %8528 = vmatpush1.bf16.msra.mxu0 %v14639_v7  ;;  %10336 = vmatpush1.bf16.msra.mxu1 %v14642_v8  ;;  %v842_v7 = vld [vmem:[%s15543_s13 + $0xfa0] sm:$0xff] }
 0x35b   : > { %8529 = vmatprep.subr.bf16.mxu0 %v14647_v9  ;;  %10337 = vmatprep.subr.bf16.mxu1 %v14650_v10  ;;  %v14701_v8 = vld [vmem:[#allocation6 + $0x17c4] ss:$16 sps:$4 sm:$0xff]   ;;  %v14704_v9 = vld [vmem:[#allocation6 + $0x17cc] ss:$16 sps:$4 sm:$0xff]   ;;  %v1098_v10 = vpack.c.bf16 %v842_v7, %v810_v6  ;;  %v14750_v6 = vld [vmem:[#allocation6 + $0x18c8] ss:$16 sps:$4 sm:$0xff]  }
 0x35c   : > { %8468 = vmatprep.mubr.bf16.mxu0 %v971_v13  ;;  %10276 = vmatprep.mubr.bf16.mxu1 %v971_v13  ;;  %v14699_v13 = vld [vmem:[#allocation6 + $0x17c0] ss:$16 sps:$4 sm:$0xff]   ;;  %v14755_v7 = vld [vmem:[#allocation6 + $0x18e4] ss:$16 sps:$4 sm:$0xff]  }
 0x35e   : > { %8530 = vmatpush1.bf16.msra.mxu0 %v14645_v11  ;;  %10338 = vmatpush1.bf16.msra.mxu1 %v14648_v12  ;;  %v365_v11 = vld [vmem:[%s15543_s13 + $0xb8] sm:$0xff] }
 0x35f   : > { %8531 = vmatprep.subr.bf16.mxu0 %v14653_v16  ;;  %10339 = vmatprep.subr.bf16.mxu1 %v14656_v17  ;;  %v397_v12 = vld [vmem:[%s15543_s13 + $0x1b8] sm:$0xff]  ;;  %v14705_v17 = vld [vmem:[#allocation6 + $0x17e0] ss:$16 sps:$4 sm:$0xff]  }
 0x360   : > { %v14710_v16 = vld [vmem:[#allocation6 + $0x17ec] ss:$16 sps:$4 sm:$0xff]   ;;  %v877_v19 = vpack.c.bf16 %v397_v12, %v365_v11  ;;  %v14756_v11 = vld [vmem:[#allocation6 + $0x18e8] ss:$16 sps:$4 sm:$0xff]   ;;  %v620_v12 = vld [vmem:[%s15543_s13 + $0x8b0] sm:$0xff] }
 0x361   : > { %8469 = vmatmul.mubr.bf16.gmra.mrb[12].mxu0 %v970_v18  ;;  %10277 = vmatmul.mubr.bf16.gmra.mrb[12].mxu1 %v970_v18  ;;  %v14708_v18 = vld [vmem:[#allocation6 + $0x17e8] ss:$16 sps:$4 sm:$0xff]  }
 0x362   : > { %8532 = vmatpush1.bf16.msra.mxu0 %v14651_v21  ;;  %10340 = vmatpush1.bf16.msra.mxu1 %v14654_v22  ;;  %v396_v21 = vld [vmem:[%s15543_s13 + $0x1b0] sm:$0xff] }
 0x363   : > { %8533 = vmatprep.subr.bf16.mxu0 %v14659_v23  ;;  %10341 = vmatprep.subr.bf16.mxu1 %v14662_v24  ;;  %v14713_v22 = vld [vmem:[#allocation6 + $0x1804] ss:$16 sps:$4 sm:$0xff]   ;;  %v14716_v23 = vld [vmem:[#allocation6 + $0x180c] ss:$16 sps:$4 sm:$0xff]   ;;  %v876_v24 = vpack.c.bf16 %v396_v21, %v364_v20  ;;  %v14762_v20 = vld [vmem:[#allocation6 + $0x1908] ss:$16 sps:$4 sm:$0xff]  }
 0x364   : > { %8478 = vmatprep.mubr.bf16.mxu0 %v1003_v27  ;;  %10286 = vmatprep.mubr.bf16.mxu1 %v1003_v27  ;;  %v14711_v27 = vld [vmem:[#allocation6 + $0x1800] ss:$16 sps:$4 sm:$0xff]   ;;  %v14767_v21 = vld [vmem:[#allocation6 + $0x1924] ss:$16 sps:$4 sm:$0xff]  }
 0x366   : > { %8534 = vmatpush1.bf16.msra.mxu0 %v14657_v25  ;;  %10342 = vmatpush1.bf16.msra.mxu1 %v14660_v26  ;;  %v429_v25 = vld [vmem:[%s15543_s13 + $0x2b8] sm:$0xff] }
 0x367   : > { %8535 = vmatprep.subr.bf16.mxu0 %v14665_v30  ;;  %10343 = vmatprep.subr.bf16.mxu1 %v14668_v31  ;;  %v461_v26 = vld [vmem:[%s15543_s13 + $0x3b8] sm:$0xff]  ;;  %v14717_v31 = vld [vmem:[#allocation6 + $0x1820] ss:$16 sps:$4 sm:$0xff]  }
 0x368   : > { %v14722_v30 = vld [vmem:[#allocation6 + $0x182c] ss:$16 sps:$4 sm:$0xff]   ;;  %v909_v33 = vpack.c.bf16 %v461_v26, %v429_v25  ;;  %v14768_v25 = vld [vmem:[#allocation6 + $0x1928] ss:$16 sps:$4 sm:$0xff]   ;;  %v684_v26 = vld [vmem:[%s15543_s13 + $0xab0] sm:$0xff] }
 0x369   : > { %8479 = vmatmul.mubr.bf16.gmra.mrb[16].mxu0 %v1002_v32  ;;  %10287 = vmatmul.mubr.bf16.gmra.mrb[16].mxu1 %v1002_v32  ;;  %v14720_v32 = vld [vmem:[#allocation6 + $0x1828] ss:$16 sps:$4 sm:$0xff]  }
 0x36a   : > { %8536 = vmatpush1.bf16.msra.mxu0 %v14663_v35  ;;  %10344 = vmatpush1.bf16.msra.mxu1 %v14666_v36  ;;  %v460_v35 = vld [vmem:[%s15543_s13 + $0x3b0] sm:$0xff] }
 0x36b   : > { %8537 = vmatprep.subr.bf16.mxu0 %v14671_v37  ;;  %10345 = vmatprep.subr.bf16.mxu1 %v14674_v38  ;;  %v14725_v36 = vld [vmem:[#allocation6 + $0x1844] ss:$16 sps:$4 sm:$0xff]   ;;  %v14728_v37 = vld [vmem:[#allocation6 + $0x184c] ss:$16 sps:$4 sm:$0xff]   ;;  %v908_v38 = vpack.c.bf16 %v460_v35, %v428_v34  ;;  %v14774_v34 = vld [vmem:[#allocation6 + $0x1948] ss:$16 sps:$4 sm:$0xff]  }
 0x36c   : > { %8488 = vmatprep.mubr.bf16.mxu0 %v1035_v41  ;;  %10296 = vmatprep.mubr.bf16.mxu1 %v1035_v41  ;;  %v14723_v41 = vld [vmem:[#allocation6 + $0x1840] ss:$16 sps:$4 sm:$0xff]   ;;  %v14779_v35 = vld [vmem:[#allocation6 + $0x1964] ss:$16 sps:$4 sm:$0xff]  }
 0x36e   : > { %8538 = vmatpush1.bf16.msra.mxu0 %v14669_v39  ;;  %10346 = vmatpush1.bf16.msra.mxu1 %v14672_v40  ;;  %v493_v39 = vld [vmem:[%s15543_s13 + $0x4b8] sm:$0xff] }
 0x36f   : > { %8539 = vmatprep.subr.bf16.mxu0 %v14677_v44  ;;  %10347 = vmatprep.subr.bf16.mxu1 %v14680_v45  ;;  %v525_v40 = vld [vmem:[%s15543_s13 + $0x5b8] sm:$0xff]  ;;  %v14729_v45 = vld [vmem:[#allocation6 + $0x1860] ss:$16 sps:$4 sm:$0xff]  }
 0x370   : > { %v14734_v44 = vld [vmem:[#allocation6 + $0x186c] ss:$16 sps:$4 sm:$0xff]   ;;  %v941_v47 = vpack.c.bf16 %v525_v40, %v493_v39  ;;  %v14780_v39 = vld [vmem:[#allocation6 + $0x1968] ss:$16 sps:$4 sm:$0xff]   ;;  %v748_v40 = vld [vmem:[%s15543_s13 + $0xcb0] sm:$0xff] }
 0x371   : > { %8489 = vmatmul.mubr.bf16.gmra.mrb[20].mxu0 %v1034_v46  ;;  %10297 = vmatmul.mubr.bf16.gmra.mrb[20].mxu1 %v1034_v46  ;;  %v14732_v46 = vld [vmem:[#allocation6 + $0x1868] ss:$16 sps:$4 sm:$0xff]  }
 0x372   : > { %8540 = vmatpush1.bf16.msra.mxu0 %v14675_v49  ;;  %10348 = vmatpush1.bf16.msra.mxu1 %v14678_v50  ;;  %v524_v49 = vld [vmem:[%s15543_s13 + $0x5b0] sm:$0xff] }
 0x373   : > { %8541 = vmatprep.subr.bf16.mxu0 %v14683_v51  ;;  %10349 = vmatprep.subr.bf16.mxu1 %v14686_v52  ;;  %v14737_v50 = vld [vmem:[#allocation6 + $0x1884] ss:$16 sps:$4 sm:$0xff]   ;;  %v14740_v51 = vld [vmem:[#allocation6 + $0x188c] ss:$16 sps:$4 sm:$0xff]   ;;  %v940_v52 = vpack.c.bf16 %v524_v49, %v492_v48  ;;  %v14786_v48 = vld [vmem:[#allocation6 + $0x1988] ss:$16 sps:$4 sm:$0xff]  }
 0x374   : > { %8498 = vmatprep.mubr.bf16.mxu0 %v1067_v55  ;;  %10306 = vmatprep.mubr.bf16.mxu1 %v1067_v55  ;;  %v14735_v55 = vld [vmem:[#allocation6 + $0x1880] ss:$16 sps:$4 sm:$0xff]   ;;  %v14791_v49 = vld [vmem:[#allocation6 + $0x19a4] ss:$16 sps:$4 sm:$0xff]  }
 0x376   : > { %8542 = vmatpush1.bf16.msra.mxu0 %v14681_v53  ;;  %10350 = vmatpush1.bf16.msra.mxu1 %v14684_v54  ;;  %v557_v53 = vld [vmem:[%s15543_s13 + $0x6b8] sm:$0xff] }
 0x377   : > { %8543 = vmatprep.subr.bf16.mxu0 %v14689_v58  ;;  %10351 = vmatprep.subr.bf16.mxu1 %v14692_v59  ;;  %v589_v54 = vld [vmem:[%s15543_s13 + $0x7b8] sm:$0xff]  ;;  %v14741_v59 = vld [vmem:[#allocation6 + $0x18a0] ss:$16 sps:$4 sm:$0xff]  }
 0x378   : > { %v14746_v58 = vld [vmem:[#allocation6 + $0x18ac] ss:$16 sps:$4 sm:$0xff]   ;;  %v973_v61 = vpack.c.bf16 %v589_v54, %v557_v53  ;;  %v14792_v53 = vld [vmem:[#allocation6 + $0x19a8] ss:$16 sps:$4 sm:$0xff]   ;;  %v812_v54 = vld [vmem:[%s15543_s13 + $0xeb0] sm:$0xff] }
 0x379   : > { %8499 = vmatmul.mubr.bf16.gmra.mrb[24].mxu0 %v1066_v60  ;;  %10307 = vmatmul.mubr.bf16.gmra.mrb[24].mxu1 %v1066_v60  ;;  %v14744_v60 = vld [vmem:[#allocation6 + $0x18a8] ss:$16 sps:$4 sm:$0xff]  }
 0x37a   : > { %8544 = vmatpush1.bf16.msra.mxu0 %v14687_v63  ;;  %10352 = vmatpush1.bf16.msra.mxu1 %v14690_v0  ;;  %v588_v63 = vld [vmem:[%s15543_s13 + $0x7b0] sm:$0xff] }
 0x37b   : > { %8545 = vmatprep.subr.bf16.mxu0 %v14695_v1  ;;  %10353 = vmatprep.subr.bf16.mxu1 %v14698_v2  ;;  %v14749_v0 = vld [vmem:[#allocation6 + $0x18c4] ss:$16 sps:$4 sm:$0xff]   ;;  %v14752_v1 = vld [vmem:[#allocation6 + $0x18cc] ss:$16 sps:$4 sm:$0xff]   ;;  %v972_v2 = vpack.c.bf16 %v588_v63, %v556_v62  ;;  %v14798_v62 = vld [vmem:[#allocation6 + $0x19c8] ss:$16 sps:$4 sm:$0xff]  }
 0x37c   : > { %8508 = vmatprep.mubr.bf16.mxu0 %v1099_v5  ;;  %10316 = vmatprep.mubr.bf16.mxu1 %v1099_v5  ;;  %v14747_v5 = vld [vmem:[#allocation6 + $0x18c0] ss:$16 sps:$4 sm:$0xff]   ;;  %v14803_v63 = vld [vmem:[#allocation6 + $0x19e4] ss:$16 sps:$4 sm:$0xff]  }
 0x37e   : > { %8546 = vmatpush1.bf16.msra.mxu0 %v14693_v3  ;;  %10354 = vmatpush1.bf16.msra.mxu1 %v14696_v4  ;;  %v621_v3 = vld [vmem:[%s15543_s13 + $0x8b8] sm:$0xff] }
 0x37f   : > { %8547 = vmatprep.subr.bf16.mxu0 %v14701_v8  ;;  %10355 = vmatprep.subr.bf16.mxu1 %v14704_v9  ;;  %v653_v4 = vld [vmem:[%s15543_s13 + $0x9b8] sm:$0xff] }
 0x380   : > { %v14758_v8 = vld [vmem:[#allocation6 + $0x18ec] ss:$16 sps:$4 sm:$0xff]   ;;  %v1005_v9 = vpack.c.bf16 %v653_v4, %v621_v3  ;;  %v14804_v3 = vld [vmem:[#allocation6 + $0x19e8] ss:$16 sps:$4 sm:$0xff]   ;;  %v366_v4 = vld [vmem:[%s15543_s13 + $0xc0] sm:$0xff] }
 0x381   : > { %8509 = vmatmul.mubr.bf16.gmra.mrb[28].mxu0 %v1098_v10  ;;  %10317 = vmatmul.mubr.bf16.gmra.mrb[28].mxu1 %v1098_v10  ;;  %v14753_v10 = vld [vmem:[#allocation6 + $0x18e0] ss:$16 sps:$4 sm:$0xff]  }
 0x382   : > { %8548 = vmatpush1.bf16.msra.mxu0 %v14699_v13  ;;  %10356 = vmatpush1.bf16.msra.mxu1 %v14702_v14  ;;  %v652_v13 = vld [vmem:[%s15543_s13 + $0x9b0] sm:$0xff] }
 0x383   : > { %8549 = vmatprep.subr.bf16.mxu0 %v14707_v15  ;;  %10357 = vmatprep.subr.bf16.mxu1 %v14710_v16  ;;  %v14761_v14 = vld [vmem:[#allocation6 + $0x1904] ss:$16 sps:$4 sm:$0xff]   ;;  %v14764_v15 = vld [vmem:[#allocation6 + $0x190c] ss:$16 sps:$4 sm:$0xff]   ;;  %v1004_v16 = vpack.c.bf16 %v652_v13, %v620_v12  ;;  %v14810_v12 = vld [vmem:[#allocation6 + $0x1a08] ss:$16 sps:$4 sm:$0xff]  }
 0x384   : > { %8551 = vmatprep.mubr.bf16.mxu0 %v877_v19  ;;  %10359 = vmatprep.mubr.bf16.mxu1 %v877_v19  ;;  %v14759_v19 = vld [vmem:[#allocation6 + $0x1900] ss:$16 sps:$4 sm:$0xff]   ;;  %v14815_v13 = vld [vmem:[#allocation6 + $0x1a24] ss:$16 sps:$4 sm:$0xff]  }
 0x386   : > { %8550 = vmatpush1.bf16.msra.mxu0 %v14705_v17  ;;  %10358 = vmatpush1.bf16.msra.mxu1 %v14708_v18  ;;  %v685_v17 = vld [vmem:[%s15543_s13 + $0xab8] sm:$0xff] }
 0x387   : > { %8632 = vmatprep.subr.bf16.mxu0 %v14713_v22  ;;  %10440 = vmatprep.subr.bf16.mxu1 %v14716_v23  ;;  %v717_v18 = vld [vmem:[%s15543_s13 + $0xbb8] sm:$0xff] }
 0x388   : > { %v14770_v22 = vld [vmem:[#allocation6 + $0x192c] ss:$16 sps:$4 sm:$0xff]   ;;  %v1037_v23 = vpack.c.bf16 %v717_v18, %v685_v17  ;;  %v14816_v17 = vld [vmem:[#allocation6 + $0x1a28] ss:$16 sps:$4 sm:$0xff]   ;;  %v430_v18 = vld [vmem:[%s15543_s13 + $0x2c0] sm:$0xff] }
 0x389   : > { %8552 = vmatmul.mubr.bf16.vlgmr.msra.gmra.mrb[0].mxu0 %v876_v24  ;;  %10360 = vmatmul.mubr.bf16.vlgmr.msra.gmra.mrb[0].mxu1 %v876_v24  ;;  %v14765_v24 = vld [vmem:[#allocation6 + $0x1920] ss:$16 sps:$4 sm:$0xff]  }
 0x38a   : > { %8633 = vmatpush1.bf16.msra.mxu0 %v14711_v27  ;;  %10441 = vmatpush1.bf16.msra.mxu1 %v14714_v28  ;;  %v716_v27 = vld [vmem:[%s15543_s13 + $0xbb0] sm:$0xff] }
 0x38b   : > { %8634 = vmatprep.subr.bf16.mxu0 %v14719_v29  ;;  %10442 = vmatprep.subr.bf16.mxu1 %v14722_v30  ;;  %v14773_v28 = vld [vmem:[#allocation6 + $0x1944] ss:$16 sps:$4 sm:$0xff]   ;;  %v14776_v29 = vld [vmem:[#allocation6 + $0x194c] ss:$16 sps:$4 sm:$0xff]   ;;  %v1036_v30 = vpack.c.bf16 %v716_v27, %v684_v26  ;;  %v14822_v26 = vld [vmem:[#allocation6 + $0x1a48] ss:$16 sps:$4 sm:$0xff]  }
 0x38c   : > { %8561 = vmatprep.mubr.bf16.mxu0 %v909_v33  ;;  %10369 = vmatprep.mubr.bf16.mxu1 %v909_v33  ;;  %v14771_v33 = vld [vmem:[#allocation6 + $0x1940] ss:$16 sps:$4 sm:$0xff]   ;;  %v14827_v27 = vld [vmem:[#allocation6 + $0x1a64] ss:$16 sps:$4 sm:$0xff]  }
 0x38e   : > { %8635 = vmatpush1.bf16.msra.mxu0 %v14717_v31  ;;  %10443 = vmatpush1.bf16.msra.mxu1 %v14720_v32  ;;  %v749_v31 = vld [vmem:[%s15543_s13 + $0xcb8] sm:$0xff] }
 0x38f   : > { %8636 = vmatprep.subr.bf16.mxu0 %v14725_v36  ;;  %10444 = vmatprep.subr.bf16.mxu1 %v14728_v37  ;;  %v781_v32 = vld [vmem:[%s15543_s13 + $0xdb8] sm:$0xff] }
 0x390   : > { %v14782_v36 = vld [vmem:[#allocation6 + $0x196c] ss:$16 sps:$4 sm:$0xff]   ;;  %v1069_v37 = vpack.c.bf16 %v781_v32, %v749_v31  ;;  %v14828_v31 = vld [vmem:[#allocation6 + $0x1a68] ss:$16 sps:$4 sm:$0xff]   ;;  %v494_v32 = vld [vmem:[%s15543_s13 + $0x4c0] sm:$0xff] }
 0x391   : > { %8562 = vmatmul.mubr.bf16.gmra.mrb[4].mxu0 %v908_v38  ;;  %10370 = vmatmul.mubr.bf16.gmra.mrb[4].mxu1 %v908_v38  ;;  %v14777_v38 = vld [vmem:[#allocation6 + $0x1960] ss:$16 sps:$4 sm:$0xff]  }
 0x392   : > { %8637 = vmatpush1.bf16.msra.mxu0 %v14723_v41  ;;  %10445 = vmatpush1.bf16.msra.mxu1 %v14726_v42  ;;  %v780_v41 = vld [vmem:[%s15543_s13 + $0xdb0] sm:$0xff] }
 0x393   : > { %8638 = vmatprep.subr.bf16.mxu0 %v14731_v43  ;;  %10446 = vmatprep.subr.bf16.mxu1 %v14734_v44  ;;  %v14785_v42 = vld [vmem:[#allocation6 + $0x1984] ss:$16 sps:$4 sm:$0xff]   ;;  %v14788_v43 = vld [vmem:[#allocation6 + $0x198c] ss:$16 sps:$4 sm:$0xff]   ;;  %v1068_v44 = vpack.c.bf16 %v780_v41, %v748_v40  ;;  %v14834_v40 = vld [vmem:[#allocation6 + $0x1a88] ss:$16 sps:$4 sm:$0xff]  }
 0x394   : > { %8571 = vmatprep.mubr.bf16.mxu0 %v941_v47  ;;  %10379 = vmatprep.mubr.bf16.mxu1 %v941_v47  ;;  %v14783_v47 = vld [vmem:[#allocation6 + $0x1980] ss:$16 sps:$4 sm:$0xff]   ;;  %v14839_v41 = vld [vmem:[#allocation6 + $0x1aa4] ss:$16 sps:$4 sm:$0xff]  }
 0x396   : > { %8639 = vmatpush1.bf16.msra.mxu0 %v14729_v45  ;;  %10447 = vmatpush1.bf16.msra.mxu1 %v14732_v46  ;;  %v813_v45 = vld [vmem:[%s15543_s13 + $0xeb8] sm:$0xff] }
 0x397   : > { %8640 = vmatprep.subr.bf16.mxu0 %v14737_v50  ;;  %10448 = vmatprep.subr.bf16.mxu1 %v14740_v51  ;;  %v845_v46 = vld [vmem:[%s15543_s13 + $0xfb8] sm:$0xff] }
 0x398   : > { %v14794_v50 = vld [vmem:[#allocation6 + $0x19ac] ss:$16 sps:$4 sm:$0xff]   ;;  %v1101_v51 = vpack.c.bf16 %v845_v46, %v813_v45  ;;  %v14840_v45 = vld [vmem:[#allocation6 + $0x1aa8] ss:$16 sps:$4 sm:$0xff]   ;;  %v558_v46 = vld [vmem:[%s15543_s13 + $0x6c0] sm:$0xff] }
 0x399   : > { %8572 = vmatmul.mubr.bf16.gmra.mrb[8].mxu0 %v940_v52  ;;  %10380 = vmatmul.mubr.bf16.gmra.mrb[8].mxu1 %v940_v52  ;;  %v14789_v52 = vld [vmem:[#allocation6 + $0x19a0] ss:$16 sps:$4 sm:$0xff]  }
 0x39a   : > { %8641 = vmatpush1.bf16.msra.mxu0 %v14735_v55  ;;  %10449 = vmatpush1.bf16.msra.mxu1 %v14738_v56  ;;  %v844_v55 = vld [vmem:[%s15543_s13 + $0xfb0] sm:$0xff] }
 0x39b   : > { %8642 = vmatprep.subr.bf16.mxu0 %v14743_v57  ;;  %10450 = vmatprep.subr.bf16.mxu1 %v14746_v58  ;;  %v14797_v56 = vld [vmem:[#allocation6 + $0x19c4] ss:$16 sps:$4 sm:$0xff]   ;;  %v14800_v57 = vld [vmem:[#allocation6 + $0x19cc] ss:$16 sps:$4 sm:$0xff]   ;;  %v1100_v58 = vpack.c.bf16 %v844_v55, %v812_v54  ;;  %v14846_v54 = vld [vmem:[#allocation6 + $0x1ac8] ss:$16 sps:$4 sm:$0xff]  }
 0x39c   : > { %8581 = vmatprep.mubr.bf16.mxu0 %v973_v61  ;;  %10389 = vmatprep.mubr.bf16.mxu1 %v973_v61  ;;  %v14795_v61 = vld [vmem:[#allocation6 + $0x19c0] ss:$16 sps:$4 sm:$0xff]   ;;  %v14851_v55 = vld [vmem:[#allocation6 + $0x1ae4] ss:$16 sps:$4 sm:$0xff]  }
 0x39e   : > { %8643 = vmatpush1.bf16.msra.mxu0 %v14741_v59  ;;  %10451 = vmatpush1.bf16.msra.mxu1 %v14744_v60  ;;  %v367_v59 = vld [vmem:[%s15543_s13 + $0xc8] sm:$0xff] }
 0x39f   : > { %8644 = vmatprep.subr.bf16.mxu0 %v14749_v0  ;;  %10452 = vmatprep.subr.bf16.mxu1 %v14752_v1  ;;  %v399_v60 = vld [vmem:[%s15543_s13 + $0x1c8] sm:$0xff] }
 0x3a0   : > { %v14806_v0 = vld [vmem:[#allocation6 + $0x19ec] ss:$16 sps:$4 sm:$0xff]   ;;  %v879_v1 = vpack.c.bf16 %v399_v60, %v367_v59  ;;  %v14852_v59 = vld [vmem:[#allocation6 + $0x1ae8] ss:$16 sps:$4 sm:$0xff]   ;;  %v622_v60 = vld [vmem:[%s15543_s13 + $0x8c0] sm:$0xff] }
 0x3a1   : > { %8582 = vmatmul.mubr.bf16.gmra.mrb[12].mxu0 %v972_v2  ;;  %10390 = vmatmul.mubr.bf16.gmra.mrb[12].mxu1 %v972_v2  ;;  %v14801_v2 = vld [vmem:[#allocation6 + $0x19e0] ss:$16 sps:$4 sm:$0xff]  }
 0x3a2   : > { %8645 = vmatpush1.bf16.msra.mxu0 %v14747_v5  ;;  %10453 = vmatpush1.bf16.msra.mxu1 %v14750_v6  ;;  %v398_v5 = vld [vmem:[%s15543_s13 + $0x1c0] sm:$0xff] }
 0x3a3   : > { %8646 = vmatprep.subr.bf16.mxu0 %v14755_v7  ;;  %10454 = vmatprep.subr.bf16.mxu1 %v14758_v8  ;;  %v14809_v6 = vld [vmem:[#allocation6 + $0x1a04] ss:$16 sps:$4 sm:$0xff]   ;;  %v14812_v7 = vld [vmem:[#allocation6 + $0x1a0c] ss:$16 sps:$4 sm:$0xff]   ;;  %v878_v8 = vpack.c.bf16 %v398_v5, %v366_v4  ;;  %v14858_v4 = vld [vmem:[#allocation6 + $0x1b08] ss:$16 sps:$4 sm:$0xff]  }
 0x3a4   : > { %8591 = vmatprep.mubr.bf16.mxu0 %v1005_v9  ;;  %10399 = vmatprep.mubr.bf16.mxu1 %v1005_v9  ;;  %v431_v9 = vld [vmem:[%s15543_s13 + $0x2c8] sm:$0xff]  ;;  %v14863_v5 = vld [vmem:[#allocation6 + $0x1b24] ss:$16 sps:$4 sm:$0xff]  }
 0x3a6   : > { %8647 = vmatpush1.bf16.msra.mxu0 %v14753_v10  ;;  %10455 = vmatpush1.bf16.msra.mxu1 %v14756_v11  ;;  %v463_v10 = vld [vmem:[%s15543_s13 + $0x3c8] sm:$0xff]  ;;  %v14807_v11 = vld [vmem:[#allocation6 + $0x1a00] ss:$16 sps:$4 sm:$0xff]  }
 0x3a7   : > { %8648 = vmatprep.subr.bf16.mxu0 %v14761_v14  ;;  %10456 = vmatprep.subr.bf16.mxu1 %v14764_v15  ;;  %v14818_v14 = vld [vmem:[#allocation6 + $0x1a2c] ss:$16 sps:$4 sm:$0xff]   ;;  %v911_v15 = vpack.c.bf16 %v463_v10, %v431_v9  ;;  %v14864_v9 = vld [vmem:[#allocation6 + $0x1b28] ss:$16 sps:$4 sm:$0xff]   ;;  %v686_v10 = vld [vmem:[%s15543_s13 + $0xac0] sm:$0xff] }
 0x3a9   : > { %8592 = vmatmul.mubr.bf16.gmra.mrb[16].mxu0 %v1004_v16  ;;  %10400 = vmatmul.mubr.bf16.gmra.mrb[16].mxu1 %v1004_v16  ;;  %v14813_v16 = vld [vmem:[#allocation6 + $0x1a20] ss:$16 sps:$4 sm:$0xff]  }
 0x3aa   : > { %8649 = vmatpush1.bf16.msra.mxu0 %v14759_v19  ;;  %10457 = vmatpush1.bf16.msra.mxu1 %v14762_v20  ;;  %v462_v19 = vld [vmem:[%s15543_s13 + $0x3c0] sm:$0xff] }
 0x3ab   : > { %8650 = vmatprep.subr.bf16.mxu0 %v14767_v21  ;;  %10458 = vmatprep.subr.bf16.mxu1 %v14770_v22  ;;  %v14821_v20 = vld [vmem:[#allocation6 + $0x1a44] ss:$16 sps:$4 sm:$0xff]   ;;  %v14824_v21 = vld [vmem:[#allocation6 + $0x1a4c] ss:$16 sps:$4 sm:$0xff]   ;;  %v910_v22 = vpack.c.bf16 %v462_v19, %v430_v18  ;;  %v14870_v18 = vld [vmem:[#allocation6 + $0x1b48] ss:$16 sps:$4 sm:$0xff]  }
 0x3ac   : > { %8601 = vmatprep.mubr.bf16.mxu0 %v1037_v23  ;;  %10409 = vmatprep.mubr.bf16.mxu1 %v1037_v23  ;;  %v495_v23 = vld [vmem:[%s15543_s13 + $0x4c8] sm:$0xff]  ;;  %v14875_v19 = vld [vmem:[#allocation6 + $0x1b64] ss:$16 sps:$4 sm:$0xff]  }
 0x3ae   : > { %8651 = vmatpush1.bf16.msra.mxu0 %v14765_v24  ;;  %10459 = vmatpush1.bf16.msra.mxu1 %v14768_v25  ;;  %v527_v24 = vld [vmem:[%s15543_s13 + $0x5c8] sm:$0xff]  ;;  %v14819_v25 = vld [vmem:[#allocation6 + $0x1a40] ss:$16 sps:$4 sm:$0xff]  }
 0x3af   : > { %8652 = vmatprep.subr.bf16.mxu0 %v14773_v28  ;;  %10460 = vmatprep.subr.bf16.mxu1 %v14776_v29  ;;  %v14830_v28 = vld [vmem:[#allocation6 + $0x1a6c] ss:$16 sps:$4 sm:$0xff]   ;;  %v943_v29 = vpack.c.bf16 %v527_v24, %v495_v23  ;;  %v14876_v23 = vld [vmem:[#allocation6 + $0x1b68] ss:$16 sps:$4 sm:$0xff]   ;;  %v750_v24 = vld [vmem:[%s15543_s13 + $0xcc0] sm:$0xff] }
 0x3b1   : > { %8602 = vmatmul.mubr.bf16.gmra.mrb[20].mxu0 %v1036_v30  ;;  %10410 = vmatmul.mubr.bf16.gmra.mrb[20].mxu1 %v1036_v30  ;;  %v14825_v30 = vld [vmem:[#allocation6 + $0x1a60] ss:$16 sps:$4 sm:$0xff]  }
 0x3b2   : > { %8653 = vmatpush1.bf16.msra.mxu0 %v14771_v33  ;;  %10461 = vmatpush1.bf16.msra.mxu1 %v14774_v34  ;;  %v526_v33 = vld [vmem:[%s15543_s13 + $0x5c0] sm:$0xff] }
 0x3b3   : > { %8654 = vmatprep.subr.bf16.mxu0 %v14779_v35  ;;  %10462 = vmatprep.subr.bf16.mxu1 %v14782_v36  ;;  %v14833_v34 = vld [vmem:[#allocation6 + $0x1a84] ss:$16 sps:$4 sm:$0xff]   ;;  %v14836_v35 = vld [vmem:[#allocation6 + $0x1a8c] ss:$16 sps:$4 sm:$0xff]   ;;  %v942_v36 = vpack.c.bf16 %v526_v33, %v494_v32  ;;  %v14882_v32 = vld [vmem:[#allocation6 + $0x1b88] ss:$16 sps:$4 sm:$0xff]  }
 0x3b4   : > { %8611 = vmatprep.mubr.bf16.mxu0 %v1069_v37  ;;  %10419 = vmatprep.mubr.bf16.mxu1 %v1069_v37  ;;  %v559_v37 = vld [vmem:[%s15543_s13 + $0x6c8] sm:$0xff]  ;;  %v14887_v33 = vld [vmem:[#allocation6 + $0x1ba4] ss:$16 sps:$4 sm:$0xff]  }
 0x3b6   : > { %8655 = vmatpush1.bf16.msra.mxu0 %v14777_v38  ;;  %10463 = vmatpush1.bf16.msra.mxu1 %v14780_v39  ;;  %v591_v38 = vld [vmem:[%s15543_s13 + $0x7c8] sm:$0xff]  ;;  %v14831_v39 = vld [vmem:[#allocation6 + $0x1a80] ss:$16 sps:$4 sm:$0xff]  }
 0x3b7   : > { %8656 = vmatprep.subr.bf16.mxu0 %v14785_v42  ;;  %10464 = vmatprep.subr.bf16.mxu1 %v14788_v43  ;;  %v14842_v42 = vld [vmem:[#allocation6 + $0x1aac] ss:$16 sps:$4 sm:$0xff]   ;;  %v975_v43 = vpack.c.bf16 %v591_v38, %v559_v37  ;;  %v14888_v37 = vld [vmem:[#allocation6 + $0x1ba8] ss:$16 sps:$4 sm:$0xff]   ;;  %v814_v38 = vld [vmem:[%s15543_s13 + $0xec0] sm:$0xff] }
 0x3b9   : > { %8612 = vmatmul.mubr.bf16.gmra.mrb[24].mxu0 %v1068_v44  ;;  %10420 = vmatmul.mubr.bf16.gmra.mrb[24].mxu1 %v1068_v44  ;;  %v14837_v44 = vld [vmem:[#allocation6 + $0x1aa0] ss:$16 sps:$4 sm:$0xff]  }
 0x3ba   : > { %8657 = vmatpush1.bf16.msra.mxu0 %v14783_v47  ;;  %10465 = vmatpush1.bf16.msra.mxu1 %v14786_v48  ;;  %v590_v47 = vld [vmem:[%s15543_s13 + $0x7c0] sm:$0xff] }
 0x3bb   : > { %8658 = vmatprep.subr.bf16.mxu0 %v14791_v49  ;;  %10466 = vmatprep.subr.bf16.mxu1 %v14794_v50  ;;  %v14845_v48 = vld [vmem:[#allocation6 + $0x1ac4] ss:$16 sps:$4 sm:$0xff]   ;;  %v14848_v49 = vld [vmem:[#allocation6 + $0x1acc] ss:$16 sps:$4 sm:$0xff]   ;;  %v974_v50 = vpack.c.bf16 %v590_v47, %v558_v46  ;;  %v14894_v46 = vld [vmem:[#allocation6 + $0x1bc8] ss:$16 sps:$4 sm:$0xff]  }
 0x3bc   : > { %8621 = vmatprep.mubr.bf16.mxu0 %v1101_v51  ;;  %10429 = vmatprep.mubr.bf16.mxu1 %v1101_v51  ;;  %v623_v51 = vld [vmem:[%s15543_s13 + $0x8c8] sm:$0xff]  ;;  %v14899_v47 = vld [vmem:[#allocation6 + $0x1be4] ss:$16 sps:$4 sm:$0xff]  }
 0x3be   : > { %8659 = vmatpush1.bf16.msra.mxu0 %v14789_v52  ;;  %10467 = vmatpush1.bf16.msra.mxu1 %v14792_v53  ;;  %v655_v52 = vld [vmem:[%s15543_s13 + $0x9c8] sm:$0xff]  ;;  %v14843_v53 = vld [vmem:[#allocation6 + $0x1ac0] ss:$16 sps:$4 sm:$0xff]  }
 0x3bf   : > { %8660 = vmatprep.subr.bf16.mxu0 %v14797_v56  ;;  %10468 = vmatprep.subr.bf16.mxu1 %v14800_v57  ;;  %v14854_v56 = vld [vmem:[#allocation6 + $0x1aec] ss:$16 sps:$4 sm:$0xff]   ;;  %v1007_v57 = vpack.c.bf16 %v655_v52, %v623_v51  ;;  %v14900_v51 = vld [vmem:[#allocation6 + $0x1be8] ss:$16 sps:$4 sm:$0xff]   ;;  %v368_v52 = vld [vmem:[%s15543_s13 + $0xd0] sm:$0xff] }
 0x3c1   : > { %8622 = vmatmul.mubr.bf16.gmra.mrb[28].mxu0 %v1100_v58  ;;  %10430 = vmatmul.mubr.bf16.gmra.mrb[28].mxu1 %v1100_v58  ;;  %v14849_v58 = vld [vmem:[#allocation6 + $0x1ae0] ss:$16 sps:$4 sm:$0xff]  }
 0x3c2   : > { %8661 = vmatpush1.bf16.msra.mxu0 %v14795_v61  ;;  %10469 = vmatpush1.bf16.msra.mxu1 %v14798_v62  ;;  %v654_v61 = vld [vmem:[%s15543_s13 + $0x9c0] sm:$0xff] }
 0x3c3   : > { %8662 = vmatprep.subr.bf16.mxu0 %v14803_v63  ;;  %10470 = vmatprep.subr.bf16.mxu1 %v14806_v0  ;;  %v14857_v62 = vld [vmem:[#allocation6 + $0x1b04] ss:$16 sps:$4 sm:$0xff]   ;;  %v14860_v63 = vld [vmem:[#allocation6 + $0x1b0c] ss:$16 sps:$4 sm:$0xff]   ;;  %v1006_v0 = vpack.c.bf16 %v654_v61, %v622_v60  ;;  %v14906_v60 = vld [vmem:[#allocation6 + $0x1c08] ss:$16 sps:$4 sm:$0xff]  }
 0x3c4   : > { %8664 = vmatprep.mubr.bf16.mxu0 %v879_v1  ;;  %10472 = vmatprep.mubr.bf16.mxu1 %v879_v1  ;;  %v687_v1 = vld [vmem:[%s15543_s13 + $0xac8] sm:$0xff]  ;;  %v14911_v61 = vld [vmem:[#allocation6 + $0x1c24] ss:$16 sps:$4 sm:$0xff]  }
 0x3c6   : > { %8663 = vmatpush1.bf16.msra.mxu0 %v14801_v2  ;;  %10471 = vmatpush1.bf16.msra.mxu1 %v14804_v3  ;;  %v719_v2 = vld [vmem:[%s15543_s13 + $0xbc8] sm:$0xff]  ;;  %v14855_v3 = vld [vmem:[#allocation6 + $0x1b00] ss:$16 sps:$4 sm:$0xff]  }
 0x3c7   : > { %8745 = vmatprep.subr.bf16.mxu0 %v14809_v6  ;;  %10553 = vmatprep.subr.bf16.mxu1 %v14812_v7  ;;  %v14866_v6 = vld [vmem:[#allocation6 + $0x1b2c] ss:$16 sps:$4 sm:$0xff]   ;;  %v1039_v7 = vpack.c.bf16 %v719_v2, %v687_v1  ;;  %v14912_v1 = vld [vmem:[#allocation6 + $0x1c28] ss:$16 sps:$4 sm:$0xff]   ;;  %v432_v2 = vld [vmem:[%s15543_s13 + $0x2d0] sm:$0xff] }
 0x3c9   : > { %8665 = vmatmul.mubr.bf16.vlgmr.msra.gmra.mrb[0].mxu0 %v878_v8  ;;  %10473 = vmatmul.mubr.bf16.vlgmr.msra.gmra.mrb[0].mxu1 %v878_v8  ;;  %v14861_v8 = vld [vmem:[#allocation6 + $0x1b20] ss:$16 sps:$4 sm:$0xff]  }
 0x3ca   : > { %8746 = vmatpush1.bf16.msra.mxu0 %v14807_v11  ;;  %10554 = vmatpush1.bf16.msra.mxu1 %v14810_v12  ;;  %v718_v11 = vld [vmem:[%s15543_s13 + $0xbc0] sm:$0xff] }
 0x3cb   : > { %8747 = vmatprep.subr.bf16.mxu0 %v14815_v13  ;;  %10555 = vmatprep.subr.bf16.mxu1 %v14818_v14  ;;  %v14869_v12 = vld [vmem:[#allocation6 + $0x1b44] ss:$16 sps:$4 sm:$0xff]   ;;  %v14872_v13 = vld [vmem:[#allocation6 + $0x1b4c] ss:$16 sps:$4 sm:$0xff]   ;;  %v1038_v14 = vpack.c.bf16 %v718_v11, %v686_v10  ;;  %v14918_v10 = vld [vmem:[#allocation6 + $0x1c48] ss:$16 sps:$4 sm:$0xff]  }
 0x3cc   : > { %8674 = vmatprep.mubr.bf16.mxu0 %v911_v15  ;;  %10482 = vmatprep.mubr.bf16.mxu1 %v911_v15  ;;  %v751_v15 = vld [vmem:[%s15543_s13 + $0xcc8] sm:$0xff]  ;;  %v14923_v11 = vld [vmem:[#allocation6 + $0x1c64] ss:$16 sps:$4 sm:$0xff]  }
 0x3ce   : > { %8748 = vmatpush1.bf16.msra.mxu0 %v14813_v16  ;;  %10556 = vmatpush1.bf16.msra.mxu1 %v14816_v17  ;;  %v783_v16 = vld [vmem:[%s15543_s13 + $0xdc8] sm:$0xff]  ;;  %v14867_v17 = vld [vmem:[#allocation6 + $0x1b40] ss:$16 sps:$4 sm:$0xff]  }
 0x3cf   : > { %8749 = vmatprep.subr.bf16.mxu0 %v14821_v20  ;;  %10557 = vmatprep.subr.bf16.mxu1 %v14824_v21  ;;  %v14878_v20 = vld [vmem:[#allocation6 + $0x1b6c] ss:$16 sps:$4 sm:$0xff]   ;;  %v1071_v21 = vpack.c.bf16 %v783_v16, %v751_v15  ;;  %v14924_v15 = vld [vmem:[#allocation6 + $0x1c68] ss:$16 sps:$4 sm:$0xff]   ;;  %v496_v16 = vld [vmem:[%s15543_s13 + $0x4d0] sm:$0xff] }
 0x3d1   : > { %8675 = vmatmul.mubr.bf16.gmra.mrb[4].mxu0 %v910_v22  ;;  %10483 = vmatmul.mubr.bf16.gmra.mrb[4].mxu1 %v910_v22  ;;  %v14873_v22 = vld [vmem:[#allocation6 + $0x1b60] ss:$16 sps:$4 sm:$0xff]  }
 0x3d2   : > { %8750 = vmatpush1.bf16.msra.mxu0 %v14819_v25  ;;  %10558 = vmatpush1.bf16.msra.mxu1 %v14822_v26  ;;  %v782_v25 = vld [vmem:[%s15543_s13 + $0xdc0] sm:$0xff] }
 0x3d3   : > { %8751 = vmatprep.subr.bf16.mxu0 %v14827_v27  ;;  %10559 = vmatprep.subr.bf16.mxu1 %v14830_v28  ;;  %v14881_v26 = vld [vmem:[#allocation6 + $0x1b84] ss:$16 sps:$4 sm:$0xff]   ;;  %v14884_v27 = vld [vmem:[#allocation6 + $0x1b8c] ss:$16 sps:$4 sm:$0xff]   ;;  %v1070_v28 = vpack.c.bf16 %v782_v25, %v750_v24  ;;  %v14930_v24 = vld [vmem:[#allocation6 + $0x1c88] ss:$16 sps:$4 sm:$0xff]  }
 0x3d4   : > { %8684 = vmatprep.mubr.bf16.mxu0 %v943_v29  ;;  %10492 = vmatprep.mubr.bf16.mxu1 %v943_v29  ;;  %v815_v29 = vld [vmem:[%s15543_s13 + $0xec8] sm:$0xff]  ;;  %v14935_v25 = vld [vmem:[#allocation6 + $0x1ca4] ss:$16 sps:$4 sm:$0xff]  }
 0x3d6   : > { %8752 = vmatpush1.bf16.msra.mxu0 %v14825_v30  ;;  %10560 = vmatpush1.bf16.msra.mxu1 %v14828_v31  ;;  %v847_v30 = vld [vmem:[%s15543_s13 + $0xfc8] sm:$0xff]  ;;  %v14879_v31 = vld [vmem:[#allocation6 + $0x1b80] ss:$16 sps:$4 sm:$0xff]  }
 0x3d7   : > { %8753 = vmatprep.subr.bf16.mxu0 %v14833_v34  ;;  %10561 = vmatprep.subr.bf16.mxu1 %v14836_v35  ;;  %v14890_v34 = vld [vmem:[#allocation6 + $0x1bac] ss:$16 sps:$4 sm:$0xff]   ;;  %v1103_v35 = vpack.c.bf16 %v847_v30, %v815_v29  ;;  %v14936_v29 = vld [vmem:[#allocation6 + $0x1ca8] ss:$16 sps:$4 sm:$0xff]   ;;  %v560_v30 = vld [vmem:[%s15543_s13 + $0x6d0] sm:$0xff] }
 0x3d9   : > { %8685 = vmatmul.mubr.bf16.gmra.mrb[8].mxu0 %v942_v36  ;;  %10493 = vmatmul.mubr.bf16.gmra.mrb[8].mxu1 %v942_v36  ;;  %v14885_v36 = vld [vmem:[#allocation6 + $0x1ba0] ss:$16 sps:$4 sm:$0xff]  }
 0x3da   : > { %8754 = vmatpush1.bf16.msra.mxu0 %v14831_v39  ;;  %10562 = vmatpush1.bf16.msra.mxu1 %v14834_v40  ;;  %v846_v39 = vld [vmem:[%s15543_s13 + $0xfc0] sm:$0xff] }
 0x3db   : > { %8755 = vmatprep.subr.bf16.mxu0 %v14839_v41  ;;  %10563 = vmatprep.subr.bf16.mxu1 %v14842_v42  ;;  %v14893_v40 = vld [vmem:[#allocation6 + $0x1bc4] ss:$16 sps:$4 sm:$0xff]   ;;  %v14896_v41 = vld [vmem:[#allocation6 + $0x1bcc] ss:$16 sps:$4 sm:$0xff]   ;;  %v1102_v42 = vpack.c.bf16 %v846_v39, %v814_v38  ;;  %v14942_v38 = vld [vmem:[#allocation6 + $0x1cc8] ss:$16 sps:$4 sm:$0xff]  }
 0x3dc   : > { %8694 = vmatprep.mubr.bf16.mxu0 %v975_v43  ;;  %10502 = vmatprep.mubr.bf16.mxu1 %v975_v43  ;;  %v369_v43 = vld [vmem:[%s15543_s13 + $0xd8] sm:$0xff]  ;;  %v14947_v39 = vld [vmem:[#allocation6 + $0x1ce4] ss:$16 sps:$4 sm:$0xff]  }
 0x3de   : > { %8756 = vmatpush1.bf16.msra.mxu0 %v14837_v44  ;;  %10564 = vmatpush1.bf16.msra.mxu1 %v14840_v45  ;;  %v401_v44 = vld [vmem:[%s15543_s13 + $0x1d8] sm:$0xff]  ;;  %v14891_v45 = vld [vmem:[#allocation6 + $0x1bc0] ss:$16 sps:$4 sm:$0xff]  }
 0x3df   : > { %8757 = vmatprep.subr.bf16.mxu0 %v14845_v48  ;;  %10565 = vmatprep.subr.bf16.mxu1 %v14848_v49  ;;  %v14902_v48 = vld [vmem:[#allocation6 + $0x1bec] ss:$16 sps:$4 sm:$0xff]   ;;  %v881_v49 = vpack.c.bf16 %v401_v44, %v369_v43  ;;  %v14948_v43 = vld [vmem:[#allocation6 + $0x1ce8] ss:$16 sps:$4 sm:$0xff]   ;;  %v624_v44 = vld [vmem:[%s15543_s13 + $0x8d0] sm:$0xff] }
 0x3e1   : > { %8695 = vmatmul.mubr.bf16.gmra.mrb[12].mxu0 %v974_v50  ;;  %10503 = vmatmul.mubr.bf16.gmra.mrb[12].mxu1 %v974_v50  ;;  %v14897_v50 = vld [vmem:[#allocation6 + $0x1be0] ss:$16 sps:$4 sm:$0xff]  }
 0x3e2   : > { %8758 = vmatpush1.bf16.msra.mxu0 %v14843_v53  ;;  %10566 = vmatpush1.bf16.msra.mxu1 %v14846_v54  ;;  %v400_v53 = vld [vmem:[%s15543_s13 + $0x1d0] sm:$0xff] }
 0x3e3   : > { %8759 = vmatprep.subr.bf16.mxu0 %v14851_v55  ;;  %10567 = vmatprep.subr.bf16.mxu1 %v14854_v56  ;;  %v14905_v54 = vld [vmem:[#allocation6 + $0x1c04] ss:$16 sps:$4 sm:$0xff]   ;;  %v14908_v55 = vld [vmem:[#allocation6 + $0x1c0c] ss:$16 sps:$4 sm:$0xff]   ;;  %v880_v56 = vpack.c.bf16 %v400_v53, %v368_v52  ;;  %v14954_v52 = vld [vmem:[#allocation6 + $0x1d08] ss:$16 sps:$4 sm:$0xff]  }
 0x3e4   : > { %8704 = vmatprep.mubr.bf16.mxu0 %v1007_v57  ;;  %10512 = vmatprep.mubr.bf16.mxu1 %v1007_v57  ;;  %v433_v57 = vld [vmem:[%s15543_s13 + $0x2d8] sm:$0xff]  ;;  %v14959_v53 = vld [vmem:[#allocation6 + $0x1d24] ss:$16 sps:$4 sm:$0xff]  }
 0x3e6   : > { %8760 = vmatpush1.bf16.msra.mxu0 %v14849_v58  ;;  %10568 = vmatpush1.bf16.msra.mxu1 %v14852_v59  ;;  %v465_v58 = vld [vmem:[%s15543_s13 + $0x3d8] sm:$0xff]  ;;  %v14903_v59 = vld [vmem:[#allocation6 + $0x1c00] ss:$16 sps:$4 sm:$0xff]  }
 0x3e7   : > { %8761 = vmatprep.subr.bf16.mxu0 %v14857_v62  ;;  %10569 = vmatprep.subr.bf16.mxu1 %v14860_v63  ;;  %v14914_v62 = vld [vmem:[#allocation6 + $0x1c2c] ss:$16 sps:$4 sm:$0xff]   ;;  %v913_v63 = vpack.c.bf16 %v465_v58, %v433_v57  ;;  %v14960_v57 = vld [vmem:[#allocation6 + $0x1d28] ss:$16 sps:$4 sm:$0xff]   ;;  %v688_v58 = vld [vmem:[%s15543_s13 + $0xad0] sm:$0xff] }
 0x3e9   : > { %8705 = vmatmul.mubr.bf16.gmra.mrb[16].mxu0 %v1006_v0  ;;  %10513 = vmatmul.mubr.bf16.gmra.mrb[16].mxu1 %v1006_v0  ;;  %v14909_v0 = vld [vmem:[#allocation6 + $0x1c20] ss:$16 sps:$4 sm:$0xff]  }
 0x3ea   : > { %8762 = vmatpush1.bf16.msra.mxu0 %v14855_v3  ;;  %10570 = vmatpush1.bf16.msra.mxu1 %v14858_v4  ;;  %v464_v3 = vld [vmem:[%s15543_s13 + $0x3d0] sm:$0xff] }
 0x3eb   : > { %8763 = vmatprep.subr.bf16.mxu0 %v14863_v5  ;;  %10571 = vmatprep.subr.bf16.mxu1 %v14866_v6  ;;  %v14917_v4 = vld [vmem:[#allocation6 + $0x1c44] ss:$16 sps:$4 sm:$0xff]   ;;  %v14920_v5 = vld [vmem:[#allocation6 + $0x1c4c] ss:$16 sps:$4 sm:$0xff]   ;;  %v912_v6 = vpack.c.bf16 %v464_v3, %v432_v2  ;;  %v14966_v2 = vld [vmem:[#allocation6 + $0x1d48] ss:$16 sps:$4 sm:$0xff]  }
 0x3ec   : > { %8714 = vmatprep.mubr.bf16.mxu0 %v1039_v7  ;;  %10522 = vmatprep.mubr.bf16.mxu1 %v1039_v7  ;;  %v497_v7 = vld [vmem:[%s15543_s13 + $0x4d8] sm:$0xff]  ;;  %v14971_v3 = vld [vmem:[#allocation6 + $0x1d64] ss:$16 sps:$4 sm:$0xff]  }
 0x3ee   : > { %8764 = vmatpush1.bf16.msra.mxu0 %v14861_v8  ;;  %10572 = vmatpush1.bf16.msra.mxu1 %v14864_v9  ;;  %v529_v8 = vld [vmem:[%s15543_s13 + $0x5d8] sm:$0xff]  ;;  %v14915_v9 = vld [vmem:[#allocation6 + $0x1c40] ss:$16 sps:$4 sm:$0xff]  }
 0x3ef   : > { %8765 = vmatprep.subr.bf16.mxu0 %v14869_v12  ;;  %10573 = vmatprep.subr.bf16.mxu1 %v14872_v13  ;;  %v14926_v12 = vld [vmem:[#allocation6 + $0x1c6c] ss:$16 sps:$4 sm:$0xff]   ;;  %v945_v13 = vpack.c.bf16 %v529_v8, %v497_v7  ;;  %v14972_v7 = vld [vmem:[#allocation6 + $0x1d68] ss:$16 sps:$4 sm:$0xff]   ;;  %v752_v8 = vld [vmem:[%s15543_s13 + $0xcd0] sm:$0xff] }
 0x3f1   : > { %8715 = vmatmul.mubr.bf16.gmra.mrb[20].mxu0 %v1038_v14  ;;  %10523 = vmatmul.mubr.bf16.gmra.mrb[20].mxu1 %v1038_v14  ;;  %v14921_v14 = vld [vmem:[#allocation6 + $0x1c60] ss:$16 sps:$4 sm:$0xff]  }
 0x3f2   : > { %8766 = vmatpush1.bf16.msra.mxu0 %v14867_v17  ;;  %10574 = vmatpush1.bf16.msra.mxu1 %v14870_v18  ;;  %v528_v17 = vld [vmem:[%s15543_s13 + $0x5d0] sm:$0xff] }
 0x3f3   : > { %8767 = vmatprep.subr.bf16.mxu0 %v14875_v19  ;;  %10575 = vmatprep.subr.bf16.mxu1 %v14878_v20  ;;  %v14929_v18 = vld [vmem:[#allocation6 + $0x1c84] ss:$16 sps:$4 sm:$0xff]   ;;  %v14932_v19 = vld [vmem:[#allocation6 + $0x1c8c] ss:$16 sps:$4 sm:$0xff]   ;;  %v944_v20 = vpack.c.bf16 %v528_v17, %v496_v16  ;;  %v14978_v16 = vld [vmem:[#allocation6 + $0x1d88] ss:$16 sps:$4 sm:$0xff]  }
 0x3f4   : > { %8724 = vmatprep.mubr.bf16.mxu0 %v1071_v21  ;;  %10532 = vmatprep.mubr.bf16.mxu1 %v1071_v21  ;;  %v561_v21 = vld [vmem:[%s15543_s13 + $0x6d8] sm:$0xff]  ;;  %v14983_v17 = vld [vmem:[#allocation6 + $0x1da4] ss:$16 sps:$4 sm:$0xff]  }
 0x3f6   : > { %8768 = vmatpush1.bf16.msra.mxu0 %v14873_v22  ;;  %10576 = vmatpush1.bf16.msra.mxu1 %v14876_v23  ;;  %v593_v22 = vld [vmem:[%s15543_s13 + $0x7d8] sm:$0xff]  ;;  %v14927_v23 = vld [vmem:[#allocation6 + $0x1c80] ss:$16 sps:$4 sm:$0xff]  }
 0x3f7   : > { %8769 = vmatprep.subr.bf16.mxu0 %v14881_v26  ;;  %10577 = vmatprep.subr.bf16.mxu1 %v14884_v27  ;;  %v14938_v26 = vld [vmem:[#allocation6 + $0x1cac] ss:$16 sps:$4 sm:$0xff]   ;;  %v977_v27 = vpack.c.bf16 %v593_v22, %v561_v21  ;;  %v14984_v21 = vld [vmem:[#allocation6 + $0x1da8] ss:$16 sps:$4 sm:$0xff]   ;;  %v816_v22 = vld [vmem:[%s15543_s13 + $0xed0] sm:$0xff] }
 0x3f9   : > { %8725 = vmatmul.mubr.bf16.gmra.mrb[24].mxu0 %v1070_v28  ;;  %10533 = vmatmul.mubr.bf16.gmra.mrb[24].mxu1 %v1070_v28  ;;  %v14933_v28 = vld [vmem:[#allocation6 + $0x1ca0] ss:$16 sps:$4 sm:$0xff]  }
 0x3fa   : > { %8770 = vmatpush1.bf16.msra.mxu0 %v14879_v31  ;;  %10578 = vmatpush1.bf16.msra.mxu1 %v14882_v32  ;;  %v592_v31 = vld [vmem:[%s15543_s13 + $0x7d0] sm:$0xff] }
 0x3fb   : > { %8771 = vmatprep.subr.bf16.mxu0 %v14887_v33  ;;  %10579 = vmatprep.subr.bf16.mxu1 %v14890_v34  ;;  %v14941_v32 = vld [vmem:[#allocation6 + $0x1cc4] ss:$16 sps:$4 sm:$0xff]   ;;  %v14944_v33 = vld [vmem:[#allocation6 + $0x1ccc] ss:$16 sps:$4 sm:$0xff]   ;;  %v976_v34 = vpack.c.bf16 %v592_v31, %v560_v30  ;;  %v14990_v30 = vld [vmem:[#allocation6 + $0x1dc8] ss:$16 sps:$4 sm:$0xff]  }
 0x3fc   : > { %8734 = vmatprep.mubr.bf16.mxu0 %v1103_v35  ;;  %10542 = vmatprep.mubr.bf16.mxu1 %v1103_v35  ;;  %v625_v35 = vld [vmem:[%s15543_s13 + $0x8d8] sm:$0xff]  ;;  %v14995_v31 = vld [vmem:[#allocation6 + $0x1de4] ss:$16 sps:$4 sm:$0xff]  }
 0x3fe   : > { %8772 = vmatpush1.bf16.msra.mxu0 %v14885_v36  ;;  %10580 = vmatpush1.bf16.msra.mxu1 %v14888_v37  ;;  %v657_v36 = vld [vmem:[%s15543_s13 + $0x9d8] sm:$0xff]  ;;  %v14939_v37 = vld [vmem:[#allocation6 + $0x1cc0] ss:$16 sps:$4 sm:$0xff]  }
 0x3ff   : > { %8773 = vmatprep.subr.bf16.mxu0 %v14893_v40  ;;  %10581 = vmatprep.subr.bf16.mxu1 %v14896_v41  ;;  %v14950_v40 = vld [vmem:[#allocation6 + $0x1cec] ss:$16 sps:$4 sm:$0xff]   ;;  %v1009_v41 = vpack.c.bf16 %v657_v36, %v625_v35  ;;  %v14996_v35 = vld [vmem:[#allocation6 + $0x1de8] ss:$16 sps:$4 sm:$0xff]   ;;  %v370_v36 = vld [vmem:[%s15543_s13 + $0xe0] sm:$0xff] }
 0x401   : > { %8735 = vmatmul.mubr.bf16.gmra.mrb[28].mxu0 %v1102_v42  ;;  %10543 = vmatmul.mubr.bf16.gmra.mrb[28].mxu1 %v1102_v42  ;;  %v14945_v42 = vld [vmem:[#allocation6 + $0x1ce0] ss:$16 sps:$4 sm:$0xff]  }
 0x402   : > { %8774 = vmatpush1.bf16.msra.mxu0 %v14891_v45  ;;  %10582 = vmatpush1.bf16.msra.mxu1 %v14894_v46  ;;  %v656_v45 = vld [vmem:[%s15543_s13 + $0x9d0] sm:$0xff] }
 0x403   : > { %8775 = vmatprep.subr.bf16.mxu0 %v14899_v47  ;;  %10583 = vmatprep.subr.bf16.mxu1 %v14902_v48  ;;  %v14953_v46 = vld [vmem:[#allocation6 + $0x1d04] ss:$16 sps:$4 sm:$0xff]   ;;  %v14956_v47 = vld [vmem:[#allocation6 + $0x1d0c] ss:$16 sps:$4 sm:$0xff]   ;;  %v1008_v48 = vpack.c.bf16 %v656_v45, %v624_v44  ;;  %v15002_v44 = vld [vmem:[#allocation6 + $0x1e08] ss:$16 sps:$4 sm:$0xff]  }
 0x404   : > { %8777 = vmatprep.mubr.bf16.mxu0 %v881_v49  ;;  %10585 = vmatprep.mubr.bf16.mxu1 %v881_v49  ;;  %v689_v49 = vld [vmem:[%s15543_s13 + $0xad8] sm:$0xff]  ;;  %v15007_v45 = vld [vmem:[#allocation6 + $0x1e24] ss:$16 sps:$4 sm:$0xff]  }
 0x406   : > { %8776 = vmatpush1.bf16.msra.mxu0 %v14897_v50  ;;  %10584 = vmatpush1.bf16.msra.mxu1 %v14900_v51  ;;  %v721_v50 = vld [vmem:[%s15543_s13 + $0xbd8] sm:$0xff]  ;;  %v14951_v51 = vld [vmem:[#allocation6 + $0x1d00] ss:$16 sps:$4 sm:$0xff]  }
 0x407   : > { %8858 = vmatprep.subr.bf16.mxu0 %v14905_v54  ;;  %10666 = vmatprep.subr.bf16.mxu1 %v14908_v55  ;;  %v14962_v54 = vld [vmem:[#allocation6 + $0x1d2c] ss:$16 sps:$4 sm:$0xff]   ;;  %v1041_v55 = vpack.c.bf16 %v721_v50, %v689_v49  ;;  %v15008_v49 = vld [vmem:[#allocation6 + $0x1e28] ss:$16 sps:$4 sm:$0xff]   ;;  %v434_v50 = vld [vmem:[%s15543_s13 + $0x2e0] sm:$0xff] }
 0x409   : > { %8778 = vmatmul.mubr.bf16.vlgmr.msra.gmra.mrb[0].mxu0 %v880_v56  ;;  %10586 = vmatmul.mubr.bf16.vlgmr.msra.gmra.mrb[0].mxu1 %v880_v56  ;;  %v14957_v56 = vld [vmem:[#allocation6 + $0x1d20] ss:$16 sps:$4 sm:$0xff]  }
 0x40a   : > { %8859 = vmatpush1.bf16.msra.mxu0 %v14903_v59  ;;  %10667 = vmatpush1.bf16.msra.mxu1 %v14906_v60  ;;  %v720_v59 = vld [vmem:[%s15543_s13 + $0xbd0] sm:$0xff] }
 0x40b   : > { %8860 = vmatprep.subr.bf16.mxu0 %v14911_v61  ;;  %10668 = vmatprep.subr.bf16.mxu1 %v14914_v62  ;;  %v14965_v60 = vld [vmem:[#allocation6 + $0x1d44] ss:$16 sps:$4 sm:$0xff]   ;;  %v14968_v61 = vld [vmem:[#allocation6 + $0x1d4c] ss:$16 sps:$4 sm:$0xff]   ;;  %v1040_v62 = vpack.c.bf16 %v720_v59, %v688_v58  ;;  %v15014_v58 = vld [vmem:[#allocation6 + $0x1e48] ss:$16 sps:$4 sm:$0xff]  }
 0x40c   : > { %8787 = vmatprep.mubr.bf16.mxu0 %v913_v63  ;;  %10595 = vmatprep.mubr.bf16.mxu1 %v913_v63  ;;  %v753_v63 = vld [vmem:[%s15543_s13 + $0xcd8] sm:$0xff]  ;;  %v15019_v59 = vld [vmem:[#allocation6 + $0x1e64] ss:$16 sps:$4 sm:$0xff]  }
 0x40e   : > { %8861 = vmatpush1.bf16.msra.mxu0 %v14909_v0  ;;  %10669 = vmatpush1.bf16.msra.mxu1 %v14912_v1  ;;  %v785_v0 = vld [vmem:[%s15543_s13 + $0xdd8] sm:$0xff]  ;;  %v14963_v1 = vld [vmem:[#allocation6 + $0x1d40] ss:$16 sps:$4 sm:$0xff]  }
 0x40f   : > { %8862 = vmatprep.subr.bf16.mxu0 %v14917_v4  ;;  %10670 = vmatprep.subr.bf16.mxu1 %v14920_v5  ;;  %v14974_v4 = vld [vmem:[#allocation6 + $0x1d6c] ss:$16 sps:$4 sm:$0xff]   ;;  %v1073_v5 = vpack.c.bf16 %v785_v0, %v753_v63  ;;  %v15020_v63 = vld [vmem:[#allocation6 + $0x1e68] ss:$16 sps:$4 sm:$0xff]   ;;  %v498_v0 = vld [vmem:[%s15543_s13 + $0x4e0] sm:$0xff] }
 0x411   : > { %8788 = vmatmul.mubr.bf16.gmra.mrb[4].mxu0 %v912_v6  ;;  %10596 = vmatmul.mubr.bf16.gmra.mrb[4].mxu1 %v912_v6  ;;  %v14969_v6 = vld [vmem:[#allocation6 + $0x1d60] ss:$16 sps:$4 sm:$0xff]  }
 0x412   : > { %8863 = vmatpush1.bf16.msra.mxu0 %v14915_v9  ;;  %10671 = vmatpush1.bf16.msra.mxu1 %v14918_v10  ;;  %v784_v9 = vld [vmem:[%s15543_s13 + $0xdd0] sm:$0xff] }
 0x413   : > { %8864 = vmatprep.subr.bf16.mxu0 %v14923_v11  ;;  %10672 = vmatprep.subr.bf16.mxu1 %v14926_v12  ;;  %v14977_v10 = vld [vmem:[#allocation6 + $0x1d84] ss:$16 sps:$4 sm:$0xff]   ;;  %v14980_v11 = vld [vmem:[#allocation6 + $0x1d8c] ss:$16 sps:$4 sm:$0xff]   ;;  %v1072_v12 = vpack.c.bf16 %v784_v9, %v752_v8  ;;  %v15026_v8 = vld [vmem:[#allocation6 + $0x1e88] ss:$16 sps:$4 sm:$0xff]  }
 0x414   : > { %8797 = vmatprep.mubr.bf16.mxu0 %v945_v13  ;;  %10605 = vmatprep.mubr.bf16.mxu1 %v945_v13  ;;  %v817_v13 = vld [vmem:[%s15543_s13 + $0xed8] sm:$0xff]  ;;  %v15031_v9 = vld [vmem:[#allocation6 + $0x1ea4] ss:$16 sps:$4 sm:$0xff]  }
 0x416   : > { %8865 = vmatpush1.bf16.msra.mxu0 %v14921_v14  ;;  %10673 = vmatpush1.bf16.msra.mxu1 %v14924_v15  ;;  %v849_v14 = vld [vmem:[%s15543_s13 + $0xfd8] sm:$0xff]  ;;  %v14975_v15 = vld [vmem:[#allocation6 + $0x1d80] ss:$16 sps:$4 sm:$0xff]  }
 0x417   : > { %8866 = vmatprep.subr.bf16.mxu0 %v14929_v18  ;;  %10674 = vmatprep.subr.bf16.mxu1 %v14932_v19  ;;  %v14986_v18 = vld [vmem:[#allocation6 + $0x1dac] ss:$16 sps:$4 sm:$0xff]   ;;  %v1105_v19 = vpack.c.bf16 %v849_v14, %v817_v13  ;;  %v15032_v13 = vld [vmem:[#allocation6 + $0x1ea8] ss:$16 sps:$4 sm:$0xff]   ;;  %v562_v14 = vld [vmem:[%s15543_s13 + $0x6e0] sm:$0xff] }
 0x419   : > { %8798 = vmatmul.mubr.bf16.gmra.mrb[8].mxu0 %v944_v20  ;;  %10606 = vmatmul.mubr.bf16.gmra.mrb[8].mxu1 %v944_v20  ;;  %v14981_v20 = vld [vmem:[#allocation6 + $0x1da0] ss:$16 sps:$4 sm:$0xff]  }
 0x41a   : > { %8867 = vmatpush1.bf16.msra.mxu0 %v14927_v23  ;;  %10675 = vmatpush1.bf16.msra.mxu1 %v14930_v24  ;;  %v848_v23 = vld [vmem:[%s15543_s13 + $0xfd0] sm:$0xff] }
 0x41b   : > { %8868 = vmatprep.subr.bf16.mxu0 %v14935_v25  ;;  %10676 = vmatprep.subr.bf16.mxu1 %v14938_v26  ;;  %v14989_v24 = vld [vmem:[#allocation6 + $0x1dc4] ss:$16 sps:$4 sm:$0xff]   ;;  %v14992_v25 = vld [vmem:[#allocation6 + $0x1dcc] ss:$16 sps:$4 sm:$0xff]   ;;  %v1104_v26 = vpack.c.bf16 %v848_v23, %v816_v22  ;;  %v15038_v22 = vld [vmem:[#allocation6 + $0x1ec8] ss:$16 sps:$4 sm:$0xff]  }
 0x41c   : > { %8807 = vmatprep.mubr.bf16.mxu0 %v977_v27  ;;  %10615 = vmatprep.mubr.bf16.mxu1 %v977_v27  ;;  %v371_v27 = vld [vmem:[%s15543_s13 + $0xe8] sm:$0xff]  ;;  %v15043_v23 = vld [vmem:[#allocation6 + $0x1ee4] ss:$16 sps:$4 sm:$0xff]  }
 0x41e   : > { %8869 = vmatpush1.bf16.msra.mxu0 %v14933_v28  ;;  %10677 = vmatpush1.bf16.msra.mxu1 %v14936_v29  ;;  %v403_v28 = vld [vmem:[%s15543_s13 + $0x1e8] sm:$0xff]  ;;  %v14987_v29 = vld [vmem:[#allocation6 + $0x1dc0] ss:$16 sps:$4 sm:$0xff]  }
 0x41f   : > { %8870 = vmatprep.subr.bf16.mxu0 %v14941_v32  ;;  %10678 = vmatprep.subr.bf16.mxu1 %v14944_v33  ;;  %v14998_v32 = vld [vmem:[#allocation6 + $0x1dec] ss:$16 sps:$4 sm:$0xff]   ;;  %v883_v33 = vpack.c.bf16 %v403_v28, %v371_v27  ;;  %v15044_v27 = vld [vmem:[#allocation6 + $0x1ee8] ss:$16 sps:$4 sm:$0xff]   ;;  %v626_v28 = vld [vmem:[%s15543_s13 + $0x8e0] sm:$0xff] }
 0x421   : > { %8808 = vmatmul.mubr.bf16.gmra.mrb[12].mxu0 %v976_v34  ;;  %10616 = vmatmul.mubr.bf16.gmra.mrb[12].mxu1 %v976_v34  ;;  %v14993_v34 = vld [vmem:[#allocation6 + $0x1de0] ss:$16 sps:$4 sm:$0xff]  }
 0x422   : > { %8871 = vmatpush1.bf16.msra.mxu0 %v14939_v37  ;;  %10679 = vmatpush1.bf16.msra.mxu1 %v14942_v38  ;;  %v402_v37 = vld [vmem:[%s15543_s13 + $0x1e0] sm:$0xff] }
 0x423   : > { %8872 = vmatprep.subr.bf16.mxu0 %v14947_v39  ;;  %10680 = vmatprep.subr.bf16.mxu1 %v14950_v40  ;;  %v15001_v38 = vld [vmem:[#allocation6 + $0x1e04] ss:$16 sps:$4 sm:$0xff]   ;;  %v15004_v39 = vld [vmem:[#allocation6 + $0x1e0c] ss:$16 sps:$4 sm:$0xff]   ;;  %v882_v40 = vpack.c.bf16 %v402_v37, %v370_v36  ;;  %v15050_v36 = vld [vmem:[#allocation6 + $0x1f08] ss:$16 sps:$4 sm:$0xff]  }
 0x424   : > { %8817 = vmatprep.mubr.bf16.mxu0 %v1009_v41  ;;  %10625 = vmatprep.mubr.bf16.mxu1 %v1009_v41  ;;  %v435_v41 = vld [vmem:[%s15543_s13 + $0x2e8] sm:$0xff]  ;;  %v15055_v37 = vld [vmem:[#allocation6 + $0x1f24] ss:$16 sps:$4 sm:$0xff]  }
 0x426   : > { %8873 = vmatpush1.bf16.msra.mxu0 %v14945_v42  ;;  %10681 = vmatpush1.bf16.msra.mxu1 %v14948_v43  ;;  %v467_v42 = vld [vmem:[%s15543_s13 + $0x3e8] sm:$0xff]  ;;  %v14999_v43 = vld [vmem:[#allocation6 + $0x1e00] ss:$16 sps:$4 sm:$0xff]  }
 0x427   : > { %8874 = vmatprep.subr.bf16.mxu0 %v14953_v46  ;;  %10682 = vmatprep.subr.bf16.mxu1 %v14956_v47  ;;  %v15010_v46 = vld [vmem:[#allocation6 + $0x1e2c] ss:$16 sps:$4 sm:$0xff]   ;;  %v915_v47 = vpack.c.bf16 %v467_v42, %v435_v41  ;;  %v15056_v41 = vld [vmem:[#allocation6 + $0x1f28] ss:$16 sps:$4 sm:$0xff]   ;;  %v690_v42 = vld [vmem:[%s15543_s13 + $0xae0] sm:$0xff] }
 0x429   : > { %8818 = vmatmul.mubr.bf16.gmra.mrb[16].mxu0 %v1008_v48  ;;  %10626 = vmatmul.mubr.bf16.gmra.mrb[16].mxu1 %v1008_v48  ;;  %v15005_v48 = vld [vmem:[#allocation6 + $0x1e20] ss:$16 sps:$4 sm:$0xff]  }
 0x42a   : > { %8875 = vmatpush1.bf16.msra.mxu0 %v14951_v51  ;;  %10683 = vmatpush1.bf16.msra.mxu1 %v14954_v52  ;;  %v466_v51 = vld [vmem:[%s15543_s13 + $0x3e0] sm:$0xff] }
 0x42b   : > { %8876 = vmatprep.subr.bf16.mxu0 %v14959_v53  ;;  %10684 = vmatprep.subr.bf16.mxu1 %v14962_v54  ;;  %v15013_v52 = vld [vmem:[#allocation6 + $0x1e44] ss:$16 sps:$4 sm:$0xff]   ;;  %v15016_v53 = vld [vmem:[#allocation6 + $0x1e4c] ss:$16 sps:$4 sm:$0xff]   ;;  %v914_v54 = vpack.c.bf16 %v466_v51, %v434_v50  ;;  %v15062_v50 = vld [vmem:[#allocation6 + $0x1f48] ss:$16 sps:$4 sm:$0xff]  }
 0x42c   : > { %8827 = vmatprep.mubr.bf16.mxu0 %v1041_v55  ;;  %10635 = vmatprep.mubr.bf16.mxu1 %v1041_v55  ;;  %v499_v55 = vld [vmem:[%s15543_s13 + $0x4e8] sm:$0xff]  ;;  %v15067_v51 = vld [vmem:[#allocation6 + $0x1f64] ss:$16 sps:$4 sm:$0xff]  }
 0x42e   : > { %8877 = vmatpush1.bf16.msra.mxu0 %v14957_v56  ;;  %10685 = vmatpush1.bf16.msra.mxu1 %v14960_v57  ;;  %v531_v56 = vld [vmem:[%s15543_s13 + $0x5e8] sm:$0xff]  ;;  %v15011_v57 = vld [vmem:[#allocation6 + $0x1e40] ss:$16 sps:$4 sm:$0xff]  }
 0x42f   : > { %8878 = vmatprep.subr.bf16.mxu0 %v14965_v60  ;;  %10686 = vmatprep.subr.bf16.mxu1 %v14968_v61  ;;  %v15022_v60 = vld [vmem:[#allocation6 + $0x1e6c] ss:$16 sps:$4 sm:$0xff]   ;;  %v947_v61 = vpack.c.bf16 %v531_v56, %v499_v55  ;;  %v15068_v55 = vld [vmem:[#allocation6 + $0x1f68] ss:$16 sps:$4 sm:$0xff]   ;;  %v754_v56 = vld [vmem:[%s15543_s13 + $0xce0] sm:$0xff] }
 0x431   : > { %8828 = vmatmul.mubr.bf16.gmra.mrb[20].mxu0 %v1040_v62  ;;  %10636 = vmatmul.mubr.bf16.gmra.mrb[20].mxu1 %v1040_v62  ;;  %v15017_v62 = vld [vmem:[#allocation6 + $0x1e60] ss:$16 sps:$4 sm:$0xff]  }
 0x432   : > { %8879 = vmatpush1.bf16.msra.mxu0 %v14963_v1  ;;  %10687 = vmatpush1.bf16.msra.mxu1 %v14966_v2  ;;  %v530_v1 = vld [vmem:[%s15543_s13 + $0x5e0] sm:$0xff] }
 0x433   : > { %8880 = vmatprep.subr.bf16.mxu0 %v14971_v3  ;;  %10688 = vmatprep.subr.bf16.mxu1 %v14974_v4  ;;  %v15025_v2 = vld [vmem:[#allocation6 + $0x1e84] ss:$16 sps:$4 sm:$0xff]   ;;  %v15028_v3 = vld [vmem:[#allocation6 + $0x1e8c] ss:$16 sps:$4 sm:$0xff]   ;;  %v946_v4 = vpack.c.bf16 %v530_v1, %v498_v0  ;;  %v15074_v0 = vld [vmem:[#allocation6 + $0x1f88] ss:$16 sps:$4 sm:$0xff]  }
 0x434   : > { %8837 = vmatprep.mubr.bf16.mxu0 %v1073_v5  ;;  %10645 = vmatprep.mubr.bf16.mxu1 %v1073_v5  ;;  %v563_v5 = vld [vmem:[%s15543_s13 + $0x6e8] sm:$0xff]  ;;  %v15079_v1 = vld [vmem:[#allocation6 + $0x1fa4] ss:$16 sps:$4 sm:$0xff]  }
 0x436   : > { %8881 = vmatpush1.bf16.msra.mxu0 %v14969_v6  ;;  %10689 = vmatpush1.bf16.msra.mxu1 %v14972_v7  ;;  %v595_v6 = vld [vmem:[%s15543_s13 + $0x7e8] sm:$0xff]  ;;  %v15023_v7 = vld [vmem:[#allocation6 + $0x1e80] ss:$16 sps:$4 sm:$0xff]  }
 0x437   : > { %8882 = vmatprep.subr.bf16.mxu0 %v14977_v10  ;;  %10690 = vmatprep.subr.bf16.mxu1 %v14980_v11  ;;  %v15034_v10 = vld [vmem:[#allocation6 + $0x1eac] ss:$16 sps:$4 sm:$0xff]   ;;  %v979_v11 = vpack.c.bf16 %v595_v6, %v563_v5  ;;  %v15080_v5 = vld [vmem:[#allocation6 + $0x1fa8] ss:$16 sps:$4 sm:$0xff]   ;;  %v818_v6 = vld [vmem:[%s15543_s13 + $0xee0] sm:$0xff] }
 0x439   : > { %8838 = vmatmul.mubr.bf16.gmra.mrb[24].mxu0 %v1072_v12  ;;  %10646 = vmatmul.mubr.bf16.gmra.mrb[24].mxu1 %v1072_v12  ;;  %v15029_v12 = vld [vmem:[#allocation6 + $0x1ea0] ss:$16 sps:$4 sm:$0xff]  }
 0x43a   : > { %8883 = vmatpush1.bf16.msra.mxu0 %v14975_v15  ;;  %10691 = vmatpush1.bf16.msra.mxu1 %v14978_v16  ;;  %v594_v15 = vld [vmem:[%s15543_s13 + $0x7e0] sm:$0xff] }
 0x43b   : > { %8884 = vmatprep.subr.bf16.mxu0 %v14983_v17  ;;  %10692 = vmatprep.subr.bf16.mxu1 %v14986_v18  ;;  %v15037_v16 = vld [vmem:[#allocation6 + $0x1ec4] ss:$16 sps:$4 sm:$0xff]   ;;  %v15040_v17 = vld [vmem:[#allocation6 + $0x1ecc] ss:$16 sps:$4 sm:$0xff]   ;;  %v978_v18 = vpack.c.bf16 %v594_v15, %v562_v14  ;;  %v15086_v14 = vld [vmem:[#allocation6 + $0x1fc8] ss:$16 sps:$4 sm:$0xff]  }
 0x43c   : > { %8847 = vmatprep.mubr.bf16.mxu0 %v1105_v19  ;;  %10655 = vmatprep.mubr.bf16.mxu1 %v1105_v19  ;;  %v627_v19 = vld [vmem:[%s15543_s13 + $0x8e8] sm:$0xff]  ;;  %v15091_v15 = vld [vmem:[#allocation6 + $0x1fe4] ss:$16 sps:$4 sm:$0xff]  }
 0x43e   : > { %8885 = vmatpush1.bf16.msra.mxu0 %v14981_v20  ;;  %10693 = vmatpush1.bf16.msra.mxu1 %v14984_v21  ;;  %v659_v20 = vld [vmem:[%s15543_s13 + $0x9e8] sm:$0xff]  ;;  %v15035_v21 = vld [vmem:[#allocation6 + $0x1ec0] ss:$16 sps:$4 sm:$0xff]  }
 0x43f   : > { %8886 = vmatprep.subr.bf16.mxu0 %v14989_v24  ;;  %10694 = vmatprep.subr.bf16.mxu1 %v14992_v25  ;;  %v15046_v24 = vld [vmem:[#allocation6 + $0x1eec] ss:$16 sps:$4 sm:$0xff]   ;;  %v1011_v25 = vpack.c.bf16 %v659_v20, %v627_v19  ;;  %v15092_v19 = vld [vmem:[#allocation6 + $0x1fe8] ss:$16 sps:$4 sm:$0xff]   ;;  %v372_v20 = vld [vmem:[%s15543_s13 + $0xf0] sm:$0xff] }
 0x441   : > { %8848 = vmatmul.mubr.bf16.gmra.mrb[28].mxu0 %v1104_v26  ;;  %10656 = vmatmul.mubr.bf16.gmra.mrb[28].mxu1 %v1104_v26  ;;  %v15041_v26 = vld [vmem:[#allocation6 + $0x1ee0] ss:$16 sps:$4 sm:$0xff]  }
 0x442   : > { %8887 = vmatpush1.bf16.msra.mxu0 %v14987_v29  ;;  %10695 = vmatpush1.bf16.msra.mxu1 %v14990_v30  ;;  %v658_v29 = vld [vmem:[%s15543_s13 + $0x9e0] sm:$0xff] }
 0x443   : > { %8888 = vmatprep.subr.bf16.mxu0 %v14995_v31  ;;  %10696 = vmatprep.subr.bf16.mxu1 %v14998_v32  ;;  %v15049_v30 = vld [vmem:[#allocation6 + $0x1f04] ss:$16 sps:$4 sm:$0xff]   ;;  %v15052_v31 = vld [vmem:[#allocation6 + $0x1f0c] ss:$16 sps:$4 sm:$0xff]   ;;  %v1010_v32 = vpack.c.bf16 %v658_v29, %v626_v28 }
 0x444   : > { %8890 = vmatprep.mubr.bf16.mxu0 %v883_v33  ;;  %10698 = vmatprep.mubr.bf16.mxu1 %v883_v33  ;;  %v691_v33 = vld [vmem:[%s15543_s13 + $0xae8] sm:$0xff]  ;;  %v501_v28 = vld [vmem:[%s15543_s13 + $0x4f8] sm:$0xff] }
 0x445   : > { %v533_v29 = vld [vmem:[%s15543_s13 + $0x5f8] sm:$0xff] }
 0x446   : > { %8889 = vmatpush1.bf16.msra.mxu0 %v14993_v34  ;;  %10697 = vmatpush1.bf16.msra.mxu1 %v14996_v35  ;;  %v723_v34 = vld [vmem:[%s15543_s13 + $0xbe8] sm:$0xff]  ;;  %v15047_v35 = vld [vmem:[#allocation6 + $0x1f00] ss:$16 sps:$4 sm:$0xff]  }
 0x447   : > { %8971 = vmatprep.subr.bf16.mxu0 %v15001_v38  ;;  %10779 = vmatprep.subr.bf16.mxu1 %v15004_v39  ;;  %v15058_v38 = vld [vmem:[#allocation6 + $0x1f2c] ss:$16 sps:$4 sm:$0xff]   ;;  %v1043_v39 = vpack.c.bf16 %v723_v34, %v691_v33  ;;  %v532_v33 = vld [vmem:[%s15543_s13 + $0x5f0] sm:$0xff] }
 0x448   : > { %v565_v34 = vld [vmem:[%s15543_s13 + $0x6f8] sm:$0xff] }
 0x449   : > { %8891 = vmatmul.mubr.bf16.vlgmr.msra.gmra.mrb[0].mxu0 %v882_v40  ;;  %10699 = vmatmul.mubr.bf16.vlgmr.msra.gmra.mrb[0].mxu1 %v882_v40  ;;  %v15053_v40 = vld [vmem:[#allocation6 + $0x1f20] ss:$16 sps:$4 sm:$0xff]  }
 0x44a   : > { %8972 = vmatpush1.bf16.msra.mxu0 %v14999_v43  ;;  %10780 = vmatpush1.bf16.msra.mxu1 %v15002_v44  ;;  %v722_v43 = vld [vmem:[%s15543_s13 + $0xbe0] sm:$0xff] }
 0x44b   : > { %8973 = vmatprep.subr.bf16.mxu0 %v15007_v45  ;;  %10781 = vmatprep.subr.bf16.mxu1 %v15010_v46  ;;  %v15061_v44 = vld [vmem:[#allocation6 + $0x1f44] ss:$16 sps:$4 sm:$0xff]   ;;  %v15064_v45 = vld [vmem:[#allocation6 + $0x1f4c] ss:$16 sps:$4 sm:$0xff]   ;;  %v1042_v46 = vpack.c.bf16 %v722_v43, %v690_v42 }
 0x44c   : > { %8900 = vmatprep.mubr.bf16.mxu0 %v915_v47  ;;  %10708 = vmatprep.mubr.bf16.mxu1 %v915_v47  ;;  %v755_v47 = vld [vmem:[%s15543_s13 + $0xce8] sm:$0xff] }
 0x44e   : > { %8974 = vmatpush1.bf16.msra.mxu0 %v15005_v48  ;;  %10782 = vmatpush1.bf16.msra.mxu1 %v15008_v49  ;;  %v787_v48 = vld [vmem:[%s15543_s13 + $0xde8] sm:$0xff]  ;;  %v15059_v49 = vld [vmem:[#allocation6 + $0x1f40] ss:$16 sps:$4 sm:$0xff]  }
 0x44f   : > { %8975 = vmatprep.subr.bf16.mxu0 %v15013_v52  ;;  %10783 = vmatprep.subr.bf16.mxu1 %v15016_v53  ;;  %v15070_v52 = vld [vmem:[#allocation6 + $0x1f6c] ss:$16 sps:$4 sm:$0xff]   ;;  %v1075_v53 = vpack.c.bf16 %v787_v48, %v755_v47 }
 0x450   : > { %v725_v47 = vld [vmem:[%s15543_s13 + $0xbf8] sm:$0xff] }
 0x451   : > { %8901 = vmatmul.mubr.bf16.gmra.mrb[4].mxu0 %v914_v54  ;;  %10709 = vmatmul.mubr.bf16.gmra.mrb[4].mxu1 %v914_v54  ;;  %v15065_v54 = vld [vmem:[#allocation6 + $0x1f60] ss:$16 sps:$4 sm:$0xff]  }
 0x452   : > { %8976 = vmatpush1.bf16.msra.mxu0 %v15011_v57  ;;  %10784 = vmatpush1.bf16.msra.mxu1 %v15014_v58  ;;  %v786_v57 = vld [vmem:[%s15543_s13 + $0xde0] sm:$0xff] }
 0x453   : > { %8977 = vmatprep.subr.bf16.mxu0 %v15019_v59  ;;  %10785 = vmatprep.subr.bf16.mxu1 %v15022_v60  ;;  %v15073_v58 = vld [vmem:[#allocation6 + $0x1f84] ss:$16 sps:$4 sm:$0xff]   ;;  %v15076_v59 = vld [vmem:[#allocation6 + $0x1f8c] ss:$16 sps:$4 sm:$0xff]   ;;  %v1074_v60 = vpack.c.bf16 %v786_v57, %v754_v56 }
 0x454   : > { %8910 = vmatprep.mubr.bf16.mxu0 %v947_v61  ;;  %10718 = vmatprep.mubr.bf16.mxu1 %v947_v61  ;;  %v819_v61 = vld [vmem:[%s15543_s13 + $0xee8] sm:$0xff]  ;;  %v756_v56 = vld [vmem:[%s15543_s13 + $0xcf0] sm:$0xff] }
 0x455   : > { %v788_v57 = vld [vmem:[%s15543_s13 + $0xdf0] sm:$0xff] }
 0x456   : > { %8978 = vmatpush1.bf16.msra.mxu0 %v15017_v62  ;;  %10786 = vmatpush1.bf16.msra.mxu1 %v15020_v63  ;;  %v851_v62 = vld [vmem:[%s15543_s13 + $0xfe8] sm:$0xff]  ;;  %v15071_v63 = vld [vmem:[#allocation6 + $0x1f80] ss:$16 sps:$4 sm:$0xff]  }
 0x457   : > { %8979 = vmatprep.subr.bf16.mxu0 %v15025_v2  ;;  %10787 = vmatprep.subr.bf16.mxu1 %v15028_v3  ;;  %v15082_v2 = vld [vmem:[#allocation6 + $0x1fac] ss:$16 sps:$4 sm:$0xff]   ;;  %v1107_v3 = vpack.c.bf16 %v851_v62, %v819_v61  ;;  %v820_v62 = vld [vmem:[%s15543_s13 + $0xef0] sm:$0xff] }
 0x459   : > { %8911 = vmatmul.mubr.bf16.gmra.mrb[8].mxu0 %v946_v4  ;;  %10719 = vmatmul.mubr.bf16.gmra.mrb[8].mxu1 %v946_v4  ;;  %v15077_v4 = vld [vmem:[#allocation6 + $0x1fa0] ss:$16 sps:$4 sm:$0xff]  }
 0x45a   : > { %8980 = vmatpush1.bf16.msra.mxu0 %v15023_v7  ;;  %10788 = vmatpush1.bf16.msra.mxu1 %v15026_v8  ;;  %v850_v7 = vld [vmem:[%s15543_s13 + $0xfe0] sm:$0xff] }
 0x45b   : > { %8981 = vmatprep.subr.bf16.mxu0 %v15031_v9  ;;  %10789 = vmatprep.subr.bf16.mxu1 %v15034_v10  ;;  %v15085_v8 = vld [vmem:[#allocation6 + $0x1fc4] ss:$16 sps:$4 sm:$0xff]   ;;  %v15088_v9 = vld [vmem:[#allocation6 + $0x1fcc] ss:$16 sps:$4 sm:$0xff]   ;;  %v1106_v10 = vpack.c.bf16 %v850_v7, %v818_v6 }
 0x45c   : > { %8920 = vmatprep.mubr.bf16.mxu0 %v979_v11  ;;  %10728 = vmatprep.mubr.bf16.mxu1 %v979_v11  ;;  %v373_v11 = vld [vmem:[%s15543_s13 + $0xf8] sm:$0xff]  ;;  %v10973_v6 = vld [vmem:[%s16228_s4 + $0x8] sm:$0xff] }
 0x45d   : > { %v10975_v7 = vld [vmem:[%s16228_s4 + $0x18] sm:$0xff] }
 0x45e   : > { %8982 = vmatpush1.bf16.msra.mxu0 %v15029_v12  ;;  %10790 = vmatpush1.bf16.msra.mxu1 %v15032_v13  ;;  %v405_v12 = vld [vmem:[%s15543_s13 + $0x1f8] sm:$0xff]  ;;  %v15083_v13 = vld [vmem:[#allocation6 + $0x1fc0] ss:$16 sps:$4 sm:$0xff]  }
 0x45f   : > { %8983 = vmatprep.subr.bf16.mxu0 %v15037_v16  ;;  %10791 = vmatprep.subr.bf16.mxu1 %v15040_v17  ;;  %v15094_v16 = vld [vmem:[#allocation6 + $0x1fec] ss:$16 sps:$4 sm:$0xff]   ;;  %v885_v17 = vpack.c.bf16 %v405_v12, %v373_v11 }
 0x460   : > { %v11173_v11 = vld [vmem:[%s16229_s5 + $0x18] sm:$0xff]  ;;  %v11207_v12 = vld [vmem:[#allocation2] sm:$0x1] }
 0x461   : > { %8921 = vmatmul.mubr.bf16.gmra.mrb[12].mxu0 %v978_v18  ;;  %10729 = vmatmul.mubr.bf16.gmra.mrb[12].mxu1 %v978_v18  ;;  %v15089_v18 = vld [vmem:[#allocation6 + $0x1fe0] ss:$16 sps:$4 sm:$0xff]  }
 0x462   : > { %8984 = vmatpush1.bf16.msra.mxu0 %v15035_v21  ;;  %10792 = vmatpush1.bf16.msra.mxu1 %v15038_v22  ;;  %v404_v21 = vld [vmem:[%s15543_s13 + $0x1f0] sm:$0xff]  ;;  %v437_v22 = vld [vmem:[%s15543_s13 + $0x2f8] sm:$0xff] }
 0x463   : > { %8985 = vmatprep.subr.bf16.mxu0 %v15043_v23  ;;  %10793 = vmatprep.subr.bf16.mxu1 %v15046_v24  ;;  %v469_v23 = vld [vmem:[%s15543_s13 + $0x3f8] sm:$0xff]  ;;  %v884_v24 = vpack.c.bf16 %v404_v21, %v372_v20 }
 0x464   : > { %8930 = vmatprep.mubr.bf16.mxu0 %v1011_v25  ;;  %10738 = vmatprep.mubr.bf16.mxu1 %v1011_v25  ;;  %v917_v25 = vpack.c.bf16 %v469_v23, %v437_v22 }
 0x466   : > { %8986 = vmatpush1.bf16.msra.mxu0 %v15041_v26  ;;  %10794 = vmatpush1.bf16.msra.mxu1 %v15044_v27  ;;  %v436_v26 = vld [vmem:[%s15543_s13 + $0x2f0] sm:$0xff] }
 0x467   : > { %8987 = vmatprep.subr.bf16.mxu0 %v15049_v30  ;;  %10795 = vmatprep.subr.bf16.mxu1 %v15052_v31  ;;  %v468_v27 = vld [vmem:[%s15543_s13 + $0x3f0] sm:$0xff]  ;;  %v949_v31 = vpack.c.bf16 %v533_v29, %v501_v28 }
 0x468   : > { %v916_v30 = vpack.c.bf16 %v468_v27, %v436_v26 }
 0x469   : > { %8931 = vmatmul.mubr.bf16.gmra.mrb[16].mxu0 %v1010_v32  ;;  %10739 = vmatmul.mubr.bf16.gmra.mrb[16].mxu1 %v1010_v32  ;;  %v500_v32 = vld [vmem:[%s15543_s13 + $0x4f0] sm:$0xff] }
 0x46a   : > { %8988 = vmatpush1.bf16.msra.mxu0 %v15047_v35  ;;  %10796 = vmatpush1.bf16.msra.mxu1 %v15050_v36  ;;  %v597_v35 = vld [vmem:[%s15543_s13 + $0x7f8] sm:$0xff]  ;;  %v948_v36 = vpack.c.bf16 %v532_v33, %v500_v32 }
 0x46b   : > { %8989 = vmatprep.subr.bf16.mxu0 %v15055_v37  ;;  %10797 = vmatprep.subr.bf16.mxu1 %v15058_v38  ;;  %v981_v37 = vpack.c.bf16 %v597_v35, %v565_v34  ;;  %v564_v38 = vld [vmem:[%s15543_s13 + $0x6f0] sm:$0xff] }
 0x46c   : > { %8940 = vmatprep.mubr.bf16.mxu0 %v1043_v39  ;;  %10748 = vmatprep.mubr.bf16.mxu1 %v1043_v39  ;;  %v596_v39 = vld [vmem:[%s15543_s13 + $0x7f0] sm:$0xff] }
 0x46d   : > { %v980_v42 = vpack.c.bf16 %v596_v39, %v564_v38 }
 0x46e   : > { %8990 = vmatpush1.bf16.msra.mxu0 %v15053_v40  ;;  %10798 = vmatpush1.bf16.msra.mxu1 %v15056_v41  ;;  %v629_v40 = vld [vmem:[%s15543_s13 + $0x8f8] sm:$0xff] }
 0x46f   : > { %8991 = vmatprep.subr.bf16.mxu0 %v15061_v44  ;;  %10799 = vmatprep.subr.bf16.mxu1 %v15064_v45  ;;  %v661_v41 = vld [vmem:[%s15543_s13 + $0x9f8] sm:$0xff]  ;;  %v628_v44 = vld [vmem:[%s15543_s13 + $0x8f0] sm:$0xff] }
 0x470   : > { %v1013_v43 = vpack.c.bf16 %v661_v41, %v629_v40  ;;  %v660_v45 = vld [vmem:[%s15543_s13 + $0x9f0] sm:$0xff] }
 0x471   : > { %8941 = vmatmul.mubr.bf16.gmra.mrb[20].mxu0 %v1042_v46  ;;  %10749 = vmatmul.mubr.bf16.gmra.mrb[20].mxu1 %v1042_v46  ;;  %v693_v46 = vld [vmem:[%s15543_s13 + $0xaf8] sm:$0xff]  ;;  %v1012_v48 = vpack.c.bf16 %v660_v45, %v628_v44 }
 0x472   : > { %8992 = vmatpush1.bf16.msra.mxu0 %v15059_v49  ;;  %10800 = vmatpush1.bf16.msra.mxu1 %v15062_v50  ;;  %v1045_v49 = vpack.c.bf16 %v725_v47, %v693_v46  ;;  %v692_v50 = vld [vmem:[%s15543_s13 + $0xaf0] sm:$0xff] }
 0x473   : > { %8993 = vmatprep.subr.bf16.mxu0 %v15067_v51  ;;  %10801 = vmatprep.subr.bf16.mxu1 %v15070_v52  ;;  %v724_v51 = vld [vmem:[%s15543_s13 + $0xbf0] sm:$0xff]  ;;  %v757_v52 = vld [vmem:[%s15543_s13 + $0xcf8] sm:$0xff] }
 0x474   : > { %8950 = vmatprep.mubr.bf16.mxu0 %v1075_v53  ;;  %10758 = vmatprep.mubr.bf16.mxu1 %v1075_v53  ;;  %v789_v53 = vld [vmem:[%s15543_s13 + $0xdf8] sm:$0xff] }
 0x476   : > { %8994 = vmatpush1.bf16.msra.mxu0 %v15065_v54  ;;  %10802 = vmatpush1.bf16.msra.mxu1 %v15068_v55  ;;  %v1044_v54 = vpack.c.bf16 %v724_v51, %v692_v50  ;;  %v1077_v55 = vpack.c.bf16 %v789_v53, %v757_v52 }
 0x477   : > { %8995 = vmatprep.subr.bf16.mxu0 %v15073_v58  ;;  %10803 = vmatprep.subr.bf16.mxu1 %v15076_v59  ;;  %v821_v58 = vld [vmem:[%s15543_s13 + $0xef8] sm:$0xff] }
 0x478   : > { %v853_v59 = vld [vmem:[%s15543_s13 + $0xff8] sm:$0xff] }
 0x479   : > { %8951 = vmatmul.mubr.bf16.gmra.mrb[24].mxu0 %v1074_v60  ;;  %10759 = vmatmul.mubr.bf16.gmra.mrb[24].mxu1 %v1074_v60  ;;  %v1076_v60 = vpack.c.bf16 %v788_v57, %v756_v56  ;;  %v1109_v61 = vpack.c.bf16 %v853_v59, %v821_v58 }
 0x47a   : > { %8996 = vmatpush1.bf16.msra.mxu0 %v15071_v63  ;;  %10804 = vmatpush1.bf16.msra.mxu1 %v15074_v0  ;;  %v852_v63 = vld [vmem:[%s15543_s13 + $0xff0] sm:$0xff] }
 0x47b   : > { %8997 = vmatprep.subr.bf16.mxu0 %v15079_v1  ;;  %10805 = vmatprep.subr.bf16.mxu1 %v15082_v2  ;;  %v1108_v0 = vpack.c.bf16 %v852_v63, %v820_v62  ;;  %v10957_v1 = vld [vmem:[#allocation9 + $0x8] sm:$0xff]  ;;  %v10959_v2 = vld [vmem:[#allocation9 + $0x18] sm:$0xff] }
 0x47c   : > { %8960 = vmatprep.mubr.bf16.mxu0 %v1107_v3  ;;  %10768 = vmatprep.mubr.bf16.mxu1 %v1107_v3  ;;  %v10972_v3 = vld [vmem:[%s16228_s4] sm:$0xff] }
 0x47e   : > { %8998 = vmatpush1.bf16.msra.mxu0 %v15077_v4  ;;  %10806 = vmatpush1.bf16.msra.mxu1 %v15080_v5  ;;  %v15298_v4 = vmov 0   ;;  %v10974_v5 = vld [vmem:[%s16228_s4 + $0x10] sm:$0xff] }
 0x47f   : > { %8999 = vmatprep.subr.bf16.mxu0 %v15085_v8  ;;  %10807 = vmatprep.subr.bf16.mxu1 %v15088_v9  ;;  %v11170_v8 = vld [vmem:[%s16229_s5] sm:$0xff]  ;;  %v11171_v9 = vld [vmem:[%s16229_s5 + $0x8] sm:$0xff] }
 0x480   : > { %13557 = vset.pattern.permute.xlu0 %v15298_v4  ;;  %13558 = vset.pattern.permute.xlu1 %v15298_v4 }
 0x481   : > { %8961 = vmatmul.mubr.bf16.gmra.mrb[28].mxu0 %v1106_v10  ;;  %10769 = vmatmul.mubr.bf16.gmra.mrb[28].mxu1 %v1106_v10  ;;  %v11172_v10 = vld [vmem:[%s16229_s5 + $0x10] sm:$0xff] }
 0x482   : > { %9000 = vmatpush1.bf16.msra.mxu0 %v15083_v13  ;;  %10808 = vmatpush1.bf16.msra.mxu1 %v15086_v14  ;;  %v2136_v13 = vlaneseq }
 0x483   : > { %9001 = vmatprep.subr.bf16.mxu0 %v15091_v15  ;;  %10809 = vmatprep.subr.bf16.mxu1 %v15094_v16 }
 0x484   : > { %9003 = vmatprep.mubr.bf16.mxu0 %v885_v17  ;;  %10811 = vmatprep.mubr.bf16.mxu1 %v885_v17  ;;  %v16093_v14 = vshrl.u32 %v2136_v13, 7  ;;  %v2134_v17 = vld [vmem:[#allocation8] sm:$0xf] }
 0x485   : > { %10978 = vperm.xlu0 %13557, %v10972_v3   ;;  %10988 = vperm.xlu1 %13558, %v10974_v5  }
 0x486   : > { %9002 = vmatpush1.bf16.msra.mxu0 %v15089_v18  ;;  %10810 = vmatpush1.bf16.msra.mxu1 %v15092_v19  ;;  %v2138_v15 = vsub.s32 0, %v16093_v14  ;;  %v2146_v16 = vsub.s32 2, %v16093_v14  ;;  %v2142_v18 = vsub.s32 1, %v16093_v14  ;;  %v2150_v19 = vsub.s32 3, %v16093_v14 }
 0x488   : > { %v16101_v20 = vrot.slane %v2134_v17, %v2138_v15  ;;  %v16103_v21 = vrot.slane %v2134_v17, %v2146_v16  ;;  %v16105_v22 = vrot.slane %v2134_v17, %v2142_v18  ;;  %v16107_v23 = vrot.slane %v2134_v17, %v2150_v19 }
 0x489   : > { %9004 = vmatmul.mubr.bf16.vlgmr.msra.gmra.mrb[0].mxu0 %v884_v24  ;;  %10812 = vmatmul.mubr.bf16.vlgmr.msra.gmra.mrb[0].mxu1 %v884_v24 }
 0x48a   : > { %9013 = vmatprep.mubr.bf16.mxu0 %v917_v25  ;;  %10821 = vmatprep.mubr.bf16.mxu1 %v917_v25 }
 0x48b   : > { %10983 = vperm.xlu0 %13557, %v10973_v6   ;;  %10993 = vperm.xlu1 %13558, %v10975_v7  }
 0x48f   : > { %11176 = vperm.xlu0 %13557, %v11170_v8   ;;  %11181 = vperm.xlu1 %13558, %v11171_v9  }
 0x491   : > { %9014 = vmatmul.mubr.bf16.gmra.mrb[4].mxu0 %v916_v30  ;;  %10822 = vmatmul.mubr.bf16.gmra.mrb[4].mxu1 %v916_v30 }
 0x492   : > { %9023 = vmatprep.mubr.bf16.mxu0 %v949_v31  ;;  %10831 = vmatprep.mubr.bf16.mxu1 %v949_v31 }
 0x493   : > { %11186 = vperm.xlu0 %13557, %v11172_v10   ;;  %11191 = vperm.xlu1 %13558, %v11173_v11  }
 0x497   : > { %11210 = vperm.xlu0 %13557, %v11207_v12  }
 0x499   : > { %9024 = vmatmul.mubr.bf16.gmra.mrb[8].mxu0 %v948_v36  ;;  %10832 = vmatmul.mubr.bf16.gmra.mrb[8].mxu1 %v948_v36 }
 0x49a   : > { %9033 = vmatprep.mubr.bf16.mxu0 %v981_v37  ;;  %10841 = vmatprep.mubr.bf16.mxu1 %v981_v37 }
 0x4a1   : > { %9034 = vmatmul.mubr.bf16.gmra.mrb[12].mxu0 %v980_v42  ;;  %10842 = vmatmul.mubr.bf16.gmra.mrb[12].mxu1 %v980_v42 }
 0x4a2   : > { %9043 = vmatprep.mubr.bf16.mxu0 %v1013_v43  ;;  %10851 = vmatprep.mubr.bf16.mxu1 %v1013_v43 }
 0x4a9   : > { %9044 = vmatmul.mubr.bf16.gmra.mrb[16].mxu0 %v1012_v48  ;;  %10852 = vmatmul.mubr.bf16.gmra.mrb[16].mxu1 %v1012_v48 }
 0x4aa   : > { %9053 = vmatprep.mubr.bf16.mxu0 %v1045_v49  ;;  %10861 = vmatprep.mubr.bf16.mxu1 %v1045_v49 }
 0x4b1   : > { %9054 = vmatmul.mubr.bf16.gmra.mrb[20].mxu0 %v1044_v54  ;;  %10862 = vmatmul.mubr.bf16.gmra.mrb[20].mxu1 %v1044_v54 }
 0x4b2   : > { %9063 = vmatprep.mubr.bf16.mxu0 %v1077_v55  ;;  %10871 = vmatprep.mubr.bf16.mxu1 %v1077_v55 }
 0x4b9   : > { %9064 = vmatmul.mubr.bf16.gmra.mrb[24].mxu0 %v1076_v60  ;;  %10872 = vmatmul.mubr.bf16.gmra.mrb[24].mxu1 %v1076_v60 }
 0x4ba   : > { %9073 = vmatprep.mubr.bf16.mxu0 %v1109_v61  ;;  %10881 = vmatprep.mubr.bf16.mxu1 %v1109_v61 }
 0x4c1   : > { %9074 = vmatmul.mubr.bf16.gmra.mrb[28].mxu0 %v1108_v0  ;;  %10882 = vmatmul.mubr.bf16.gmra.mrb[28].mxu1 %v1108_v0 }
 0x4c2   : > { %11060 = vmatprep.mubr.f32.mxu1 %v10957_v1  ;;  %11145 = vmatprep.mubr.f32.mxu0 %v10959_v2 }
 0x55c   : > { %v9005_v24 = vpop.f32.mrb[0].mxu0  ;;  %v10813_v25 = vpop.f32.mrb[0].mxu1 }
 0x55d   : > { %v12442_v26 = vadd.f32 %v9005_v24, %v16101_v20  ;;  %v12474_v27 = vadd.f32 %v10813_v25, %v16103_v21  ;;  %v9007_v28 = vpop.f32.mrb[1].mxu0  ;;  %v10815_v29 = vpop.f32.mrb[1].mxu1 }
 0x55e   : > { %v12443_v30 = vadd.f32 %v9007_v28, %v16105_v22  ;;  %v12475_v31 = vadd.f32 %v10815_v29, %v16107_v23  ;;  %v9009_v32 = vpop.f32.mrb[2].mxu0  ;;  %v10817_v33 = vpop.f32.mrb[2].mxu1 }
 0x55f   : > { %v12444_v34 = vadd.f32 %v9009_v32, %v16101_v20  ;;  %v12476_v35 = vadd.f32 %v10817_v33, %v16103_v21  ;;  %v9011_v36 = vpop.f32.mrb[3].mxu0  ;;  %v10819_v37 = vpop.f32.mrb[3].mxu1  ;;  %v10892_v40 = vmax.f32 %v12442_v26, 0.0  ;;  %v10894_v41 = vmax.f32 %v12474_v27, 0.0 }
 0x560   : > { %v12445_v38 = vadd.f32 %v9011_v36, %v16105_v22  ;;  %v12477_v39 = vadd.f32 %v10819_v37, %v16107_v23  ;;  %v10893_v44 = vmax.f32 %v12443_v30, 0.0  ;;  %v10895_v45 = vmax.f32 %v12475_v31, 0.0 }
 0x561   : > { %v10896_v42 = vmax.f32 %v12444_v34, 0.0  ;;  %v10898_v43 = vmax.f32 %v12476_v35, 0.0 }
 0x562   : > { %v10897_v46 = vmax.f32 %v12445_v38, 0.0  ;;  %v10899_v47 = vmax.f32 %v12477_v39, 0.0 }
 0x563   : > { %v12380_v48 = vpack.c.bf16 %v10896_v42, %v10892_v40  ;;  %v12412_v49 = vpack.c.bf16 %v10898_v43, %v10894_v41 }
 0x564   : > { %v12378_v50 = vpack.c.bf16 %v10897_v46, %v10893_v44  ;;  %v12410_v51 = vpack.c.bf16 %v10899_v47, %v10895_v45  ;;  %v9015_v52 = vpop.f32.mrb[4].mxu0  ;;  %v10823_v53 = vpop.f32.mrb[4].mxu1 }
 0x565   : > { %v12446_v54 = vadd.f32 %v9015_v52, %v16101_v20  ;;  %v12478_v55 = vadd.f32 %v10823_v53, %v16103_v21  ;;  %v9017_v56 = vpop.f32.mrb[5].mxu0  ;;  %v10825_v57 = vpop.f32.mrb[5].mxu1 }
 0x566   : > { %v12447_v58 = vadd.f32 %v9017_v56, %v16105_v22  ;;  %v12479_v59 = vadd.f32 %v10825_v57, %v16107_v23  ;;  %v9019_v60 = vpop.f32.mrb[6].mxu0  ;;  %v10827_v61 = vpop.f32.mrb[6].mxu1  ;;  %12379 = vmatprep.subr.bf16.mxu1 %v12378_v50  ;;  %12411 = vmatprep.subr.bf16.mxu0 %v12410_v51 }
 0x567   : > { %v12448_v62 = vadd.f32 %v9019_v60, %v16101_v20  ;;  %v12480_v63 = vadd.f32 %v10827_v61, %v16103_v21  ;;  %v9021_v0 = vpop.f32.mrb[7].mxu0  ;;  %v10829_v1 = vpop.f32.mrb[7].mxu1  ;;  %12381 = vmatpush1.bf16.xpose.msra.mxu1 %v12380_v48  ;;  %12413 = vmatpush1.bf16.xpose.msra.mxu0 %v12412_v49  ;;  %v10900_v4 = vmax.f32 %v12446_v54, 0.0  ;;  %v10902_v5 = vmax.f32 %v12478_v55, 0.0 }
 0x568   : > { %v12449_v2 = vadd.f32 %v9021_v0, %v16105_v22  ;;  %v12481_v3 = vadd.f32 %v10829_v1, %v16107_v23  ;;  %v10901_v8 = vmax.f32 %v12447_v58, 0.0  ;;  %v10903_v9 = vmax.f32 %v12479_v59, 0.0 }
 0x569   : > { %v10904_v6 = vmax.f32 %v12448_v62, 0.0  ;;  %v10906_v7 = vmax.f32 %v12480_v63, 0.0 }
 0x56a   : > { %v10905_v10 = vmax.f32 %v12449_v2, 0.0  ;;  %v10907_v11 = vmax.f32 %v12481_v3, 0.0 }
 0x56b   : > { %v12384_v12 = vpack.c.bf16 %v10904_v6, %v10900_v4  ;;  %v12416_v13 = vpack.c.bf16 %v10906_v7, %v10902_v5 }
 0x56c   : > { %v12382_v16 = vpack.c.bf16 %v10905_v10, %v10901_v8  ;;  %v12414_v17 = vpack.c.bf16 %v10907_v11, %v10903_v9  ;;  %v9025_v18 = vpop.f32.mrb[8].mxu0  ;;  %v10833_v19 = vpop.f32.mrb[8].mxu1 }
 0x56d   : > { %v12450_v24 = vadd.f32 %v9025_v18, %v16101_v20  ;;  %v12482_v25 = vadd.f32 %v10833_v19, %v16103_v21  ;;  %v9027_v26 = vpop.f32.mrb[9].mxu0  ;;  %v10835_v27 = vpop.f32.mrb[9].mxu1 }
 0x56e   : > { %v12451_v28 = vadd.f32 %v9027_v26, %v16105_v22  ;;  %v12483_v29 = vadd.f32 %v10835_v27, %v16107_v23  ;;  %v9029_v30 = vpop.f32.mrb[10].mxu0  ;;  %v10837_v31 = vpop.f32.mrb[10].mxu1  ;;  %12383 = vmatprep.subr.bf16.mxu1 %v12382_v16  ;;  %12415 = vmatprep.subr.bf16.mxu0 %v12414_v17 }
 0x56f   : > { %v12452_v32 = vadd.f32 %v9029_v30, %v16101_v20  ;;  %v12484_v33 = vadd.f32 %v10837_v31, %v16103_v21  ;;  %v9031_v34 = vpop.f32.mrb[11].mxu0  ;;  %v10839_v35 = vpop.f32.mrb[11].mxu1  ;;  %12385 = vmatpush1.bf16.xpose.msra.mxu1 %v12384_v12  ;;  %12417 = vmatpush1.bf16.xpose.msra.mxu0 %v12416_v13  ;;  %v10908_v38 = vmax.f32 %v12450_v24, 0.0  ;;  %v10910_v39 = vmax.f32 %v12482_v25, 0.0 }
 0x570   : > { %v12453_v36 = vadd.f32 %v9031_v34, %v16105_v22  ;;  %v12485_v37 = vadd.f32 %v10839_v35, %v16107_v23  ;;  %v10909_v42 = vmax.f32 %v12451_v28, 0.0  ;;  %v10911_v43 = vmax.f32 %v12483_v29, 0.0 }
 0x571   : > { %v10912_v40 = vmax.f32 %v12452_v32, 0.0  ;;  %v10914_v41 = vmax.f32 %v12484_v33, 0.0 }
 0x572   : > { %v10913_v44 = vmax.f32 %v12453_v36, 0.0  ;;  %v10915_v45 = vmax.f32 %v12485_v37, 0.0 }
 0x573   : > { %v12388_v46 = vpack.c.bf16 %v10912_v40, %v10908_v38  ;;  %v12420_v47 = vpack.c.bf16 %v10914_v41, %v10910_v39 }
 0x574   : > { %v12386_v48 = vpack.c.bf16 %v10913_v44, %v10909_v42  ;;  %v12418_v49 = vpack.c.bf16 %v10915_v45, %v10911_v43  ;;  %v9035_v50 = vpop.f32.mrb[12].mxu0  ;;  %v10843_v51 = vpop.f32.mrb[12].mxu1 }
 0x575   : > { %v12454_v52 = vadd.f32 %v9035_v50, %v16101_v20  ;;  %v12486_v53 = vadd.f32 %v10843_v51, %v16103_v21  ;;  %v9037_v54 = vpop.f32.mrb[13].mxu0  ;;  %v10845_v55 = vpop.f32.mrb[13].mxu1 }
 0x576   : > { %v12455_v56 = vadd.f32 %v9037_v54, %v16105_v22  ;;  %v12487_v57 = vadd.f32 %v10845_v55, %v16107_v23  ;;  %v9039_v58 = vpop.f32.mrb[14].mxu0  ;;  %v10847_v59 = vpop.f32.mrb[14].mxu1  ;;  %12387 = vmatprep.subr.bf16.mxu1 %v12386_v48  ;;  %12419 = vmatprep.subr.bf16.mxu0 %v12418_v49 }
 0x577   : > { %v12456_v60 = vadd.f32 %v9039_v58, %v16101_v20  ;;  %v12488_v61 = vadd.f32 %v10847_v59, %v16103_v21  ;;  %v9041_v62 = vpop.f32.mrb[15].mxu0  ;;  %v10849_v63 = vpop.f32.mrb[15].mxu1  ;;  %12389 = vmatpush1.bf16.xpose.msra.mxu1 %v12388_v46  ;;  %12421 = vmatpush1.bf16.xpose.msra.mxu0 %v12420_v47  ;;  %v10916_v2 = vmax.f32 %v12454_v52, 0.0  ;;  %v10918_v3 = vmax.f32 %v12486_v53, 0.0 }
 0x578   : > { %v12457_v0 = vadd.f32 %v9041_v62, %v16105_v22  ;;  %v12489_v1 = vadd.f32 %v10849_v63, %v16107_v23  ;;  %v10917_v6 = vmax.f32 %v12455_v56, 0.0  ;;  %v10919_v7 = vmax.f32 %v12487_v57, 0.0 }
 0x579   : > { %v10920_v4 = vmax.f32 %v12456_v60, 0.0  ;;  %v10922_v5 = vmax.f32 %v12488_v61, 0.0 }
 0x57a   : > { %v10921_v8 = vmax.f32 %v12457_v0, 0.0  ;;  %v10923_v9 = vmax.f32 %v12489_v1, 0.0 }
 0x57b   : > { %v12392_v10 = vpack.c.bf16 %v10920_v4, %v10916_v2  ;;  %v12424_v11 = vpack.c.bf16 %v10922_v5, %v10918_v3 }
 0x57c   : > { %v12390_v12 = vpack.c.bf16 %v10921_v8, %v10917_v6  ;;  %v12422_v13 = vpack.c.bf16 %v10923_v9, %v10919_v7  ;;  %v9045_v16 = vpop.f32.mrb[16].mxu0  ;;  %v10853_v17 = vpop.f32.mrb[16].mxu1 }
 0x57d   : > { %v12458_v18 = vadd.f32 %v9045_v16, %v16101_v20  ;;  %v12490_v19 = vadd.f32 %v10853_v17, %v16103_v21  ;;  %v9047_v24 = vpop.f32.mrb[17].mxu0  ;;  %v10855_v25 = vpop.f32.mrb[17].mxu1 }
 0x57e   : > { %v12459_v26 = vadd.f32 %v9047_v24, %v16105_v22  ;;  %v12491_v27 = vadd.f32 %v10855_v25, %v16107_v23  ;;  %v9049_v28 = vpop.f32.mrb[18].mxu0  ;;  %v10857_v29 = vpop.f32.mrb[18].mxu1  ;;  %12391 = vmatprep.subr.bf16.mxu1 %v12390_v12  ;;  %12423 = vmatprep.subr.bf16.mxu0 %v12422_v13 }
 0x57f   : > { %v12460_v30 = vadd.f32 %v9049_v28, %v16101_v20  ;;  %v12492_v31 = vadd.f32 %v10857_v29, %v16103_v21  ;;  %v9051_v32 = vpop.f32.mrb[19].mxu0  ;;  %v10859_v33 = vpop.f32.mrb[19].mxu1  ;;  %12393 = vmatpush1.bf16.xpose.msra.mxu1 %v12392_v10  ;;  %12425 = vmatpush1.bf16.xpose.msra.mxu0 %v12424_v11  ;;  %v10924_v36 = vmax.f32 %v12458_v18, 0.0  ;;  %v10926_v37 = vmax.f32 %v12490_v19, 0.0 }
 0x580   : > { %v12461_v34 = vadd.f32 %v9051_v32, %v16105_v22  ;;  %v12493_v35 = vadd.f32 %v10859_v33, %v16107_v23  ;;  %v10925_v40 = vmax.f32 %v12459_v26, 0.0  ;;  %v10927_v41 = vmax.f32 %v12491_v27, 0.0 }
 0x581   : > { %v10928_v38 = vmax.f32 %v12460_v30, 0.0  ;;  %v10930_v39 = vmax.f32 %v12492_v31, 0.0 }
 0x582   : > { %v10929_v42 = vmax.f32 %v12461_v34, 0.0  ;;  %v10931_v43 = vmax.f32 %v12493_v35, 0.0 }
 0x583   : > { %v12396_v44 = vpack.c.bf16 %v10928_v38, %v10924_v36  ;;  %v12428_v45 = vpack.c.bf16 %v10930_v39, %v10926_v37 }
 0x584   : > { %v12394_v46 = vpack.c.bf16 %v10929_v42, %v10925_v40  ;;  %v12426_v47 = vpack.c.bf16 %v10931_v43, %v10927_v41  ;;  %v9055_v48 = vpop.f32.mrb[20].mxu0  ;;  %v10863_v49 = vpop.f32.mrb[20].mxu1 }
 0x585   : > { %v12462_v50 = vadd.f32 %v9055_v48, %v16101_v20  ;;  %v12494_v51 = vadd.f32 %v10863_v49, %v16103_v21  ;;  %v9057_v52 = vpop.f32.mrb[21].mxu0  ;;  %v10865_v53 = vpop.f32.mrb[21].mxu1 }
 0x586   : > { %v12463_v54 = vadd.f32 %v9057_v52, %v16105_v22  ;;  %v12495_v55 = vadd.f32 %v10865_v53, %v16107_v23  ;;  %v9059_v56 = vpop.f32.mrb[22].mxu0  ;;  %v10867_v57 = vpop.f32.mrb[22].mxu1  ;;  %12395 = vmatprep.subr.bf16.mxu1 %v12394_v46  ;;  %12427 = vmatprep.subr.bf16.mxu0 %v12426_v47 }
 0x587   : > { %v12464_v58 = vadd.f32 %v9059_v56, %v16101_v20  ;;  %v12496_v59 = vadd.f32 %v10867_v57, %v16103_v21  ;;  %v9061_v60 = vpop.f32.mrb[23].mxu0  ;;  %v10869_v61 = vpop.f32.mrb[23].mxu1  ;;  %12397 = vmatpush1.bf16.xpose.msra.mxu1 %v12396_v44  ;;  %12429 = vmatpush1.bf16.xpose.msra.mxu0 %v12428_v45  ;;  %v10932_v0 = vmax.f32 %v12462_v50, 0.0  ;;  %v10934_v1 = vmax.f32 %v12494_v51, 0.0 }
 0x588   : > { %v12465_v62 = vadd.f32 %v9061_v60, %v16105_v22  ;;  %v12497_v63 = vadd.f32 %v10869_v61, %v16107_v23  ;;  %v10933_v4 = vmax.f32 %v12463_v54, 0.0  ;;  %v10935_v5 = vmax.f32 %v12495_v55, 0.0 }
 0x589   : > { %v10936_v2 = vmax.f32 %v12464_v58, 0.0  ;;  %v10938_v3 = vmax.f32 %v12496_v59, 0.0 }
 0x58a   : > { %v10937_v6 = vmax.f32 %v12465_v62, 0.0  ;;  %v10939_v7 = vmax.f32 %v12497_v63, 0.0 }
 0x58b   : > { %v12400_v8 = vpack.c.bf16 %v10936_v2, %v10932_v0  ;;  %v12432_v9 = vpack.c.bf16 %v10938_v3, %v10934_v1 }
 0x58c   : > { %v12398_v10 = vpack.c.bf16 %v10937_v6, %v10933_v4  ;;  %v12430_v11 = vpack.c.bf16 %v10939_v7, %v10935_v5  ;;  %v9065_v12 = vpop.f32.mrb[24].mxu0  ;;  %v10873_v13 = vpop.f32.mrb[24].mxu1 }
 0x58d   : > { %v12466_v16 = vadd.f32 %v9065_v12, %v16101_v20  ;;  %v12498_v17 = vadd.f32 %v10873_v13, %v16103_v21  ;;  %v9067_v18 = vpop.f32.mrb[25].mxu0  ;;  %v10875_v19 = vpop.f32.mrb[25].mxu1  ;;  %v10965_v12 = vld [vmem:[#allocation9 + $0x48] sm:$0xff]  ;;  %v10967_v13 = vld [vmem:[#allocation9 + $0x58] sm:$0xff] }
 0x58e   : > { %v12467_v24 = vadd.f32 %v9067_v18, %v16105_v22  ;;  %v12499_v25 = vadd.f32 %v10875_v19, %v16107_v23  ;;  %v9069_v26 = vpop.f32.mrb[26].mxu0  ;;  %v10877_v27 = vpop.f32.mrb[26].mxu1  ;;  %12399 = vmatprep.subr.bf16.mxu1 %v12398_v10  ;;  %12431 = vmatprep.subr.bf16.mxu0 %v12430_v11  ;;  %v10960_v10 = vld [vmem:[#allocation9 + $0x20] sm:$0xff]  ;;  %v10962_v11 = vld [vmem:[#allocation9 + $0x30] sm:$0xff]  ;;  %v10969_v18 = vld [vmem:[#allocation9 + $0x68] sm:$0xff] }
 0x58f   : > { %v12468_v28 = vadd.f32 %v9069_v26, %v16101_v20  ;;  %v12500_v29 = vadd.f32 %v10877_v27, %v16103_v21  ;;  %v9071_v30 = vpop.f32.mrb[27].mxu0  ;;  %v10879_v31 = vpop.f32.mrb[27].mxu1  ;;  %12401 = vmatpush1.bf16.xpose.msra.mxu1 %v12400_v8  ;;  %12433 = vmatpush1.bf16.xpose.msra.mxu0 %v12432_v9  ;;  %v10940_v34 = vmax.f32 %v12466_v16, 0.0  ;;  %v10942_v35 = vmax.f32 %v12498_v17, 0.0  ;;  %v10956_v8 = vld [vmem:[#allocation9] sm:$0xff]  ;;  %v10961_v9 = vld [vmem:[#allocation9 + $0x28] sm:$0xff] }
 0x590   : > { %v12469_v32 = vadd.f32 %v9071_v30, %v16105_v22  ;;  %v12501_v33 = vadd.f32 %v10879_v31, %v16107_v23  ;;  %v10941_v38 = vmax.f32 %v12467_v24, 0.0  ;;  %v10943_v39 = vmax.f32 %v12499_v25, 0.0  ;;  %v10964_v16 = vld [vmem:[#allocation9 + $0x40] sm:$0xff]  ;;  %v10966_v17 = vld [vmem:[#allocation9 + $0x50] sm:$0xff]  ;;  %v10971_v19 = vld [vmem:[#allocation9 + $0x78] sm:$0xff]  ;;  %v10979_v26 = vpop.permute.xlu0 %10978  ;;  %v10989_v27 = vpop.permute.xlu1 %10988 }
 0x591   : > { %v10944_v36 = vmax.f32 %v12468_v28, 0.0  ;;  %v10946_v37 = vmax.f32 %v12500_v29, 0.0  ;;  %v10968_v24 = vld [vmem:[#allocation9 + $0x60] sm:$0xff]  ;;  %v10970_v25 = vld [vmem:[#allocation9 + $0x70] sm:$0xff] }
 0x592   : > { %v10945_v40 = vmax.f32 %v12469_v32, 0.0  ;;  %v10947_v41 = vmax.f32 %v12501_v33, 0.0 }
 0x593   : > { %v12404_v42 = vpack.c.bf16 %v10944_v36, %v10940_v34  ;;  %v12436_v43 = vpack.c.bf16 %v10946_v37, %v10942_v35 }
 0x594   : > { %v12402_v44 = vpack.c.bf16 %v10945_v40, %v10941_v38  ;;  %v12434_v45 = vpack.c.bf16 %v10947_v41, %v10943_v39  ;;  %v9075_v46 = vpop.f32.mrb[28].mxu0  ;;  %v10883_v47 = vpop.f32.mrb[28].mxu1 }
 0x595   : > { %v12470_v48 = vadd.f32 %v9075_v46, %v16101_v20  ;;  %v12502_v49 = vadd.f32 %v10883_v47, %v16103_v21  ;;  %v9077_v50 = vpop.f32.mrb[29].mxu0  ;;  %v10885_v51 = vpop.f32.mrb[29].mxu1 }
 0x596   : > { %v12471_v52 = vadd.f32 %v9077_v50, %v16105_v22  ;;  %v12503_v53 = vadd.f32 %v10885_v51, %v16107_v23  ;;  %v9079_v54 = vpop.f32.mrb[30].mxu0  ;;  %v10887_v55 = vpop.f32.mrb[30].mxu1  ;;  %12403 = vmatprep.subr.bf16.mxu1 %v12402_v44  ;;  %12435 = vmatprep.subr.bf16.mxu0 %v12434_v45 }
 0x597   : > { %v12472_v56 = vadd.f32 %v9079_v54, %v16101_v20  ;;  %v12504_v57 = vadd.f32 %v10887_v55, %v16103_v21  ;;  %v9081_v58 = vpop.f32.mrb[31].mxu0  ;;  %v10889_v59 = vpop.f32.mrb[31].mxu1  ;;  %12405 = vmatpush1.bf16.xpose.msra.mxu1 %v12404_v42  ;;  %12437 = vmatpush1.bf16.xpose.msra.mxu0 %v12436_v43  ;;  %v10948_v62 = vmax.f32 %v12470_v48, 0.0  ;;  %v10950_v63 = vmax.f32 %v12502_v49, 0.0 }
 0x598   : > { %v12473_v60 = vadd.f32 %v9081_v58, %v16105_v22  ;;  %v12505_v61 = vadd.f32 %v10889_v59, %v16107_v23  ;;  %v10949_v2 = vmax.f32 %v12471_v52, 0.0  ;;  %v10951_v3 = vmax.f32 %v12503_v53, 0.0  ;;  %v10958_v22 = vld [vmem:[#allocation9 + $0x10] sm:$0xff]  ;;  %v10963_v23 = vld [vmem:[#allocation9 + $0x38] sm:$0xff]  ;;  %v10984_v28 = vpop.permute.xlu0 %10983  ;;  %v10994_v34 = vpop.permute.xlu1 %10993 }
 0x599   : > { %v10952_v0 = vmax.f32 %v12472_v56, 0.0  ;;  %v10954_v1 = vmax.f32 %v12504_v57, 0.0 }
 0x59a   : > { %v10953_v4 = vmax.f32 %v12473_v60, 0.0  ;;  %v10955_v5 = vmax.f32 %v12505_v61, 0.0 }
 0x59b   : > { %v12408_v6 = vpack.c.bf16 %v10952_v0, %v10948_v62  ;;  %v12440_v20 = vpack.c.bf16 %v10954_v1, %v10950_v63 }
 0x59c   : > { %v12406_v7 = vpack.c.bf16 %v10953_v4, %v10949_v2  ;;  %v12438_v21 = vpack.c.bf16 %v10955_v5, %v10951_v3  ;;  %v11177_v41 = vpop.permute.xlu0 %11176  ;;  %v11182_v50 = vpop.permute.xlu1 %11181 }
 0x59e   : > { %12407 = vmatprep.subr.bf16.mxu1 %v12406_v7  ;;  %12439 = vmatprep.subr.bf16.mxu0 %v12438_v21 }
 0x59f   : > { %12409 = vmatpush1.bf16.xpose.msra.mxu1 %v12408_v6  ;;  %12441 = vmatpush1.bf16.xpose.msra.mxu0 %v12440_v20 }
 0x5a0   : > { %v11187_v61 = vpop.permute.xlu0 %11186  ;;  %v11192_v2 = vpop.permute.xlu1 %11191 }
 0x5a4   : > { %v11211_v21 = vpop.permute.xlu0 %11210 }
 0x5a6   : > { %11061 = vmatmul.mubr.f32.vlgmr.msra.gmra.mrb[32].mxu1 %v10956_v8  ;;  %11146 = vmatmul.mubr.f32.vlgmr.msra.gmra.mrb[32].mxu0 %v10958_v22  ;;  %v11216_v22 = vrot.slane %v11211_v21, %v2138_v15 }
 0x5a7   : > { %11065 = vmatprep.mubr.f32.mxu1 %v10961_v9  ;;  %11150 = vmatprep.mubr.f32.mxu0 %v10963_v23 }
 0x5aa   : > { %11066 = vmatmul.mubr.f32.gmra.mrb[34].mxu1 %v10960_v10  ;;  %11151 = vmatmul.mubr.f32.gmra.mrb[34].mxu0 %v10962_v11 }
 0x5ab   : > { %11070 = vmatprep.mubr.f32.mxu1 %v10965_v12  ;;  %11155 = vmatprep.mubr.f32.mxu0 %v10967_v13 }
 0x5ae   : > { %11071 = vmatmul.mubr.f32.gmra.mrb[36].mxu1 %v10964_v16  ;;  %11156 = vmatmul.mubr.f32.gmra.mrb[36].mxu0 %v10966_v17 }
 0x5af   : > { %11075 = vmatprep.mubr.f32.mxu1 %v10969_v18  ;;  %11160 = vmatprep.mubr.f32.mxu0 %v10971_v19 }
 0x5b2   : > { %11076 = vmatmul.mubr.f32.gmra.mrb[38].mxu1 %v10968_v24  ;;  %11161 = vmatmul.mubr.f32.gmra.mrb[38].mxu0 %v10970_v25 }
 0x679   : > { %v11062_v29 = vpop.f32.mrb[32].mxu1  ;;  %v11147_v30 = vpop.f32.mrb[32].mxu0 }
 0x67a   : > { %v11063_v31 = vadd.f32 %v11062_v29, %v10979_v26  ;;  %v11064_v32 = vpop.f32.mrb[33].mxu1  ;;  %v11149_v33 = vpop.f32.mrb[33].mxu0 }
 0x67c   : > { %v11148_v35 = vadd.f32 %v11147_v30, %v11063_v31 }
 0x67d   : > { %v11067_v36 = vpop.f32.mrb[34].mxu1  ;;  %v11152_v37 = vpop.f32.mrb[34].mxu0 }
 0x67e   : > { %v11068_v38 = vadd.f32 %v11067_v36, %v10984_v28  ;;  %v11069_v39 = vpop.f32.mrb[35].mxu1  ;;  %v11154_v40 = vpop.f32.mrb[35].mxu0  ;;  %v11166_v42 = vmax.f32 %v11148_v35, 0.0 }
 0x680   : > { %v11153_v43 = vadd.f32 %v11152_v37, %v11068_v38  ;;  %v11194_v51 = vmul.f32 %v11177_v41, %v11166_v42 }
 0x681   : > { %v11072_v44 = vpop.f32.mrb[36].mxu1  ;;  %v11157_v45 = vpop.f32.mrb[36].mxu0 }
 0x682   : > { %v11167_v46 = vmax.f32 %v11153_v43, 0.0  ;;  %v11073_v47 = vadd.f32 %v11072_v44, %v10989_v27  ;;  %v11074_v48 = vpop.f32.mrb[37].mxu1  ;;  %v11159_v49 = vpop.f32.mrb[37].mxu0 }
 0x684   : > { %v11195_v52 = vmul.f32 %v11182_v50, %v11167_v46  ;;  %v11158_v53 = vadd.f32 %v11157_v45, %v11073_v47 }
 0x685   : > { %v11077_v54 = vpop.f32.mrb[38].mxu1  ;;  %v11162_v55 = vpop.f32.mrb[38].mxu0 }
 0x686   : > { %v11198_v56 = vadd.f32 %v11195_v52, %v11194_v51  ;;  %v11168_v57 = vmax.f32 %v11158_v53, 0.0  ;;  %v11078_v58 = vadd.f32 %v11077_v54, %v10994_v34  ;;  %v11079_v59 = vpop.f32.mrb[39].mxu1  ;;  %v11164_v60 = vpop.f32.mrb[39].mxu0 }
 0x688   : > { %v11196_v62 = vmul.f32 %v11187_v61, %v11168_v57  ;;  %v11163_v63 = vadd.f32 %v11162_v55, %v11078_v58 }
 0x68a   : > { %v11199_v0 = vadd.f32 %v11198_v56, %v11196_v62  ;;  %v11169_v1 = vmax.f32 %v11163_v63, 0.0 }
 0x68c   : > { %v11197_v3 = vmul.f32 %v11192_v2, %v11169_v1 }
 0x68e   : > { %v11200_v4 = vadd.f32 %v11199_v0, %v11197_v3 }
 0x690   : > { %v11201_v5 = vrot.slane %v11200_v4, 4 }
 0x692   : > { %v11202_v6 = vadd.f32 %v11201_v5, %v11200_v4 }
 0x694   : > { %v11203_v20 = vrot.slane %v11202_v6, 2 }
 0x696   : > { %v11204_v7 = vadd.f32 %v11203_v20, %v11202_v6 }
 0x698   : > { %v11205_v8 = vrot.slane %v11204_v7, 1 }
 0x69a   : > { %v11206_v9 = vadd.f32 %v11205_v8, %v11204_v7 }
 0x69c   : > { %v11217_v23 = vadd.f32 %v11216_v22, %v11206_v9 }
 0x69e   : > { %v12372_v10 = vmul.f32 -1.442695, %v11217_v23 }
 0x6a0   : > { %15095 = vpow2.f32 %v12372_v10 }
 0x6aa   : > { %v15096_v11 = vpop.eup %15095 }
 0x6ab   : > { %v11221_v12 = vadd.f32 1.0, %v15096_v11 }
 0x6ad   : > { %15097 = vrcp.f32 %v11221_v12 }
 0x6b7   : > { %v15098_v14 = vpop.eup %15097 }
 0x6b8   : > { %11224 = vst [vmem:[%s340_s30] sm:$0x1] %v15098_v14 }
 0x6b9   : > { %15226 = shalt.err (!%p15223_p4)
}
 0x6ba   : > { %s15227_s17 = scalar_lea.hbm %s16180_s15, 16  ;;  %s15231_s8 = scalar_lea.hbm %s16231_s7, 32 }
 0x6bb   : > { %p15228_p9 = scmp.ne.s32.totalorder %s16180_s15, %s15227_s17  ;;  %p15232_p8 = scmp.lt.u32.totalorder %s16180_s15, %s16231_s7 }
 0x6bc   : > { %p15233_p13 = scmp.lt.u32.totalorder %s15231_s8, %s15227_s17  ;;  %p15235_p10 = scmp.lt.u32.totalorder %s15227_s17, %s16180_s15 }
 0x6bd   : > { %p15229_p0 = pnand %p15228_p9, %p15490_p5 }
 0x6be   : > { %p15234_p6 = por %p15233_p13, %p15232_p8 }
 0x6bf   : > { %p15230_p11 = pneg %p15229_p0 }
 0x6c0   : > { %p15236_p3 = por %p15235_p10, %p15234_p6 }
 0x6c2   : > { %p15237_p7 = pnand %p15236_p3, %p15230_p11 }
 0x6c4   : > { %15240 = shalt.err (!%p15237_p7)
}
 0x6c5   : > { %13488 = dma.vmem_to_hbm [thread:$0]  (%p15490_p5), %s16182_s23, 16, %s16180_s15, %s11226_s19  }
 0x6c6 PF: > { %s11250_s30 = sand.u32 1, %s15275_s26   ;;  %p16249_p12 = scmp.ne.s32.totalorder %s16236_s9, 0 }
 0x6c7   : > { %p16250_p1 = scmp.ge.s32.totalorder %s15287_s29, 2  ;;  %s11251_s12 = scalar_lea.sflag [#allocation5], %s11250_s30 }
 0x6c9   : > { %p13505_p2 = pnand %p16250_p1, %p16249_p12 }
 0x6cb   : > { %15270 = dma.done.wait (!%p13505_p2), %s11251_s12, 16  }
 0x6cc   : > { %15272 = vsyncadd (!%p13505_p2), %s11251_s12, 4294967280  ;;  %p24_p4 = scmp.ge.s32.totalorder %s15476_s16, 4   ;;  %s16251_s26 = smov %s15279_s27 }
 0x6cd   : > { %s16252_s27 = smov %s15283_s28  ;;  %s16253_s28 = smov %s15486_s20 }
 0x6ce   : > { %s16254_s29 = smov %s15476_s16  ;;  %26 = sbr.rel (!%p24_p4) target bundleno = 10 (0xa), region = 105 }
 0x6d5   :  { %11255 = vsyncpa [#allocation4], 1 }
 0x6d6   :  { %11257 = vsyncpa [#allocation4 + $0x1], 1 }
 0x6d7   :  { %11258 = vsyncpa [#allocation7], 1 }
 0x6d8   :  { %11259 = vsyncpa [#allocation10], 1 }
 0x6d9   :  { %11260 = vsyncpa [#allocation5], 1 }
 0x6da   :  { %11262 = vsyncpa [#allocation5 + $0x1], 1 }

</bundles_post_ra>
